<compile_context>
chip_gen: v7x
topology: tpu7x:2x2x1
jax: 0.10.0
libtpu: 0.0.40
codegen_flags: <defaults>
</compile_context>

<pallas_src>
import jax
import jax.numpy as jnp
from jax import lax
from jax.experimental import pallas as pl
from jax.experimental.pallas import tpu as pltpu

INPUT = 32
HIDDEN = 256
META_IN = 8
META_H = 128
CAT = 2 * HIDDEN      # 512
HEAD_H = 128
OUT = 2


def elo_kernel(
    x_ref,       # (T*Bp, 32)   time-major rows: row r = (t = r // Bp, b = r % Bp)
    meta_ref,    # (Bp, 8)
    wih0_ref,    # (32, 1024)
    whh0_ref,    # (256, 1024)
    b0_ref,      # (1, 1024)    b_ih0 + b_hh0
    w1_ref,      # (512, 1024)  [Wih1; Whh1] stacked along the input axis
    b1_ref,      # (1, 1024)    b_ih1 + b_hh1
    wm1_ref,     # (8, 128)
    bm1_ref,     # (1, 128)
    wm2_ref,     # (128, 256)
    bm2_ref,     # (1, 256)
    wl1_ref,     # (512, 128)
    bl1_ref,     # (1, 128)
    wl2_ref,     # (128, 2)
    bl2_ref,     # (1, 2)
    out_ref,     # (Bp, 2)
    g0_ref,      # VMEM scratch (T*Bp, 1024): precomputed layer-0 input gates
):
    H = HIDDEN
    Bp = meta_ref.shape[0]
    T = x_ref.shape[0] // Bp

    # ---- Hoisted layer-0 input projection: one big GEMM, bias folded in. ----
    g0_ref[...] = (
        jnp.dot(x_ref[...], wih0_ref[...], preferred_element_type=jnp.float32)
        + b0_ref[...]
    )

    whh0 = whh0_ref[...]
    w1 = w1_ref[...]
    b1b = jnp.broadcast_to(b1_ref[...], (Bp, 4 * H))   # broadcast once, not per step

    def sigmoid(z):
        # tanh form -> EUP slot; keeps the divide off the serial VPU path.
        return 0.5 * jnp.tanh(0.5 * z) + 0.5

    def cell_tail(gates, c):
        # PyTorch gate order: i, f, g, o
        i = sigmoid(gates[:, 0 * H:1 * H])
        f = sigmoid(gates[:, 1 * H:2 * H])
        g = jnp.tanh(gates[:, 2 * H:3 * H])
        o = sigmoid(gates[:, 3 * H:4 * H])
        c_new = f * c + i * g
        h_new = o * jnp.tanh(c_new)
        return h_new, c_new

    def body(t, carry):
        h1, c1, h2, c2 = carry
        row = pl.multiple_of(t * Bp, 8)
        # Layer 0: input projection already in g0_ref; one MXU push (K=256).
        gates0 = g0_ref[pl.ds(row, Bp), :] + jnp.dot(
            h1, whh0, preferred_element_type=jnp.float32
        )
        h1, c1 = cell_tail(gates0, c1)
        # Layer 1: fused [input, hidden] @ [Wih1; Whh1]; one MXU push (K=512).
        xh = jnp.concatenate([h1, h2], axis=-1)          # (Bp, 512)
        gates1 = jnp.dot(xh, w1, preferred_element_type=jnp.float32) + b1b
        h2, c2 = cell_tail(gates1, c2)
        return (h1, c1, h2, c2)

    zeros = jnp.zeros((Bp, H), jnp.float32)
    _, _, h2, _ = lax.fori_loop(0, T, body, (zeros, zeros, zeros, zeros))
    # h2 == h_n[-1] in the PyTorch module (final hidden of the top layer).

    # Meta MLP: Linear(8,128) -> ReLU -> Linear(128,256) -> ReLU
    m = jnp.dot(meta_ref[...], wm1_ref[...], preferred_element_type=jnp.float32) + bm1_ref[...]
    m = jnp.maximum(m, 0.0)
    m = jnp.dot(m, wm2_ref[...], preferred_element_type=jnp.float32) + bm2_ref[...]
    m = jnp.maximum(m, 0.0)

    # Head: concat -> Linear(512,128) -> ReLU -> Linear(128,2)
    cat = jnp.concatenate([h2, m], axis=-1)              # (Bp, 512)
    y = jnp.dot(cat, wl1_ref[...], preferred_element_type=jnp.float32) + bl1_ref[...]
    y = jnp.maximum(y, 0.0)
    y = jnp.dot(y, wl2_ref[...], preferred_element_type=jnp.float32) + bl2_ref[...]

    out_ref[...] = y.astype(out_ref.dtype)


def init_params(key):
    """Deterministic synthetic parameters (PyTorch-shaped, stored transposed)."""
    ks = list(jax.random.split(key, 16))

    def unif(k, shape, scale):
        return jax.random.uniform(k, shape, jnp.float32, -scale, scale)

    sc_lstm = 1.0 / jnp.sqrt(HIDDEN)
    params = dict(
        # LSTM layer 0 (input 32 -> hidden 256), weights transposed to (in, 4H)
        wih0=unif(ks[0], (INPUT, 4 * HIDDEN), sc_lstm),
        whh0=unif(ks[1], (HIDDEN, 4 * HIDDEN), sc_lstm),
        b0=unif(ks[2], (1, 4 * HIDDEN), sc_lstm)
           + unif(ks[3], (1, 4 * HIDDEN), sc_lstm),   # b_ih + b_hh
        # LSTM layer 1 (input 256 -> hidden 256)
        wih1=unif(ks[4], (HIDDEN, 4 * HIDDEN), sc_lstm),
        whh1=unif(ks[5], (HIDDEN, 4 * HIDDEN), sc_lstm),
        b1=unif(ks[6], (1, 4 * HIDDEN), sc_lstm)
           + unif(ks[7], (1, 4 * HIDDEN), sc_lstm),
        # meta_linear: Linear(8, 128)
        wm1=unif(ks[8], (META_IN, META_H), 1.0 / jnp.sqrt(META_IN)),
        bm1=unif(ks[9], (1, META_H), 1.0 / jnp.sqrt(META_IN)),
        # meta_linear02: Linear(128, 256)
        wm2=unif(ks[10], (META_H, HIDDEN), 1.0 / jnp.sqrt(META_H)),
        bm2=unif(ks[11], (1, HIDDEN), 1.0 / jnp.sqrt(META_H)),
        # linear: Linear(512, 128)
        wl1=unif(ks[12], (CAT, HEAD_H), 1.0 / jnp.sqrt(CAT)),
        bl1=unif(ks[13], (1, HEAD_H), 1.0 / jnp.sqrt(CAT)),
        # linear02: Linear(128, 2)
        wl2=unif(ks[14], (HEAD_H, OUT), 1.0 / jnp.sqrt(HEAD_H)),
        bl2=unif(ks[15], (1, OUT), 1.0 / jnp.sqrt(HEAD_H)),
    )
    return params


@jax.jit
def elo_predictor(x_moves, x_meta, params):
    """x_moves: (B, T, 32) batch-first (PyTorch convention); x_meta: (B, 8)."""
    B, T, _ = x_moves.shape
    Bp = ((B + 7) // 8) * 8          # round batch up to the f32 sublane multiple
    pad = Bp - B

    xm = x_moves.astype(jnp.float32)
    xme = x_meta.astype(jnp.float32)
    if pad:
        xm = jnp.pad(xm, ((0, pad), (0, 0), (0, 0)))
        xme = jnp.pad(xme, ((0, pad), (0, 0)))

    # Time-major 2-D slab: row r = (t = r // Bp, b = r % Bp). Lets the kernel
    # run the layer-0 input projection as one GEMM and fetch whole sublane
    # tiles per timestep with pl.ds.
    x_rows = jnp.transpose(xm, (1, 0, 2)).reshape(T * Bp, INPUT)

    # Fuse layer-1 input/hidden weights into one (2H, 4H) matrix.
    w1 = jnp.concatenate([params["wih1"], params["whh1"]], axis=0)

    args = (
        x_rows, xme,
        params["wih0"], params["whh0"], params["b0"],
        w1, params["b1"],
        params["wm1"], params["bm1"],
        params["wm2"], params["bm2"],
        params["wl1"], params["bl1"],
        params["wl2"], params["bl2"],
    )

    out = pl.pallas_call(
        elo_kernel,
        out_shape=jax.ShapeDtypeStruct((Bp, OUT), jnp.float32),
        in_specs=[pl.BlockSpec(memory_space=pltpu.MemorySpace.VMEM)] * len(args),
        out_specs=pl.BlockSpec(memory_space=pltpu.MemorySpace.VMEM),
        scratch_shapes=[pltpu.VMEM((T * Bp, 4 * HIDDEN), jnp.float32)],
    )(*args)
    return out[:B]


if __name__ == "__main__":
    key = jax.random.PRNGKey(0)
    k_param, k_moves, k_meta = jax.random.split(key, 3)

    B, T = 2, 8
    params = init_params(k_param)
    x_moves = jax.random.normal(k_moves, (B, T, INPUT), jnp.float32)
    x_meta = jax.random.normal(k_meta, (B, META_IN), jnp.float32)

    out = elo_predictor(x_moves, x_meta, params)
    out = jax.block_until_ready(out)
    assert out.shape == (B, OUT), out.shape
    print("KERNEL_OK")
</pallas_src>

<mosaic_0001>
module attributes {stable_mosaic.version = 11 : i64} {
  func.func @elo_kernel(%arg0: memref<64x32xf32, #tpu.memory_space<vmem>>, %arg1: memref<8x8xf32, #tpu.memory_space<vmem>>, %arg2: memref<32x1024xf32, #tpu.memory_space<vmem>>, %arg3: memref<256x1024xf32, #tpu.memory_space<vmem>>, %arg4: memref<1x1024xf32, #tpu.memory_space<vmem>>, %arg5: memref<512x1024xf32, #tpu.memory_space<vmem>>, %arg6: memref<1x1024xf32, #tpu.memory_space<vmem>>, %arg7: memref<8x128xf32, #tpu.memory_space<vmem>>, %arg8: memref<1x128xf32, #tpu.memory_space<vmem>>, %arg9: memref<128x256xf32, #tpu.memory_space<vmem>>, %arg10: memref<1x256xf32, #tpu.memory_space<vmem>>, %arg11: memref<512x128xf32, #tpu.memory_space<vmem>>, %arg12: memref<1x128xf32, #tpu.memory_space<vmem>>, %arg13: memref<128x2xf32, #tpu.memory_space<vmem>>, %arg14: memref<1x2xf32, #tpu.memory_space<vmem>>, %arg15: memref<8x2xf32, #tpu.memory_space<vmem>>, %arg16: memref<64x1024xf32, #tpu.memory_space<vmem>>) attributes {dimension_semantics = [], scalar_prefetch = 0 : i64, scratch_operands = 1 : i64, tpu.core_type = #tpu.core_type<tc>} {
    %c0 = arith.constant 0 : index
    %c0_0 = arith.constant 0 : index
    %0 = vector.load %arg0[%c0, %c0_0] : memref<64x32xf32, #tpu.memory_space<vmem>>, vector<64x32xf32>
    %c0_1 = arith.constant 0 : index
    %c0_2 = arith.constant 0 : index
    %1 = vector.load %arg2[%c0_1, %c0_2] : memref<32x1024xf32, #tpu.memory_space<vmem>>, vector<32x1024xf32>
    %cst = arith.constant dense<0.000000e+00> : vector<64x1024xf32>
    %2 = tpu.matmul %0, %1, %cst {dimension_numbers = #tpu.dot_dimension_numbers<[1], [0], [0], [1], [0, 0, 1, 1], [], []>} : vector<64x32xf32>, vector<32x1024xf32>, vector<64x1024xf32> -> vector<64x1024xf32>
    %c0_3 = arith.constant 0 : index
    %c0_4 = arith.constant 0 : index
    %3 = vector.load %arg4[%c0_3, %c0_4] : memref<1x1024xf32, #tpu.memory_space<vmem>>, vector<1x1024xf32>
    %4 = vector.broadcast %3 : vector<1x1024xf32> to vector<64x1024xf32>
    %5 = arith.addf %2, %4 : vector<64x1024xf32>
    %c0_5 = arith.constant 0 : index
    %c0_6 = arith.constant 0 : index
    %6 = vector.load %arg16[%c0_5, %c0_6] : memref<64x1024xf32, #tpu.memory_space<vmem>>, vector<64x1024xf32>
    tpu.vector_store %arg16[%c0_5, %c0_6], %5 {strides = array<i32>} : memref<64x1024xf32, #tpu.memory_space<vmem>>, vector<64x1024xf32>,
    %c0_7 = arith.constant 0 : index
    %c0_8 = arith.constant 0 : index
    %7 = vector.load %arg3[%c0_7, %c0_8] : memref<256x1024xf32, #tpu.memory_space<vmem>>, vector<256x1024xf32>
    %c0_9 = arith.constant 0 : index
    %c0_10 = arith.constant 0 : index
    %8 = vector.load %arg5[%c0_9, %c0_10] : memref<512x1024xf32, #tpu.memory_space<vmem>>, vector<512x1024xf32>
    %c0_11 = arith.constant 0 : index
    %c0_12 = arith.constant 0 : index
    %9 = vector.load %arg6[%c0_11, %c0_12] : memref<1x1024xf32, #tpu.memory_space<vmem>>, vector<1x1024xf32>
    %10 = vector.shape_cast %9 : vector<1x1024xf32> to vector<1x1024xf32>
    %11 = vector.broadcast %10 : vector<1x1024xf32> to vector<8x1024xf32>
    %cst_13 = arith.constant 0.000000e+00 : f32
    %12 = vector.broadcast %cst_13 : f32 to vector<8x256xf32>
    %c0_i32 = arith.constant 0 : i32
    %c8_i32 = arith.constant 8 : i32
    %13 = arith.addi %c0_i32, %c8_i32 : i32
    %c1_i32 = arith.constant 1 : i32
    %14:4 = scf.for %arg17 = %c0_i32 to %13 step %c1_i32 iter_args(%arg18 = %12, %arg19 = %12, %arg20 = %12, %arg21 = %12) -> (vector<8x256xf32>, vector<8x256xf32>, vector<8x256xf32>, vector<8x256xf32>)  : i32 {
      %c8_i32_42 = arith.constant 8 : i32
      %44 = arith.muli %arg17, %c8_i32_42 : i32
      %45 = tpu.assume_multiple %44, 8 : i32
      %46 = arith.index_cast %45 : i32 to index
      %c0_43 = arith.constant 0 : index
      %47 = vector.load %arg16[%46, %c0_43] : memref<64x1024xf32, #tpu.memory_space<vmem>>, vector<8x1024xf32>
      %cst_44 = arith.constant dense<0.000000e+00> : vector<8x1024xf32>
      %48 = tpu.matmul %arg18, %7, %cst_44 {dimension_numbers = #tpu.dot_dimension_numbers<[1], [0], [0], [1], [0, 0, 1, 1], [], []>} : vector<8x256xf32>, vector<256x1024xf32>, vector<8x1024xf32> -> vector<8x1024xf32>
      %49 = arith.addf %47, %48 : vector<8x1024xf32>
      %50 = vector.extract_strided_slice %49 {offsets = [0, 0], sizes = [8, 256], strides = [1, 1]} : vector<8x1024xf32> to vector<8x256xf32>
      %cst_45 = arith.constant 5.000000e-01 : f32
      %51 = vector.broadcast %cst_45 : f32 to vector<8x256xf32>
      %52 = arith.mulf %51, %50 : vector<8x256xf32>
      %53 = math.tanh %52 : vector<8x256xf32>
      %cst_46 = arith.constant 5.000000e-01 : f32
      %54 = vector.broadcast %cst_46 : f32 to vector<8x256xf32>
      %55 = arith.mulf %54, %53 : vector<8x256xf32>
      %cst_47 = arith.constant 5.000000e-01 : f32
      %56 = vector.broadcast %cst_47 : f32 to vector<8x256xf32>
      %57 = arith.addf %55, %56 : vector<8x256xf32>
      %58 = vector.extract_strided_slice %49 {offsets = [0, 256], sizes = [8, 256], strides = [1, 1]} : vector<8x1024xf32> to vector<8x256xf32>
      %cst_48 = arith.constant 5.000000e-01 : f32
      %59 = vector.broadcast %cst_48 : f32 to vector<8x256xf32>
      %60 = arith.mulf %59, %58 : vector<8x256xf32>
      %61 = math.tanh %60 : vector<8x256xf32>
      %cst_49 = arith.constant 5.000000e-01 : f32
      %62 = vector.broadcast %cst_49 : f32 to vector<8x256xf32>
      %63 = arith.mulf %62, %61 : vector<8x256xf32>
      %cst_50 = arith.constant 5.000000e-01 : f32
      %64 = vector.broadcast %cst_50 : f32 to vector<8x256xf32>
      %65 = arith.addf %63, %64 : vector<8x256xf32>
      %66 = vector.extract_strided_slice %49 {offsets = [0, 512], sizes = [8, 256], strides = [1, 1]} : vector<8x1024xf32> to vector<8x256xf32>
      %67 = math.tanh %66 : vector<8x256xf32>
      %68 = vector.extract_strided_slice %49 {offsets = [0, 768], sizes = [8, 256], strides = [1, 1]} : vector<8x1024xf32> to vector<8x256xf32>
      %cst_51 = arith.constant 5.000000e-01 : f32
      %69 = vector.broadcast %cst_51 : f32 to vector<8x256xf32>
      %70 = arith.mulf %69, %68 : vector<8x256xf32>
      %71 = math.tanh %70 : vector<8x256xf32>
      %cst_52 = arith.constant 5.000000e-01 : f32
      %72 = vector.broadcast %cst_52 : f32 to vector<8x256xf32>
      %73 = arith.mulf %72, %71 : vector<8x256xf32>
      %cst_53 = arith.constant 5.000000e-01 : f32
      %74 = vector.broadcast %cst_53 : f32 to vector<8x256xf32>
      %75 = arith.addf %73, %74 : vector<8x256xf32>
      %76 = arith.mulf %65, %arg19 : vector<8x256xf32>
      %77 = arith.mulf %57, %67 : vector<8x256xf32>
      %78 = arith.addf %76, %77 : vector<8x256xf32>
      %79 = math.tanh %78 : vector<8x256xf32>
      %80 = arith.mulf %75, %79 : vector<8x256xf32>
      %81 = tpu.concatenate %80, %arg20 in 1 : vector<8x256xf32>, vector<8x256xf32> -> vector<8x512xf32>
      %cst_54 = arith.constant dense<0.000000e+00> : vector<8x1024xf32>
      %82 = tpu.matmul %81, %8, %cst_54 {dimension_numbers = #tpu.dot_dimension_numbers<[1], [0], [0], [1], [0, 0, 1, 1], [], []>} : vector<8x512xf32>, vector<512x1024xf32>, vector<8x1024xf32> -> vector<8x1024xf32>
      %83 = arith.addf %82, %11 : vector<8x1024xf32>
      %84 = vector.extract_strided_slice %83 {offsets = [0, 0], sizes = [8, 256], strides = [1, 1]} : vector<8x1024xf32> to vector<8x256xf32>
      %cst_55 = arith.constant 5.000000e-01 : f32
      %85 = vector.broadcast %cst_55 : f32 to vector<8x256xf32>
      %86 = arith.mulf %85, %84 : vector<8x256xf32>
      %87 = math.tanh %86 : vector<8x256xf32>
      %cst_56 = arith.constant 5.000000e-01 : f32
      %88 = vector.broadcast %cst_56 : f32 to vector<8x256xf32>
      %89 = arith.mulf %88, %87 : vector<8x256xf32>
      %cst_57 = arith.constant 5.000000e-01 : f32
      %90 = vector.broadcast %cst_57 : f32 to vector<8x256xf32>
      %91 = arith.addf %89, %90 : vector<8x256xf32>
      %92 = vector.extract_strided_slice %83 {offsets = [0, 256], sizes = [8, 256], strides = [1, 1]} : vector<8x1024xf32> to vector<8x256xf32>
      %cst_58 = arith.constant 5.000000e-01 : f32
      %93 = vector.broadcast %cst_58 : f32 to vector<8x256xf32>
      %94 = arith.mulf %93, %92 : vector<8x256xf32>
      %95 = math.tanh %94 : vector<8x256xf32>
      %cst_59 = arith.constant 5.000000e-01 : f32
      %96 = vector.broadcast %cst_59 : f32 to vector<8x256xf32>
      %97 = arith.mulf %96, %95 : vector<8x256xf32>
      %cst_60 = arith.constant 5.000000e-01 : f32
      %98 = vector.broadcast %cst_60 : f32 to vector<8x256xf32>
      %99 = arith.addf %97, %98 : vector<8x256xf32>
      %100 = vector.extract_strided_slice %83 {offsets = [0, 512], sizes = [8, 256], strides = [1, 1]} : vector<8x1024xf32> to vector<8x256xf32>
      %101 = math.tanh %100 : vector<8x256xf32>
      %102 = vector.extract_strided_slice %83 {offsets = [0, 768], sizes = [8, 256], strides = [1, 1]} : vector<8x1024xf32> to vector<8x256xf32>
      %cst_61 = arith.constant 5.000000e-01 : f32
      %103 = vector.broadcast %cst_61 : f32 to vector<8x256xf32>
      %104 = arith.mulf %103, %102 : vector<8x256xf32>
      %105 = math.tanh %104 : vector<8x256xf32>
      %cst_62 = arith.constant 5.000000e-01 : f32
      %106 = vector.broadcast %cst_62 : f32 to vector<8x256xf32>
      %107 = arith.mulf %106, %105 : vector<8x256xf32>
      %cst_63 = arith.constant 5.000000e-01 : f32
      %108 = vector.broadcast %cst_63 : f32 to vector<8x256xf32>
      %109 = arith.addf %107, %108 : vector<8x256xf32>
      %110 = arith.mulf %99, %arg21 : vector<8x256xf32>
      %111 = arith.mulf %91, %101 : vector<8x256xf32>
      %112 = arith.addf %110, %111 : vector<8x256xf32>
      %113 = math.tanh %112 : vector<8x256xf32>
      %114 = arith.mulf %109, %113 : vector<8x256xf32>
      scf.yield %80, %78, %114, %112 : vector<8x256xf32>, vector<8x256xf32>, vector<8x256xf32>, vector<8x256xf32>
    }
    %c8_i32_14 = arith.constant 8 : i32
    %c0_15 = arith.constant 0 : index
    %c0_16 = arith.constant 0 : index
    %15 = vector.load %arg1[%c0_15, %c0_16] : memref<8x8xf32, #tpu.memory_space<vmem>>, vector<8x8xf32>
    %c0_17 = arith.constant 0 : index
    %c0_18 = arith.constant 0 : index
    %16 = vector.load %arg7[%c0_17, %c0_18] : memref<8x128xf32, #tpu.memory_space<vmem>>, vector<8x128xf32>
    %cst_19 = arith.constant dense<0.000000e+00> : vector<8x128xf32>
    %17 = tpu.matmul %15, %16, %cst_19 {dimension_numbers = #tpu.dot_dimension_numbers<[1], [0], [0], [1], [0, 0, 1, 1], [], []>} : vector<8x8xf32>, vector<8x128xf32>, vector<8x128xf32> -> vector<8x128xf32>
    %c0_20 = arith.constant 0 : index
    %c0_21 = arith.constant 0 : index
    %18 = vector.load %arg8[%c0_20, %c0_21] : memref<1x128xf32, #tpu.memory_space<vmem>>, vector<1x128xf32>
    %19 = vector.broadcast %18 : vector<1x128xf32> to vector<8x128xf32>
    %20 = arith.addf %17, %19 : vector<8x128xf32>
    %cst_22 = arith.constant 0.000000e+00 : f32
    %21 = vector.broadcast %cst_22 : f32 to vector<8x128xf32>
    %22 = arith.maximumf %20, %21 : vector<8x128xf32>
    %c0_23 = arith.constant 0 : index
    %c0_24 = arith.constant 0 : index
    %23 = vector.load %arg9[%c0_23, %c0_24] : memref<128x256xf32, #tpu.memory_space<vmem>>, vector<128x256xf32>
    %cst_25 = arith.constant dense<0.000000e+00> : vector<8x256xf32>
    %24 = tpu.matmul %22, %23, %cst_25 {dimension_numbers = #tpu.dot_dimension_numbers<[1], [0], [0], [1], [0, 0, 1, 1], [], []>} : vector<8x128xf32>, vector<128x256xf32>, vector<8x256xf32> -> vector<8x256xf32>
    %c0_26 = arith.constant 0 : index
    %c0_27 = arith.constant 0 : index
    %25 = vector.load %arg10[%c0_26, %c0_27] : memref<1x256xf32, #tpu.memory_space<vmem>>, vector<1x256xf32>
    %26 = vector.broadcast %25 : vector<1x256xf32> to vector<8x256xf32>
    %27 = arith.addf %24, %26 : vector<8x256xf32>
    %cst_28 = arith.constant 0.000000e+00 : f32
    %28 = vector.broadcast %cst_28 : f32 to vector<8x256xf32>
    %29 = arith.maximumf %27, %28 : vector<8x256xf32>
    %30 = tpu.concatenate %14#2, %29 in 1 : vector<8x256xf32>, vector<8x256xf32> -> vector<8x512xf32>
    %c0_29 = arith.constant 0 : index
    %c0_30 = arith.constant 0 : index
    %31 = vector.load %arg11[%c0_29, %c0_30] : memref<512x128xf32, #tpu.memory_space<vmem>>, vector<512x128xf32>
    %cst_31 = arith.constant dense<0.000000e+00> : vector<8x128xf32>
    %32 = tpu.matmul %30, %31, %cst_31 {dimension_numbers = #tpu.dot_dimension_numbers<[1], [0], [0], [1], [0, 0, 1, 1], [], []>} : vector<8x512xf32>, vector<512x128xf32>, vector<8x128xf32> -> vector<8x128xf32>
    %c0_32 = arith.constant 0 : index
    %c0_33 = arith.constant 0 : index
    %33 = vector.load %arg12[%c0_32, %c0_33] : memref<1x128xf32, #tpu.memory_space<vmem>>, vector<1x128xf32>
    %34 = vector.broadcast %33 : vector<1x128xf32> to vector<8x128xf32>
    %35 = arith.addf %32, %34 : vector<8x128xf32>
    %cst_34 = arith.constant 0.000000e+00 : f32
    %36 = vector.broadcast %cst_34 : f32 to vector<8x128xf32>
    %37 = arith.maximumf %35, %36 : vector<8x128xf32>
    %c0_35 = arith.constant 0 : index
    %c0_36 = arith.constant 0 : index
    %38 = vector.load %arg13[%c0_35, %c0_36] : memref<128x2xf32, #tpu.memory_space<vmem>>, vector<128x2xf32>
    %cst_37 = arith.constant dense<0.000000e+00> : vector<8x2xf32>
    %39 = tpu.matmul %37, %38, %cst_37 {dimension_numbers = #tpu.dot_dimension_numbers<[1], [0], [0], [1], [0, 0, 1, 1], [], []>} : vector<8x128xf32>, vector<128x2xf32>, vector<8x2xf32> -> vector<8x2xf32>
    %c0_38 = arith.constant 0 : index
    %c0_39 = arith.constant 0 : index
    %40 = vector.load %arg14[%c0_38, %c0_39] : memref<1x2xf32, #tpu.memory_space<vmem>>, vector<1x2xf32>
    %41 = vector.broadcast %40 : vector<1x2xf32> to vector<8x2xf32>
    %42 = arith.addf %39, %41 : vector<8x2xf32>
    %c0_40 = arith.constant 0 : index
    %c0_41 = arith.constant 0 : index
    %43 = vector.load %arg15[%c0_40, %c0_41] : memref<8x2xf32, #tpu.memory_space<vmem>>, vector<8x2xf32>
    tpu.vector_store %arg15[%c0_40, %c0_41], %42 {strides = array<i32>} : memref<8x2xf32, #tpu.memory_space<vmem>>, vector<8x2xf32>,
    return
  }
}

</mosaic_0001>

<bundles_post_ra>
// kernel: elo_predictor.1
= control target key start
LH: loop header
LB: loop body
LE: loop exit
PB: predicated region body
PF: predicated region fallthrough
CT: control target
= control target key end

     0   :  { %v9823_v3 = vmov 0.0   ;;  %vm132_vm0 = vcmask 261120   ;;  %v92_v57 = vlaneseq  ;;  %s8567_s26 = smov 0   ;;  %s9807_s1 = inlined_call_operand.vmem [shape: f32[8,8], index: 1, kind: input, shape index: {}]   ;;  %s9808_s2 = inlined_call_operand.vmem [shape: f32[32,1024], index: 2, kind: input, shape index: {}]   ;;  %s9809_s7 = inlined_call_operand.vmem [shape: f32[8,128], index: 7, kind: input, shape index: {}]   ;;  %s9810_s8 = inlined_call_operand.vmem [shape: f32[1,128], index: 8, kind: input, shape index: {}]   ;;  %s9811_s9 = inlined_call_operand.vmem [shape: f32[128,256], index: 9, kind: input, shape index: {}]   ;;  %s9812_s10 = inlined_call_operand.vmem [shape: f32[1,256], index: 10, kind: input, shape index: {}]   ;;  %s9813_s11 = inlined_call_operand.vmem [shape: f32[512,128], index: 11, kind: input, shape index: {}]   ;;  %s9814_s12 = inlined_call_operand.vmem [shape: f32[1,128], index: 12, kind: input, shape index: {}]   ;;  %s9815_s13 = inlined_call_operand.vmem [shape: f32[128,2], index: 13, kind: input, shape index: {}]   ;;  %s9816_s14 = inlined_call_operand.vmem [shape: f32[1,2], index: 14, kind: input, shape index: {}]   ;;  %s9817_s15 = inlined_call_operand.vmem [shape: f32[8,2], index: 15, kind: output, shape index: {}]   ;;  %s9818_s0 = inlined_call_operand.vmem [shape: f32[64,32], index: 0, kind: input, shape index: {}]   ;;  %s9819_s6 = inlined_call_operand.vmem [shape: f32[1,1024], index: 6, kind: input, shape index: {}]   ;;  %s9820_s3 = inlined_call_operand.vmem [shape: f32[256,1024], index: 3, kind: input, shape index: {}]   ;;  %s9821_s4 = inlined_call_operand.vmem [shape: f32[1,1024], index: 4, kind: input, shape index: {}]   ;;  %s9822_s5 = inlined_call_operand.vmem [shape: f32[512,1024], index: 5, kind: input, shape index: {}]  }
   0x1   :  { %v59_v0 = vld [vmem:[%s9808_s2 + $0x8] sm:$0xff]  ;;  %v61_v2 = vld [vmem:[%s9808_s2 + $0x18] sm:$0xff]  ;;  %221 = vmatprep.mubr.f32.mxu0 %v9823_v3  ;;  %334 = vmatprep.mubr.f32.mxu1 %v9823_v3  ;;  %v58_v6 = vld [vmem:[%s9808_s2] sm:$0xff] }
   0x2   :  { %v67_v1 = vld [vmem:[%s9808_s2 + $0x48] sm:$0xff]  ;;  %v69_v5 = vld [vmem:[%s9808_s2 + $0x58] sm:$0xff]  ;;  %v66_v7 = vld [vmem:[%s9808_s2 + $0x40] sm:$0xff]  ;;  %v4551_v58 = vshrl.u32 %v92_v57, 7 }
   0x3   :  { %v3155_v4 = vpack.c.bf16 %v67_v1, %v59_v0  ;;  %v3163_v8 = vpack.c.bf16 %v69_v5, %v61_v2  ;;  %v3157_v9 = vpack.c.bf16 %v66_v7, %v58_v6  ;;  %v60_v10 = vld [vmem:[%s9808_s2 + $0x10] sm:$0xff]  ;;  %v75_v12 = vld [vmem:[%s9808_s2 + $0x88] sm:$0xff]  ;;  %v77_v15 = vld [vmem:[%s9808_s2 + $0x98] sm:$0xff] }
   0x4   :  { %v68_v11 = vld [vmem:[%s9808_s2 + $0x50] sm:$0xff]  ;;  %v83_v14 = vld [vmem:[%s9808_s2 + $0xc8] sm:$0xff]  ;;  %v85_v16 = vld [vmem:[%s9808_s2 + $0xd8] sm:$0xff]  ;;  %v4554_v59 = vsub.s32 0, %v4551_v58  ;;  %v9830_v60 = vsub.s32 2, %v4551_v58  ;;  %v4558_v61 = vsub.s32 1, %v4551_v58 }
   0x5   :  { %3156 = vmatprep.subr.bf16.mxu0 %v3155_v4  ;;  %v3165_v13 = vpack.c.bf16 %v68_v11, %v60_v10  ;;  %3164 = vmatprep.subr.bf16.mxu1 %v3163_v8  ;;  %v3159_v17 = vpack.c.bf16 %v83_v14, %v75_v12  ;;  %v3167_v18 = vpack.c.bf16 %v85_v16, %v77_v15  ;;  %v74_v19 = vld [vmem:[%s9808_s2 + $0x80] sm:$0xff]  ;;  %v76_v21 = vld [vmem:[%s9808_s2 + $0x90] sm:$0xff]  ;;  %v63_v24 = vld [vmem:[%s9808_s2 + $0x28] sm:$0xff]  ;;  %v9829_v63 = vsub.s32 3, %v4551_v58 }
   0x6   :  { %3158 = vmatpush1.bf16.msra.mxu0 %v3157_v9  ;;  %v82_v20 = vld [vmem:[%s9808_s2 + $0xc0] sm:$0xff]  ;;  %v84_v23 = vld [vmem:[%s9808_s2 + $0xd0] sm:$0xff]  ;;  %v71_v26 = vld [vmem:[%s9808_s2 + $0x68] sm:$0xff]  ;;  %9838 = vst [vmem:[#allocation3_spill] sm:$0xff] %v4554_v59  ;;  %v9828_v5 = vsub.s32 4, %v4551_v58  ;;  %v9827_v6 = vsub.s32 6, %v4551_v58 }
   0x7   :  { %3166 = vmatpush1.bf16.msra.mxu1 %v3165_v13  ;;  %v3161_v22 = vpack.c.bf16 %v82_v20, %v74_v19  ;;  %3160 = vmatprep.subr.bf16.mxu0 %v3159_v17  ;;  %v3169_v25 = vpack.c.bf16 %v84_v23, %v76_v21  ;;  %v65_v27 = vld [vmem:[%s9808_s2 + $0x38] sm:$0xff]  ;;  %v3171_v29 = vpack.c.bf16 %v71_v26, %v63_v24  ;;  %v62_v31 = vld [vmem:[%s9808_s2 + $0x20] sm:$0xff]  ;;  %v64_v33 = vld [vmem:[%s9808_s2 + $0x30] sm:$0xff]  ;;  %v9826_v7 = vsub.s32 5, %v4551_v58 }
   0x8   :  { %3168 = vmatprep.subr.bf16.mxu1 %v3167_v18  ;;  %v73_v28 = vld [vmem:[%s9808_s2 + $0x78] sm:$0xff]  ;;  %v70_v32 = vld [vmem:[%s9808_s2 + $0x60] sm:$0xff]  ;;  %v72_v36 = vld [vmem:[%s9808_s2 + $0x70] sm:$0xff]  ;;  %9839 = vst [vmem:[#allocation4_spill] sm:$0xff] %v4558_v61  ;;  %v9825_v9 = vsub.s32 7, %v4551_v58 }
   0x9   :  { %v3179_v30 = vpack.c.bf16 %v73_v28, %v65_v27  ;;  %v4435_v34 = vld [vmem:[%s9818_s0] sm:$0xff]  ;;  %v3173_v35 = vpack.c.bf16 %v70_v32, %v62_v31  ;;  %v3181_v37 = vpack.c.bf16 %v72_v36, %v64_v33  ;;  %v79_v38 = vld [vmem:[%s9808_s2 + $0xa8] sm:$0xff]  ;;  %v81_v40 = vld [vmem:[%s9808_s2 + $0xb8] sm:$0xff] }
   0xa   :  { %3162 = vmatpush1.bf16.msra.mxu0 %v3161_v22  ;;  %v87_v39 = vld [vmem:[%s9808_s2 + $0xe8] sm:$0xff]  ;;  %v89_v41 = vld [vmem:[%s9808_s2 + $0xf8] sm:$0xff]  ;;  %v78_v44 = vld [vmem:[%s9808_s2 + $0xa0] sm:$0xff] }
   0xb   :  { %3170 = vmatpush1.bf16.msra.mxu1 %v3169_v25  ;;  %3172 = vmatprep.subr.bf16.mxu0 %v3171_v29  ;;  %v3175_v42 = vpack.c.bf16 %v87_v39, %v79_v38  ;;  %v3183_v43 = vpack.c.bf16 %v89_v41, %v81_v40  ;;  %v86_v45 = vld [vmem:[%s9808_s2 + $0xe0] sm:$0xff]  ;;  %v80_v46 = vld [vmem:[%s9808_s2 + $0xb0] sm:$0xff]  ;;  %v51_v47 = vld [vmem:[%s9818_s0 + $0x8] sm:$0xff] }
   0xc   :  { %3180 = vmatprep.subr.bf16.mxu1 %v3179_v30  ;;  %v88_v48 = vld [vmem:[%s9808_s2 + $0xf0] sm:$0xff]  ;;  %v3177_v49 = vpack.c.bf16 %v86_v45, %v78_v44  ;;  %v53_v52 = vld [vmem:[%s9818_s0 + $0x18] sm:$0xff]  ;;  %v54_v53 = vld [vmem:[%s9818_s0 + $0x20] sm:$0xff] }
   0xd   :  { %2986 = vmatmul.mubr.msk.f32.vlgmr.msra.gmra.mrb[0].mxu0 %vm132_vm0, %v4435_v34  ;;  %v3185_v50 = vpack.c.bf16 %v88_v48, %v80_v46  ;;  %v52_v51 = vld [vmem:[%s9818_s0 + $0x10] sm:$0xff]  ;;  %v55_v54 = vld [vmem:[%s9818_s0 + $0x28] sm:$0xff]  ;;  %v57_v56 = vld [vmem:[%s9818_s0 + $0x38] sm:$0xff] }
   0xe   :  { %2994 = vmatmul.mubr.msk.f32.vlgmr.msra.gmra.mrb[0].mxu1 %vm132_vm0, %v4435_v34  ;;  %3174 = vmatpush1.bf16.msra.mxu0 %v3173_v35  ;;  %v56_v55 = vld [vmem:[%s9818_s0 + $0x30] sm:$0xff]  ;;  %v4563_v62 = vld [vmem:[%s9819_s6] sm:$0xff]  ;;  %v4612_v14 = vld [vmem:[%s9820_s3 + $0x8] sm:$0xff] }
   0xf   :  { %3182 = vmatpush1.bf16.msra.mxu1 %v3181_v37  ;;  %227 = vmatprep.mubr.f32.mxu0 %v9823_v3  ;;  %9840 = vst [vmem:[#allocation5_spill] sm:$0xff] %v4563_v62  ;;  %v4571_v1 = vrot.slane %v4563_v62, %v9830_v60  ;;  %v4578_v4 = vrot.slane %v4563_v62, %v9829_v63  ;;  %v4607_v13 = vld [vmem:[%s9820_s3] sm:$0xff]  ;;  %9848 = vst [vmem:[#allocation13_spill] sm:$0xff] %v4612_v14  ;;  %v4617_v15 = vld [vmem:[%s9820_s3 + $0x10] sm:$0xff] }
  0x10   :  { %340 = vmatprep.mubr.f32.mxu1 %v9823_v3  ;;  %3176 = vmatprep.subr.bf16.mxu0 %v3175_v42  ;;  %v4586_v8 = vrot.slane %v4563_v62, %v9828_v5  ;;  %v4592_v10 = vrot.slane %v4563_v62, %v9827_v6  ;;  %v4597_v11 = vrot.slane %v4563_v62, %v9826_v7  ;;  %v4622_v16 = vld [vmem:[%s9820_s3 + $0x18] sm:$0xff]  ;;  %v4627_v17 = vld [vmem:[%s9820_s3 + $0x20] sm:$0xff]  ;;  %v4632_v18 = vld [vmem:[%s9820_s3 + $0x28] sm:$0xff] }
  0x11   :  { %2987 = vmatmul.mubr.msk.f32.gmra.mrb[2].mxu0 %vm132_vm0, %v51_v47  ;;  %3184 = vmatprep.subr.bf16.mxu1 %v3183_v43  ;;  %9841 = vst [vmem:[#allocation6_spill] sm:$0xff] %v4571_v1  ;;  %9842 = vst [vmem:[#allocation7_spill] sm:$0xff] %v4578_v4  ;;  %v4602_v12 = vrot.slane %v4563_v62, %v9825_v9  ;;  %v4637_v19 = vld [vmem:[%s9820_s3 + $0x30] sm:$0xff]  ;;  %v4642_v20 = vld [vmem:[%s9820_s3 + $0x38] sm:$0xff] }
  0x12   :  { %2995 = vmatmul.mubr.msk.f32.gmra.mrb[2].mxu1 %vm132_vm0, %v51_v47  ;;  %233 = vmatprep.mubr.f32.mxu0 %v9823_v3  ;;  %9843 = vst [vmem:[#allocation8_spill] sm:$0xff] %v4586_v8  ;;  %9844 = vst [vmem:[#allocation9_spill] sm:$0xff] %v4592_v10  ;;  %v4647_v21 = vld [vmem:[%s9820_s3 + $0x40] sm:$0xff]  ;;  %v4652_v22 = vld [vmem:[%s9820_s3 + $0x48] sm:$0xff] }
  0x13   :  { %346 = vmatprep.mubr.f32.mxu1 %v9823_v3  ;;  %3178 = vmatpush1.bf16.msra.mxu0 %v3177_v49  ;;  %9845 = vst [vmem:[#allocation10_spill] sm:$0xff] %v4597_v11  ;;  %9846 = vst [vmem:[#allocation11_spill] sm:$0xff] %v4602_v12  ;;  %v4657_v23 = vld [vmem:[%s9820_s3 + $0x50] sm:$0xff]  ;;  %v4662_v24 = vld [vmem:[%s9820_s3 + $0x58] sm:$0xff] }
  0x14   :  { %3186 = vmatpush1.bf16.msra.mxu1 %v3185_v50  ;;  %9847 = vst [vmem:[#allocation12_spill] sm:$0xff] %v4607_v13  ;;  %9849 = vst [vmem:[#allocation14_spill] sm:$0xff] %v4617_v15  ;;  %v4667_v25 = vld [vmem:[%s9820_s3 + $0x60] sm:$0xff]  ;;  %v4672_v26 = vld [vmem:[%s9820_s3 + $0x68] sm:$0xff] }
  0x15   :  { %2988 = vmatmul.mubr.msk.f32.gmra.mrb[4].mxu0 %vm132_vm0, %v52_v51  ;;  %9850 = vst [vmem:[#allocation15_spill] sm:$0xff] %v4622_v16  ;;  %9851 = vst [vmem:[#allocation16_spill] sm:$0xff] %v4627_v17  ;;  %v4677_v27 = vld [vmem:[%s9820_s3 + $0x70] sm:$0xff]  ;;  %v4682_v28 = vld [vmem:[%s9820_s3 + $0x78] sm:$0xff] }
  0x16   :  { %2996 = vmatmul.mubr.msk.f32.gmra.mrb[4].mxu1 %vm132_vm0, %v52_v51  ;;  %239 = vmatprep.mubr.f32.mxu0 %v9823_v3  ;;  %9852 = vst [vmem:[#allocation17_spill] sm:$0xff] %v4632_v18  ;;  %9853 = vst [vmem:[#allocation18_spill] sm:$0xff] %v4637_v19  ;;  %v4687_v29 = vld [vmem:[%s9820_s3 + $0x80] sm:$0xff]  ;;  %v4692_v30 = vld [vmem:[%s9820_s3 + $0x88] sm:$0xff] }
  0x17   :  { %352 = vmatprep.mubr.f32.mxu1 %v9823_v3  ;;  %9854 = vst [vmem:[#allocation19_spill] sm:$0xff] %v4642_v20  ;;  %9855 = vst [vmem:[#allocation20_spill] sm:$0xff] %v4647_v21  ;;  %v4697_v31 = vld [vmem:[%s9820_s3 + $0x90] sm:$0xff]  ;;  %v4702_v32 = vld [vmem:[%s9820_s3 + $0x98] sm:$0xff] }
  0x18   :  { %9856 = vst [vmem:[#allocation21_spill] sm:$0xff] %v4652_v22  ;;  %9857 = vst [vmem:[#allocation22_spill] sm:$0xff] %v4667_v25  ;;  %v4707_v33 = vld [vmem:[%s9820_s3 + $0xa0] sm:$0xff]  ;;  %v4717_v35 = vld [vmem:[%s9820_s3 + $0xb0] sm:$0xff] }
  0x19   :  { %2989 = vmatmul.mubr.msk.f32.gmra.mrb[6].mxu0 %vm132_vm0, %v53_v52  ;;  %9858 = vst [vmem:[#allocation23_spill] sm:$0xff] %v4672_v26  ;;  %9859 = vst [vmem:[#allocation24_spill] sm:$0xff] %v4677_v27  ;;  %v4722_v36 = vld [vmem:[%s9820_s3 + $0xb8] sm:$0xff]  ;;  %v4727_v37 = vld [vmem:[%s9820_s3 + $0xc0] sm:$0xff] }
  0x1a   :  { %2997 = vmatmul.mubr.msk.f32.gmra.mrb[6].mxu1 %vm132_vm0, %v53_v52  ;;  %245 = vmatprep.mubr.f32.mxu0 %v9823_v3  ;;  %9860 = vst [vmem:[#allocation25_spill] sm:$0xff] %v4682_v28  ;;  %9861 = vst [vmem:[#allocation26_spill] sm:$0xff] %v4707_v33  ;;  %v4732_v38 = vld [vmem:[%s9820_s3 + $0xc8] sm:$0xff]  ;;  %v4737_v39 = vld [vmem:[%s9820_s3 + $0xd0] sm:$0xff] }
  0x1b   :  { %358 = vmatprep.mubr.f32.mxu1 %v9823_v3  ;;  %9863 = vst [vmem:[#allocation28_spill] sm:$0xff] %v4717_v35  ;;  %9864 = vst [vmem:[#allocation29_spill] sm:$0xff] %v4722_v36  ;;  %v4742_v40 = vld [vmem:[%s9820_s3 + $0xd8] sm:$0xff]  ;;  %v4747_v41 = vld [vmem:[%s9820_s3 + $0xe0] sm:$0xff] }
  0x1c   :  { %9865 = vst [vmem:[#allocation30_spill] sm:$0xff] %v4747_v41  ;;  %v4752_v42 = vld [vmem:[%s9820_s3 + $0xe8] sm:$0xff]  ;;  %v4757_v43 = vld [vmem:[%s9820_s3 + $0xf0] sm:$0xff]  ;;  %v4762_v44 = vld [vmem:[%s9820_s3 + $0xf8] sm:$0xff] }
  0x1d   :  { %2990 = vmatmul.mubr.msk.f32.gmra.mrb[8].mxu0 %vm132_vm0, %v54_v53  ;;  %9866 = vst [vmem:[#allocation31_spill] sm:$0xff] %v4752_v42  ;;  %9867 = vst [vmem:[#allocation32_spill] sm:$0xff] %v4757_v43  ;;  %v4767_v45 = vld [vmem:[%s9820_s3 + $0x100] sm:$0xff]  ;;  %v4772_v46 = vld [vmem:[%s9820_s3 + $0x108] sm:$0xff] }
  0x1e   :  { %2998 = vmatmul.mubr.msk.f32.gmra.mrb[8].mxu1 %vm132_vm0, %v54_v53  ;;  %251 = vmatprep.mubr.f32.mxu0 %v9823_v3  ;;  %9868 = vst [vmem:[#allocation33_spill] sm:$0xff] %v4762_v44  ;;  %v4782_v48 = vld [vmem:[%s9820_s3 + $0x118] sm:$0xff]  ;;  %v4787_v49 = vld [vmem:[%s9820_s3 + $0x120] sm:$0xff]  ;;  %v4792_v50 = vld [vmem:[%s9820_s3 + $0x128] sm:$0xff] }
  0x1f   :  { %364 = vmatprep.mubr.f32.mxu1 %v9823_v3  ;;  %9869 = vst [vmem:[#allocation34_spill] sm:$0xff] %v4787_v49  ;;  %9870 = vst [vmem:[#allocation35_spill] sm:$0xff] %v4792_v50  ;;  %v4827_v57 = vld [vmem:[%s9820_s3 + $0x160] sm:$0xff]  ;;  %v4837_v2 = vld [vmem:[%s9820_s3 + $0x170] sm:$0xff] }
  0x20   :  { %9873 = vst [vmem:[#allocation38_spill] sm:$0xff] %v4827_v57  ;;  %9875 = vst [vmem:[#allocation40_spill] sm:$0xff] %v4837_v2  ;;  %v4842_v0 = vld [vmem:[%s9820_s3 + $0x178] sm:$0xff]  ;;  %v4847_v9 = vld [vmem:[%s9820_s3 + $0x180] sm:$0xff] }
  0x21   :  { %2991 = vmatmul.mubr.msk.f32.gmra.mrb[10].mxu0 %vm132_vm0, %v55_v54  ;;  %9876 = vst [vmem:[#allocation41_spill] sm:$0xff] %v4842_v0  ;;  %9877 = vst [vmem:[#allocation42_spill] sm:$0xff] %v4847_v9  ;;  %v4852_v7 = vld [vmem:[%s9820_s3 + $0x188] sm:$0xff]  ;;  %v4857_v6 = vld [vmem:[%s9820_s3 + $0x190] sm:$0xff] }
  0x22   :  { %2999 = vmatmul.mubr.msk.f32.gmra.mrb[10].mxu1 %vm132_vm0, %v55_v54  ;;  %257 = vmatprep.mubr.f32.mxu0 %v9823_v3  ;;  %9878 = vst [vmem:[#allocation43_spill] sm:$0xff] %v4852_v7  ;;  %9879 = vst [vmem:[#allocation44_spill] sm:$0xff] %v4857_v6  ;;  %v4862_v5 = vld [vmem:[%s9820_s3 + $0x198] sm:$0xff]  ;;  %v4867_v63 = vld [vmem:[%s9820_s3 + $0x1a0] sm:$0xff] }
  0x23   :  { %370 = vmatprep.mubr.f32.mxu1 %v9823_v3  ;;  %9880 = vst [vmem:[#allocation45_spill] sm:$0xff] %v4862_v5  ;;  %9881 = vst [vmem:[#allocation46_spill] sm:$0xff] %v4867_v63  ;;  %v4872_v60 = vld [vmem:[%s9820_s3 + $0x1a8] sm:$0xff]  ;;  %v4877_v12 = vld [vmem:[%s9820_s3 + $0x1b0] sm:$0xff] }
  0x24   :  { %9882 = vst [vmem:[#allocation47_spill] sm:$0xff] %v4872_v60  ;;  %9883 = vst [vmem:[#allocation48_spill] sm:$0xff] %v4877_v12  ;;  %v4882_v11 = vld [vmem:[%s9820_s3 + $0x1b8] sm:$0xff]  ;;  %v4887_v10 = vld [vmem:[%s9820_s3 + $0x1c0] sm:$0xff] }
  0x25   :  { %2992 = vmatmul.mubr.msk.f32.gmra.mrb[12].mxu0 %vm132_vm0, %v56_v55  ;;  %9884 = vst [vmem:[#allocation49_spill] sm:$0xff] %v4882_v11  ;;  %9885 = vst [vmem:[#allocation50_spill] sm:$0xff] %v4887_v10  ;;  %v4892_v8 = vld [vmem:[%s9820_s3 + $0x1c8] sm:$0xff]  ;;  %v4897_v62 = vld [vmem:[%s9820_s3 + $0x1d0] sm:$0xff] }
  0x26   :  { %3000 = vmatmul.mubr.msk.f32.gmra.mrb[12].mxu1 %vm132_vm0, %v56_v55  ;;  %263 = vmatprep.mubr.f32.mxu0 %v9823_v3  ;;  %9886 = vst [vmem:[#allocation51_spill] sm:$0xff] %v4892_v8  ;;  %v4902_v4 = vld [vmem:[%s9820_s3 + $0x1d8] sm:$0xff]  ;;  %v4907_v1 = vld [vmem:[%s9820_s3 + $0x1e0] sm:$0xff]  ;;  %v4912_v12 = vld [vmem:[%s9820_s3 + $0x1e8] sm:$0xff] }
  0x27   :  { %376 = vmatprep.mubr.f32.mxu1 %v9823_v3  ;;  %9887 = vst [vmem:[#allocation52_spill] sm:$0xff] %v4902_v4  ;;  %9888 = vst [vmem:[#allocation53_spill] sm:$0xff] %v4907_v1  ;;  %v4917_v63 = vld [vmem:[%s9820_s3 + $0x1f0] sm:$0xff]  ;;  %v4922_v11 = vld [vmem:[%s9820_s3 + $0x1f8] sm:$0xff] }
  0x28   :  { %9889 = vst [vmem:[#allocation54_spill] sm:$0xff] %v4912_v12  ;;  %9890 = vst [vmem:[#allocation55_spill] sm:$0xff] %v4917_v63  ;;  %v4927_v2 = vld [vmem:[%s9820_s3 + $0x200] sm:$0xff]  ;;  %v4932_v1 = vld [vmem:[%s9820_s3 + $0x208] sm:$0xff] }
  0x29   :  { %2993 = vmatmul.mubr.msk.f32.gmra.mrb[14].mxu0 %vm132_vm0, %v57_v56  ;;  %9891 = vst [vmem:[#allocation56_spill] sm:$0xff] %v4922_v11  ;;  %9892 = vst [vmem:[#allocation57_spill] sm:$0xff] %v4927_v2  ;;  %v4942_v63 = vld [vmem:[%s9820_s3 + $0x218] sm:$0xff]  ;;  %v4947_v11 = vld [vmem:[%s9820_s3 + $0x220] sm:$0xff] }
  0x2a   :  { %3001 = vmatmul.mubr.msk.f32.gmra.mrb[14].mxu1 %vm132_vm0, %v57_v56  ;;  %447 = vmatprep.mubr.f32.mxu0 %v9823_v3  ;;  %9893 = vst [vmem:[#allocation58_spill] sm:$0xff] %v4932_v1  ;;  %9894 = vst [vmem:[#allocation59_spill] sm:$0xff] %v4947_v11  ;;  %v4952_v12 = vld [vmem:[%s9820_s3 + $0x228] sm:$0xff]  ;;  %v4957_v60 = vld [vmem:[%s9820_s3 + $0x230] sm:$0xff] }
  0x2b   :  { %560 = vmatprep.mubr.f32.mxu1 %v9823_v3  ;;  %9895 = vst [vmem:[#allocation60_spill] sm:$0xff] %v4952_v12  ;;  %9896 = vst [vmem:[#allocation61_spill] sm:$0xff] %v4957_v60  ;;  %v4962_v57 = vld [vmem:[%s9820_s3 + $0x238] sm:$0xff]  ;;  %v4967_v49 = vld [vmem:[%s9820_s3 + $0x240] sm:$0xff] }
  0x2c   :  { %9897 = vst [vmem:[#allocation62_spill] sm:$0xff] %v4962_v57  ;;  %v4972_v11 = vld [vmem:[%s9820_s3 + $0x248] sm:$0xff]  ;;  %v4977_v12 = vld [vmem:[%s9820_s3 + $0x250] sm:$0xff]  ;;  %v4982_v60 = vld [vmem:[%s9820_s3 + $0x258] sm:$0xff] }
  0x2d   :  { %3002 = vmatmul.mubr.msk.f32.vlgmr.msra.gmra.mrb[16].mxu0 %vm132_vm0, %v4435_v34  ;;  %9898 = vst [vmem:[#allocation63_spill] sm:$0xff] %v4972_v11  ;;  %9899 = vst [vmem:[#allocation64_spill] sm:$0xff] %v4977_v12  ;;  %v4987_v57 = vld [vmem:[%s9820_s3 + $0x260] sm:$0xff]  ;;  %v4992_v0 = vld [vmem:[%s9820_s3 + $0x268] sm:$0xff] }
  0x2e   :  { %3010 = vmatmul.mubr.msk.f32.vlgmr.msra.gmra.mrb[16].mxu1 %vm132_vm0, %v4435_v34  ;;  %453 = vmatprep.mubr.f32.mxu0 %v9823_v3  ;;  %v4712_v34 = vld [vmem:[%s9820_s3 + $0xa8] sm:$0xff]  ;;  %9900 = vst [vmem:[#allocation65_spill] sm:$0xff] %v4987_v57  ;;  %9901 = vst [vmem:[#allocation66_spill] sm:$0xff] %v4992_v0  ;;  %v5002_v43 = vld [vmem:[%s9820_s3 + $0x278] sm:$0xff] }
  0x2f   :  { %566 = vmatprep.mubr.f32.mxu1 %v9823_v3  ;;  %9862 = vst [vmem:[#allocation27_spill] sm:$0xff] %v4712_v34  ;;  %9903 = vst [vmem:[#allocation68_spill] sm:$0xff] %v5002_v43  ;;  %v5007_v35 = vld [vmem:[%s9820_s3 + $0x280] sm:$0xff]  ;;  %v5012_v57 = vld [vmem:[%s9820_s3 + $0x288] sm:$0xff] }
  0x30   :  { %v5017_v0 = vld [vmem:[%s9820_s3 + $0x290] sm:$0xff]  ;;  %v5027_v43 = vld [vmem:[%s9820_s3 + $0x2a0] sm:$0xff]  ;;  %v5042_v41 = vld [vmem:[%s9820_s3 + $0x2b8] sm:$0xff] }
  0x31   :  { %3003 = vmatmul.mubr.msk.f32.gmra.mrb[18].mxu0 %vm132_vm0, %v51_v47  ;;  %9904 = vst [vmem:[#allocation69_spill] sm:$0xff] %v5017_v0  ;;  %9905 = vst [vmem:[#allocation70_spill] sm:$0xff] %v5027_v43  ;;  %v5037_v50 = vld [vmem:[%s9820_s3 + $0x2b0] sm:$0xff]  ;;  %v5047_v33 = vld [vmem:[%s9820_s3 + $0x2c0] sm:$0xff] }
  0x32   :  { %3011 = vmatmul.mubr.msk.f32.gmra.mrb[18].mxu1 %vm132_vm0, %v51_v47  ;;  %459 = vmatprep.mubr.f32.mxu0 %v9823_v3  ;;  %v4777_v47 = vld [vmem:[%s9820_s3 + $0x110] sm:$0xff]  ;;  %9907 = vst [vmem:[#allocation72_spill] sm:$0xff] %v5037_v50  ;;  %9908 = vst [vmem:[#allocation73_spill] sm:$0xff] %v5042_v41  ;;  %v5052_v43 = vld [vmem:[%s9820_s3 + $0x2c8] sm:$0xff] }
  0x33   :  { %572 = vmatprep.mubr.f32.mxu1 %v9823_v3  ;;  %v5062_v50 = vld [vmem:[%s9820_s3 + $0x2d8] sm:$0xff]  ;;  %v5067_v41 = vld [vmem:[%s9820_s3 + $0x2e0] sm:$0xff]  ;;  %v5072_v44 = vld [vmem:[%s9820_s3 + $0x2e8] sm:$0xff] }
  0x34   :  { %9910 = vst [vmem:[#allocation75_spill] sm:$0xff] %v5067_v41  ;;  %9911 = vst [vmem:[#allocation76_spill] sm:$0xff] %v5072_v44  ;;  %v5077_v36 = vld [vmem:[%s9820_s3 + $0x2f0] sm:$0xff]  ;;  %v5082_v27 = vld [vmem:[%s9820_s3 + $0x2f8] sm:$0xff] }
  0x35   :  { %3004 = vmatmul.mubr.msk.f32.gmra.mrb[20].mxu0 %vm132_vm0, %v52_v51  ;;  %9912 = vst [vmem:[#allocation77_spill] sm:$0xff] %v5077_v36  ;;  %9913 = vst [vmem:[#allocation78_spill] sm:$0xff] %v5082_v27  ;;  %v5087_v19 = vld [vmem:[%s9820_s3 + $0x300] sm:$0xff]  ;;  %v5092_v41 = vld [vmem:[%s9820_s3 + $0x308] sm:$0xff] }
  0x36   :  { %3012 = vmatmul.mubr.msk.f32.gmra.mrb[20].mxu1 %vm132_vm0, %v52_v51  ;;  %465 = vmatprep.mubr.f32.mxu0 %v9823_v3  ;;  %v4797_v51 = vld [vmem:[%s9820_s3 + $0x130] sm:$0xff]  ;;  %9914 = vst [vmem:[#allocation79_spill] sm:$0xff] %v5087_v19  ;;  %9915 = vst [vmem:[#allocation80_spill] sm:$0xff] %v5092_v41  ;;  %v5102_v36 = vld [vmem:[%s9820_s3 + $0x318] sm:$0xff] }
  0x37   :  { %578 = vmatprep.mubr.f32.mxu1 %v9823_v3  ;;  %9871 = vst [vmem:[#allocation36_spill] sm:$0xff] %v4797_v51  ;;  %v4937_v51 = vld [vmem:[%s9820_s3 + $0x210] sm:$0xff]  ;;  %9917 = vst [vmem:[#allocation82_spill] sm:$0xff] %v5102_v36  ;;  %v5107_v27 = vld [vmem:[%s9820_s3 + $0x320] sm:$0xff] }
  0x38   :  { %v5097_v44 = vld [vmem:[%s9820_s3 + $0x310] sm:$0xff]  ;;  %9918 = vst [vmem:[#allocation83_spill] sm:$0xff] %v5107_v27  ;;  %v5112_v42 = vld [vmem:[%s9820_s3 + $0x328] sm:$0xff]  ;;  %v5122_v25 = vld [vmem:[%s9820_s3 + $0x338] sm:$0xff] }
  0x39   :  { %3005 = vmatmul.mubr.msk.f32.gmra.mrb[22].mxu0 %vm132_vm0, %v53_v52  ;;  %9916 = vst [vmem:[#allocation81_spill] sm:$0xff] %v5097_v44  ;;  %9919 = vst [vmem:[#allocation84_spill] sm:$0xff] %v5112_v42  ;;  %v5117_v34 = vld [vmem:[%s9820_s3 + $0x330] sm:$0xff]  ;;  %v5127_v17 = vld [vmem:[%s9820_s3 + $0x340] sm:$0xff] }
  0x3a   :  { %3013 = vmatmul.mubr.msk.f32.gmra.mrb[22].mxu1 %vm132_vm0, %v53_v52  ;;  %471 = vmatprep.mubr.f32.mxu0 %v9823_v3  ;;  %v4802_v52 = vld [vmem:[%s9820_s3 + $0x138] sm:$0xff]  ;;  %9920 = vst [vmem:[#allocation85_spill] sm:$0xff] %v5117_v34  ;;  %9921 = vst [vmem:[#allocation86_spill] sm:$0xff] %v5122_v25  ;;  %v5132_v27 = vld [vmem:[%s9820_s3 + $0x348] sm:$0xff] }
  0x3b   :  { %584 = vmatprep.mubr.f32.mxu1 %v9823_v3  ;;  %9872 = vst [vmem:[#allocation37_spill] sm:$0xff] %v4802_v52  ;;  %v4997_v52 = vld [vmem:[%s9820_s3 + $0x270] sm:$0xff]  ;;  %9922 = vst [vmem:[#allocation87_spill] sm:$0xff] %v5127_v17  ;;  %v5142_v34 = vld [vmem:[%s9820_s3 + $0x358] sm:$0xff] }
  0x3c   :  { %9902 = vst [vmem:[#allocation67_spill] sm:$0xff] %v4997_v52  ;;  %v5022_v52 = vld [vmem:[%s9820_s3 + $0x298] sm:$0xff]  ;;  %9923 = vst [vmem:[#allocation88_spill] sm:$0xff] %v5132_v27  ;;  %v5137_v42 = vld [vmem:[%s9820_s3 + $0x350] sm:$0xff] }
  0x3d   :  { %3006 = vmatmul.mubr.msk.f32.gmra.mrb[24].mxu0 %vm132_vm0, %v54_v53  ;;  %9924 = vst [vmem:[#allocation89_spill] sm:$0xff] %v5137_v42  ;;  %9925 = vst [vmem:[#allocation90_spill] sm:$0xff] %v5142_v34  ;;  %v5147_v25 = vld [vmem:[%s9820_s3 + $0x360] sm:$0xff]  ;;  %v5152_v28 = vld [vmem:[%s9820_s3 + $0x368] sm:$0xff] }
  0x3e   :  { %3014 = vmatmul.mubr.msk.f32.gmra.mrb[24].mxu1 %vm132_vm0, %v54_v53  ;;  %477 = vmatprep.mubr.f32.mxu0 %v9823_v3  ;;  %v4807_v53 = vld [vmem:[%s9820_s3 + $0x140] sm:$0xff]  ;;  %9926 = vst [vmem:[#allocation91_spill] sm:$0xff] %v5147_v25  ;;  %9927 = vst [vmem:[#allocation92_spill] sm:$0xff] %v5152_v28  ;;  %v5157_v20 = vld [vmem:[%s9820_s3 + $0x370] sm:$0xff] }
  0x3f   :  { %590 = vmatprep.mubr.f32.mxu1 %v9823_v3  ;;  %9928 = vst [vmem:[#allocation93_spill] sm:$0xff] %v5157_v20  ;;  %v5162_v26 = vld [vmem:[%s9820_s3 + $0x378] sm:$0xff]  ;;  %v5167_v18 = vld [vmem:[%s9820_s3 + $0x380] sm:$0xff]  ;;  %v5172_v25 = vld [vmem:[%s9820_s3 + $0x388] sm:$0xff] }
  0x40   :  { %9929 = vst [vmem:[#allocation94_spill] sm:$0xff] %v5162_v26  ;;  %9930 = vst [vmem:[#allocation95_spill] sm:$0xff] %v5167_v18  ;;  %v5177_v28 = vld [vmem:[%s9820_s3 + $0x390] sm:$0xff]  ;;  %v5182_v20 = vld [vmem:[%s9820_s3 + $0x398] sm:$0xff] }
  0x41   :  { %3007 = vmatmul.mubr.msk.f32.gmra.mrb[26].mxu0 %vm132_vm0, %v55_v54  ;;  %9931 = vst [vmem:[#allocation96_spill] sm:$0xff] %v5172_v25  ;;  %9932 = vst [vmem:[#allocation97_spill] sm:$0xff] %v5177_v28  ;;  %v5187_v26 = vld [vmem:[%s9820_s3 + $0x3a0] sm:$0xff]  ;;  %v5192_v18 = vld [vmem:[%s9820_s3 + $0x3a8] sm:$0xff] }
  0x42   :  { %3015 = vmatmul.mubr.msk.f32.gmra.mrb[26].mxu1 %vm132_vm0, %v55_v54  ;;  %483 = vmatprep.mubr.f32.mxu0 %v9823_v3  ;;  %v4812_v54 = vld [vmem:[%s9820_s3 + $0x148] sm:$0xff]  ;;  %9933 = vst [vmem:[#allocation98_spill] sm:$0xff] %v5182_v20  ;;  %9934 = vst [vmem:[#allocation99_spill] sm:$0xff] %v5187_v26  ;;  %v5197_v42 = vld [vmem:[%s9820_s3 + $0x3b0] sm:$0xff] }
  0x43   :  { %596 = vmatprep.mubr.f32.mxu1 %v9823_v3  ;;  %9935 = vst [vmem:[#allocation100_spill] sm:$0xff] %v5192_v18  ;;  %9936 = vst [vmem:[#allocation101_spill] sm:$0xff] %v5197_v42  ;;  %v5202_v28 = vld [vmem:[%s9820_s3 + $0x3b8] sm:$0xff]  ;;  %v5207_v20 = vld [vmem:[%s9820_s3 + $0x3c0] sm:$0xff] }
  0x44   :  { %9937 = vst [vmem:[#allocation102_spill] sm:$0xff] %v5202_v28  ;;  %9938 = vst [vmem:[#allocation103_spill] sm:$0xff] %v5207_v20  ;;  %v5212_v26 = vld [vmem:[%s9820_s3 + $0x3c8] sm:$0xff]  ;;  %v5217_v18 = vld [vmem:[%s9820_s3 + $0x3d0] sm:$0xff] }
  0x45   :  { %3008 = vmatmul.mubr.msk.f32.gmra.mrb[28].mxu0 %vm132_vm0, %v56_v55  ;;  %9939 = vst [vmem:[#allocation104_spill] sm:$0xff] %v5212_v26  ;;  %9940 = vst [vmem:[#allocation105_spill] sm:$0xff] %v5217_v18  ;;  %v5222_v42 = vld [vmem:[%s9820_s3 + $0x3d8] sm:$0xff]  ;;  %v5227_v28 = vld [vmem:[%s9820_s3 + $0x3e0] sm:$0xff] }
  0x46   :  { %3016 = vmatmul.mubr.msk.f32.gmra.mrb[28].mxu1 %vm132_vm0, %v56_v55  ;;  %489 = vmatprep.mubr.f32.mxu0 %v9823_v3  ;;  %v4817_v55 = vld [vmem:[%s9820_s3 + $0x150] sm:$0xff]  ;;  %9941 = vst [vmem:[#allocation106_spill] sm:$0xff] %v5222_v42  ;;  %9942 = vst [vmem:[#allocation107_spill] sm:$0xff] %v5227_v28  ;;  %v5232_v20 = vld [vmem:[%s9820_s3 + $0x3e8] sm:$0xff] }
  0x47   :  { %602 = vmatprep.mubr.f32.mxu1 %v9823_v3  ;;  %v4832_v3 = vld [vmem:[%s9820_s3 + $0x168] sm:$0xff]  ;;  %9943 = vst [vmem:[#allocation108_spill] sm:$0xff] %v5232_v20  ;;  %v5237_v44 = vld [vmem:[%s9820_s3 + $0x3f0] sm:$0xff]  ;;  %v5242_v18 = vld [vmem:[%s9820_s3 + $0x3f8] sm:$0xff] }
  0x48   :  { %9874 = vst [vmem:[#allocation39_spill] sm:$0xff] %v4832_v3  ;;  %v5032_v3 = vld [vmem:[%s9820_s3 + $0x2a8] sm:$0xff]  ;;  %9944 = vst [vmem:[#allocation109_spill] sm:$0xff] %v5237_v44  ;;  %v5247_v42 = vld [vmem:[%s9820_s3 + $0x400] sm:$0xff] }
  0x49   :  { %3009 = vmatmul.mubr.msk.f32.gmra.mrb[30].mxu0 %vm132_vm0, %v57_v56  ;;  %9906 = vst [vmem:[#allocation71_spill] sm:$0xff] %v5032_v3  ;;  %v5057_v3 = vld [vmem:[%s9820_s3 + $0x2d0] sm:$0xff]  ;;  %9945 = vst [vmem:[#allocation110_spill] sm:$0xff] %v5242_v18  ;;  %v5252_v28 = vld [vmem:[%s9820_s3 + $0x408] sm:$0xff] }
  0x4a   :  { %3017 = vmatmul.mubr.msk.f32.gmra.mrb[30].mxu1 %vm132_vm0, %v57_v56  ;;  %v4822_v56 = vld [vmem:[%s9820_s3 + $0x158] sm:$0xff]  ;;  %9909 = vst [vmem:[#allocation74_spill] sm:$0xff] %v5057_v3  ;;  %9946 = vst [vmem:[#allocation111_spill] sm:$0xff] %v5247_v42  ;;  %v5257_v20 = vld [vmem:[%s9820_s3 + $0x410] sm:$0xff] }
  0x4b   :  { %9947 = vst [vmem:[#allocation112_spill] sm:$0xff] %v5252_v28  ;;  %9948 = vst [vmem:[#allocation113_spill] sm:$0xff] %v5257_v20  ;;  %v5262_v44 = vld [vmem:[%s9820_s3 + $0x418] sm:$0xff]  ;;  %v5267_v18 = vld [vmem:[%s9820_s3 + $0x420] sm:$0xff] }
  0x4c   :  { %9949 = vst [vmem:[#allocation114_spill] sm:$0xff] %v5262_v44  ;;  %9950 = vst [vmem:[#allocation115_spill] sm:$0xff] %v5267_v18  ;;  %v5272_v42 = vld [vmem:[%s9820_s3 + $0x428] sm:$0xff]  ;;  %v5277_v28 = vld [vmem:[%s9820_s3 + $0x430] sm:$0xff] }
  0x4d   :  { %9951 = vst [vmem:[#allocation116_spill] sm:$0xff] %v5272_v42  ;;  %9952 = vst [vmem:[#allocation117_spill] sm:$0xff] %v5277_v28  ;;  %v5282_v20 = vld [vmem:[%s9820_s3 + $0x438] sm:$0xff]  ;;  %v5287_v44 = vld [vmem:[%s9820_s3 + $0x440] sm:$0xff] }
  0x4e   :  { %9953 = vst [vmem:[#allocation118_spill] sm:$0xff] %v5282_v20  ;;  %9954 = vst [vmem:[#allocation119_spill] sm:$0xff] %v5287_v44  ;;  %v5292_v18 = vld [vmem:[%s9820_s3 + $0x448] sm:$0xff]  ;;  %v5297_v42 = vld [vmem:[%s9820_s3 + $0x450] sm:$0xff] }
  0x4f   :  { %9955 = vst [vmem:[#allocation120_spill] sm:$0xff] %v5292_v18  ;;  %9956 = vst [vmem:[#allocation121_spill] sm:$0xff] %v5297_v42  ;;  %v5302_v28 = vld [vmem:[%s9820_s3 + $0x458] sm:$0xff]  ;;  %v5307_v20 = vld [vmem:[%s9820_s3 + $0x460] sm:$0xff] }
  0x50   :  { %9957 = vst [vmem:[#allocation122_spill] sm:$0xff] %v5302_v28  ;;  %9958 = vst [vmem:[#allocation123_spill] sm:$0xff] %v5307_v20  ;;  %v5312_v44 = vld [vmem:[%s9820_s3 + $0x468] sm:$0xff]  ;;  %v5317_v18 = vld [vmem:[%s9820_s3 + $0x470] sm:$0xff] }
  0x51   :  { %9959 = vst [vmem:[#allocation124_spill] sm:$0xff] %v5312_v44  ;;  %9960 = vst [vmem:[#allocation125_spill] sm:$0xff] %v5317_v18  ;;  %v5322_v42 = vld [vmem:[%s9820_s3 + $0x478] sm:$0xff]  ;;  %v5327_v28 = vld [vmem:[%s9820_s3 + $0x480] sm:$0xff] }
  0x52   :  { %9961 = vst [vmem:[#allocation126_spill] sm:$0xff] %v5322_v42  ;;  %9962 = vst [vmem:[#allocation127_spill] sm:$0xff] %v5327_v28  ;;  %v5332_v20 = vld [vmem:[%s9820_s3 + $0x488] sm:$0xff]  ;;  %v5337_v44 = vld [vmem:[%s9820_s3 + $0x490] sm:$0xff] }
  0x53   :  { %9963 = vst [vmem:[#allocation128_spill] sm:$0xff] %v5332_v20  ;;  %9964 = vst [vmem:[#allocation129_spill] sm:$0xff] %v5337_v44  ;;  %v5342_v18 = vld [vmem:[%s9820_s3 + $0x498] sm:$0xff]  ;;  %v5347_v42 = vld [vmem:[%s9820_s3 + $0x4a0] sm:$0xff] }
  0x54   :  { %9965 = vst [vmem:[#allocation130_spill] sm:$0xff] %v5342_v18  ;;  %9966 = vst [vmem:[#allocation131_spill] sm:$0xff] %v5347_v42  ;;  %v5352_v28 = vld [vmem:[%s9820_s3 + $0x4a8] sm:$0xff]  ;;  %v5357_v20 = vld [vmem:[%s9820_s3 + $0x4b0] sm:$0xff] }
  0x55   :  { %9967 = vst [vmem:[#allocation132_spill] sm:$0xff] %v5352_v28  ;;  %9968 = vst [vmem:[#allocation133_spill] sm:$0xff] %v5357_v20  ;;  %v5362_v44 = vld [vmem:[%s9820_s3 + $0x4b8] sm:$0xff]  ;;  %v5367_v18 = vld [vmem:[%s9820_s3 + $0x4c0] sm:$0xff] }
  0x56   :  { %9969 = vst [vmem:[#allocation134_spill] sm:$0xff] %v5362_v44  ;;  %9970 = vst [vmem:[#allocation135_spill] sm:$0xff] %v5367_v18  ;;  %v5372_v42 = vld [vmem:[%s9820_s3 + $0x4c8] sm:$0xff]  ;;  %v5377_v28 = vld [vmem:[%s9820_s3 + $0x4d0] sm:$0xff] }
  0x57   :  { %9971 = vst [vmem:[#allocation136_spill] sm:$0xff] %v5372_v42  ;;  %9972 = vst [vmem:[#allocation137_spill] sm:$0xff] %v5377_v28  ;;  %v5382_v20 = vld [vmem:[%s9820_s3 + $0x4d8] sm:$0xff]  ;;  %v5387_v44 = vld [vmem:[%s9820_s3 + $0x4e0] sm:$0xff] }
  0x58   :  { %9973 = vst [vmem:[#allocation138_spill] sm:$0xff] %v5382_v20  ;;  %9974 = vst [vmem:[#allocation139_spill] sm:$0xff] %v5387_v44  ;;  %v5392_v18 = vld [vmem:[%s9820_s3 + $0x4e8] sm:$0xff]  ;;  %v5397_v42 = vld [vmem:[%s9820_s3 + $0x4f0] sm:$0xff] }
  0x59   :  { %9975 = vst [vmem:[#allocation140_spill] sm:$0xff] %v5392_v18  ;;  %9976 = vst [vmem:[#allocation141_spill] sm:$0xff] %v5397_v42  ;;  %v5402_v28 = vld [vmem:[%s9820_s3 + $0x4f8] sm:$0xff]  ;;  %v5407_v20 = vld [vmem:[%s9820_s3 + $0x500] sm:$0xff] }
  0x5a   :  { %9977 = vst [vmem:[#allocation142_spill] sm:$0xff] %v5402_v28  ;;  %9978 = vst [vmem:[#allocation143_spill] sm:$0xff] %v5407_v20  ;;  %v5412_v44 = vld [vmem:[%s9820_s3 + $0x508] sm:$0xff]  ;;  %v5417_v18 = vld [vmem:[%s9820_s3 + $0x510] sm:$0xff] }
  0x5b   :  { %9979 = vst [vmem:[#allocation144_spill] sm:$0xff] %v5412_v44  ;;  %9980 = vst [vmem:[#allocation145_spill] sm:$0xff] %v5417_v18  ;;  %v5422_v42 = vld [vmem:[%s9820_s3 + $0x518] sm:$0xff]  ;;  %v5427_v28 = vld [vmem:[%s9820_s3 + $0x520] sm:$0xff] }
  0x5c   :  { %9981 = vst [vmem:[#allocation146_spill] sm:$0xff] %v5422_v42  ;;  %9982 = vst [vmem:[#allocation147_spill] sm:$0xff] %v5427_v28  ;;  %v5432_v20 = vld [vmem:[%s9821_s4] sm:$0xff]  ;;  %v5437_v44 = vld [vmem:[%s9820_s3 + $0x528] sm:$0xff] }
  0x5d   :  { %9983 = vst [vmem:[#allocation148_spill] sm:$0xff] %v5437_v44  ;;  %v5442_v18 = vld [vmem:[%s9820_s3 + $0x530] sm:$0xff]  ;;  %v5447_v42 = vld [vmem:[%s9820_s3 + $0x538] sm:$0xff]  ;;  %v5452_v28 = vld [vmem:[%s9820_s3 + $0x540] sm:$0xff]  ;;  %v5535_v25 = vrot.slane %v5432_v20, %v4558_v61 }
  0x5e   :  { %9984 = vst [vmem:[#allocation149_spill] sm:$0xff] %v5442_v18  ;;  %9985 = vst [vmem:[#allocation150_spill] sm:$0xff] %v5447_v42  ;;  %v5457_v26 = vld [vmem:[%s9820_s3 + $0x548] sm:$0xff]  ;;  %v5462_v44 = vld [vmem:[%s9820_s3 + $0x550] sm:$0xff] }
  0x5f   :  { %9986 = vst [vmem:[#allocation151_spill] sm:$0xff] %v5452_v28  ;;  %9987 = vst [vmem:[#allocation152_spill] sm:$0xff] %v5457_v26  ;;  %v5467_v18 = vld [vmem:[%s9820_s3 + $0x558] sm:$0xff]  ;;  %v5472_v42 = vld [vmem:[%s9820_s3 + $0x560] sm:$0xff] }
  0x60   :  { %9988 = vst [vmem:[#allocation153_spill] sm:$0xff] %v5462_v44  ;;  %9989 = vst [vmem:[#allocation154_spill] sm:$0xff] %v5467_v18  ;;  %v5477_v28 = vld [vmem:[%s9820_s3 + $0x568] sm:$0xff]  ;;  %v5482_v26 = vld [vmem:[%s9820_s3 + $0x570] sm:$0xff] }
  0x61   :  { %9990 = vst [vmem:[#allocation155_spill] sm:$0xff] %v5472_v42  ;;  %9991 = vst [vmem:[#allocation156_spill] sm:$0xff] %v5477_v28  ;;  %v5487_v44 = vld [vmem:[%s9820_s3 + $0x578] sm:$0xff]  ;;  %v5492_v18 = vld [vmem:[%s9820_s3 + $0x580] sm:$0xff] }
  0x62   :  { %9992 = vst [vmem:[#allocation157_spill] sm:$0xff] %v5482_v26  ;;  %9993 = vst [vmem:[#allocation158_spill] sm:$0xff] %v5487_v44  ;;  %v5497_v42 = vld [vmem:[%s9820_s3 + $0x588] sm:$0xff]  ;;  %v5502_v28 = vld [vmem:[%s9820_s3 + $0x590] sm:$0xff]  ;;  %v5511_v44 = vrot.slane %v5432_v20, %v4554_v59 }
  0x63   :  { %9994 = vst [vmem:[#allocation159_spill] sm:$0xff] %v5492_v18  ;;  %9995 = vst [vmem:[#allocation160_spill] sm:$0xff] %v5497_v42  ;;  %v5507_v26 = vld [vmem:[%s9820_s3 + $0x598] sm:$0xff]  ;;  %v5516_v18 = vld [vmem:[%s9820_s3 + $0x5a0] sm:$0xff] }
  0x64   :  { %9996 = vst [vmem:[#allocation161_spill] sm:$0xff] %v5502_v28  ;;  %9997 = vst [vmem:[#allocation162_spill] sm:$0xff] %v5507_v26  ;;  %v5521_v42 = vld [vmem:[%s9820_s3 + $0x5a8] sm:$0xff]  ;;  %v5526_v28 = vld [vmem:[%s9820_s3 + $0x5b0] sm:$0xff]  ;;  %v10001_v26 = vsub.s32 2, %v4551_v58 }
  0x65   :  { %9998 = vst [vmem:[#allocation163_spill] sm:$0xff] %v5516_v18  ;;  %9999 = vst [vmem:[#allocation164_spill] sm:$0xff] %v5521_v42  ;;  %v5540_v18 = vld [vmem:[%s9820_s3 + $0x5b8] sm:$0xff]  ;;  %v5545_v42 = vld [vmem:[%s9820_s3 + $0x5c0] sm:$0xff] }
  0x66   :  { %10000 = vst [vmem:[#allocation165_spill] sm:$0xff] %v5526_v28  ;;  %v5531_v59 = vrot.slane %v5432_v20, %v10001_v26  ;;  %10002 = vst [vmem:[#allocation166_spill] sm:$0xff] %v5540_v18  ;;  %v5550_v28 = vld [vmem:[%s9820_s3 + $0x5c8] sm:$0xff]  ;;  %v10005_v26 = vsub.s32 3, %v4551_v58  ;;  %v5560_v17 = vld [vmem:[%s9820_s3 + $0x5d0] sm:$0xff] }
  0x67   :  { %10003 = vst [vmem:[#allocation167_spill] sm:$0xff] %v5545_v42  ;;  %10004 = vst [vmem:[#allocation168_spill] sm:$0xff] %v5550_v28  ;;  %v5565_v18 = vld [vmem:[%s9820_s3 + $0x5d8] sm:$0xff]  ;;  %v5570_v42 = vld [vmem:[%s9820_s3 + $0x5e0] sm:$0xff] }
  0x68   :  { %v5555_v61 = vrot.slane %v5432_v20, %v10005_v26  ;;  %10006 = vst [vmem:[#allocation169_spill] sm:$0xff] %v5560_v17  ;;  %10007 = vst [vmem:[#allocation170_spill] sm:$0xff] %v5565_v18  ;;  %v5575_v26 = vld [vmem:[%s9820_s3 + $0x5e8] sm:$0xff]  ;;  %v5580_v17 = vld [vmem:[%s9820_s3 + $0x5f0] sm:$0xff] }
  0x69   :  { %10008 = vst [vmem:[#allocation171_spill] sm:$0xff] %v5570_v42  ;;  %10009 = vst [vmem:[#allocation172_spill] sm:$0xff] %v5575_v26  ;;  %v5585_v18 = vld [vmem:[%s9820_s3 + $0x5f8] sm:$0xff]  ;;  %v5591_v36 = vld [vmem:[%s9820_s3 + $0x600] sm:$0xff] }
  0x6a   :  { %10010 = vst [vmem:[#allocation173_spill] sm:$0xff] %v5580_v17  ;;  %10011 = vst [vmem:[#allocation174_spill] sm:$0xff] %v5585_v18  ;;  %v5596_v26 = vld [vmem:[%s9820_s3 + $0x608] sm:$0xff]  ;;  %v5601_v17 = vld [vmem:[%s9820_s3 + $0x610] sm:$0xff] }
  0x6b   :  { %10012 = vst [vmem:[#allocation175_spill] sm:$0xff] %v5591_v36  ;;  %10013 = vst [vmem:[#allocation176_spill] sm:$0xff] %v5596_v26  ;;  %v5608_v0 = vld [vmem:[%s9820_s3 + $0x618] sm:$0xff]  ;;  %v5613_v36 = vld [vmem:[%s9820_s3 + $0x620] sm:$0xff] }
  0x6c   :  { %10014 = vst [vmem:[#allocation177_spill] sm:$0xff] %v5601_v17  ;;  %10015 = vst [vmem:[#allocation178_spill] sm:$0xff] %v5608_v0  ;;  %v5618_v26 = vld [vmem:[%s9820_s3 + $0x628] sm:$0xff]  ;;  %v5629_v17 = vld [vmem:[%s9820_s3 + $0x638] sm:$0xff] }
  0x6d   :  { %10016 = vst [vmem:[#allocation179_spill] sm:$0xff] %v5613_v36  ;;  %10017 = vst [vmem:[#allocation180_spill] sm:$0xff] %v5618_v26  ;;  %v5634_v36 = vld [vmem:[%s9820_s3 + $0x640] sm:$0xff]  ;;  %v5660_v0 = vld [vmem:[%s9820_s3 + $0x668] sm:$0xff] }
  0x6e   :  { %10019 = vst [vmem:[#allocation182_spill] sm:$0xff] %v5629_v17  ;;  %10020 = vst [vmem:[#allocation183_spill] sm:$0xff] %v5634_v36  ;;  %v5649_v17 = vld [vmem:[%s9820_s3 + $0x658] sm:$0xff]  ;;  %v5655_v36 = vld [vmem:[%s9820_s3 + $0x660] sm:$0xff] }
  0x6f   :  { %10023 = vst [vmem:[#allocation186_spill] sm:$0xff] %v5649_v17  ;;  %10024 = vst [vmem:[#allocation187_spill] sm:$0xff] %v5655_v36  ;;  %v5677_v36 = vld [vmem:[%s9820_s3 + $0x680] sm:$0xff] }
  0x70   :  { %10025 = vst [vmem:[#allocation188_spill] sm:$0xff] %v5660_v0  ;;  %10028 = vst [vmem:[#allocation191_spill] sm:$0xff] %v5677_v36  ;;  %v5682_v0 = vld [vmem:[%s9820_s3 + $0x688] sm:$0xff]  ;;  %v5713_v36 = vld [vmem:[%s9820_s3 + $0x6b8] sm:$0xff] }
  0x71   :  { %10029 = vst [vmem:[#allocation192_spill] sm:$0xff] %v5682_v0  ;;  %10035 = vst [vmem:[#allocation198_spill] sm:$0xff] %v5713_v36  ;;  %v5736_v0 = vld [vmem:[%s9820_s3 + $0x6d8] sm:$0xff] }
  0x72   :  { %10039 = vst [vmem:[#allocation202_spill] sm:$0xff] %v5736_v0  ;;  %v5800_v0 = vld [vmem:[%s9820_s3 + $0x738] sm:$0xff] }
  0x73   :  { %10051 = vst [vmem:[#allocation214_spill] sm:$0xff] %v5800_v0  ;;  %v5826_v0 = vld [vmem:[%s9820_s3 + $0x760] sm:$0xff] }
  0x74   :  { %10056 = vst [vmem:[#allocation219_spill] sm:$0xff] %v5826_v0 }
  0xe0   :  { %v223_v28 = vpop.f32.mrb[0].mxu0 }
  0xe1   :  { %v224_v19 = vadd.f32 %v223_v28, %v5511_v44  ;;  %v336_v34 = vpop.f32.mrb[0].mxu1  ;;  %v225_v42 = vpop.f32.mrb[1].mxu0 }
  0xe2   :  { %v337_v18 = vadd.f32 %v336_v34, %v5531_v59  ;;  %v226_v28 = vadd.f32 %v225_v42, %v5535_v25  ;;  %v338_v3 = vpop.f32.mrb[1].mxu1  ;;  %v5624_v42 = vld [vmem:[%s9820_s3 + $0x630] sm:$0xff] }
  0xe3   :  { %609 = vst [vmem:[#allocation2] sm:$0xff] %v224_v19  ;;  %v339_v34 = vadd.f32 %v338_v3, %v5555_v61  ;;  %10018 = vst [vmem:[#allocation181_spill] sm:$0xff] %v5624_v42  ;;  %v5639_v3 = vld [vmem:[%s9820_s3 + $0x648] sm:$0xff]  ;;  %v5644_v42 = vld [vmem:[%s9820_s3 + $0x650] sm:$0xff] }
  0xe4   :  { %611 = vst [vmem:[#allocation2 + $0x10] sm:$0xff] %v337_v18  ;;  %610 = vst [vmem:[#allocation2 + $0x8] sm:$0xff] %v226_v28  ;;  %v229_v19 = vpop.f32.mrb[2].mxu0 }
  0xe5   :  { %10021 = vst [vmem:[#allocation184_spill] sm:$0xff] %v5639_v3  ;;  %10022 = vst [vmem:[#allocation185_spill] sm:$0xff] %v5644_v42  ;;  %v230_v18 = vadd.f32 %v229_v19, %v5511_v44  ;;  %v342_v28 = vpop.f32.mrb[2].mxu1  ;;  %v231_v26 = vpop.f32.mrb[3].mxu0  ;;  %v5665_v42 = vld [vmem:[%s9820_s3 + $0x670] sm:$0xff]  ;;  %v5672_v3 = vld [vmem:[%s9820_s3 + $0x678] sm:$0xff] }
  0xe6   :  { %612 = vst [vmem:[#allocation2 + $0x18] sm:$0xff] %v339_v34  ;;  %10026 = vst [vmem:[#allocation189_spill] sm:$0xff] %v5665_v42  ;;  %v343_v34 = vadd.f32 %v342_v28, %v5531_v59  ;;  %v232_v19 = vadd.f32 %v231_v26, %v5535_v25  ;;  %v344_v17 = vpop.f32.mrb[3].mxu1  ;;  %v5688_v26 = vld [vmem:[%s9820_s3 + $0x690] sm:$0xff]  ;;  %v5693_v42 = vld [vmem:[%s9820_s3 + $0x698] sm:$0xff] }
  0xe7   :  { %10027 = vst [vmem:[#allocation190_spill] sm:$0xff] %v5672_v3  ;;  %617 = vst [vmem:[#allocation2 + $0x40] sm:$0xff] %v230_v18  ;;  %v345_v28 = vadd.f32 %v344_v17, %v5555_v61  ;;  %v5698_v3 = vld [vmem:[%s9820_s3 + $0x6a0] sm:$0xff]  ;;  %v5703_v17 = vld [vmem:[%s9820_s3 + $0x6a8] sm:$0xff] }
  0xe8   :  { %10030 = vst [vmem:[#allocation193_spill] sm:$0xff] %v5688_v26  ;;  %10031 = vst [vmem:[#allocation194_spill] sm:$0xff] %v5693_v42  ;;  %v235_v18 = vpop.f32.mrb[4].mxu0  ;;  %v5708_v26 = vld [vmem:[%s9820_s3 + $0x6b0] sm:$0xff]  ;;  %v5719_v42 = vld [vmem:[%s9820_s3 + $0x6c0] sm:$0xff] }
  0xe9   :  { %10032 = vst [vmem:[#allocation195_spill] sm:$0xff] %v5698_v3  ;;  %619 = vst [vmem:[#allocation2 + $0x50] sm:$0xff] %v343_v34  ;;  %v236_v34 = vadd.f32 %v235_v18, %v5511_v44  ;;  %v237_v3 = vpop.f32.mrb[5].mxu0 }
  0xea   :  { %618 = vst [vmem:[#allocation2 + $0x48] sm:$0xff] %v232_v19  ;;  %10033 = vst [vmem:[#allocation196_spill] sm:$0xff] %v5703_v17  ;;  %v348_v19 = vpop.f32.mrb[4].mxu1  ;;  %v5724_v17 = vld [vmem:[%s9820_s3 + $0x6c8] sm:$0xff]  ;;  %v238_v18 = vadd.f32 %v237_v3, %v5535_v25  ;;  %v5752_v3 = vld [vmem:[%s9820_s3 + $0x6f0] sm:$0xff] }
  0xeb   :  { %10034 = vst [vmem:[#allocation197_spill] sm:$0xff] %v5708_v26  ;;  %620 = vst [vmem:[#allocation2 + $0x58] sm:$0xff] %v345_v28  ;;  %v5729_v26 = vld [vmem:[%s9820_s3 + $0x6d0] sm:$0xff]  ;;  %v349_v28 = vadd.f32 %v348_v19, %v5531_v59  ;;  %v350_v36 = vpop.f32.mrb[5].mxu1 }
  0xec   :  { %10036 = vst [vmem:[#allocation199_spill] sm:$0xff] %v5719_v42  ;;  %10037 = vst [vmem:[#allocation200_spill] sm:$0xff] %v5724_v17  ;;  %v5741_v42 = vld [vmem:[%s9820_s3 + $0x6e0] sm:$0xff]  ;;  %v5746_v17 = vld [vmem:[%s9820_s3 + $0x6e8] sm:$0xff]  ;;  %v351_v19 = vadd.f32 %v350_v36, %v5555_v61 }
  0xed   :  { %10038 = vst [vmem:[#allocation201_spill] sm:$0xff] %v5729_v26  ;;  %10040 = vst [vmem:[#allocation203_spill] sm:$0xff] %v5741_v42  ;;  %v5757_v26 = vld [vmem:[%s9820_s3 + $0x6f8] sm:$0xff]  ;;  %v5762_v42 = vld [vmem:[%s9820_s3 + $0x700] sm:$0xff] }
  0xee   :  { %10041 = vst [vmem:[#allocation204_spill] sm:$0xff] %v5746_v17  ;;  %625 = vst [vmem:[#allocation2 + $0x80] sm:$0xff] %v236_v34  ;;  %v241_v34 = vpop.f32.mrb[6].mxu0  ;;  %v5767_v36 = vld [vmem:[%s9820_s3 + $0x708] sm:$0xff] }
  0xef   :  { %10042 = vst [vmem:[#allocation205_spill] sm:$0xff] %v5752_v3  ;;  %10043 = vst [vmem:[#allocation206_spill] sm:$0xff] %v5757_v26  ;;  %v5772_v3 = vld [vmem:[%s9820_s3 + $0x710] sm:$0xff]  ;;  %v5777_v26 = vld [vmem:[%s9820_s3 + $0x718] sm:$0xff]  ;;  %v243_v17 = vpop.f32.mrb[7].mxu0 }
  0xf0   :  { %10044 = vst [vmem:[#allocation207_spill] sm:$0xff] %v5762_v42  ;;  %627 = vst [vmem:[#allocation2 + $0x90] sm:$0xff] %v349_v28  ;;  %v242_v28 = vadd.f32 %v241_v34, %v5511_v44  ;;  %v5783_v42 = vld [vmem:[%s9820_s3 + $0x720] sm:$0xff]  ;;  %v244_v34 = vadd.f32 %v243_v17, %v5535_v25  ;;  %v5816_v17 = vld [vmem:[%s9820_s3 + $0x750] sm:$0xff] }
  0xf1   :  { %626 = vst [vmem:[#allocation2 + $0x88] sm:$0xff] %v238_v18  ;;  %10045 = vst [vmem:[#allocation208_spill] sm:$0xff] %v5767_v36  ;;  %v354_v18 = vpop.f32.mrb[6].mxu1  ;;  %v5788_v36 = vld [vmem:[%s9820_s3 + $0x728] sm:$0xff] }
  0xf2   :  { %10046 = vst [vmem:[#allocation209_spill] sm:$0xff] %v5772_v3  ;;  %10047 = vst [vmem:[#allocation210_spill] sm:$0xff] %v5777_v26  ;;  %v5793_v3 = vld [vmem:[%s9820_s3 + $0x730] sm:$0xff]  ;;  %v356_v26 = vpop.f32.mrb[7].mxu1 }
  0xf3   :  { %628 = vst [vmem:[#allocation2 + $0x98] sm:$0xff] %v351_v19  ;;  %10048 = vst [vmem:[#allocation211_spill] sm:$0xff] %v5783_v42  ;;  %v355_v19 = vadd.f32 %v354_v18, %v5531_v59  ;;  %v5805_v42 = vld [vmem:[%s9820_s3 + $0x740] sm:$0xff]  ;;  %v357_v18 = vadd.f32 %v356_v26, %v5555_v61  ;;  %v5831_v26 = vld [vmem:[%s9820_s3 + $0x768] sm:$0xff] }
  0xf4   :  { %10049 = vst [vmem:[#allocation212_spill] sm:$0xff] %v5788_v36  ;;  %10050 = vst [vmem:[#allocation213_spill] sm:$0xff] %v5793_v3  ;;  %v5810_v36 = vld [vmem:[%s9820_s3 + $0x748] sm:$0xff]  ;;  %v5821_v3 = vld [vmem:[%s9820_s3 + $0x758] sm:$0xff] }
  0xf5   :  { %10052 = vst [vmem:[#allocation215_spill] sm:$0xff] %v5805_v42  ;;  %10053 = vst [vmem:[#allocation216_spill] sm:$0xff] %v5810_v36  ;;  %v5841_v42 = vld [vmem:[%s9820_s3 + $0x778] sm:$0xff] }
  0xf6   :  { %633 = vst [vmem:[#allocation2 + $0xc0] sm:$0xff] %v242_v28  ;;  %10054 = vst [vmem:[#allocation217_spill] sm:$0xff] %v5816_v17  ;;  %v247_v28 = vpop.f32.mrb[8].mxu0  ;;  %v5836_v17 = vld [vmem:[%s9820_s3 + $0x770] sm:$0xff]  ;;  %v5864_v36 = vld [vmem:[%s9820_s3 + $0x798] sm:$0xff] }
  0xf7   :  { %10055 = vst [vmem:[#allocation218_spill] sm:$0xff] %v5821_v3  ;;  %635 = vst [vmem:[#allocation2 + $0xd0] sm:$0xff] %v355_v19  ;;  %v248_v19 = vadd.f32 %v247_v28, %v5511_v44  ;;  %v249_v0 = vpop.f32.mrb[9].mxu0  ;;  %v5847_v3 = vld [vmem:[%s9820_s3 + $0x780] sm:$0xff] }
  0xf8   :  { %634 = vst [vmem:[#allocation2 + $0xc8] sm:$0xff] %v244_v34  ;;  %10057 = vst [vmem:[#allocation220_spill] sm:$0xff] %v5831_v26  ;;  %v360_v34 = vpop.f32.mrb[8].mxu1  ;;  %v5852_v26 = vld [vmem:[%s9820_s3 + $0x788] sm:$0xff]  ;;  %v250_v28 = vadd.f32 %v249_v0, %v5535_v25  ;;  %v5880_v0 = vld [vmem:[%s9820_s3 + $0x7b0] sm:$0xff] }
  0xf9   :  { %10058 = vst [vmem:[#allocation221_spill] sm:$0xff] %v5836_v17  ;;  %10059 = vst [vmem:[#allocation222_spill] sm:$0xff] %v5841_v42  ;;  %v5857_v17 = vld [vmem:[%s9820_s3 + $0x790] sm:$0xff]  ;;  %v362_v42 = vpop.f32.mrb[9].mxu1 }
  0xfa   :  { %636 = vst [vmem:[#allocation2 + $0xd8] sm:$0xff] %v357_v18  ;;  %10060 = vst [vmem:[#allocation223_spill] sm:$0xff] %v5847_v3  ;;  %v361_v18 = vadd.f32 %v360_v34, %v5531_v59  ;;  %v5869_v3 = vld [vmem:[%s9820_s3 + $0x7a0] sm:$0xff]  ;;  %v363_v34 = vadd.f32 %v362_v42, %v5555_v61  ;;  %v5895_v42 = vld [vmem:[%s9820_s3 + $0x7c8] sm:$0xff] }
  0xfb   :  { %10061 = vst [vmem:[#allocation224_spill] sm:$0xff] %v5852_v26  ;;  %10062 = vst [vmem:[#allocation225_spill] sm:$0xff] %v5857_v17  ;;  %v5874_v26 = vld [vmem:[%s9820_s3 + $0x7a8] sm:$0xff]  ;;  %v5885_v17 = vld [vmem:[%s9820_s3 + $0x7b8] sm:$0xff] }
  0xfc   :  { %10063 = vst [vmem:[#allocation226_spill] sm:$0xff] %v5864_v36  ;;  %10064 = vst [vmem:[#allocation227_spill] sm:$0xff] %v5869_v3  ;;  %v5890_v3 = vld [vmem:[%s9820_s3 + $0x7c0] sm:$0xff]  ;;  %v5916_v36 = vld [vmem:[%s9820_s3 + $0x7e8] sm:$0xff] }
  0xfd   :  { %10065 = vst [vmem:[#allocation228_spill] sm:$0xff] %v5874_v26  ;;  %641 = vst [vmem:[#allocation2 + $0x100] sm:$0xff] %v248_v19  ;;  %v253_v19 = vpop.f32.mrb[10].mxu0 }
  0xfe   :  { %10066 = vst [vmem:[#allocation229_spill] sm:$0xff] %v5880_v0  ;;  %10067 = vst [vmem:[#allocation230_spill] sm:$0xff] %v5885_v17  ;;  %v5900_v0 = vld [vmem:[%s9820_s3 + $0x7d0] sm:$0xff]  ;;  %v5905_v17 = vld [vmem:[%s9820_s3 + $0x7d8] sm:$0xff]  ;;  %v255_v26 = vpop.f32.mrb[11].mxu0 }
  0xff   :  { %10068 = vst [vmem:[#allocation231_spill] sm:$0xff] %v5890_v3  ;;  %643 = vst [vmem:[#allocation2 + $0x110] sm:$0xff] %v361_v18  ;;  %v254_v18 = vadd.f32 %v253_v19, %v5511_v44  ;;  %v5911_v3 = vld [vmem:[%s9820_s3 + $0x7e0] sm:$0xff]  ;;  %v256_v19 = vadd.f32 %v255_v26, %v5535_v25  ;;  %v5944_v26 = vld [vmem:[%s9822_s5 + $0x10] sm:$0xff] }
 0x100   :  { %642 = vst [vmem:[#allocation2 + $0x108] sm:$0xff] %v250_v28  ;;  %10069 = vst [vmem:[#allocation232_spill] sm:$0xff] %v5895_v42  ;;  %v366_v28 = vpop.f32.mrb[10].mxu1  ;;  %v5928_v42 = vld [vmem:[%s9820_s3 + $0x7f8] sm:$0xff] }
 0x101   :  { %10070 = vst [vmem:[#allocation233_spill] sm:$0xff] %v5900_v0  ;;  %10071 = vst [vmem:[#allocation234_spill] sm:$0xff] %v5905_v17  ;;  %v5921_v0 = vld [vmem:[%s9820_s3 + $0x7f0] sm:$0xff]  ;;  %v368_v17 = vpop.f32.mrb[11].mxu1 }
 0x102   :  { %644 = vst [vmem:[#allocation2 + $0x118] sm:$0xff] %v363_v34  ;;  %10072 = vst [vmem:[#allocation235_spill] sm:$0xff] %v5911_v3  ;;  %v367_v34 = vadd.f32 %v366_v28, %v5531_v59  ;;  %v5933_v3 = vld [vmem:[%s9822_s5] sm:$0xff]  ;;  %v369_v28 = vadd.f32 %v368_v17, %v5555_v61  ;;  %v5959_v17 = vld [vmem:[%s9822_s5 + $0x28] sm:$0xff] }
 0x103   :  { %10073 = vst [vmem:[#allocation236_spill] sm:$0xff] %v5916_v36  ;;  %10074 = vst [vmem:[#allocation237_spill] sm:$0xff] %v5921_v0  ;;  %v5938_v36 = vld [vmem:[%s9822_s5 + $0x8] sm:$0xff]  ;;  %v5949_v0 = vld [vmem:[%s9822_s5 + $0x18] sm:$0xff] }
 0x104   :  { %10075 = vst [vmem:[#allocation238_spill] sm:$0xff] %v5928_v42  ;;  %10076 = vst [vmem:[#allocation239_spill] sm:$0xff] %v5933_v3  ;;  %v5954_v3 = vld [vmem:[%s9822_s5 + $0x20] sm:$0xff]  ;;  %v5992_v42 = vld [vmem:[%s9822_s5 + $0x58] sm:$0xff] }
 0x105   :  { %10077 = vst [vmem:[#allocation240_spill] sm:$0xff] %v5938_v36  ;;  %649 = vst [vmem:[#allocation2 + $0x140] sm:$0xff] %v254_v18  ;;  %v259_v18 = vpop.f32.mrb[12].mxu0  ;;  %v5975_v36 = vld [vmem:[%s9822_s5 + $0x40] sm:$0xff] }
 0x106   :  { %10078 = vst [vmem:[#allocation241_spill] sm:$0xff] %v5944_v26  ;;  %10079 = vst [vmem:[#allocation242_spill] sm:$0xff] %v5949_v0  ;;  %v5964_v26 = vld [vmem:[%s9822_s5 + $0x30] sm:$0xff]  ;;  %v5969_v0 = vld [vmem:[%s9822_s5 + $0x38] sm:$0xff] }
 0x107   :  { %10080 = vst [vmem:[#allocation243_spill] sm:$0xff] %v5954_v3  ;;  %651 = vst [vmem:[#allocation2 + $0x150] sm:$0xff] %v367_v34  ;;  %v260_v34 = vadd.f32 %v259_v18, %v5511_v44  ;;  %v261_v3 = vpop.f32.mrb[13].mxu0 }
 0x108   :  { %650 = vst [vmem:[#allocation2 + $0x148] sm:$0xff] %v256_v19  ;;  %10081 = vst [vmem:[#allocation244_spill] sm:$0xff] %v5959_v17  ;;  %v372_v19 = vpop.f32.mrb[12].mxu1  ;;  %v5980_v17 = vld [vmem:[%s9822_s5 + $0x48] sm:$0xff]  ;;  %v262_v18 = vadd.f32 %v261_v3, %v5535_v25  ;;  %v6008_v3 = vld [vmem:[%s9822_s5 + $0x70] sm:$0xff] }
 0x109   :  { %10082 = vst [vmem:[#allocation245_spill] sm:$0xff] %v5964_v26  ;;  %10083 = vst [vmem:[#allocation246_spill] sm:$0xff] %v5969_v0  ;;  %v5985_v26 = vld [vmem:[%s9822_s5 + $0x50] sm:$0xff]  ;;  %v374_v0 = vpop.f32.mrb[13].mxu1 }
 0x10a   :  { %652 = vst [vmem:[#allocation2 + $0x158] sm:$0xff] %v369_v28  ;;  %10084 = vst [vmem:[#allocation247_spill] sm:$0xff] %v5975_v36  ;;  %v373_v28 = vadd.f32 %v372_v19, %v5531_v59  ;;  %v5997_v36 = vld [vmem:[%s9822_s5 + $0x60] sm:$0xff]  ;;  %v375_v19 = vadd.f32 %v374_v0, %v5555_v61  ;;  %v6023_v0 = vld [vmem:[%s9822_s5 + $0x88] sm:$0xff] }
 0x10b   :  { %10085 = vst [vmem:[#allocation248_spill] sm:$0xff] %v5980_v17  ;;  %10086 = vst [vmem:[#allocation249_spill] sm:$0xff] %v5985_v26  ;;  %v6002_v17 = vld [vmem:[%s9822_s5 + $0x68] sm:$0xff]  ;;  %v6013_v26 = vld [vmem:[%s9822_s5 + $0x78] sm:$0xff] }
 0x10c   :  { %10087 = vst [vmem:[#allocation250_spill] sm:$0xff] %v5992_v42  ;;  %10088 = vst [vmem:[#allocation251_spill] sm:$0xff] %v5997_v36  ;;  %v6018_v36 = vld [vmem:[%s9822_s5 + $0x80] sm:$0xff] }
 0x10d   :  { %10089 = vst [vmem:[#allocation252_spill] sm:$0xff] %v6002_v17  ;;  %657 = vst [vmem:[#allocation2 + $0x180] sm:$0xff] %v260_v34  ;;  %v265_v34 = vpop.f32.mrb[14].mxu0 }
 0x10e   :  { %10090 = vst [vmem:[#allocation253_spill] sm:$0xff] %v6008_v3  ;;  %10091 = vst [vmem:[#allocation254_spill] sm:$0xff] %v6013_v26  ;;  %v6028_v3 = vld [vmem:[%s9822_s5 + $0x90] sm:$0xff]  ;;  %v6033_v26 = vld [vmem:[%s9822_s5 + $0x98] sm:$0xff]  ;;  %v267_v17 = vpop.f32.mrb[15].mxu0 }
 0x10f   :  { %10092 = vst [vmem:[#allocation255_spill] sm:$0xff] %v6018_v36  ;;  %659 = vst [vmem:[#allocation2 + $0x190] sm:$0xff] %v373_v28  ;;  %v266_v28 = vadd.f32 %v265_v34, %v5511_v44  ;;  %v10096_v36 = vsub.s32 4, %v4551_v58  ;;  %v6054_v44 = vld [vmem:[%s9822_s5 + $0xb0] sm:$0xff] }
 0x110   :  { %658 = vst [vmem:[#allocation2 + $0x188] sm:$0xff] %v262_v18  ;;  %10093 = vst [vmem:[#allocation256_spill] sm:$0xff] %v6023_v0  ;;  %v378_v18 = vpop.f32.mrb[14].mxu1  ;;  %v6044_v0 = vld [vmem:[%s9822_s5 + $0xa0] sm:$0xff] }
 0x111   :  { %10094 = vst [vmem:[#allocation257_spill] sm:$0xff] %v6028_v3  ;;  %10095 = vst [vmem:[#allocation258_spill] sm:$0xff] %v6033_v26  ;;  %v6039_v42 = vrot.slane %v5432_v20, %v10096_v36  ;;  %v6049_v3 = vld [vmem:[%s9822_s5 + $0xa8] sm:$0xff]  ;;  %v268_v36 = vadd.f32 %v267_v17, %v5535_v25  ;;  %v380_v34 = vpop.f32.mrb[15].mxu1  ;;  %v10100_v26 = vsub.s32 6, %v4551_v58  ;;  %v10103_v17 = vsub.s32 7, %v4551_v58 }
 0x112   :  { %660 = vst [vmem:[#allocation2 + $0x198] sm:$0xff] %v375_v19  ;;  %10097 = vst [vmem:[#allocation259_spill] sm:$0xff] %v6044_v0  ;;  %v379_v19 = vadd.f32 %v378_v18, %v5531_v59  ;;  %v10101_v0 = vsub.s32 5, %v4551_v58  ;;  %v6076_v59 = vld [vmem:[%s9822_s5 + $0xc0] sm:$0xff]  ;;  %v6081_v25 = vld [vmem:[%s9822_s5 + $0xc8] sm:$0xff]  ;;  %v449_v58 = vpop.f32.mrb[16].mxu0 }
 0x113   :  { %10098 = vst [vmem:[#allocation260_spill] sm:$0xff] %v6049_v3  ;;  %10099 = vst [vmem:[#allocation261_spill] sm:$0xff] %v6054_v44  ;;  %v6061_v27 = vrot.slane %v5432_v20, %v10100_v26  ;;  %v6071_v3 = vld [vmem:[%s9822_s5 + $0xb8] sm:$0xff]  ;;  %v381_v26 = vadd.f32 %v380_v34, %v5555_v61  ;;  %v6092_v18 = vld [vmem:[%s9822_s5 + $0xd0] sm:$0xff] }
 0x114   :  { %v6066_v41 = vrot.slane %v5432_v20, %v10101_v0  ;;  %10102 = vst [vmem:[#allocation262_spill] sm:$0xff] %v6071_v3  ;;  %665 = vst [vmem:[#allocation2 + $0x1c0] sm:$0xff] %v266_v28  ;;  %v6087_v0 = vrot.slane %v5432_v20, %v10103_v17  ;;  %v6097_v44 = vld [vmem:[%s9822_s5 + $0xd8] sm:$0xff]  ;;  %v6102_v28 = vld [vmem:[%s9822_s5 + $0xe0] sm:$0xff]  ;;  %v451_v17 = vpop.f32.mrb[17].mxu0 }
 0x115   :  { %10104 = vst [vmem:[#allocation263_spill] sm:$0xff] %v6092_v18  ;;  %10105 = vst [vmem:[#allocation264_spill] sm:$0xff] %v6102_v28  ;;  %v6107_v61 = vld [vmem:[%s9822_s5 + $0xe8] sm:$0xff]  ;;  %v6112_v20 = vld [vmem:[%s9822_s5 + $0xf0] sm:$0xff] }
 0x116   :  { %667 = vst [vmem:[#allocation2 + $0x1d0] sm:$0xff] %v379_v19  ;;  %666 = vst [vmem:[#allocation2 + $0x1c8] sm:$0xff] %v268_v36  ;;  %v6117_v34 = vld [vmem:[%s9822_s5 + $0xf8] sm:$0xff]  ;;  %v450_v19 = vadd.f32 %v449_v58, %v6039_v42  ;;  %v562_v36 = vpop.f32.mrb[16].mxu1  ;;  %v6123_v28 = vld [vmem:[%s9822_s5 + $0x100] sm:$0xff]  ;;  %v452_v58 = vadd.f32 %v451_v17, %v6066_v41 }
 0x117   :  { %10106 = vst [vmem:[#allocation265_spill] sm:$0xff] %v6107_v61  ;;  %10107 = vst [vmem:[#allocation266_spill] sm:$0xff] %v6112_v20  ;;  %v6128_v3 = vld [vmem:[%s9822_s5 + $0x108] sm:$0xff]  ;;  %v6133_v20 = vld [vmem:[%s9822_s5 + $0x110] sm:$0xff] }
 0x118   :  { %10108 = vst [vmem:[#allocation267_spill] sm:$0xff] %v6117_v34  ;;  %668 = vst [vmem:[#allocation2 + $0x1d8] sm:$0xff] %v381_v26  ;;  %v563_v26 = vadd.f32 %v562_v36, %v6061_v27  ;;  %v564_v34 = vpop.f32.mrb[17].mxu1  ;;  %v6140_v61 = vld [vmem:[%s9822_s5 + $0x118] sm:$0xff]  ;;  %v6156_v17 = vld [vmem:[%s9822_s5 + $0x130] sm:$0xff] }
 0x119   :  { %10109 = vst [vmem:[#allocation268_spill] sm:$0xff] %v6123_v28  ;;  %10110 = vst [vmem:[#allocation269_spill] sm:$0xff] %v6128_v3  ;;  %v6145_v28 = vld [vmem:[%s9822_s5 + $0x120] sm:$0xff]  ;;  %v6150_v3 = vld [vmem:[%s9822_s5 + $0x128] sm:$0xff]  ;;  %v565_v36 = vadd.f32 %v564_v34, %v6087_v0 }
 0x11a   :  { %10111 = vst [vmem:[#allocation270_spill] sm:$0xff] %v6133_v20  ;;  %10112 = vst [vmem:[#allocation271_spill] sm:$0xff] %v6140_v61  ;;  %v6161_v20 = vld [vmem:[%s9822_s5 + $0x138] sm:$0xff]  ;;  %v6171_v34 = vld [vmem:[%s9822_s5 + $0x148] sm:$0xff] }
 0x11b   :  { %10113 = vst [vmem:[#allocation272_spill] sm:$0xff] %v6145_v28  ;;  %10114 = vst [vmem:[#allocation273_spill] sm:$0xff] %v6150_v3  ;;  %v6166_v28 = vld [vmem:[%s9822_s5 + $0x140] sm:$0xff]  ;;  %v6192_v61 = vld [vmem:[%s9822_s5 + $0x168] sm:$0xff] }
 0x11c   :  { %613 = vst [vmem:[#allocation2 + $0x20] sm:$0xff] %v450_v19  ;;  %10115 = vst [vmem:[#allocation274_spill] sm:$0xff] %v6156_v17  ;;  %v455_v19 = vpop.f32.mrb[18].mxu0  ;;  %v6176_v17 = vld [vmem:[%s9822_s5 + $0x150] sm:$0xff] }
 0x11d   :  { %10116 = vst [vmem:[#allocation275_spill] sm:$0xff] %v6161_v20  ;;  %10117 = vst [vmem:[#allocation276_spill] sm:$0xff] %v6166_v28  ;;  %v6181_v20 = vld [vmem:[%s9822_s5 + $0x158] sm:$0xff]  ;;  %v457_v3 = vpop.f32.mrb[19].mxu0  ;;  %v6187_v28 = vld [vmem:[%s9822_s5 + $0x160] sm:$0xff] }
 0x11e   :  { %615 = vst [vmem:[#allocation2 + $0x30] sm:$0xff] %v563_v26  ;;  %614 = vst [vmem:[#allocation2 + $0x28] sm:$0xff] %v452_v58  ;;  %v456_v26 = vadd.f32 %v455_v19, %v6039_v42  ;;  %v568_v58 = vpop.f32.mrb[18].mxu1  ;;  %v458_v19 = vadd.f32 %v457_v3, %v6066_v41  ;;  %v6220_v3 = vld [vmem:[%s9822_s5 + $0x190] sm:$0xff] }
 0x11f   :  { %10118 = vst [vmem:[#allocation277_spill] sm:$0xff] %v6171_v34  ;;  %10119 = vst [vmem:[#allocation278_spill] sm:$0xff] %v6176_v17  ;;  %v6197_v17 = vld [vmem:[%s9822_s5 + $0x170] sm:$0xff]  ;;  %v6204_v34 = vld [vmem:[%s9822_s5 + $0x178] sm:$0xff] }
 0x120   :  { %10120 = vst [vmem:[#allocation279_spill] sm:$0xff] %v6181_v20  ;;  %616 = vst [vmem:[#allocation2 + $0x38] sm:$0xff] %v565_v36  ;;  %v569_v36 = vadd.f32 %v568_v58, %v6061_v27  ;;  %v570_v20 = vpop.f32.mrb[19].mxu1 }
 0x121   :  { %10121 = vst [vmem:[#allocation280_spill] sm:$0xff] %v6187_v28  ;;  %10122 = vst [vmem:[#allocation281_spill] sm:$0xff] %v6192_v61  ;;  %v6209_v28 = vld [vmem:[%s9822_s5 + $0x180] sm:$0xff]  ;;  %v6214_v61 = vld [vmem:[%s9822_s5 + $0x188] sm:$0xff]  ;;  %v571_v58 = vadd.f32 %v570_v20, %v6087_v0 }
 0x122   :  { %10123 = vst [vmem:[#allocation282_spill] sm:$0xff] %v6197_v17  ;;  %10124 = vst [vmem:[#allocation283_spill] sm:$0xff] %v6204_v34  ;;  %v6225_v17 = vld [vmem:[%s9822_s5 + $0x198] sm:$0xff]  ;;  %v6230_v34 = vld [vmem:[%s9822_s5 + $0x1a0] sm:$0xff] }
 0x123   :  { %10125 = vst [vmem:[#allocation284_spill] sm:$0xff] %v6209_v28  ;;  %10126 = vst [vmem:[#allocation285_spill] sm:$0xff] %v6214_v61  ;;  %v6235_v20 = vld [vmem:[%s9822_s5 + $0x1a8] sm:$0xff]  ;;  %v6245_v28 = vld [vmem:[%s9822_s5 + $0x1b8] sm:$0xff] }
 0x124   :  { %621 = vst [vmem:[#allocation2 + $0x60] sm:$0xff] %v456_v26  ;;  %10127 = vst [vmem:[#allocation286_spill] sm:$0xff] %v6220_v3  ;;  %v461_v26 = vpop.f32.mrb[20].mxu0  ;;  %v6240_v3 = vld [vmem:[%s9822_s5 + $0x1b0] sm:$0xff]  ;;  %v6268_v61 = vld [vmem:[%s9822_s5 + $0x1d8] sm:$0xff] }
 0x125   :  { %10128 = vst [vmem:[#allocation287_spill] sm:$0xff] %v6225_v17  ;;  %10129 = vst [vmem:[#allocation288_spill] sm:$0xff] %v6230_v34  ;;  %v463_v34 = vpop.f32.mrb[21].mxu0  ;;  %v6251_v17 = vld [vmem:[%s9822_s5 + $0x1c0] sm:$0xff] }
 0x126   :  { %623 = vst [vmem:[#allocation2 + $0x70] sm:$0xff] %v569_v36  ;;  %622 = vst [vmem:[#allocation2 + $0x68] sm:$0xff] %v458_v19  ;;  %v462_v36 = vadd.f32 %v461_v26, %v6039_v42  ;;  %v574_v19 = vpop.f32.mrb[20].mxu1  ;;  %v464_v26 = vadd.f32 %v463_v34, %v6066_v41  ;;  %v6284_v34 = vld [vmem:[%s9822_s5 + $0x1f0] sm:$0xff] }
 0x127   :  { %10130 = vst [vmem:[#allocation289_spill] sm:$0xff] %v6235_v20  ;;  %10131 = vst [vmem:[#allocation290_spill] sm:$0xff] %v6240_v3  ;;  %v6256_v20 = vld [vmem:[%s9822_s5 + $0x1c8] sm:$0xff]  ;;  %v6261_v3 = vld [vmem:[%s9822_s5 + $0x1d0] sm:$0xff] }
 0x128   :  { %10132 = vst [vmem:[#allocation291_spill] sm:$0xff] %v6245_v28  ;;  %624 = vst [vmem:[#allocation2 + $0x78] sm:$0xff] %v571_v58  ;;  %v575_v58 = vadd.f32 %v574_v19, %v6061_v27  ;;  %v576_v28 = vpop.f32.mrb[21].mxu1 }
 0x129   :  { %10133 = vst [vmem:[#allocation292_spill] sm:$0xff] %v6251_v17  ;;  %10134 = vst [vmem:[#allocation293_spill] sm:$0xff] %v6256_v20  ;;  %v6273_v17 = vld [vmem:[%s9822_s5 + $0x1e0] sm:$0xff]  ;;  %v6278_v20 = vld [vmem:[%s9822_s5 + $0x1e8] sm:$0xff]  ;;  %v577_v19 = vadd.f32 %v576_v28, %v6087_v0 }
 0x12a   :  { %10135 = vst [vmem:[#allocation294_spill] sm:$0xff] %v6261_v3  ;;  %10136 = vst [vmem:[#allocation295_spill] sm:$0xff] %v6268_v61  ;;  %v6289_v3 = vld [vmem:[%s9822_s5 + $0x1f8] sm:$0xff]  ;;  %v6299_v28 = vld [vmem:[%s9822_s5 + $0x208] sm:$0xff] }
 0x12b   :  { %10137 = vst [vmem:[#allocation296_spill] sm:$0xff] %v6273_v17  ;;  %10138 = vst [vmem:[#allocation297_spill] sm:$0xff] %v6278_v20  ;;  %v6294_v17 = vld [vmem:[%s9822_s5 + $0x200] sm:$0xff]  ;;  %v6332_v61 = vld [vmem:[%s9822_s5 + $0x238] sm:$0xff] }
 0x12c   :  { %629 = vst [vmem:[#allocation2 + $0xa0] sm:$0xff] %v462_v36  ;;  %10139 = vst [vmem:[#allocation298_spill] sm:$0xff] %v6284_v34  ;;  %v467_v36 = vpop.f32.mrb[22].mxu0  ;;  %v6304_v34 = vld [vmem:[%s9822_s5 + $0x210] sm:$0xff] }
 0x12d   :  { %10140 = vst [vmem:[#allocation299_spill] sm:$0xff] %v6289_v3  ;;  %10141 = vst [vmem:[#allocation300_spill] sm:$0xff] %v6294_v17  ;;  %v6309_v3 = vld [vmem:[%s9822_s5 + $0x218] sm:$0xff]  ;;  %v469_v20 = vpop.f32.mrb[23].mxu0  ;;  %v6315_v17 = vld [vmem:[%s9822_s5 + $0x220] sm:$0xff] }
 0x12e   :  { %631 = vst [vmem:[#allocation2 + $0xb0] sm:$0xff] %v575_v58  ;;  %630 = vst [vmem:[#allocation2 + $0xa8] sm:$0xff] %v464_v26  ;;  %v468_v58 = vadd.f32 %v467_v36, %v6039_v42  ;;  %v580_v26 = vpop.f32.mrb[22].mxu1  ;;  %v470_v36 = vadd.f32 %v469_v20, %v6066_v41  ;;  %v6348_v20 = vld [vmem:[%s9822_s5 + $0x250] sm:$0xff] }
 0x12f   :  { %10142 = vst [vmem:[#allocation301_spill] sm:$0xff] %v6299_v28  ;;  %10143 = vst [vmem:[#allocation302_spill] sm:$0xff] %v6304_v34  ;;  %v6320_v28 = vld [vmem:[%s9822_s5 + $0x228] sm:$0xff]  ;;  %v6325_v34 = vld [vmem:[%s9822_s5 + $0x230] sm:$0xff] }
 0x130   :  { %10144 = vst [vmem:[#allocation303_spill] sm:$0xff] %v6309_v3  ;;  %632 = vst [vmem:[#allocation2 + $0xb8] sm:$0xff] %v577_v19  ;;  %v581_v19 = vadd.f32 %v580_v26, %v6061_v27  ;;  %v582_v3 = vpop.f32.mrb[23].mxu1 }
 0x131   :  { %10145 = vst [vmem:[#allocation304_spill] sm:$0xff] %v6315_v17  ;;  %10146 = vst [vmem:[#allocation305_spill] sm:$0xff] %v6320_v28  ;;  %v6337_v17 = vld [vmem:[%s9822_s5 + $0x240] sm:$0xff]  ;;  %v6342_v28 = vld [vmem:[%s9822_s5 + $0x248] sm:$0xff]  ;;  %v583_v26 = vadd.f32 %v582_v3, %v6087_v0 }
 0x132   :  { %10147 = vst [vmem:[#allocation306_spill] sm:$0xff] %v6325_v34  ;;  %10148 = vst [vmem:[#allocation307_spill] sm:$0xff] %v6332_v61  ;;  %v6353_v34 = vld [vmem:[%s9822_s5 + $0x258] sm:$0xff]  ;;  %v6358_v61 = vld [vmem:[%s9822_s5 + $0x260] sm:$0xff] }
 0x133   :  { %10149 = vst [vmem:[#allocation308_spill] sm:$0xff] %v6337_v17  ;;  %10150 = vst [vmem:[#allocation309_spill] sm:$0xff] %v6342_v28  ;;  %v6363_v3 = vld [vmem:[%s9822_s5 + $0x268] sm:$0xff]  ;;  %v6373_v17 = vld [vmem:[%s9822_s5 + $0x278] sm:$0xff] }
 0x134   :  { %637 = vst [vmem:[#allocation2 + $0xe0] sm:$0xff] %v468_v58  ;;  %10151 = vst [vmem:[#allocation310_spill] sm:$0xff] %v6348_v20  ;;  %v473_v58 = vpop.f32.mrb[24].mxu0  ;;  %v6368_v20 = vld [vmem:[%s9822_s5 + $0x270] sm:$0xff]  ;;  %v6396_v28 = vld [vmem:[%s9822_s5 + $0x298] sm:$0xff] }
 0x135   :  { %10152 = vst [vmem:[#allocation311_spill] sm:$0xff] %v6353_v34  ;;  %10153 = vst [vmem:[#allocation312_spill] sm:$0xff] %v6358_v61  ;;  %v475_v61 = vpop.f32.mrb[25].mxu0  ;;  %v6379_v34 = vld [vmem:[%s9822_s5 + $0x280] sm:$0xff] }
 0x136   :  { %639 = vst [vmem:[#allocation2 + $0xf0] sm:$0xff] %v581_v19  ;;  %638 = vst [vmem:[#allocation2 + $0xe8] sm:$0xff] %v470_v36  ;;  %v474_v19 = vadd.f32 %v473_v58, %v6039_v42  ;;  %v586_v36 = vpop.f32.mrb[24].mxu1  ;;  %v476_v58 = vadd.f32 %v475_v61, %v6066_v41  ;;  %v6412_v61 = vld [vmem:[%s9822_s5 + $0x2b0] sm:$0xff] }
 0x137   :  { %10154 = vst [vmem:[#allocation313_spill] sm:$0xff] %v6363_v3  ;;  %10155 = vst [vmem:[#allocation314_spill] sm:$0xff] %v6368_v20  ;;  %v6384_v3 = vld [vmem:[%s9822_s5 + $0x288] sm:$0xff]  ;;  %v6389_v20 = vld [vmem:[%s9822_s5 + $0x290] sm:$0xff] }
 0x138   :  { %10156 = vst [vmem:[#allocation315_spill] sm:$0xff] %v6373_v17  ;;  %640 = vst [vmem:[#allocation2 + $0xf8] sm:$0xff] %v583_v26  ;;  %v587_v26 = vadd.f32 %v586_v36, %v6061_v27  ;;  %v588_v17 = vpop.f32.mrb[25].mxu1 }
 0x139   :  { %10157 = vst [vmem:[#allocation316_spill] sm:$0xff] %v6379_v34  ;;  %10158 = vst [vmem:[#allocation317_spill] sm:$0xff] %v6384_v3  ;;  %v6401_v34 = vld [vmem:[%s9822_s5 + $0x2a0] sm:$0xff]  ;;  %v6406_v3 = vld [vmem:[%s9822_s5 + $0x2a8] sm:$0xff]  ;;  %v589_v36 = vadd.f32 %v588_v17, %v6087_v0 }
 0x13a   :  { %10159 = vst [vmem:[#allocation318_spill] sm:$0xff] %v6389_v20  ;;  %10160 = vst [vmem:[#allocation319_spill] sm:$0xff] %v6396_v28  ;;  %v6417_v20 = vld [vmem:[%s9822_s5 + $0x2b8] sm:$0xff]  ;;  %v6427_v17 = vld [vmem:[%s9822_s5 + $0x2c8] sm:$0xff] }
 0x13b   :  { %10161 = vst [vmem:[#allocation320_spill] sm:$0xff] %v6401_v34  ;;  %10162 = vst [vmem:[#allocation321_spill] sm:$0xff] %v6406_v3  ;;  %v6422_v34 = vld [vmem:[%s9822_s5 + $0x2c0] sm:$0xff]  ;;  %v6448_v28 = vld [vmem:[%s9822_s5 + $0x2e8] sm:$0xff] }
 0x13c   :  { %645 = vst [vmem:[#allocation2 + $0x120] sm:$0xff] %v474_v19  ;;  %10163 = vst [vmem:[#allocation322_spill] sm:$0xff] %v6412_v61  ;;  %v479_v19 = vpop.f32.mrb[26].mxu0  ;;  %v6432_v61 = vld [vmem:[%s9822_s5 + $0x2d0] sm:$0xff] }
 0x13d   :  { %10164 = vst [vmem:[#allocation323_spill] sm:$0xff] %v6417_v20  ;;  %10165 = vst [vmem:[#allocation324_spill] sm:$0xff] %v6422_v34  ;;  %v6437_v20 = vld [vmem:[%s9822_s5 + $0x2d8] sm:$0xff]  ;;  %v481_v3 = vpop.f32.mrb[27].mxu0  ;;  %v6443_v34 = vld [vmem:[%s9822_s5 + $0x2e0] sm:$0xff] }
 0x13e   :  { %647 = vst [vmem:[#allocation2 + $0x130] sm:$0xff] %v587_v26  ;;  %646 = vst [vmem:[#allocation2 + $0x128] sm:$0xff] %v476_v58  ;;  %v480_v26 = vadd.f32 %v479_v19, %v6039_v42  ;;  %v592_v58 = vpop.f32.mrb[26].mxu1  ;;  %v482_v19 = vadd.f32 %v481_v3, %v6066_v41  ;;  %v6476_v3 = vld [vmem:[%s9822_s5 + $0x310] sm:$0xff] }
 0x13f   :  { %10166 = vst [vmem:[#allocation325_spill] sm:$0xff] %v6427_v17  ;;  %10167 = vst [vmem:[#allocation326_spill] sm:$0xff] %v6432_v61  ;;  %v6453_v61 = vld [vmem:[%s9822_s5 + $0x2f0] sm:$0xff]  ;;  %v6460_v17 = vld [vmem:[%s9822_s5 + $0x2f8] sm:$0xff] }
 0x140   :  { %10168 = vst [vmem:[#allocation327_spill] sm:$0xff] %v6437_v20  ;;  %648 = vst [vmem:[#allocation2 + $0x138] sm:$0xff] %v589_v36  ;;  %v593_v36 = vadd.f32 %v592_v58, %v6061_v27  ;;  %v594_v20 = vpop.f32.mrb[27].mxu1 }
 0x141   :  { %10169 = vst [vmem:[#allocation328_spill] sm:$0xff] %v6443_v34  ;;  %10170 = vst [vmem:[#allocation329_spill] sm:$0xff] %v6448_v28  ;;  %v6465_v34 = vld [vmem:[%s9822_s5 + $0x300] sm:$0xff]  ;;  %v6470_v28 = vld [vmem:[%s9822_s5 + $0x308] sm:$0xff]  ;;  %v595_v58 = vadd.f32 %v594_v20, %v6087_v0 }
 0x142   :  { %10171 = vst [vmem:[#allocation330_spill] sm:$0xff] %v6453_v61  ;;  %10172 = vst [vmem:[#allocation331_spill] sm:$0xff] %v6460_v17  ;;  %v6481_v61 = vld [vmem:[%s9822_s5 + $0x318] sm:$0xff]  ;;  %v6486_v17 = vld [vmem:[%s9822_s5 + $0x320] sm:$0xff] }
 0x143   :  { %10173 = vst [vmem:[#allocation332_spill] sm:$0xff] %v6465_v34  ;;  %10174 = vst [vmem:[#allocation333_spill] sm:$0xff] %v6470_v28  ;;  %v6491_v20 = vld [vmem:[%s9822_s5 + $0x328] sm:$0xff]  ;;  %v6501_v34 = vld [vmem:[%s9822_s5 + $0x338] sm:$0xff] }
 0x144   :  { %653 = vst [vmem:[#allocation2 + $0x160] sm:$0xff] %v480_v26  ;;  %10175 = vst [vmem:[#allocation334_spill] sm:$0xff] %v6476_v3  ;;  %v485_v26 = vpop.f32.mrb[28].mxu0  ;;  %v6496_v3 = vld [vmem:[%s9822_s5 + $0x330] sm:$0xff]  ;;  %v6524_v28 = vld [vmem:[%s9822_s5 + $0x358] sm:$0xff] }
 0x145   :  { %10176 = vst [vmem:[#allocation335_spill] sm:$0xff] %v6481_v61  ;;  %10177 = vst [vmem:[#allocation336_spill] sm:$0xff] %v6486_v17  ;;  %v487_v17 = vpop.f32.mrb[29].mxu0  ;;  %v6507_v61 = vld [vmem:[%s9822_s5 + $0x340] sm:$0xff] }
 0x146   :  { %655 = vst [vmem:[#allocation2 + $0x170] sm:$0xff] %v593_v36  ;;  %654 = vst [vmem:[#allocation2 + $0x168] sm:$0xff] %v482_v19  ;;  %v486_v36 = vadd.f32 %v485_v26, %v6039_v42  ;;  %v598_v19 = vpop.f32.mrb[28].mxu1  ;;  %v488_v26 = vadd.f32 %v487_v17, %v6066_v41  ;;  %v6540_v17 = vld [vmem:[%s9822_s5 + $0x370] sm:$0xff] }
 0x147   :  { %10178 = vst [vmem:[#allocation337_spill] sm:$0xff] %v6491_v20  ;;  %10179 = vst [vmem:[#allocation338_spill] sm:$0xff] %v6496_v3  ;;  %v6512_v20 = vld [vmem:[%s9822_s5 + $0x348] sm:$0xff]  ;;  %v6517_v3 = vld [vmem:[%s9822_s5 + $0x350] sm:$0xff] }
 0x148   :  { %10180 = vst [vmem:[#allocation339_spill] sm:$0xff] %v6501_v34  ;;  %656 = vst [vmem:[#allocation2 + $0x178] sm:$0xff] %v595_v58  ;;  %v599_v58 = vadd.f32 %v598_v19, %v6061_v27  ;;  %v600_v34 = vpop.f32.mrb[29].mxu1 }
 0x149   :  { %10181 = vst [vmem:[#allocation340_spill] sm:$0xff] %v6507_v61  ;;  %10182 = vst [vmem:[#allocation341_spill] sm:$0xff] %v6512_v20  ;;  %v6529_v61 = vld [vmem:[%s9822_s5 + $0x360] sm:$0xff]  ;;  %v6534_v20 = vld [vmem:[%s9822_s5 + $0x368] sm:$0xff]  ;;  %v601_v19 = vadd.f32 %v600_v34, %v6087_v0 }
 0x14a   :  { %10183 = vst [vmem:[#allocation342_spill] sm:$0xff] %v6517_v3  ;;  %10184 = vst [vmem:[#allocation343_spill] sm:$0xff] %v6529_v61  ;;  %v6545_v3 = vld [vmem:[%s9822_s5 + $0x378] sm:$0xff]  ;;  %v6550_v61 = vld [vmem:[%s9822_s5 + $0x380] sm:$0xff] }
 0x14b   :  { %10185 = vst [vmem:[#allocation344_spill] sm:$0xff] %v6534_v20  ;;  %661 = vst [vmem:[#allocation2 + $0x1a0] sm:$0xff] %v486_v36  ;;  %v491_v36 = vpop.f32.mrb[30].mxu0  ;;  %v6555_v34 = vld [vmem:[%s9822_s5 + $0x388] sm:$0xff] }
 0x14c   :  { %10186 = vst [vmem:[#allocation345_spill] sm:$0xff] %v6540_v17  ;;  %10187 = vst [vmem:[#allocation346_spill] sm:$0xff] %v6545_v3  ;;  %v6560_v17 = vld [vmem:[%s9822_s5 + $0x390] sm:$0xff]  ;;  %v6565_v3 = vld [vmem:[%s9822_s5 + $0x398] sm:$0xff]  ;;  %v493_v20 = vpop.f32.mrb[31].mxu0 }
 0x14d   :  { %10188 = vst [vmem:[#allocation347_spill] sm:$0xff] %v6550_v61  ;;  %663 = vst [vmem:[#allocation2 + $0x1b0] sm:$0xff] %v599_v58  ;;  %v492_v58 = vadd.f32 %v491_v36, %v6039_v42  ;;  %v6571_v61 = vld [vmem:[%s9822_s5 + $0x3a0] sm:$0xff]  ;;  %v494_v42 = vadd.f32 %v493_v20, %v6066_v41  ;;  %v6604_v41 = vld [vmem:[%s9822_s5 + $0x3d0] sm:$0xff] }
 0x14e   :  { %662 = vst [vmem:[#allocation2 + $0x1a8] sm:$0xff] %v488_v26  ;;  %10189 = vst [vmem:[#allocation348_spill] sm:$0xff] %v6555_v34  ;;  %v604_v26 = vpop.f32.mrb[30].mxu1  ;;  %v6576_v34 = vld [vmem:[%s9822_s5 + $0x3a8] sm:$0xff]  ;;  %v6609_v20 = vld [vmem:[%s9822_s5 + $0x3d8] sm:$0xff] }
 0x14f   :  { %10190 = vst [vmem:[#allocation349_spill] sm:$0xff] %v6560_v17  ;;  %10191 = vst [vmem:[#allocation350_spill] sm:$0xff] %v6565_v3  ;;  %v6581_v17 = vld [vmem:[%s9822_s5 + $0x3b0] sm:$0xff]  ;;  %v606_v36 = vpop.f32.mrb[31].mxu1  ;;  %v6588_v3 = vld [vmem:[%s9822_s5 + $0x3b8] sm:$0xff] }
 0x150   :  { %664 = vst [vmem:[#allocation2 + $0x1b8] sm:$0xff] %v601_v19  ;;  %10192 = vst [vmem:[#allocation351_spill] sm:$0xff] %v6571_v61  ;;  %v605_v19 = vadd.f32 %v604_v26, %v6061_v27  ;;  %v6593_v61 = vld [vmem:[%s9822_s5 + $0x3c0] sm:$0xff]  ;;  %v607_v27 = vadd.f32 %v606_v36, %v6087_v0  ;;  %v6619_v0 = vld [vmem:[%s9822_s5 + $0x3e8] sm:$0xff] }
 0x151   :  { %10193 = vst [vmem:[#allocation352_spill] sm:$0xff] %v6576_v34  ;;  %10194 = vst [vmem:[#allocation353_spill] sm:$0xff] %v6581_v17  ;;  %v6598_v34 = vld [vmem:[%s9822_s5 + $0x3c8] sm:$0xff]  ;;  %v6614_v26 = vld [vmem:[%s9822_s5 + $0x3e0] sm:$0xff] }
 0x152   :  { %10195 = vst [vmem:[#allocation354_spill] sm:$0xff] %v6588_v3  ;;  %669 = vst [vmem:[#allocation2 + $0x1e0] sm:$0xff] %v492_v58  ;;  %v6624_v58 = vld [vmem:[%s9822_s5 + $0x3f0] sm:$0xff]  ;;  %v6629_v36 = vld [vmem:[%s9822_s5 + $0x3f8] sm:$0xff] }
 0x153   :  { %10196 = vst [vmem:[#allocation355_spill] sm:$0xff] %v6609_v20  ;;  %10197 = vst [vmem:[#allocation356_spill] sm:$0xff] %v6614_v26  ;;  %v6649_v17 = vld [vmem:[%s9822_s5 + $0x418] sm:$0xff]  ;;  %v6659_v26 = vld [vmem:[%s9822_s5 + $0x428] sm:$0xff] }
 0x154   :  { %671 = vst [vmem:[#allocation2 + $0x1f0] sm:$0xff] %v605_v19  ;;  %670 = vst [vmem:[#allocation2 + $0x1e8] sm:$0xff] %v494_v42  ;;  %v6634_v19 = vld [vmem:[%s9822_s5 + $0x400] sm:$0xff]  ;;  %v6639_v42 = vld [vmem:[%s9822_s5 + $0x408] sm:$0xff] }
 0x155   :  { %10198 = vst [vmem:[#allocation357_spill] sm:$0xff] %v6619_v0  ;;  %10199 = vst [vmem:[#allocation358_spill] sm:$0xff] %v6624_v58  ;;  %v6644_v58 = vld [vmem:[%s9822_s5 + $0x410] sm:$0xff]  ;;  %v6669_v3 = vld [vmem:[%s9822_s5 + $0x438] sm:$0xff] }
 0x156   :  { %10200 = vst [vmem:[#allocation359_spill] sm:$0xff] %v6629_v36  ;;  %672 = vst [vmem:[#allocation2 + $0x1f8] sm:$0xff] %v607_v27  ;;  %v6654_v27 = vld [vmem:[%s9822_s5 + $0x420] sm:$0xff]  ;;  %v6664_v36 = vld [vmem:[%s9822_s5 + $0x430] sm:$0xff] }
 0x157   :  { %10201 = vst [vmem:[#allocation360_spill] sm:$0xff] %v6634_v19  ;;  %10202 = vst [vmem:[#allocation361_spill] sm:$0xff] %v6639_v42  ;;  %v6674_v0 = vld [vmem:[%s9822_s5 + $0x440] sm:$0xff]  ;;  %v8563_v42 = vmov 0.0  }
 0x158   :  { %10203 = vst [vmem:[#allocation362_spill] sm:$0xff] %v6644_v58  ;;  %10204 = vst [vmem:[#allocation363_spill] sm:$0xff] %v6649_v17  ;;  %v6699_v58 = vld [vmem:[%s9822_s5 + $0x468] sm:$0xff]  ;;  %v6714_v19 = vld [vmem:[%s9822_s5 + $0x480] sm:$0xff]  ;;  %v8557_v17 = vmov 0.0  }
 0x159   :  { %10205 = vst [vmem:[#allocation364_spill] sm:$0xff] %v6654_v27  ;;  %10206 = vst [vmem:[#allocation365_spill] sm:$0xff] %v6659_v26  ;;  %v6679_v27 = vld [vmem:[%s9822_s5 + $0x448] sm:$0xff]  ;;  %v6684_v26 = vld [vmem:[%s9822_s5 + $0x450] sm:$0xff] }
 0x15a   :  { %10207 = vst [vmem:[#allocation366_spill] sm:$0xff] %v6664_v36  ;;  %10208 = vst [vmem:[#allocation367_spill] sm:$0xff] %v6669_v3  ;;  %v6689_v36 = vld [vmem:[%s9822_s5 + $0x458] sm:$0xff]  ;;  %v6694_v3 = vld [vmem:[%s9822_s5 + $0x460] sm:$0xff] }
 0x15b   :  { %10209 = vst [vmem:[#allocation368_spill] sm:$0xff] %v6674_v0  ;;  %10210 = vst [vmem:[#allocation369_spill] sm:$0xff] %v6679_v27  ;;  %v6704_v0 = vld [vmem:[%s9822_s5 + $0x470] sm:$0xff]  ;;  %v8559_v27 = vmov 0.0  }
 0x15c   :  { %10211 = vst [vmem:[#allocation370_spill] sm:$0xff] %v6684_v26  ;;  %10212 = vst [vmem:[#allocation371_spill] sm:$0xff] %v6689_v36  ;;  %v6709_v26 = vld [vmem:[%s9822_s5 + $0x478] sm:$0xff]  ;;  %v8553_v36 = vmov 0.0  }
 0x15d   :  { %10213 = vst [vmem:[#allocation372_spill] sm:$0xff] %v6694_v3  ;;  %10214 = vst [vmem:[#allocation373_spill] sm:$0xff] %v6699_v58  ;;  %v6719_v3 = vld [vmem:[%s9822_s5 + $0x488] sm:$0xff]  ;;  %v6724_v58 = vld [vmem:[%s9822_s5 + $0x490] sm:$0xff] }
 0x15e   :  { %10215 = vst [vmem:[#allocation374_spill] sm:$0xff] %v6704_v0  ;;  %10216 = vst [vmem:[#allocation375_spill] sm:$0xff] %v6709_v26  ;;  %v6729_v0 = vld [vmem:[%s9822_s5 + $0x498] sm:$0xff]  ;;  %v6734_v26 = vld [vmem:[%s9822_s5 + $0x4a0] sm:$0xff] }
 0x15f   :  { %10217 = vst [vmem:[#allocation376_spill] sm:$0xff] %v6714_v19  ;;  %10218 = vst [vmem:[#allocation377_spill] sm:$0xff] %v6719_v3  ;;  %v6739_v19 = vld [vmem:[%s9822_s5 + $0x4a8] sm:$0xff]  ;;  %v6744_v3 = vld [vmem:[%s9822_s5 + $0x4b0] sm:$0xff] }
 0x160   :  { %10219 = vst [vmem:[#allocation378_spill] sm:$0xff] %v6724_v58  ;;  %10220 = vst [vmem:[#allocation379_spill] sm:$0xff] %v6729_v0  ;;  %v6749_v58 = vld [vmem:[%s9822_s5 + $0x4b8] sm:$0xff]  ;;  %v6754_v0 = vld [vmem:[%s9822_s5 + $0x4c0] sm:$0xff] }
 0x161   :  { %10221 = vst [vmem:[#allocation380_spill] sm:$0xff] %v6734_v26  ;;  %10222 = vst [vmem:[#allocation381_spill] sm:$0xff] %v6739_v19  ;;  %v6759_v26 = vld [vmem:[%s9822_s5 + $0x4c8] sm:$0xff]  ;;  %v6764_v19 = vld [vmem:[%s9822_s5 + $0x4d0] sm:$0xff] }
 0x162   :  { %10223 = vst [vmem:[#allocation382_spill] sm:$0xff] %v6744_v3  ;;  %10224 = vst [vmem:[#allocation383_spill] sm:$0xff] %v6749_v58  ;;  %v6769_v3 = vld [vmem:[%s9822_s5 + $0x4d8] sm:$0xff]  ;;  %v6774_v58 = vld [vmem:[%s9822_s5 + $0x4e0] sm:$0xff] }
 0x163   :  { %10225 = vst [vmem:[#allocation384_spill] sm:$0xff] %v6754_v0  ;;  %10226 = vst [vmem:[#allocation385_spill] sm:$0xff] %v6759_v26  ;;  %v6779_v0 = vld [vmem:[%s9822_s5 + $0x4e8] sm:$0xff]  ;;  %v6784_v26 = vld [vmem:[%s9822_s5 + $0x4f0] sm:$0xff] }
 0x164   :  { %10227 = vst [vmem:[#allocation386_spill] sm:$0xff] %v6764_v19  ;;  %10228 = vst [vmem:[#allocation387_spill] sm:$0xff] %v6769_v3  ;;  %v6789_v19 = vld [vmem:[%s9822_s5 + $0x4f8] sm:$0xff]  ;;  %v6794_v3 = vld [vmem:[%s9822_s5 + $0x500] sm:$0xff] }
 0x165   :  { %10229 = vst [vmem:[#allocation388_spill] sm:$0xff] %v6774_v58  ;;  %10230 = vst [vmem:[#allocation389_spill] sm:$0xff] %v6779_v0  ;;  %v6799_v58 = vld [vmem:[%s9822_s5 + $0x508] sm:$0xff]  ;;  %v6804_v0 = vld [vmem:[%s9822_s5 + $0x510] sm:$0xff] }
 0x166   :  { %10231 = vst [vmem:[#allocation390_spill] sm:$0xff] %v6784_v26  ;;  %10232 = vst [vmem:[#allocation391_spill] sm:$0xff] %v6789_v19  ;;  %v6809_v26 = vld [vmem:[%s9822_s5 + $0x518] sm:$0xff]  ;;  %v6814_v19 = vld [vmem:[%s9822_s5 + $0x520] sm:$0xff] }
 0x167   :  { %10233 = vst [vmem:[#allocation392_spill] sm:$0xff] %v6794_v3  ;;  %10234 = vst [vmem:[#allocation393_spill] sm:$0xff] %v6799_v58  ;;  %v6819_v3 = vld [vmem:[%s9822_s5 + $0x528] sm:$0xff]  ;;  %v6824_v58 = vld [vmem:[%s9822_s5 + $0x530] sm:$0xff] }
 0x168   :  { %10235 = vst [vmem:[#allocation394_spill] sm:$0xff] %v6804_v0  ;;  %10236 = vst [vmem:[#allocation395_spill] sm:$0xff] %v6809_v26  ;;  %v6829_v0 = vld [vmem:[%s9822_s5 + $0x538] sm:$0xff]  ;;  %v6834_v26 = vld [vmem:[%s9822_s5 + $0x540] sm:$0xff] }
 0x169   :  { %10237 = vst [vmem:[#allocation396_spill] sm:$0xff] %v6814_v19  ;;  %10238 = vst [vmem:[#allocation397_spill] sm:$0xff] %v6819_v3  ;;  %v6839_v19 = vld [vmem:[%s9822_s5 + $0x548] sm:$0xff]  ;;  %v6844_v3 = vld [vmem:[%s9822_s5 + $0x550] sm:$0xff] }
 0x16a   :  { %10239 = vst [vmem:[#allocation398_spill] sm:$0xff] %v6824_v58  ;;  %10240 = vst [vmem:[#allocation399_spill] sm:$0xff] %v6829_v0  ;;  %v6849_v58 = vld [vmem:[%s9822_s5 + $0x558] sm:$0xff]  ;;  %v6854_v0 = vld [vmem:[%s9822_s5 + $0x560] sm:$0xff] }
 0x16b   :  { %10241 = vst [vmem:[#allocation400_spill] sm:$0xff] %v6834_v26  ;;  %10242 = vst [vmem:[#allocation401_spill] sm:$0xff] %v6839_v19  ;;  %v6859_v26 = vld [vmem:[%s9822_s5 + $0x568] sm:$0xff]  ;;  %v6864_v19 = vld [vmem:[%s9822_s5 + $0x570] sm:$0xff] }
 0x16c   :  { %10243 = vst [vmem:[#allocation402_spill] sm:$0xff] %v6844_v3  ;;  %10244 = vst [vmem:[#allocation403_spill] sm:$0xff] %v6849_v58  ;;  %v6869_v3 = vld [vmem:[%s9822_s5 + $0x578] sm:$0xff]  ;;  %v6874_v58 = vld [vmem:[%s9822_s5 + $0x580] sm:$0xff] }
 0x16d   :  { %10245 = vst [vmem:[#allocation404_spill] sm:$0xff] %v6854_v0  ;;  %10246 = vst [vmem:[#allocation405_spill] sm:$0xff] %v6859_v26  ;;  %v6879_v0 = vld [vmem:[%s9822_s5 + $0x588] sm:$0xff]  ;;  %v6884_v26 = vld [vmem:[%s9822_s5 + $0x590] sm:$0xff] }
 0x16e   :  { %10247 = vst [vmem:[#allocation406_spill] sm:$0xff] %v6864_v19  ;;  %10248 = vst [vmem:[#allocation407_spill] sm:$0xff] %v6869_v3  ;;  %v6889_v19 = vld [vmem:[%s9822_s5 + $0x598] sm:$0xff]  ;;  %v6894_v3 = vld [vmem:[%s9822_s5 + $0x5a0] sm:$0xff] }
 0x16f   :  { %10249 = vst [vmem:[#allocation408_spill] sm:$0xff] %v6874_v58  ;;  %10250 = vst [vmem:[#allocation409_spill] sm:$0xff] %v6879_v0  ;;  %v6899_v58 = vld [vmem:[%s9822_s5 + $0x5a8] sm:$0xff]  ;;  %v6904_v0 = vld [vmem:[%s9822_s5 + $0x5b0] sm:$0xff] }
 0x170   :  { %10251 = vst [vmem:[#allocation410_spill] sm:$0xff] %v6884_v26  ;;  %10252 = vst [vmem:[#allocation411_spill] sm:$0xff] %v6889_v19  ;;  %v6909_v26 = vld [vmem:[%s9822_s5 + $0x5b8] sm:$0xff]  ;;  %v6914_v19 = vld [vmem:[%s9822_s5 + $0x5c0] sm:$0xff] }
 0x171   :  { %10253 = vst [vmem:[#allocation412_spill] sm:$0xff] %v6894_v3  ;;  %10254 = vst [vmem:[#allocation413_spill] sm:$0xff] %v6899_v58  ;;  %v6919_v3 = vld [vmem:[%s9822_s5 + $0x5c8] sm:$0xff]  ;;  %v6924_v58 = vld [vmem:[%s9822_s5 + $0x5d0] sm:$0xff] }
 0x172   :  { %10255 = vst [vmem:[#allocation414_spill] sm:$0xff] %v6904_v0  ;;  %10256 = vst [vmem:[#allocation415_spill] sm:$0xff] %v6909_v26  ;;  %v6929_v0 = vld [vmem:[%s9822_s5 + $0x5d8] sm:$0xff]  ;;  %v6934_v26 = vld [vmem:[%s9822_s5 + $0x5e0] sm:$0xff] }
 0x173   :  { %10257 = vst [vmem:[#allocation416_spill] sm:$0xff] %v6914_v19  ;;  %10258 = vst [vmem:[#allocation417_spill] sm:$0xff] %v6919_v3  ;;  %v6939_v19 = vld [vmem:[%s9822_s5 + $0x5e8] sm:$0xff]  ;;  %v6944_v3 = vld [vmem:[%s9822_s5 + $0x5f0] sm:$0xff] }
 0x174   :  { %10259 = vst [vmem:[#allocation418_spill] sm:$0xff] %v6924_v58  ;;  %10260 = vst [vmem:[#allocation419_spill] sm:$0xff] %v6929_v0  ;;  %v6949_v58 = vld [vmem:[%s9822_s5 + $0x5f8] sm:$0xff]  ;;  %v6954_v0 = vld [vmem:[%s9822_s5 + $0x600] sm:$0xff] }
 0x175   :  { %10261 = vst [vmem:[#allocation420_spill] sm:$0xff] %v6934_v26  ;;  %10262 = vst [vmem:[#allocation421_spill] sm:$0xff] %v6939_v19  ;;  %v6959_v26 = vld [vmem:[%s9822_s5 + $0x608] sm:$0xff]  ;;  %v6964_v19 = vld [vmem:[%s9822_s5 + $0x610] sm:$0xff] }
 0x176   :  { %10263 = vst [vmem:[#allocation422_spill] sm:$0xff] %v6944_v3  ;;  %10264 = vst [vmem:[#allocation423_spill] sm:$0xff] %v6949_v58  ;;  %v6969_v3 = vld [vmem:[%s9822_s5 + $0x618] sm:$0xff]  ;;  %v6974_v58 = vld [vmem:[%s9822_s5 + $0x620] sm:$0xff] }
 0x177   :  { %10265 = vst [vmem:[#allocation424_spill] sm:$0xff] %v6954_v0  ;;  %10266 = vst [vmem:[#allocation425_spill] sm:$0xff] %v6959_v26  ;;  %v6979_v0 = vld [vmem:[%s9822_s5 + $0x628] sm:$0xff]  ;;  %v6984_v26 = vld [vmem:[%s9822_s5 + $0x630] sm:$0xff] }
 0x178   :  { %10267 = vst [vmem:[#allocation426_spill] sm:$0xff] %v6964_v19  ;;  %10268 = vst [vmem:[#allocation427_spill] sm:$0xff] %v6969_v3  ;;  %v6989_v19 = vld [vmem:[%s9822_s5 + $0x638] sm:$0xff]  ;;  %v6994_v3 = vld [vmem:[%s9822_s5 + $0x640] sm:$0xff] }
 0x179   :  { %10269 = vst [vmem:[#allocation428_spill] sm:$0xff] %v6974_v58  ;;  %10270 = vst [vmem:[#allocation429_spill] sm:$0xff] %v6979_v0  ;;  %v6999_v58 = vld [vmem:[%s9822_s5 + $0x648] sm:$0xff]  ;;  %v7004_v0 = vld [vmem:[%s9822_s5 + $0x650] sm:$0xff] }
 0x17a   :  { %10271 = vst [vmem:[#allocation430_spill] sm:$0xff] %v6984_v26  ;;  %10272 = vst [vmem:[#allocation431_spill] sm:$0xff] %v6989_v19  ;;  %v7009_v26 = vld [vmem:[%s9822_s5 + $0x658] sm:$0xff]  ;;  %v7014_v19 = vld [vmem:[%s9822_s5 + $0x660] sm:$0xff] }
 0x17b   :  { %10273 = vst [vmem:[#allocation432_spill] sm:$0xff] %v6994_v3  ;;  %10274 = vst [vmem:[#allocation433_spill] sm:$0xff] %v6999_v58  ;;  %v7019_v3 = vld [vmem:[%s9822_s5 + $0x668] sm:$0xff]  ;;  %v7024_v58 = vld [vmem:[%s9822_s5 + $0x670] sm:$0xff] }
 0x17c   :  { %10275 = vst [vmem:[#allocation434_spill] sm:$0xff] %v7004_v0  ;;  %10276 = vst [vmem:[#allocation435_spill] sm:$0xff] %v7009_v26  ;;  %v7029_v0 = vld [vmem:[%s9822_s5 + $0x678] sm:$0xff]  ;;  %v7034_v26 = vld [vmem:[%s9822_s5 + $0x680] sm:$0xff] }
 0x17d   :  { %10277 = vst [vmem:[#allocation436_spill] sm:$0xff] %v7014_v19  ;;  %10278 = vst [vmem:[#allocation437_spill] sm:$0xff] %v7019_v3  ;;  %v7039_v19 = vld [vmem:[%s9822_s5 + $0x688] sm:$0xff]  ;;  %v7044_v3 = vld [vmem:[%s9822_s5 + $0x690] sm:$0xff] }
 0x17e   :  { %10279 = vst [vmem:[#allocation438_spill] sm:$0xff] %v7024_v58  ;;  %10280 = vst [vmem:[#allocation439_spill] sm:$0xff] %v7029_v0  ;;  %v7049_v58 = vld [vmem:[%s9822_s5 + $0x698] sm:$0xff]  ;;  %v7054_v0 = vld [vmem:[%s9822_s5 + $0x6a0] sm:$0xff] }
 0x17f   :  { %10281 = vst [vmem:[#allocation440_spill] sm:$0xff] %v7034_v26  ;;  %10282 = vst [vmem:[#allocation441_spill] sm:$0xff] %v7039_v19  ;;  %v7059_v26 = vld [vmem:[%s9822_s5 + $0x6a8] sm:$0xff]  ;;  %v7064_v19 = vld [vmem:[%s9822_s5 + $0x6b0] sm:$0xff] }
 0x180   :  { %10283 = vst [vmem:[#allocation442_spill] sm:$0xff] %v7044_v3  ;;  %10284 = vst [vmem:[#allocation443_spill] sm:$0xff] %v7049_v58  ;;  %v7069_v3 = vld [vmem:[%s9822_s5 + $0x6b8] sm:$0xff]  ;;  %v7074_v58 = vld [vmem:[%s9822_s5 + $0x6c0] sm:$0xff] }
 0x181   :  { %10285 = vst [vmem:[#allocation444_spill] sm:$0xff] %v7054_v0  ;;  %10286 = vst [vmem:[#allocation445_spill] sm:$0xff] %v7059_v26  ;;  %v7079_v0 = vld [vmem:[%s9822_s5 + $0x6c8] sm:$0xff]  ;;  %v7084_v26 = vld [vmem:[%s9822_s5 + $0x6d0] sm:$0xff] }
 0x182   :  { %10287 = vst [vmem:[#allocation446_spill] sm:$0xff] %v7064_v19  ;;  %10288 = vst [vmem:[#allocation447_spill] sm:$0xff] %v7069_v3  ;;  %v7089_v19 = vld [vmem:[%s9822_s5 + $0x6d8] sm:$0xff]  ;;  %v7094_v3 = vld [vmem:[%s9822_s5 + $0x6e0] sm:$0xff] }
 0x183   :  { %10289 = vst [vmem:[#allocation448_spill] sm:$0xff] %v7074_v58  ;;  %10290 = vst [vmem:[#allocation449_spill] sm:$0xff] %v7079_v0  ;;  %v7099_v58 = vld [vmem:[%s9822_s5 + $0x6e8] sm:$0xff]  ;;  %v7104_v0 = vld [vmem:[%s9822_s5 + $0x6f0] sm:$0xff] }
 0x184   :  { %10291 = vst [vmem:[#allocation450_spill] sm:$0xff] %v7084_v26  ;;  %10292 = vst [vmem:[#allocation451_spill] sm:$0xff] %v7089_v19  ;;  %v7109_v26 = vld [vmem:[%s9822_s5 + $0x6f8] sm:$0xff]  ;;  %v7114_v19 = vld [vmem:[%s9822_s5 + $0x700] sm:$0xff] }
 0x185   :  { %10293 = vst [vmem:[#allocation452_spill] sm:$0xff] %v7094_v3  ;;  %10294 = vst [vmem:[#allocation453_spill] sm:$0xff] %v7099_v58  ;;  %v7119_v3 = vld [vmem:[%s9822_s5 + $0x708] sm:$0xff]  ;;  %v7124_v58 = vld [vmem:[%s9822_s5 + $0x710] sm:$0xff] }
 0x186   :  { %10295 = vst [vmem:[#allocation454_spill] sm:$0xff] %v7104_v0  ;;  %10296 = vst [vmem:[#allocation455_spill] sm:$0xff] %v7109_v26  ;;  %v7129_v0 = vld [vmem:[%s9822_s5 + $0x718] sm:$0xff]  ;;  %v7134_v26 = vld [vmem:[%s9822_s5 + $0x720] sm:$0xff] }
 0x187   :  { %10297 = vst [vmem:[#allocation456_spill] sm:$0xff] %v7114_v19  ;;  %10298 = vst [vmem:[#allocation457_spill] sm:$0xff] %v7119_v3  ;;  %v7139_v19 = vld [vmem:[%s9822_s5 + $0x728] sm:$0xff]  ;;  %v7144_v3 = vld [vmem:[%s9822_s5 + $0x730] sm:$0xff] }
 0x188   :  { %10299 = vst [vmem:[#allocation458_spill] sm:$0xff] %v7124_v58  ;;  %10300 = vst [vmem:[#allocation459_spill] sm:$0xff] %v7129_v0  ;;  %v7149_v58 = vld [vmem:[%s9822_s5 + $0x738] sm:$0xff]  ;;  %v7154_v0 = vld [vmem:[%s9822_s5 + $0x740] sm:$0xff] }
 0x189   :  { %10301 = vst [vmem:[#allocation460_spill] sm:$0xff] %v7134_v26  ;;  %10302 = vst [vmem:[#allocation461_spill] sm:$0xff] %v7139_v19  ;;  %v7159_v26 = vld [vmem:[%s9822_s5 + $0x748] sm:$0xff]  ;;  %v7164_v19 = vld [vmem:[%s9822_s5 + $0x750] sm:$0xff] }
 0x18a   :  { %10303 = vst [vmem:[#allocation462_spill] sm:$0xff] %v7144_v3  ;;  %10304 = vst [vmem:[#allocation463_spill] sm:$0xff] %v7149_v58  ;;  %v7169_v3 = vld [vmem:[%s9822_s5 + $0x758] sm:$0xff]  ;;  %v7174_v58 = vld [vmem:[%s9822_s5 + $0x760] sm:$0xff] }
 0x18b   :  { %10305 = vst [vmem:[#allocation464_spill] sm:$0xff] %v7154_v0  ;;  %10306 = vst [vmem:[#allocation465_spill] sm:$0xff] %v7159_v26  ;;  %v7179_v0 = vld [vmem:[%s9822_s5 + $0x768] sm:$0xff]  ;;  %v7184_v26 = vld [vmem:[%s9822_s5 + $0x770] sm:$0xff] }
 0x18c   :  { %10307 = vst [vmem:[#allocation466_spill] sm:$0xff] %v7164_v19  ;;  %10308 = vst [vmem:[#allocation467_spill] sm:$0xff] %v7169_v3  ;;  %v7189_v19 = vld [vmem:[%s9822_s5 + $0x778] sm:$0xff]  ;;  %v7194_v3 = vld [vmem:[%s9822_s5 + $0x780] sm:$0xff] }
 0x18d   :  { %10309 = vst [vmem:[#allocation468_spill] sm:$0xff] %v7174_v58  ;;  %10310 = vst [vmem:[#allocation469_spill] sm:$0xff] %v7179_v0  ;;  %v7199_v58 = vld [vmem:[%s9822_s5 + $0x788] sm:$0xff]  ;;  %v7204_v0 = vld [vmem:[%s9822_s5 + $0x790] sm:$0xff] }
 0x18e   :  { %10311 = vst [vmem:[#allocation470_spill] sm:$0xff] %v7184_v26  ;;  %10312 = vst [vmem:[#allocation471_spill] sm:$0xff] %v7189_v19  ;;  %v7209_v26 = vld [vmem:[%s9822_s5 + $0x798] sm:$0xff]  ;;  %v7214_v19 = vld [vmem:[%s9822_s5 + $0x7a0] sm:$0xff] }
 0x18f   :  { %10313 = vst [vmem:[#allocation472_spill] sm:$0xff] %v7194_v3  ;;  %10314 = vst [vmem:[#allocation473_spill] sm:$0xff] %v7199_v58  ;;  %v7219_v3 = vld [vmem:[%s9822_s5 + $0x7a8] sm:$0xff]  ;;  %v7224_v58 = vld [vmem:[%s9822_s5 + $0x7b0] sm:$0xff] }
 0x190   :  { %10315 = vst [vmem:[#allocation474_spill] sm:$0xff] %v7204_v0  ;;  %10316 = vst [vmem:[#allocation475_spill] sm:$0xff] %v7209_v26  ;;  %v7229_v0 = vld [vmem:[%s9822_s5 + $0x7b8] sm:$0xff]  ;;  %v7234_v26 = vld [vmem:[%s9822_s5 + $0x7c0] sm:$0xff] }
 0x191   :  { %10317 = vst [vmem:[#allocation476_spill] sm:$0xff] %v7214_v19  ;;  %10318 = vst [vmem:[#allocation477_spill] sm:$0xff] %v7219_v3  ;;  %v7239_v19 = vld [vmem:[%s9822_s5 + $0x7c8] sm:$0xff]  ;;  %v7244_v3 = vld [vmem:[%s9822_s5 + $0x7d0] sm:$0xff] }
 0x192   :  { %10319 = vst [vmem:[#allocation478_spill] sm:$0xff] %v7224_v58  ;;  %10320 = vst [vmem:[#allocation479_spill] sm:$0xff] %v7229_v0  ;;  %v7249_v58 = vld [vmem:[%s9822_s5 + $0x7d8] sm:$0xff]  ;;  %v7254_v0 = vld [vmem:[%s9822_s5 + $0x7e0] sm:$0xff] }
 0x193   :  { %10321 = vst [vmem:[#allocation480_spill] sm:$0xff] %v7234_v26  ;;  %10322 = vst [vmem:[#allocation481_spill] sm:$0xff] %v7239_v19  ;;  %v7259_v26 = vld [vmem:[%s9822_s5 + $0x7e8] sm:$0xff]  ;;  %v7264_v19 = vld [vmem:[%s9822_s5 + $0x7f0] sm:$0xff] }
 0x194   :  { %10323 = vst [vmem:[#allocation482_spill] sm:$0xff] %v7244_v3  ;;  %10324 = vst [vmem:[#allocation483_spill] sm:$0xff] %v7249_v58  ;;  %v7269_v3 = vld [vmem:[%s9822_s5 + $0x7f8] sm:$0xff]  ;;  %v7274_v58 = vld [vmem:[%s9822_s5 + $0x800] sm:$0xff] }
 0x195   :  { %10325 = vst [vmem:[#allocation484_spill] sm:$0xff] %v7254_v0  ;;  %10326 = vst [vmem:[#allocation485_spill] sm:$0xff] %v7259_v26  ;;  %v7279_v0 = vld [vmem:[%s9822_s5 + $0x808] sm:$0xff]  ;;  %v7284_v26 = vld [vmem:[%s9822_s5 + $0x810] sm:$0xff] }
 0x196   :  { %10327 = vst [vmem:[#allocation486_spill] sm:$0xff] %v7264_v19  ;;  %10328 = vst [vmem:[#allocation487_spill] sm:$0xff] %v7269_v3  ;;  %v7289_v19 = vld [vmem:[%s9822_s5 + $0x818] sm:$0xff]  ;;  %v7294_v3 = vld [vmem:[%s9822_s5 + $0x820] sm:$0xff] }
 0x197   :  { %10329 = vst [vmem:[#allocation488_spill] sm:$0xff] %v7274_v58  ;;  %10330 = vst [vmem:[#allocation489_spill] sm:$0xff] %v7279_v0  ;;  %v7299_v58 = vld [vmem:[%s9822_s5 + $0x828] sm:$0xff]  ;;  %v7304_v0 = vld [vmem:[%s9822_s5 + $0x830] sm:$0xff] }
 0x198   :  { %10331 = vst [vmem:[#allocation490_spill] sm:$0xff] %v7284_v26  ;;  %10332 = vst [vmem:[#allocation491_spill] sm:$0xff] %v7289_v19  ;;  %v7309_v26 = vld [vmem:[%s9822_s5 + $0x838] sm:$0xff]  ;;  %v7314_v19 = vld [vmem:[%s9822_s5 + $0x840] sm:$0xff] }
 0x199   :  { %10333 = vst [vmem:[#allocation492_spill] sm:$0xff] %v7294_v3  ;;  %10334 = vst [vmem:[#allocation493_spill] sm:$0xff] %v7299_v58  ;;  %v7319_v3 = vld [vmem:[%s9822_s5 + $0x848] sm:$0xff]  ;;  %v7324_v58 = vld [vmem:[%s9822_s5 + $0x850] sm:$0xff] }
 0x19a   :  { %10335 = vst [vmem:[#allocation494_spill] sm:$0xff] %v7304_v0  ;;  %10336 = vst [vmem:[#allocation495_spill] sm:$0xff] %v7309_v26  ;;  %v7329_v0 = vld [vmem:[%s9822_s5 + $0x858] sm:$0xff]  ;;  %v7334_v26 = vld [vmem:[%s9822_s5 + $0x860] sm:$0xff] }
 0x19b   :  { %10337 = vst [vmem:[#allocation496_spill] sm:$0xff] %v7314_v19  ;;  %10338 = vst [vmem:[#allocation497_spill] sm:$0xff] %v7319_v3  ;;  %v7339_v19 = vld [vmem:[%s9822_s5 + $0x868] sm:$0xff]  ;;  %v7344_v3 = vld [vmem:[%s9822_s5 + $0x870] sm:$0xff] }
 0x19c   :  { %10339 = vst [vmem:[#allocation498_spill] sm:$0xff] %v7324_v58  ;;  %10340 = vst [vmem:[#allocation499_spill] sm:$0xff] %v7329_v0  ;;  %v7349_v58 = vld [vmem:[%s9822_s5 + $0x878] sm:$0xff]  ;;  %v7354_v0 = vld [vmem:[%s9822_s5 + $0x880] sm:$0xff] }
 0x19d   :  { %10341 = vst [vmem:[#allocation500_spill] sm:$0xff] %v7334_v26  ;;  %10342 = vst [vmem:[#allocation501_spill] sm:$0xff] %v7339_v19  ;;  %v7359_v26 = vld [vmem:[%s9822_s5 + $0x888] sm:$0xff]  ;;  %v7364_v19 = vld [vmem:[%s9822_s5 + $0x890] sm:$0xff] }
 0x19e   :  { %10343 = vst [vmem:[#allocation502_spill] sm:$0xff] %v7344_v3  ;;  %10344 = vst [vmem:[#allocation503_spill] sm:$0xff] %v7349_v58  ;;  %v7369_v3 = vld [vmem:[%s9822_s5 + $0x898] sm:$0xff]  ;;  %v7374_v58 = vld [vmem:[%s9822_s5 + $0x8a0] sm:$0xff] }
 0x19f   :  { %10345 = vst [vmem:[#allocation504_spill] sm:$0xff] %v7354_v0  ;;  %10346 = vst [vmem:[#allocation505_spill] sm:$0xff] %v7359_v26  ;;  %v7379_v0 = vld [vmem:[%s9822_s5 + $0x8a8] sm:$0xff]  ;;  %v7384_v26 = vld [vmem:[%s9822_s5 + $0x8b0] sm:$0xff] }
 0x1a0   :  { %10347 = vst [vmem:[#allocation506_spill] sm:$0xff] %v7364_v19  ;;  %10348 = vst [vmem:[#allocation507_spill] sm:$0xff] %v7369_v3  ;;  %v7389_v19 = vld [vmem:[%s9822_s5 + $0x8b8] sm:$0xff]  ;;  %v7394_v3 = vld [vmem:[%s9822_s5 + $0x8c0] sm:$0xff] }
 0x1a1   :  { %10349 = vst [vmem:[#allocation508_spill] sm:$0xff] %v7374_v58  ;;  %10350 = vst [vmem:[#allocation509_spill] sm:$0xff] %v7379_v0  ;;  %v7399_v58 = vld [vmem:[%s9822_s5 + $0x8c8] sm:$0xff]  ;;  %v7404_v0 = vld [vmem:[%s9822_s5 + $0x8d0] sm:$0xff] }
 0x1a2   :  { %10351 = vst [vmem:[#allocation510_spill] sm:$0xff] %v7384_v26  ;;  %10352 = vst [vmem:[#allocation511_spill] sm:$0xff] %v7389_v19  ;;  %v7409_v26 = vld [vmem:[%s9822_s5 + $0x8d8] sm:$0xff]  ;;  %v7414_v19 = vld [vmem:[%s9822_s5 + $0x8e0] sm:$0xff] }
 0x1a3   :  { %10353 = vst [vmem:[#allocation512_spill] sm:$0xff] %v7394_v3  ;;  %10354 = vst [vmem:[#allocation513_spill] sm:$0xff] %v7399_v58  ;;  %v7419_v3 = vld [vmem:[%s9822_s5 + $0x8e8] sm:$0xff]  ;;  %v7424_v58 = vld [vmem:[%s9822_s5 + $0x8f0] sm:$0xff] }
 0x1a4   :  { %10355 = vst [vmem:[#allocation514_spill] sm:$0xff] %v7404_v0  ;;  %10356 = vst [vmem:[#allocation515_spill] sm:$0xff] %v7409_v26  ;;  %v7429_v0 = vld [vmem:[%s9822_s5 + $0x8f8] sm:$0xff]  ;;  %v7434_v26 = vld [vmem:[%s9822_s5 + $0x900] sm:$0xff] }
 0x1a5   :  { %10357 = vst [vmem:[#allocation516_spill] sm:$0xff] %v7414_v19  ;;  %10358 = vst [vmem:[#allocation517_spill] sm:$0xff] %v7419_v3  ;;  %v7439_v19 = vld [vmem:[%s9822_s5 + $0x908] sm:$0xff]  ;;  %v7444_v3 = vld [vmem:[%s9822_s5 + $0x910] sm:$0xff] }
 0x1a6   :  { %10359 = vst [vmem:[#allocation518_spill] sm:$0xff] %v7424_v58  ;;  %10360 = vst [vmem:[#allocation519_spill] sm:$0xff] %v7429_v0  ;;  %v7449_v58 = vld [vmem:[%s9822_s5 + $0x918] sm:$0xff]  ;;  %v7454_v0 = vld [vmem:[%s9822_s5 + $0x920] sm:$0xff] }
 0x1a7   :  { %10361 = vst [vmem:[#allocation520_spill] sm:$0xff] %v7434_v26  ;;  %10362 = vst [vmem:[#allocation521_spill] sm:$0xff] %v7439_v19  ;;  %v7459_v26 = vld [vmem:[%s9822_s5 + $0x928] sm:$0xff]  ;;  %v7464_v19 = vld [vmem:[%s9822_s5 + $0x930] sm:$0xff] }
 0x1a8   :  { %10363 = vst [vmem:[#allocation522_spill] sm:$0xff] %v7444_v3  ;;  %10364 = vst [vmem:[#allocation523_spill] sm:$0xff] %v7449_v58  ;;  %v7469_v3 = vld [vmem:[%s9822_s5 + $0x938] sm:$0xff]  ;;  %v7474_v58 = vld [vmem:[%s9822_s5 + $0x940] sm:$0xff] }
 0x1a9   :  { %10365 = vst [vmem:[#allocation524_spill] sm:$0xff] %v7454_v0  ;;  %10366 = vst [vmem:[#allocation525_spill] sm:$0xff] %v7459_v26  ;;  %v7479_v0 = vld [vmem:[%s9822_s5 + $0x948] sm:$0xff]  ;;  %v7484_v26 = vld [vmem:[%s9822_s5 + $0x950] sm:$0xff] }
 0x1aa   :  { %10367 = vst [vmem:[#allocation526_spill] sm:$0xff] %v7464_v19  ;;  %10368 = vst [vmem:[#allocation527_spill] sm:$0xff] %v7469_v3  ;;  %v7489_v19 = vld [vmem:[%s9822_s5 + $0x958] sm:$0xff]  ;;  %v7494_v3 = vld [vmem:[%s9822_s5 + $0x960] sm:$0xff] }
 0x1ab   :  { %10369 = vst [vmem:[#allocation528_spill] sm:$0xff] %v7474_v58  ;;  %10370 = vst [vmem:[#allocation529_spill] sm:$0xff] %v7479_v0  ;;  %v7499_v58 = vld [vmem:[%s9822_s5 + $0x968] sm:$0xff]  ;;  %v7504_v0 = vld [vmem:[%s9822_s5 + $0x970] sm:$0xff] }
 0x1ac   :  { %10371 = vst [vmem:[#allocation530_spill] sm:$0xff] %v7484_v26  ;;  %10372 = vst [vmem:[#allocation531_spill] sm:$0xff] %v7489_v19  ;;  %v7509_v26 = vld [vmem:[%s9822_s5 + $0x978] sm:$0xff]  ;;  %v7514_v19 = vld [vmem:[%s9822_s5 + $0x980] sm:$0xff] }
 0x1ad   :  { %10373 = vst [vmem:[#allocation532_spill] sm:$0xff] %v7494_v3  ;;  %10374 = vst [vmem:[#allocation533_spill] sm:$0xff] %v7499_v58  ;;  %v7519_v3 = vld [vmem:[%s9822_s5 + $0x988] sm:$0xff]  ;;  %v7524_v58 = vld [vmem:[%s9822_s5 + $0x990] sm:$0xff] }
 0x1ae   :  { %10375 = vst [vmem:[#allocation534_spill] sm:$0xff] %v7504_v0  ;;  %10376 = vst [vmem:[#allocation535_spill] sm:$0xff] %v7509_v26  ;;  %v7529_v0 = vld [vmem:[%s9822_s5 + $0x998] sm:$0xff]  ;;  %v7534_v26 = vld [vmem:[%s9822_s5 + $0x9a0] sm:$0xff] }
 0x1af   :  { %10377 = vst [vmem:[#allocation536_spill] sm:$0xff] %v7514_v19  ;;  %10378 = vst [vmem:[#allocation537_spill] sm:$0xff] %v7519_v3  ;;  %v7539_v19 = vld [vmem:[%s9822_s5 + $0x9a8] sm:$0xff]  ;;  %v7544_v3 = vld [vmem:[%s9822_s5 + $0x9b0] sm:$0xff] }
 0x1b0   :  { %10379 = vst [vmem:[#allocation538_spill] sm:$0xff] %v7524_v58  ;;  %10380 = vst [vmem:[#allocation539_spill] sm:$0xff] %v7529_v0  ;;  %v7549_v58 = vld [vmem:[%s9822_s5 + $0x9b8] sm:$0xff]  ;;  %v7554_v0 = vld [vmem:[%s9822_s5 + $0x9c0] sm:$0xff] }
 0x1b1   :  { %10381 = vst [vmem:[#allocation540_spill] sm:$0xff] %v7534_v26  ;;  %10382 = vst [vmem:[#allocation541_spill] sm:$0xff] %v7539_v19  ;;  %v7559_v26 = vld [vmem:[%s9822_s5 + $0x9c8] sm:$0xff]  ;;  %v7564_v19 = vld [vmem:[%s9822_s5 + $0x9d0] sm:$0xff] }
 0x1b2   :  { %10383 = vst [vmem:[#allocation542_spill] sm:$0xff] %v7544_v3  ;;  %10384 = vst [vmem:[#allocation543_spill] sm:$0xff] %v7549_v58  ;;  %v7569_v3 = vld [vmem:[%s9822_s5 + $0x9d8] sm:$0xff]  ;;  %v7574_v58 = vld [vmem:[%s9822_s5 + $0x9e0] sm:$0xff] }
 0x1b3   :  { %10385 = vst [vmem:[#allocation544_spill] sm:$0xff] %v7554_v0  ;;  %10386 = vst [vmem:[#allocation545_spill] sm:$0xff] %v7559_v26  ;;  %v7579_v0 = vld [vmem:[%s9822_s5 + $0x9e8] sm:$0xff]  ;;  %v7584_v26 = vld [vmem:[%s9822_s5 + $0x9f0] sm:$0xff] }
 0x1b4   :  { %10387 = vst [vmem:[#allocation546_spill] sm:$0xff] %v7564_v19  ;;  %10388 = vst [vmem:[#allocation547_spill] sm:$0xff] %v7569_v3  ;;  %v7589_v19 = vld [vmem:[%s9822_s5 + $0x9f8] sm:$0xff]  ;;  %v7594_v3 = vld [vmem:[%s9822_s5 + $0xa00] sm:$0xff] }
 0x1b5   :  { %10389 = vst [vmem:[#allocation548_spill] sm:$0xff] %v7574_v58  ;;  %10390 = vst [vmem:[#allocation549_spill] sm:$0xff] %v7579_v0  ;;  %v7599_v58 = vld [vmem:[%s9822_s5 + $0xa08] sm:$0xff]  ;;  %v7604_v0 = vld [vmem:[%s9822_s5 + $0xa10] sm:$0xff] }
 0x1b6   :  { %10391 = vst [vmem:[#allocation550_spill] sm:$0xff] %v7584_v26  ;;  %10392 = vst [vmem:[#allocation551_spill] sm:$0xff] %v7589_v19  ;;  %v7609_v26 = vld [vmem:[%s9822_s5 + $0xa18] sm:$0xff]  ;;  %v7614_v19 = vld [vmem:[%s9822_s5 + $0xa20] sm:$0xff] }
 0x1b7   :  { %10393 = vst [vmem:[#allocation552_spill] sm:$0xff] %v7594_v3  ;;  %10394 = vst [vmem:[#allocation553_spill] sm:$0xff] %v7599_v58  ;;  %v7619_v3 = vld [vmem:[%s9822_s5 + $0xa28] sm:$0xff]  ;;  %v7624_v58 = vld [vmem:[%s9822_s5 + $0xa30] sm:$0xff] }
 0x1b8   :  { %10395 = vst [vmem:[#allocation554_spill] sm:$0xff] %v7604_v0  ;;  %10396 = vst [vmem:[#allocation555_spill] sm:$0xff] %v7609_v26  ;;  %v7629_v0 = vld [vmem:[%s9822_s5 + $0xa38] sm:$0xff]  ;;  %v7634_v26 = vld [vmem:[%s9822_s5 + $0xa40] sm:$0xff] }
 0x1b9   :  { %10397 = vst [vmem:[#allocation556_spill] sm:$0xff] %v7614_v19  ;;  %10398 = vst [vmem:[#allocation557_spill] sm:$0xff] %v7619_v3  ;;  %v7639_v19 = vld [vmem:[%s9822_s5 + $0xa48] sm:$0xff]  ;;  %v7644_v3 = vld [vmem:[%s9822_s5 + $0xa50] sm:$0xff] }
 0x1ba   :  { %10399 = vst [vmem:[#allocation558_spill] sm:$0xff] %v7624_v58  ;;  %10400 = vst [vmem:[#allocation559_spill] sm:$0xff] %v7629_v0  ;;  %v7649_v58 = vld [vmem:[%s9822_s5 + $0xa58] sm:$0xff]  ;;  %v7654_v0 = vld [vmem:[%s9822_s5 + $0xa60] sm:$0xff] }
 0x1bb   :  { %10401 = vst [vmem:[#allocation560_spill] sm:$0xff] %v7634_v26  ;;  %10402 = vst [vmem:[#allocation561_spill] sm:$0xff] %v7639_v19  ;;  %v7659_v26 = vld [vmem:[%s9822_s5 + $0xa68] sm:$0xff]  ;;  %v7664_v19 = vld [vmem:[%s9822_s5 + $0xa70] sm:$0xff] }
 0x1bc   :  { %10403 = vst [vmem:[#allocation562_spill] sm:$0xff] %v7644_v3  ;;  %10404 = vst [vmem:[#allocation563_spill] sm:$0xff] %v7649_v58  ;;  %v7669_v3 = vld [vmem:[%s9822_s5 + $0xa78] sm:$0xff]  ;;  %v7674_v58 = vld [vmem:[%s9822_s5 + $0xa80] sm:$0xff] }
 0x1bd   :  { %10405 = vst [vmem:[#allocation564_spill] sm:$0xff] %v7654_v0  ;;  %10406 = vst [vmem:[#allocation565_spill] sm:$0xff] %v7659_v26  ;;  %v7679_v0 = vld [vmem:[%s9822_s5 + $0xa88] sm:$0xff]  ;;  %v7684_v26 = vld [vmem:[%s9822_s5 + $0xa90] sm:$0xff] }
 0x1be   :  { %10407 = vst [vmem:[#allocation566_spill] sm:$0xff] %v7664_v19  ;;  %10408 = vst [vmem:[#allocation567_spill] sm:$0xff] %v7669_v3  ;;  %v7689_v19 = vld [vmem:[%s9822_s5 + $0xa98] sm:$0xff]  ;;  %v7694_v3 = vld [vmem:[%s9822_s5 + $0xaa0] sm:$0xff] }
 0x1bf   :  { %10409 = vst [vmem:[#allocation568_spill] sm:$0xff] %v7674_v58  ;;  %10410 = vst [vmem:[#allocation569_spill] sm:$0xff] %v7679_v0  ;;  %v7699_v58 = vld [vmem:[%s9822_s5 + $0xaa8] sm:$0xff]  ;;  %v7704_v0 = vld [vmem:[%s9822_s5 + $0xab0] sm:$0xff] }
 0x1c0   :  { %10411 = vst [vmem:[#allocation570_spill] sm:$0xff] %v7684_v26  ;;  %10412 = vst [vmem:[#allocation571_spill] sm:$0xff] %v7689_v19  ;;  %v7709_v26 = vld [vmem:[%s9822_s5 + $0xab8] sm:$0xff]  ;;  %v7714_v19 = vld [vmem:[%s9822_s5 + $0xac0] sm:$0xff] }
 0x1c1   :  { %10413 = vst [vmem:[#allocation572_spill] sm:$0xff] %v7694_v3  ;;  %10414 = vst [vmem:[#allocation573_spill] sm:$0xff] %v7699_v58  ;;  %v7719_v3 = vld [vmem:[%s9822_s5 + $0xac8] sm:$0xff]  ;;  %v7724_v58 = vld [vmem:[%s9822_s5 + $0xad0] sm:$0xff] }
 0x1c2   :  { %10415 = vst [vmem:[#allocation574_spill] sm:$0xff] %v7704_v0  ;;  %10416 = vst [vmem:[#allocation575_spill] sm:$0xff] %v7709_v26  ;;  %v7729_v0 = vld [vmem:[%s9822_s5 + $0xad8] sm:$0xff]  ;;  %v7734_v26 = vld [vmem:[%s9822_s5 + $0xae0] sm:$0xff] }
 0x1c3   :  { %10417 = vst [vmem:[#allocation576_spill] sm:$0xff] %v7714_v19  ;;  %10418 = vst [vmem:[#allocation577_spill] sm:$0xff] %v7719_v3  ;;  %v7739_v19 = vld [vmem:[%s9822_s5 + $0xae8] sm:$0xff]  ;;  %v7744_v3 = vld [vmem:[%s9822_s5 + $0xaf0] sm:$0xff] }
 0x1c4   :  { %10419 = vst [vmem:[#allocation578_spill] sm:$0xff] %v7724_v58  ;;  %10420 = vst [vmem:[#allocation579_spill] sm:$0xff] %v7729_v0  ;;  %v7749_v58 = vld [vmem:[%s9822_s5 + $0xaf8] sm:$0xff]  ;;  %v7754_v0 = vld [vmem:[%s9822_s5 + $0xb00] sm:$0xff] }
 0x1c5   :  { %10421 = vst [vmem:[#allocation580_spill] sm:$0xff] %v7734_v26  ;;  %10422 = vst [vmem:[#allocation581_spill] sm:$0xff] %v7739_v19  ;;  %v7759_v26 = vld [vmem:[%s9822_s5 + $0xb08] sm:$0xff]  ;;  %v7764_v19 = vld [vmem:[%s9822_s5 + $0xb10] sm:$0xff] }
 0x1c6   :  { %10423 = vst [vmem:[#allocation582_spill] sm:$0xff] %v7744_v3  ;;  %10424 = vst [vmem:[#allocation583_spill] sm:$0xff] %v7749_v58  ;;  %v7769_v3 = vld [vmem:[%s9822_s5 + $0xb18] sm:$0xff]  ;;  %v7774_v58 = vld [vmem:[%s9822_s5 + $0xb20] sm:$0xff] }
 0x1c7   :  { %10425 = vst [vmem:[#allocation584_spill] sm:$0xff] %v7754_v0  ;;  %10426 = vst [vmem:[#allocation585_spill] sm:$0xff] %v7759_v26  ;;  %v7779_v0 = vld [vmem:[%s9822_s5 + $0xb28] sm:$0xff]  ;;  %v7784_v26 = vld [vmem:[%s9822_s5 + $0xb30] sm:$0xff] }
 0x1c8   :  { %10427 = vst [vmem:[#allocation586_spill] sm:$0xff] %v7764_v19  ;;  %10428 = vst [vmem:[#allocation587_spill] sm:$0xff] %v7769_v3  ;;  %v7789_v19 = vld [vmem:[%s9822_s5 + $0xb38] sm:$0xff]  ;;  %v7794_v3 = vld [vmem:[%s9822_s5 + $0xb40] sm:$0xff] }
 0x1c9   :  { %10429 = vst [vmem:[#allocation588_spill] sm:$0xff] %v7774_v58  ;;  %10430 = vst [vmem:[#allocation589_spill] sm:$0xff] %v7779_v0  ;;  %v7799_v58 = vld [vmem:[%s9822_s5 + $0xb48] sm:$0xff]  ;;  %v7804_v0 = vld [vmem:[%s9822_s5 + $0xb50] sm:$0xff] }
 0x1ca   :  { %10431 = vst [vmem:[#allocation590_spill] sm:$0xff] %v7784_v26  ;;  %10432 = vst [vmem:[#allocation591_spill] sm:$0xff] %v7789_v19  ;;  %v7809_v26 = vld [vmem:[%s9822_s5 + $0xb58] sm:$0xff]  ;;  %v7814_v19 = vld [vmem:[%s9822_s5 + $0xb60] sm:$0xff] }
 0x1cb   :  { %10433 = vst [vmem:[#allocation592_spill] sm:$0xff] %v7794_v3  ;;  %10434 = vst [vmem:[#allocation593_spill] sm:$0xff] %v7799_v58  ;;  %v7819_v3 = vld [vmem:[%s9822_s5 + $0xb68] sm:$0xff]  ;;  %v7824_v58 = vld [vmem:[%s9822_s5 + $0xb70] sm:$0xff] }
 0x1cc   :  { %10435 = vst [vmem:[#allocation594_spill] sm:$0xff] %v7804_v0  ;;  %10436 = vst [vmem:[#allocation595_spill] sm:$0xff] %v7809_v26  ;;  %v7829_v0 = vld [vmem:[%s9822_s5 + $0xb78] sm:$0xff]  ;;  %v7834_v26 = vld [vmem:[%s9822_s5 + $0xb80] sm:$0xff] }
 0x1cd   :  { %10437 = vst [vmem:[#allocation596_spill] sm:$0xff] %v7814_v19  ;;  %10438 = vst [vmem:[#allocation597_spill] sm:$0xff] %v7819_v3  ;;  %v7839_v19 = vld [vmem:[%s9822_s5 + $0xb88] sm:$0xff]  ;;  %v7844_v3 = vld [vmem:[%s9822_s5 + $0xb90] sm:$0xff] }
 0x1ce   :  { %10439 = vst [vmem:[#allocation598_spill] sm:$0xff] %v7824_v58  ;;  %10440 = vst [vmem:[#allocation599_spill] sm:$0xff] %v7829_v0  ;;  %v7849_v58 = vld [vmem:[%s9822_s5 + $0xb98] sm:$0xff]  ;;  %v7854_v0 = vld [vmem:[%s9822_s5 + $0xba0] sm:$0xff] }
 0x1cf   :  { %10441 = vst [vmem:[#allocation600_spill] sm:$0xff] %v7834_v26  ;;  %10442 = vst [vmem:[#allocation601_spill] sm:$0xff] %v7839_v19  ;;  %v7859_v26 = vld [vmem:[%s9822_s5 + $0xba8] sm:$0xff]  ;;  %v7864_v19 = vld [vmem:[%s9822_s5 + $0xbb0] sm:$0xff] }
 0x1d0   :  { %10443 = vst [vmem:[#allocation602_spill] sm:$0xff] %v7844_v3  ;;  %10444 = vst [vmem:[#allocation603_spill] sm:$0xff] %v7849_v58  ;;  %v7869_v3 = vld [vmem:[%s9822_s5 + $0xbb8] sm:$0xff]  ;;  %v7874_v58 = vld [vmem:[%s9822_s5 + $0xbc0] sm:$0xff] }
 0x1d1   :  { %10445 = vst [vmem:[#allocation604_spill] sm:$0xff] %v7854_v0  ;;  %10446 = vst [vmem:[#allocation605_spill] sm:$0xff] %v7859_v26  ;;  %v7879_v0 = vld [vmem:[%s9822_s5 + $0xbc8] sm:$0xff]  ;;  %v7884_v26 = vld [vmem:[%s9822_s5 + $0xbd0] sm:$0xff] }
 0x1d2   :  { %10447 = vst [vmem:[#allocation606_spill] sm:$0xff] %v7864_v19  ;;  %10448 = vst [vmem:[#allocation607_spill] sm:$0xff] %v7869_v3  ;;  %v7889_v19 = vld [vmem:[%s9822_s5 + $0xbd8] sm:$0xff]  ;;  %v7894_v3 = vld [vmem:[%s9822_s5 + $0xbe0] sm:$0xff] }
 0x1d3   :  { %10449 = vst [vmem:[#allocation608_spill] sm:$0xff] %v7874_v58  ;;  %10450 = vst [vmem:[#allocation609_spill] sm:$0xff] %v7879_v0  ;;  %v7899_v58 = vld [vmem:[%s9822_s5 + $0xbe8] sm:$0xff]  ;;  %v7904_v0 = vld [vmem:[%s9822_s5 + $0xbf0] sm:$0xff] }
 0x1d4   :  { %10451 = vst [vmem:[#allocation610_spill] sm:$0xff] %v7884_v26  ;;  %10452 = vst [vmem:[#allocation611_spill] sm:$0xff] %v7889_v19  ;;  %v7909_v26 = vld [vmem:[%s9822_s5 + $0xbf8] sm:$0xff]  ;;  %v7914_v19 = vld [vmem:[%s9822_s5 + $0xc00] sm:$0xff] }
 0x1d5   :  { %10453 = vst [vmem:[#allocation612_spill] sm:$0xff] %v7894_v3  ;;  %10454 = vst [vmem:[#allocation613_spill] sm:$0xff] %v7899_v58  ;;  %v7919_v3 = vld [vmem:[%s9822_s5 + $0xc08] sm:$0xff]  ;;  %v7924_v58 = vld [vmem:[%s9822_s5 + $0xc10] sm:$0xff] }
 0x1d6   :  { %10455 = vst [vmem:[#allocation614_spill] sm:$0xff] %v7904_v0  ;;  %10456 = vst [vmem:[#allocation615_spill] sm:$0xff] %v7909_v26  ;;  %v7929_v0 = vld [vmem:[%s9822_s5 + $0xc18] sm:$0xff]  ;;  %v7934_v26 = vld [vmem:[%s9822_s5 + $0xc20] sm:$0xff] }
 0x1d7   :  { %10457 = vst [vmem:[#allocation616_spill] sm:$0xff] %v7914_v19  ;;  %10458 = vst [vmem:[#allocation617_spill] sm:$0xff] %v7919_v3  ;;  %v7939_v19 = vld [vmem:[%s9822_s5 + $0xc28] sm:$0xff]  ;;  %v7944_v3 = vld [vmem:[%s9822_s5 + $0xc30] sm:$0xff] }
 0x1d8   :  { %10459 = vst [vmem:[#allocation618_spill] sm:$0xff] %v7924_v58  ;;  %10460 = vst [vmem:[#allocation619_spill] sm:$0xff] %v7929_v0  ;;  %v7949_v58 = vld [vmem:[%s9822_s5 + $0xc38] sm:$0xff]  ;;  %v7954_v0 = vld [vmem:[%s9822_s5 + $0xc40] sm:$0xff] }
 0x1d9   :  { %10461 = vst [vmem:[#allocation620_spill] sm:$0xff] %v7934_v26  ;;  %10462 = vst [vmem:[#allocation621_spill] sm:$0xff] %v7939_v19  ;;  %v7959_v26 = vld [vmem:[%s9822_s5 + $0xc48] sm:$0xff]  ;;  %v7964_v19 = vld [vmem:[%s9822_s5 + $0xc50] sm:$0xff] }
 0x1da   :  { %10463 = vst [vmem:[#allocation622_spill] sm:$0xff] %v7944_v3  ;;  %10464 = vst [vmem:[#allocation623_spill] sm:$0xff] %v7949_v58  ;;  %v7969_v3 = vld [vmem:[%s9822_s5 + $0xc58] sm:$0xff]  ;;  %v7974_v58 = vld [vmem:[%s9822_s5 + $0xc60] sm:$0xff] }
 0x1db   :  { %10465 = vst [vmem:[#allocation624_spill] sm:$0xff] %v7954_v0  ;;  %10466 = vst [vmem:[#allocation625_spill] sm:$0xff] %v7959_v26  ;;  %v7979_v0 = vld [vmem:[%s9822_s5 + $0xc68] sm:$0xff]  ;;  %v7984_v26 = vld [vmem:[%s9822_s5 + $0xc70] sm:$0xff] }
 0x1dc   :  { %10467 = vst [vmem:[#allocation626_spill] sm:$0xff] %v7964_v19  ;;  %10468 = vst [vmem:[#allocation627_spill] sm:$0xff] %v7969_v3  ;;  %v7989_v19 = vld [vmem:[%s9822_s5 + $0xc78] sm:$0xff]  ;;  %v7994_v3 = vld [vmem:[%s9822_s5 + $0xc80] sm:$0xff] }
 0x1dd   :  { %10469 = vst [vmem:[#allocation628_spill] sm:$0xff] %v7974_v58  ;;  %10470 = vst [vmem:[#allocation629_spill] sm:$0xff] %v7979_v0  ;;  %v7999_v58 = vld [vmem:[%s9822_s5 + $0xc88] sm:$0xff]  ;;  %v8004_v0 = vld [vmem:[%s9822_s5 + $0xc90] sm:$0xff] }
 0x1de   :  { %10471 = vst [vmem:[#allocation630_spill] sm:$0xff] %v7984_v26  ;;  %10472 = vst [vmem:[#allocation631_spill] sm:$0xff] %v7989_v19  ;;  %v8009_v26 = vld [vmem:[%s9822_s5 + $0xc98] sm:$0xff]  ;;  %v8014_v19 = vld [vmem:[%s9822_s5 + $0xca0] sm:$0xff] }
 0x1df   :  { %10473 = vst [vmem:[#allocation632_spill] sm:$0xff] %v7994_v3  ;;  %10474 = vst [vmem:[#allocation633_spill] sm:$0xff] %v7999_v58  ;;  %v8019_v3 = vld [vmem:[%s9822_s5 + $0xca8] sm:$0xff]  ;;  %v8024_v58 = vld [vmem:[%s9822_s5 + $0xcb0] sm:$0xff] }
 0x1e0   :  { %10475 = vst [vmem:[#allocation634_spill] sm:$0xff] %v8004_v0  ;;  %10476 = vst [vmem:[#allocation635_spill] sm:$0xff] %v8009_v26  ;;  %v8029_v0 = vld [vmem:[%s9822_s5 + $0xcb8] sm:$0xff]  ;;  %v8034_v26 = vld [vmem:[%s9822_s5 + $0xcc0] sm:$0xff] }
 0x1e1   :  { %10477 = vst [vmem:[#allocation636_spill] sm:$0xff] %v8014_v19  ;;  %10478 = vst [vmem:[#allocation637_spill] sm:$0xff] %v8019_v3  ;;  %v8039_v19 = vld [vmem:[%s9822_s5 + $0xcc8] sm:$0xff]  ;;  %v8044_v3 = vld [vmem:[%s9822_s5 + $0xcd0] sm:$0xff] }
 0x1e2   :  { %10479 = vst [vmem:[#allocation638_spill] sm:$0xff] %v8024_v58  ;;  %10480 = vst [vmem:[#allocation639_spill] sm:$0xff] %v8029_v0  ;;  %v8049_v58 = vld [vmem:[%s9822_s5 + $0xcd8] sm:$0xff]  ;;  %v8054_v0 = vld [vmem:[%s9822_s5 + $0xce0] sm:$0xff] }
 0x1e3   :  { %10481 = vst [vmem:[#allocation640_spill] sm:$0xff] %v8034_v26  ;;  %10482 = vst [vmem:[#allocation641_spill] sm:$0xff] %v8039_v19  ;;  %v8059_v26 = vld [vmem:[%s9822_s5 + $0xce8] sm:$0xff]  ;;  %v8064_v19 = vld [vmem:[%s9822_s5 + $0xcf0] sm:$0xff] }
 0x1e4   :  { %10483 = vst [vmem:[#allocation642_spill] sm:$0xff] %v8044_v3  ;;  %10484 = vst [vmem:[#allocation643_spill] sm:$0xff] %v8049_v58  ;;  %v8069_v3 = vld [vmem:[%s9822_s5 + $0xcf8] sm:$0xff]  ;;  %v8074_v58 = vld [vmem:[%s9822_s5 + $0xd00] sm:$0xff] }
 0x1e5   :  { %10485 = vst [vmem:[#allocation644_spill] sm:$0xff] %v8054_v0  ;;  %10486 = vst [vmem:[#allocation645_spill] sm:$0xff] %v8059_v26  ;;  %v8079_v0 = vld [vmem:[%s9822_s5 + $0xd08] sm:$0xff]  ;;  %v8084_v26 = vld [vmem:[%s9822_s5 + $0xd10] sm:$0xff] }
 0x1e6   :  { %10487 = vst [vmem:[#allocation646_spill] sm:$0xff] %v8064_v19  ;;  %10488 = vst [vmem:[#allocation647_spill] sm:$0xff] %v8069_v3  ;;  %v8089_v19 = vld [vmem:[%s9822_s5 + $0xd18] sm:$0xff]  ;;  %v8094_v3 = vld [vmem:[%s9822_s5 + $0xd20] sm:$0xff] }
 0x1e7   :  { %10489 = vst [vmem:[#allocation648_spill] sm:$0xff] %v8074_v58  ;;  %10490 = vst [vmem:[#allocation649_spill] sm:$0xff] %v8079_v0  ;;  %v8099_v58 = vld [vmem:[%s9822_s5 + $0xd28] sm:$0xff]  ;;  %v8104_v0 = vld [vmem:[%s9822_s5 + $0xd30] sm:$0xff] }
 0x1e8   :  { %10491 = vst [vmem:[#allocation650_spill] sm:$0xff] %v8084_v26  ;;  %10492 = vst [vmem:[#allocation651_spill] sm:$0xff] %v8089_v19  ;;  %v8109_v26 = vld [vmem:[%s9822_s5 + $0xd38] sm:$0xff]  ;;  %v8114_v19 = vld [vmem:[%s9822_s5 + $0xd40] sm:$0xff] }
 0x1e9   :  { %10493 = vst [vmem:[#allocation652_spill] sm:$0xff] %v8094_v3  ;;  %10494 = vst [vmem:[#allocation653_spill] sm:$0xff] %v8099_v58  ;;  %v8119_v3 = vld [vmem:[%s9822_s5 + $0xd48] sm:$0xff]  ;;  %v8124_v58 = vld [vmem:[%s9822_s5 + $0xd50] sm:$0xff] }
 0x1ea   :  { %10495 = vst [vmem:[#allocation654_spill] sm:$0xff] %v8104_v0  ;;  %10496 = vst [vmem:[#allocation655_spill] sm:$0xff] %v8109_v26  ;;  %v8129_v0 = vld [vmem:[%s9822_s5 + $0xd58] sm:$0xff]  ;;  %v8134_v26 = vld [vmem:[%s9822_s5 + $0xd60] sm:$0xff] }
 0x1eb   :  { %10497 = vst [vmem:[#allocation656_spill] sm:$0xff] %v8114_v19  ;;  %10498 = vst [vmem:[#allocation657_spill] sm:$0xff] %v8119_v3  ;;  %v8139_v19 = vld [vmem:[%s9822_s5 + $0xd68] sm:$0xff]  ;;  %v8144_v3 = vld [vmem:[%s9822_s5 + $0xd70] sm:$0xff] }
 0x1ec   :  { %10499 = vst [vmem:[#allocation658_spill] sm:$0xff] %v8124_v58  ;;  %10500 = vst [vmem:[#allocation659_spill] sm:$0xff] %v8129_v0  ;;  %v8149_v58 = vld [vmem:[%s9822_s5 + $0xd78] sm:$0xff]  ;;  %v8154_v0 = vld [vmem:[%s9822_s5 + $0xd80] sm:$0xff] }
 0x1ed   :  { %10501 = vst [vmem:[#allocation660_spill] sm:$0xff] %v8134_v26  ;;  %10502 = vst [vmem:[#allocation661_spill] sm:$0xff] %v8139_v19  ;;  %v8159_v26 = vld [vmem:[%s9822_s5 + $0xd88] sm:$0xff]  ;;  %v8164_v19 = vld [vmem:[%s9822_s5 + $0xd90] sm:$0xff] }
 0x1ee   :  { %10503 = vst [vmem:[#allocation662_spill] sm:$0xff] %v8144_v3  ;;  %10504 = vst [vmem:[#allocation663_spill] sm:$0xff] %v8149_v58  ;;  %v8169_v3 = vld [vmem:[%s9822_s5 + $0xd98] sm:$0xff]  ;;  %v8174_v58 = vld [vmem:[%s9822_s5 + $0xda0] sm:$0xff] }
 0x1ef   :  { %10505 = vst [vmem:[#allocation664_spill] sm:$0xff] %v8154_v0  ;;  %10506 = vst [vmem:[#allocation665_spill] sm:$0xff] %v8159_v26  ;;  %v8179_v0 = vld [vmem:[%s9822_s5 + $0xda8] sm:$0xff]  ;;  %v8184_v26 = vld [vmem:[%s9822_s5 + $0xdb0] sm:$0xff] }
 0x1f0   :  { %10507 = vst [vmem:[#allocation666_spill] sm:$0xff] %v8164_v19  ;;  %10508 = vst [vmem:[#allocation667_spill] sm:$0xff] %v8169_v3  ;;  %v8189_v19 = vld [vmem:[%s9822_s5 + $0xdb8] sm:$0xff]  ;;  %v8194_v3 = vld [vmem:[%s9822_s5 + $0xdc0] sm:$0xff] }
 0x1f1   :  { %10509 = vst [vmem:[#allocation668_spill] sm:$0xff] %v8174_v58  ;;  %10510 = vst [vmem:[#allocation669_spill] sm:$0xff] %v8179_v0  ;;  %v8199_v58 = vld [vmem:[%s9822_s5 + $0xdc8] sm:$0xff]  ;;  %v8204_v0 = vld [vmem:[%s9822_s5 + $0xdd0] sm:$0xff] }
 0x1f2   :  { %10511 = vst [vmem:[#allocation670_spill] sm:$0xff] %v8184_v26  ;;  %10512 = vst [vmem:[#allocation671_spill] sm:$0xff] %v8189_v19  ;;  %v8209_v26 = vld [vmem:[%s9822_s5 + $0xdd8] sm:$0xff]  ;;  %v8214_v19 = vld [vmem:[%s9822_s5 + $0xde0] sm:$0xff] }
 0x1f3   :  { %10513 = vst [vmem:[#allocation672_spill] sm:$0xff] %v8194_v3  ;;  %10514 = vst [vmem:[#allocation673_spill] sm:$0xff] %v8199_v58  ;;  %v8219_v3 = vld [vmem:[%s9822_s5 + $0xde8] sm:$0xff]  ;;  %v8224_v58 = vld [vmem:[%s9822_s5 + $0xdf0] sm:$0xff] }
 0x1f4   :  { %10515 = vst [vmem:[#allocation674_spill] sm:$0xff] %v8204_v0  ;;  %10516 = vst [vmem:[#allocation675_spill] sm:$0xff] %v8209_v26  ;;  %v8229_v0 = vld [vmem:[%s9822_s5 + $0xdf8] sm:$0xff]  ;;  %v8234_v26 = vld [vmem:[%s9822_s5 + $0xe00] sm:$0xff] }
 0x1f5   :  { %10517 = vst [vmem:[#allocation676_spill] sm:$0xff] %v8214_v19  ;;  %10518 = vst [vmem:[#allocation677_spill] sm:$0xff] %v8219_v3  ;;  %v8239_v19 = vld [vmem:[%s9822_s5 + $0xe08] sm:$0xff]  ;;  %v8244_v3 = vld [vmem:[%s9822_s5 + $0xe10] sm:$0xff] }
 0x1f6   :  { %10519 = vst [vmem:[#allocation678_spill] sm:$0xff] %v8224_v58  ;;  %10520 = vst [vmem:[#allocation679_spill] sm:$0xff] %v8229_v0  ;;  %v8249_v58 = vld [vmem:[%s9822_s5 + $0xe18] sm:$0xff]  ;;  %v8254_v0 = vld [vmem:[%s9822_s5 + $0xe20] sm:$0xff] }
 0x1f7   :  { %10521 = vst [vmem:[#allocation680_spill] sm:$0xff] %v8234_v26  ;;  %10522 = vst [vmem:[#allocation681_spill] sm:$0xff] %v8239_v19  ;;  %v8259_v26 = vld [vmem:[%s9822_s5 + $0xe28] sm:$0xff]  ;;  %v8264_v19 = vld [vmem:[%s9822_s5 + $0xe30] sm:$0xff] }
 0x1f8   :  { %10523 = vst [vmem:[#allocation682_spill] sm:$0xff] %v8244_v3  ;;  %10524 = vst [vmem:[#allocation683_spill] sm:$0xff] %v8249_v58  ;;  %v8269_v3 = vld [vmem:[%s9822_s5 + $0xe38] sm:$0xff]  ;;  %v8274_v58 = vld [vmem:[%s9822_s5 + $0xe40] sm:$0xff] }
 0x1f9   :  { %10525 = vst [vmem:[#allocation684_spill] sm:$0xff] %v8254_v0  ;;  %10526 = vst [vmem:[#allocation685_spill] sm:$0xff] %v8259_v26  ;;  %v8279_v0 = vld [vmem:[%s9822_s5 + $0xe48] sm:$0xff]  ;;  %v8284_v26 = vld [vmem:[%s9822_s5 + $0xe50] sm:$0xff] }
 0x1fa   :  { %10527 = vst [vmem:[#allocation686_spill] sm:$0xff] %v8264_v19  ;;  %10528 = vst [vmem:[#allocation687_spill] sm:$0xff] %v8269_v3  ;;  %v8289_v19 = vld [vmem:[%s9822_s5 + $0xe58] sm:$0xff]  ;;  %v8294_v3 = vld [vmem:[%s9822_s5 + $0xe60] sm:$0xff] }
 0x1fb   :  { %10529 = vst [vmem:[#allocation688_spill] sm:$0xff] %v8274_v58  ;;  %10530 = vst [vmem:[#allocation689_spill] sm:$0xff] %v8279_v0  ;;  %v8299_v58 = vld [vmem:[%s9822_s5 + $0xe68] sm:$0xff]  ;;  %v8304_v0 = vld [vmem:[%s9822_s5 + $0xe70] sm:$0xff] }
 0x1fc   :  { %10531 = vst [vmem:[#allocation690_spill] sm:$0xff] %v8284_v26  ;;  %10532 = vst [vmem:[#allocation691_spill] sm:$0xff] %v8289_v19  ;;  %v8309_v26 = vld [vmem:[%s9822_s5 + $0xe78] sm:$0xff]  ;;  %v8314_v19 = vld [vmem:[%s9822_s5 + $0xe80] sm:$0xff] }
 0x1fd   :  { %10533 = vst [vmem:[#allocation692_spill] sm:$0xff] %v8294_v3  ;;  %10534 = vst [vmem:[#allocation693_spill] sm:$0xff] %v8299_v58  ;;  %v8319_v3 = vld [vmem:[%s9822_s5 + $0xe88] sm:$0xff]  ;;  %v8324_v58 = vld [vmem:[%s9822_s5 + $0xe90] sm:$0xff] }
 0x1fe   :  { %10535 = vst [vmem:[#allocation694_spill] sm:$0xff] %v8304_v0  ;;  %10536 = vst [vmem:[#allocation695_spill] sm:$0xff] %v8309_v26  ;;  %v8329_v0 = vld [vmem:[%s9822_s5 + $0xe98] sm:$0xff]  ;;  %v8334_v26 = vld [vmem:[%s9822_s5 + $0xea0] sm:$0xff] }
 0x1ff   :  { %10537 = vst [vmem:[#allocation696_spill] sm:$0xff] %v8314_v19  ;;  %10538 = vst [vmem:[#allocation697_spill] sm:$0xff] %v8319_v3  ;;  %v8339_v19 = vld [vmem:[%s9822_s5 + $0xea8] sm:$0xff]  ;;  %v8344_v3 = vld [vmem:[%s9822_s5 + $0xeb0] sm:$0xff] }
 0x200   :  { %10539 = vst [vmem:[#allocation698_spill] sm:$0xff] %v8324_v58  ;;  %10540 = vst [vmem:[#allocation699_spill] sm:$0xff] %v8329_v0  ;;  %v8349_v58 = vld [vmem:[%s9822_s5 + $0xeb8] sm:$0xff]  ;;  %v8354_v0 = vld [vmem:[%s9822_s5 + $0xec0] sm:$0xff] }
 0x201   :  { %10541 = vst [vmem:[#allocation700_spill] sm:$0xff] %v8334_v26  ;;  %10542 = vst [vmem:[#allocation701_spill] sm:$0xff] %v8339_v19  ;;  %v8359_v26 = vld [vmem:[%s9822_s5 + $0xec8] sm:$0xff]  ;;  %v8364_v19 = vld [vmem:[%s9822_s5 + $0xed0] sm:$0xff] }
 0x202   :  { %10543 = vst [vmem:[#allocation702_spill] sm:$0xff] %v8344_v3  ;;  %10544 = vst [vmem:[#allocation703_spill] sm:$0xff] %v8349_v58  ;;  %v8369_v3 = vld [vmem:[%s9822_s5 + $0xed8] sm:$0xff]  ;;  %v8374_v58 = vld [vmem:[%s9822_s5 + $0xee0] sm:$0xff] }
 0x203   :  { %10545 = vst [vmem:[#allocation704_spill] sm:$0xff] %v8354_v0  ;;  %10546 = vst [vmem:[#allocation705_spill] sm:$0xff] %v8359_v26  ;;  %v8379_v0 = vld [vmem:[%s9822_s5 + $0xee8] sm:$0xff]  ;;  %v8384_v26 = vld [vmem:[%s9822_s5 + $0xef0] sm:$0xff] }
 0x204   :  { %10547 = vst [vmem:[#allocation706_spill] sm:$0xff] %v8364_v19  ;;  %10548 = vst [vmem:[#allocation707_spill] sm:$0xff] %v8369_v3  ;;  %v8389_v19 = vld [vmem:[%s9822_s5 + $0xef8] sm:$0xff]  ;;  %v8394_v3 = vld [vmem:[%s9822_s5 + $0xf00] sm:$0xff] }
 0x205   :  { %10549 = vst [vmem:[#allocation708_spill] sm:$0xff] %v8374_v58  ;;  %10550 = vst [vmem:[#allocation709_spill] sm:$0xff] %v8379_v0  ;;  %v8399_v58 = vld [vmem:[%s9822_s5 + $0xf08] sm:$0xff]  ;;  %v8404_v0 = vld [vmem:[%s9822_s5 + $0xf10] sm:$0xff] }
 0x206   :  { %10551 = vst [vmem:[#allocation710_spill] sm:$0xff] %v8384_v26  ;;  %10552 = vst [vmem:[#allocation711_spill] sm:$0xff] %v8389_v19  ;;  %v8409_v26 = vld [vmem:[%s9822_s5 + $0xf18] sm:$0xff]  ;;  %v8414_v19 = vld [vmem:[%s9822_s5 + $0xf20] sm:$0xff] }
 0x207   :  { %10553 = vst [vmem:[#allocation712_spill] sm:$0xff] %v8394_v3  ;;  %10554 = vst [vmem:[#allocation713_spill] sm:$0xff] %v8399_v58  ;;  %v8419_v3 = vld [vmem:[%s9822_s5 + $0xf28] sm:$0xff]  ;;  %v8424_v58 = vld [vmem:[%s9822_s5 + $0xf30] sm:$0xff] }
 0x208   :  { %10555 = vst [vmem:[#allocation714_spill] sm:$0xff] %v8404_v0  ;;  %10556 = vst [vmem:[#allocation715_spill] sm:$0xff] %v8409_v26  ;;  %v8429_v0 = vld [vmem:[%s9822_s5 + $0xf38] sm:$0xff]  ;;  %v8434_v26 = vld [vmem:[%s9822_s5 + $0xf40] sm:$0xff] }
 0x209   :  { %10557 = vst [vmem:[#allocation716_spill] sm:$0xff] %v8414_v19  ;;  %10558 = vst [vmem:[#allocation717_spill] sm:$0xff] %v8419_v3  ;;  %v8439_v19 = vld [vmem:[%s9822_s5 + $0xf48] sm:$0xff]  ;;  %v8444_v3 = vld [vmem:[%s9822_s5 + $0xf50] sm:$0xff] }
 0x20a   :  { %10559 = vst [vmem:[#allocation718_spill] sm:$0xff] %v8424_v58  ;;  %10560 = vst [vmem:[#allocation719_spill] sm:$0xff] %v8429_v0  ;;  %v8449_v58 = vld [vmem:[%s9822_s5 + $0xf58] sm:$0xff]  ;;  %v8454_v0 = vld [vmem:[%s9822_s5 + $0xf60] sm:$0xff] }
 0x20b   :  { %10561 = vst [vmem:[#allocation720_spill] sm:$0xff] %v8434_v26  ;;  %10562 = vst [vmem:[#allocation721_spill] sm:$0xff] %v8439_v19  ;;  %v8459_v26 = vld [vmem:[%s9822_s5 + $0xf68] sm:$0xff]  ;;  %v8464_v19 = vld [vmem:[%s9822_s5 + $0xf70] sm:$0xff] }
 0x20c   :  { %10563 = vst [vmem:[#allocation722_spill] sm:$0xff] %v8444_v3  ;;  %10564 = vst [vmem:[#allocation723_spill] sm:$0xff] %v8449_v58  ;;  %v8469_v3 = vld [vmem:[%s9822_s5 + $0xf78] sm:$0xff]  ;;  %v8474_v58 = vld [vmem:[%s9822_s5 + $0xf80] sm:$0xff] }
 0x20d   :  { %10565 = vst [vmem:[#allocation724_spill] sm:$0xff] %v8454_v0  ;;  %10566 = vst [vmem:[#allocation725_spill] sm:$0xff] %v8459_v26  ;;  %v8479_v0 = vld [vmem:[%s9822_s5 + $0xf88] sm:$0xff]  ;;  %v8484_v26 = vld [vmem:[%s9822_s5 + $0xf90] sm:$0xff] }
 0x20e   :  { %10567 = vst [vmem:[#allocation726_spill] sm:$0xff] %v8464_v19  ;;  %10568 = vst [vmem:[#allocation727_spill] sm:$0xff] %v8469_v3  ;;  %v8489_v19 = vld [vmem:[%s9822_s5 + $0xf98] sm:$0xff]  ;;  %v8494_v3 = vld [vmem:[%s9822_s5 + $0xfa0] sm:$0xff] }
 0x20f   :  { %10569 = vst [vmem:[#allocation728_spill] sm:$0xff] %v8474_v58  ;;  %10570 = vst [vmem:[#allocation729_spill] sm:$0xff] %v8479_v0  ;;  %v8499_v58 = vld [vmem:[%s9822_s5 + $0xfa8] sm:$0xff]  ;;  %v8504_v0 = vld [vmem:[%s9822_s5 + $0xfb0] sm:$0xff] }
 0x210   :  { %10571 = vst [vmem:[#allocation730_spill] sm:$0xff] %v8484_v26  ;;  %10572 = vst [vmem:[#allocation731_spill] sm:$0xff] %v8489_v19  ;;  %v8509_v26 = vld [vmem:[%s9822_s5 + $0xfb8] sm:$0xff]  ;;  %v8514_v19 = vld [vmem:[%s9822_s5 + $0xfc0] sm:$0xff] }
 0x211   :  { %10573 = vst [vmem:[#allocation732_spill] sm:$0xff] %v8494_v3  ;;  %10574 = vst [vmem:[#allocation733_spill] sm:$0xff] %v8499_v58  ;;  %v8519_v3 = vld [vmem:[%s9822_s5 + $0xfc8] sm:$0xff]  ;;  %v8524_v58 = vld [vmem:[%s9822_s5 + $0xfd0] sm:$0xff] }
 0x212   :  { %10575 = vst [vmem:[#allocation734_spill] sm:$0xff] %v8504_v0  ;;  %10576 = vst [vmem:[#allocation735_spill] sm:$0xff] %v8509_v26  ;;  %v8529_v0 = vld [vmem:[%s9822_s5 + $0xfd8] sm:$0xff]  ;;  %v8534_v26 = vld [vmem:[%s9822_s5 + $0xfe0] sm:$0xff] }
 0x213   :  { %10577 = vst [vmem:[#allocation736_spill] sm:$0xff] %v8514_v19  ;;  %10578 = vst [vmem:[#allocation737_spill] sm:$0xff] %v8519_v3  ;;  %v8539_v19 = vld [vmem:[%s9822_s5 + $0xfe8] sm:$0xff]  ;;  %v8544_v3 = vld [vmem:[%s9822_s5 + $0xff0] sm:$0xff] }
 0x214   :  { %10579 = vst [vmem:[#allocation738_spill] sm:$0xff] %v8524_v58  ;;  %10580 = vst [vmem:[#allocation739_spill] sm:$0xff] %v8529_v0  ;;  %v8549_v58 = vld [vmem:[%s9822_s5 + $0xff8] sm:$0xff]  ;;  %v8551_v0 = vmov 0.0  }
 0x215   :  { %10581 = vst [vmem:[#allocation740_spill] sm:$0xff] %v8534_v26  ;;  %10582 = vst [vmem:[#allocation741_spill] sm:$0xff] %v8539_v19  ;;  %v8555_v26 = vmov 0.0   ;;  %v8561_v19 = vmov 0.0  }
 0x216   :  { %10583 = vst [vmem:[#allocation742_spill] sm:$0xff] %v8544_v3  ;;  %10584 = vst [vmem:[#allocation743_spill] sm:$0xff] %v8549_v58  ;;  %v8565_v3 = vmov 0.0  }
 0x217 LB: > { %10585 = vst [vmem:[#allocation744_spill] sm:$0xff] %v4244_v0  ;;  %10586 = vst [vmem:[#allocation745_spill] sm:$0xff] %v4248_v36  ;;  %v10590_v14 = vld [vmem:[#allocation13_spill] sm:$0xff]  ;;  %v10592_v13 = vld [vmem:[#allocation12_spill] sm:$0xff]  ;;  %v3191_v58 = vpack.c.bf16 %v4732_v38, %v4692_v30  ;;  %1575 = vmatprep.mubr.f32.mxu0 %v4268_v42  ;;  %1646 = vmatprep.mubr.f32.mxu1 %v4268_v42  ;;  %s3018_s5 = sshll.u32 %s4276_s26, 3  ;;  %s1488_s26 = sadd.s32 1, %s4276_s26   ;;  %s4276_s26 = sphi %s8567_s26, %s1488_s26   ;;  %v4272_v3 = vphi %v8565_v3, %v9001_v3   ;;  %v4268_v42 = vphi %v8563_v42, %v9003_v42   ;;  %v4264_v19 = vphi %v8561_v19, %v8995_v19   ;;  %v4260_v27 = vphi %v8559_v27, %v8997_v27   ;;  %v4256_v17 = vphi %v8557_v17, %v11340_v17   ;;  %v4252_v26 = vphi %v8555_v26, %v11339_v26   ;;  %v4248_v36 = vphi %v8553_v36, %v2437_v36   ;;  %v4244_v0 = vphi %v8551_v0, %v2438_v0  }
 0x218   : > { %10587 = vst [vmem:[#allocation746_spill] sm:$0xff] %v4252_v26  ;;  %10588 = vst [vmem:[#allocation747_spill] sm:$0xff] %v4256_v17  ;;  %v10591_v22 = vld [vmem:[#allocation21_spill] sm:$0xff]  ;;  %v10593_v21 = vld [vmem:[#allocation20_spill] sm:$0xff]  ;;  %s1498_s27 = sshra.s32 %s3018_s5, 3  ;;  %p1485_p0 = scmp.ge.s32.totalorder %s1488_s26, 8  }
 0x219   : > { %10589 = vst [vmem:[#allocation748_spill] sm:$0xff] %v4260_v27  ;;  %v3187_v0 = vpack.c.bf16 %v10591_v22, %v10590_v14  ;;  %v3189_v36 = vpack.c.bf16 %v10593_v21, %v10592_v13  ;;  %v10594_v16 = vld [vmem:[#allocation15_spill] sm:$0xff]  ;;  %v10595_v15 = vld [vmem:[#allocation14_spill] sm:$0xff]  ;;  %v3255_v27 = vpack.c.bf16 %v4742_v40, %v4702_v32  ;;  %v3193_v14 = vpack.c.bf16 %v4727_v37, %v4687_v29  ;;  %v10598_v5 = vld [vmem:[#allocation45_spill] sm:$0xff]  ;;  %s3025_s3 = sshll.u32 %s1498_s27, 6 }
 0x21a   : > { %v3251_v17 = vpack.c.bf16 %v4662_v24, %v10594_v16  ;;  %v3253_v26 = vpack.c.bf16 %v4657_v23, %v10595_v15  ;;  %v3195_v13 = vpack.c.bf16 %v4812_v54, %v4772_v46  ;;  %v3257_v16 = vpack.c.bf16 %v4737_v39, %v4697_v31  ;;  %v10596_v7 = vld [vmem:[#allocation43_spill] sm:$0xff]  ;;  %v10599_v4 = vld [vmem:[#allocation52_spill] sm:$0xff]  ;;  %v10600_v9 = vld [vmem:[#allocation42_spill] sm:$0xff]  ;;  %s1502_s2 = scalar_lea.vmem [#allocation2], %s3025_s3 }
 0x21b   : > { %3188 = vmatprep.subr.bf16.mxu0 %v3187_v0  ;;  %v3259_v0 = vpack.c.bf16 %v4822_v56, %v4782_v48  ;;  %v10597_v8 = vld [vmem:[#allocation51_spill] sm:$0xff]  ;;  %v10601_v10 = vld [vmem:[#allocation50_spill] sm:$0xff]  ;;  %v10604_v6 = vld [vmem:[#allocation44_spill] sm:$0xff]  ;;  %vm2452_vm1 = vcmask (%p1485_p0), 64512   ;;  %vm4279_vm2 = vmmov (%p1485_p0), 0   ;;  %vm2949_vm3 = vcmask (%p1485_p0), 15360  }
 0x21c   : > { %3190 = vmatpush1.bf16.msra.mxu0 %v3189_v36  ;;  %3252 = vmatprep.subr.bf16.mxu1 %v3251_v17  ;;  %v3197_v36 = vpack.c.bf16 %v4807_v53, %v4767_v45  ;;  %v3199_v17 = vpack.c.bf16 %v10597_v8, %v10596_v7  ;;  %v10602_v1 = vld [vmem:[#allocation58_spill] sm:$0xff]  ;;  %v10603_v11 = vld [vmem:[#allocation63_spill] sm:$0xff]  ;;  %v10605_v2 = vld [vmem:[#allocation57_spill] sm:$0xff] }
 0x21d   : > { %3192 = vmatprep.subr.bf16.mxu0 %v3191_v58  ;;  %3254 = vmatpush1.bf16.msra.mxu1 %v3253_v26  ;;  %v3261_v26 = vpack.c.bf16 %v4817_v55, %v4777_v47  ;;  %v3263_v58 = vpack.c.bf16 %v10599_v4, %v10598_v5  ;;  %v10606_v12 = vld [vmem:[#allocation64_spill] sm:$0xff]  ;;  %v10610_v4 = vld [vmem:[#allocation74_spill] sm:$0xff]  ;;  %v10614_v8 = vld [vmem:[#allocation87_spill] sm:$0xff] }
 0x21e   : > { %3256 = vmatprep.subr.bf16.mxu1 %v3255_v27  ;;  %v3267_v27 = vpack.c.bf16 %v4982_v60, %v4942_v63  ;;  %v10829_v18 = vld [vmem:[#allocation263_spill] sm:$0xff]  ;;  %v2530_v60 = vld [vmem:[%s9811_s9 + $0x18] sm:$0xff] (%p1485_p0)  ;;  %v2529_v63 = vld [vmem:[%s9811_s9 + $0x10] sm:$0xff] (%p1485_p0) }
 0x21f   : > { %v10871_v20 = vld [vmem:[#allocation355_spill] sm:$0xff]  ;;  %v2532_v29 = vld [vmem:[%s9811_s9 + $0x28] sm:$0xff] (%p1485_p0)  ;;  %v2534_v30 = vld [vmem:[%s9811_s9 + $0x38] sm:$0xff] (%p1485_p0) }
 0x220   : > { %3194 = vmatpush1.bf16.msra.mxu0 %v3193_v14  ;;  %v3201_v14 = vpack.c.bf16 %v10601_v10, %v10600_v9  ;;  %v10616_v10 = vld [vmem:[#allocation104_spill] sm:$0xff]  ;;  %v2531_v31 = vld [vmem:[%s9811_s9 + $0x20] sm:$0xff] (%p1485_p0)  ;;  %v3959_v32 = vpack.c.bf16 (%p1485_p0), %v2534_v30, %v2532_v29  ;;  %v2538_v37 = vld [vmem:[%s9811_s9 + $0x58] sm:$0xff] (%p1485_p0) }
 0x221   : > { %3196 = vmatprep.subr.bf16.mxu0 %v3195_v13  ;;  %3258 = vmatpush1.bf16.msra.mxu1 %v3257_v16  ;;  %v3203_v13 = vpack.c.bf16 %v10603_v11, %v10602_v1  ;;  %v3265_v16 = vpack.c.bf16 %v4897_v62, %v10604_v6  ;;  %v10608_v1 = vld [vmem:[#allocation88_spill] sm:$0xff]  ;;  %v10612_v6 = vld [vmem:[#allocation90_spill] sm:$0xff]  ;;  %v2527_v62 = vld [vmem:[%s9811_s9] sm:$0xff] (%p1485_p0) }
 0x222   : > { %3260 = vmatprep.subr.bf16.mxu1 %v3259_v0  ;;  %v3205_v0 = vpack.c.bf16 %v4967_v49, %v10605_v2  ;;  %v3957_v24 = vpack.c.bf16 (%p1485_p0), %v2529_v63, %v2527_v62  ;;  %v2535_v40 = vld [vmem:[%s9811_s9 + $0x40] sm:$0xff] (%p1485_p0)  ;;  %v2540_v45 = vld [vmem:[%s9811_s9 + $0x68] sm:$0xff] (%p1485_p0)  ;;  %v2542_v46 = vld [vmem:[%s9811_s9 + $0x78] sm:$0xff] (%p1485_p0) }
 0x223   :  { %v3967_v48 = vpack.c.bf16 (%p1485_p0), %v2542_v46, %v2540_v45  ;;  %v2539_v49 = vld [vmem:[%s9811_s9 + $0x60] sm:$0xff] (%p1485_p0)  ;;  %v2545_v56 = vld [vmem:[%s9811_s9 + $0x90] sm:$0xff] (%p1485_p0)  ;;  %v2665_v62 = vld [vmem:[%s9813_s11 + $0xa8] sm:$0xff] (%p1485_p0) }
 0x224   : > { %3198 = vmatpush1.bf16.msra.mxu0 %v3197_v36  ;;  %v3207_v36 = vpack.c.bf16 %v5052_v43, %v5012_v57  ;;  %v2537_v43 = vld [vmem:[%s9811_s9 + $0x50] sm:$0xff] (%p1485_p0)  ;;  %v2543_v55 = vld [vmem:[%s9811_s9 + $0x80] sm:$0xff] (%p1485_p0)  ;;  %v2548_v57 = vld [vmem:[%s9811_s9 + $0xa8] sm:$0xff] (%p1485_p0) }
 0x225   : > { %3200 = vmatprep.subr.bf16.mxu0 %v3199_v17  ;;  %3262 = vmatpush1.bf16.msra.mxu1 %v3261_v26  ;;  %v3269_v17 = vpack.c.bf16 %v10606_v12, %v4937_v51  ;;  %v3271_v26 = vpack.c.bf16 %v5062_v50, %v5022_v52  ;;  %v10618_v12 = vld [vmem:[#allocation89_spill] sm:$0xff]  ;;  %v3965_v47 = vpack.c.bf16 (%p1485_p0), %v2537_v43, %v2535_v40  ;;  %v2544_v51 = vld [vmem:[%s9811_s9 + $0x88] sm:$0xff] (%p1485_p0)  ;;  %v2546_v52 = vld [vmem:[%s9811_s9 + $0x98] sm:$0xff] (%p1485_p0) }
 0x226   : > { %3264 = vmatprep.subr.bf16.mxu1 %v3263_v58  ;;  %v3209_v58 = vpack.c.bf16 %v5047_v33, %v5007_v35  ;;  %v2533_v33 = vld [vmem:[%s9811_s9 + $0x30] sm:$0xff] (%p1485_p0)  ;;  %v2536_v35 = vld [vmem:[%s9811_s9 + $0x48] sm:$0xff] (%p1485_p0)  ;;  %v3971_v54 = vpack.c.bf16 (%p1485_p0), %v2546_v52, %v2544_v51  ;;  %v2667_v30 = vld [vmem:[%s9813_s11 + $0xb8] sm:$0xff] (%p1485_p0) }
 0x227   :  { %v3961_v38 = vpack.c.bf16 (%p1485_p0), %v2533_v33, %v2531_v31  ;;  %v3963_v39 = vpack.c.bf16 (%p1485_p0), %v2538_v37, %v2536_v35  ;;  %v2541_v50 = vld [vmem:[%s9811_s9 + $0x70] sm:$0xff] (%p1485_p0)  ;;  %v2651_v35 = vld [vmem:[%s9813_s11 + $0x38] sm:$0xff] (%p1485_p0)  ;;  %v2668_v37 = vld [vmem:[%s9813_s11 + $0xc0] sm:$0xff] (%p1485_p0) }
 0x228   : > { %3202 = vmatpush1.bf16.msra.mxu0 %v3201_v14  ;;  %v10607_v14 = vld [vmem:[#allocation80_spill] sm:$0xff]  ;;  %v3969_v53 = vpack.c.bf16 (%p1485_p0), %v2541_v50, %v2539_v49  ;;  %v2666_v29 = vld [vmem:[%s9813_s11 + $0xb0] sm:$0xff] (%p1485_p0)  ;;  %v2652_v43 = vld [vmem:[%s9813_s11 + $0x40] sm:$0xff] (%p1485_p0) }
 0x229   : > { %3204 = vmatprep.subr.bf16.mxu0 %v3203_v13  ;;  %3266 = vmatpush1.bf16.msra.mxu1 %v3265_v16  ;;  %v3211_v2 = vpack.c.bf16 %v10608_v1, %v10607_v14  ;;  %v10609_v13 = vld [vmem:[#allocation69_spill] sm:$0xff]  ;;  %v10611_v16 = vld [vmem:[#allocation82_spill] sm:$0xff]  ;;  %v2653_v45 = vld [vmem:[%s9813_s11 + $0x48] sm:$0xff] (%p1485_p0) }
 0x22a   : > { %3268 = vmatprep.subr.bf16.mxu1 %v3267_v27  ;;  %v3273_v5 = vpack.c.bf16 %v10610_v4, %v10609_v13  ;;  %v3275_v7 = vpack.c.bf16 %v10612_v6, %v10611_v16  ;;  %v10613_v27 = vld [vmem:[#allocation79_spill] sm:$0xff]  ;;  %v10620_v14 = vld [vmem:[#allocation106_spill] sm:$0xff]  ;;  %v10624_v16 = vld [vmem:[#allocation120_spill] sm:$0xff] }
 0x22b   : > { %v3213_v9 = vpack.c.bf16 %v10614_v8, %v10613_v27  ;;  %v10622_v13 = vld [vmem:[#allocation103_spill] sm:$0xff]  ;;  %v10626_v27 = vld [vmem:[#allocation105_spill] sm:$0xff]  ;;  %v2655_v51 = vld [vmem:[%s9813_s11 + $0x58] sm:$0xff] (%p1485_p0) }
 0x22c   : > { %3206 = vmatpush1.bf16.msra.mxu0 %v3205_v0  ;;  %v10615_v0 = vld [vmem:[#allocation96_spill] sm:$0xff]  ;;  %v2650_v33 = vld [vmem:[%s9813_s11 + $0x30] sm:$0xff] (%p1485_p0)  ;;  %v2672_v52 = vld [vmem:[%s9813_s11 + $0xe0] sm:$0xff] (%p1485_p0) }
 0x22d   : > { %3208 = vmatprep.subr.bf16.mxu0 %v3207_v36  ;;  %3270 = vmatpush1.bf16.msra.mxu1 %v3269_v17  ;;  %v3215_v11 = vpack.c.bf16 %v10616_v10, %v10615_v0  ;;  %v10617_v36 = vld [vmem:[#allocation81_spill] sm:$0xff]  ;;  %v10619_v17 = vld [vmem:[#allocation98_spill] sm:$0xff] }
 0x22e   : > { %3272 = vmatprep.subr.bf16.mxu1 %v3271_v26  ;;  %v3277_v1 = vpack.c.bf16 %v10618_v12, %v10617_v36  ;;  %v3279_v4 = vpack.c.bf16 %v10620_v14, %v10619_v17  ;;  %v10621_v26 = vld [vmem:[#allocation95_spill] sm:$0xff]  ;;  %v10628_v0 = vld [vmem:[#allocation122_spill] sm:$0xff]  ;;  %v10632_v14 = vld [vmem:[#allocation136_spill] sm:$0xff] }
 0x22f   : > { %v3217_v6 = vpack.c.bf16 %v10622_v13, %v10621_v26  ;;  %v10630_v36 = vld [vmem:[#allocation119_spill] sm:$0xff]  ;;  %v10634_v13 = vld [vmem:[#allocation121_spill] sm:$0xff] }
 0x230   : > { %3210 = vmatpush1.bf16.msra.mxu0 %v3209_v58  ;;  %v10623_v58 = vld [vmem:[#allocation112_spill] sm:$0xff]  ;;  %v2670_v46 = vld [vmem:[%s9813_s11 + $0xd0] sm:$0xff] (%p1485_p0) }
 0x231   : > { %3212 = vmatprep.subr.bf16.mxu0 %v3211_v2  ;;  %3274 = vmatpush1.bf16.msra.mxu1 %v3273_v5  ;;  %v3219_v8 = vpack.c.bf16 %v10624_v16, %v10623_v58  ;;  %v10625_v2 = vld [vmem:[#allocation97_spill] sm:$0xff]  ;;  %v10627_v5 = vld [vmem:[#allocation114_spill] sm:$0xff] }
 0x232   : > { %3276 = vmatprep.subr.bf16.mxu1 %v3275_v7  ;;  %v3281_v10 = vpack.c.bf16 %v10626_v27, %v10625_v2  ;;  %v3283_v12 = vpack.c.bf16 %v10628_v0, %v10627_v5  ;;  %v10629_v7 = vld [vmem:[#allocation111_spill] sm:$0xff]  ;;  %v10636_v16 = vld [vmem:[#allocation138_spill] sm:$0xff]  ;;  %v10640_v0 = vld [vmem:[#allocation152_spill] sm:$0xff] }
 0x233   : > { %v3221_v17 = vpack.c.bf16 %v10630_v36, %v10629_v7  ;;  %v10638_v27 = vld [vmem:[#allocation135_spill] sm:$0xff]  ;;  %v10642_v36 = vld [vmem:[#allocation137_spill] sm:$0xff] }
 0x234   : > { %3214 = vmatpush1.bf16.msra.mxu0 %v3213_v9  ;;  %v10631_v9 = vld [vmem:[#allocation128_spill] sm:$0xff]  ;;  %v2654_v50 = vld [vmem:[%s9813_s11 + $0x50] sm:$0xff] (%p1485_p0) }
 0x235   : > { %3216 = vmatprep.subr.bf16.mxu0 %v3215_v11  ;;  %3278 = vmatpush1.bf16.msra.mxu1 %v3277_v1  ;;  %v3223_v26 = vpack.c.bf16 %v10632_v14, %v10631_v9  ;;  %v10633_v11 = vld [vmem:[#allocation113_spill] sm:$0xff]  ;;  %v10635_v1 = vld [vmem:[#allocation130_spill] sm:$0xff] }
 0x236   : > { %3280 = vmatprep.subr.bf16.mxu1 %v3279_v4  ;;  %v3285_v58 = vpack.c.bf16 %v10634_v13, %v10633_v11  ;;  %v3287_v2 = vpack.c.bf16 %v10636_v16, %v10635_v1  ;;  %v10637_v4 = vld [vmem:[#allocation127_spill] sm:$0xff]  ;;  %v10644_v14 = vld [vmem:[#allocation154_spill] sm:$0xff]  ;;  %v10648_v16 = vld [vmem:[#allocation168_spill] sm:$0xff] }
 0x237   : > { %v3225_v5 = vpack.c.bf16 %v10638_v27, %v10637_v4  ;;  %v10646_v13 = vld [vmem:[#allocation151_spill] sm:$0xff]  ;;  %v10650_v27 = vld [vmem:[#allocation153_spill] sm:$0xff] }
 0x238   : > { %3218 = vmatpush1.bf16.msra.mxu0 %v3217_v6  ;;  %v10639_v6 = vld [vmem:[#allocation144_spill] sm:$0xff] }
 0x239   : > { %3220 = vmatprep.subr.bf16.mxu0 %v3219_v8  ;;  %3282 = vmatpush1.bf16.msra.mxu1 %v3281_v10  ;;  %v3227_v7 = vpack.c.bf16 %v10640_v0, %v10639_v6  ;;  %v10641_v8 = vld [vmem:[#allocation129_spill] sm:$0xff]  ;;  %v10643_v10 = vld [vmem:[#allocation146_spill] sm:$0xff] }
 0x23a   : > { %3284 = vmatprep.subr.bf16.mxu1 %v3283_v12  ;;  %v3289_v9 = vpack.c.bf16 %v10642_v36, %v10641_v8  ;;  %v3291_v11 = vpack.c.bf16 %v10644_v14, %v10643_v10  ;;  %v10645_v12 = vld [vmem:[#allocation143_spill] sm:$0xff]  ;;  %v10652_v0 = vld [vmem:[#allocation170_spill] sm:$0xff]  ;;  %v10656_v14 = vld [vmem:[#allocation184_spill] sm:$0xff] }
 0x23b   : > { %v3229_v1 = vpack.c.bf16 %v10646_v13, %v10645_v12  ;;  %v10654_v36 = vld [vmem:[#allocation167_spill] sm:$0xff]  ;;  %v10658_v13 = vld [vmem:[#allocation169_spill] sm:$0xff] }
 0x23c   : > { %3222 = vmatpush1.bf16.msra.mxu0 %v3221_v17  ;;  %v10647_v17 = vld [vmem:[#allocation160_spill] sm:$0xff] }
 0x23d   : > { %3224 = vmatprep.subr.bf16.mxu0 %v3223_v26  ;;  %3286 = vmatpush1.bf16.msra.mxu1 %v3285_v58  ;;  %v3231_v4 = vpack.c.bf16 %v10648_v16, %v10647_v17  ;;  %v10649_v26 = vld [vmem:[#allocation145_spill] sm:$0xff]  ;;  %v10651_v58 = vld [vmem:[#allocation162_spill] sm:$0xff] }
 0x23e   : > { %3288 = vmatprep.subr.bf16.mxu1 %v3287_v2  ;;  %v3293_v6 = vpack.c.bf16 %v10650_v27, %v10649_v26  ;;  %v3295_v8 = vpack.c.bf16 %v10652_v0, %v10651_v58  ;;  %v10653_v2 = vld [vmem:[#allocation159_spill] sm:$0xff]  ;;  %v10660_v16 = vld [vmem:[#allocation186_spill] sm:$0xff]  ;;  %v10664_v0 = vld [vmem:[#allocation200_spill] sm:$0xff] }
 0x23f   : > { %v3233_v10 = vpack.c.bf16 %v10654_v36, %v10653_v2  ;;  %v10662_v27 = vld [vmem:[#allocation183_spill] sm:$0xff]  ;;  %v10666_v36 = vld [vmem:[#allocation185_spill] sm:$0xff] }
 0x240   : > { %3226 = vmatpush1.bf16.msra.mxu0 %v3225_v5  ;;  %v10655_v5 = vld [vmem:[#allocation176_spill] sm:$0xff] }
 0x241   : > { %3228 = vmatprep.subr.bf16.mxu0 %v3227_v7  ;;  %3290 = vmatpush1.bf16.msra.mxu1 %v3289_v9  ;;  %v3235_v12 = vpack.c.bf16 %v10656_v14, %v10655_v5  ;;  %v10657_v7 = vld [vmem:[#allocation161_spill] sm:$0xff]  ;;  %v10659_v9 = vld [vmem:[#allocation178_spill] sm:$0xff] }
 0x242   : > { %3292 = vmatprep.subr.bf16.mxu1 %v3291_v11  ;;  %v3297_v17 = vpack.c.bf16 %v10658_v13, %v10657_v7  ;;  %v3299_v26 = vpack.c.bf16 %v10660_v16, %v10659_v9  ;;  %v10661_v11 = vld [vmem:[#allocation175_spill] sm:$0xff]  ;;  %v10668_v14 = vld [vmem:[#allocation202_spill] sm:$0xff]  ;;  %v10672_v16 = vld [vmem:[#allocation216_spill] sm:$0xff] }
 0x243   : > { %v3237_v58 = vpack.c.bf16 %v10662_v27, %v10661_v11  ;;  %v10670_v13 = vld [vmem:[#allocation199_spill] sm:$0xff]  ;;  %v10674_v27 = vld [vmem:[#allocation201_spill] sm:$0xff] }
 0x244   : > { %3230 = vmatpush1.bf16.msra.mxu0 %v3229_v1  ;;  %v10663_v1 = vld [vmem:[#allocation192_spill] sm:$0xff] }
 0x245   : > { %3232 = vmatprep.subr.bf16.mxu0 %v3231_v4  ;;  %3294 = vmatpush1.bf16.msra.mxu1 %v3293_v6  ;;  %v3239_v2 = vpack.c.bf16 %v10664_v0, %v10663_v1  ;;  %v10665_v4 = vld [vmem:[#allocation177_spill] sm:$0xff]  ;;  %v10667_v6 = vld [vmem:[#allocation194_spill] sm:$0xff] }
 0x246   : > { %3296 = vmatprep.subr.bf16.mxu1 %v3295_v8  ;;  %v3301_v5 = vpack.c.bf16 %v10666_v36, %v10665_v4  ;;  %v3303_v7 = vpack.c.bf16 %v10668_v14, %v10667_v6  ;;  %v10669_v8 = vld [vmem:[#allocation191_spill] sm:$0xff]  ;;  %v10676_v0 = vld [vmem:[#allocation218_spill] sm:$0xff]  ;;  %v10680_v14 = vld [vmem:[#allocation232_spill] sm:$0xff] }
 0x247   : > { %v3241_v9 = vpack.c.bf16 %v10670_v13, %v10669_v8  ;;  %v10678_v36 = vld [vmem:[#allocation215_spill] sm:$0xff]  ;;  %v10682_v13 = vld [vmem:[#allocation217_spill] sm:$0xff] }
 0x248   : > { %3234 = vmatpush1.bf16.msra.mxu0 %v3233_v10  ;;  %v10671_v10 = vld [vmem:[#allocation208_spill] sm:$0xff] }
 0x249   : > { %3236 = vmatprep.subr.bf16.mxu0 %v3235_v12  ;;  %3298 = vmatpush1.bf16.msra.mxu1 %v3297_v17  ;;  %v3243_v11 = vpack.c.bf16 %v10672_v16, %v10671_v10  ;;  %v10673_v12 = vld [vmem:[#allocation193_spill] sm:$0xff]  ;;  %v10675_v17 = vld [vmem:[#allocation210_spill] sm:$0xff] }
 0x24a   : > { %3300 = vmatprep.subr.bf16.mxu1 %v3299_v26  ;;  %v3305_v1 = vpack.c.bf16 %v10674_v27, %v10673_v12  ;;  %v3307_v4 = vpack.c.bf16 %v10676_v0, %v10675_v17  ;;  %v10677_v26 = vld [vmem:[#allocation207_spill] sm:$0xff]  ;;  %v10684_v16 = vld [vmem:[#allocation234_spill] sm:$0xff] }
 0x24b   : > { %v3245_v6 = vpack.c.bf16 %v10678_v36, %v10677_v26  ;;  %v10686_v27 = vld [vmem:[#allocation231_spill] sm:$0xff]  ;;  %v10690_v36 = vld [vmem:[#allocation233_spill] sm:$0xff] }
 0x24c   : > { %3238 = vmatpush1.bf16.msra.mxu0 %v3237_v58  ;;  %v10679_v58 = vld [vmem:[#allocation224_spill] sm:$0xff]  ;;  %v10688_v0 = vld [vmem:[#allocation23_spill] sm:$0xff] }
 0x24d   : > { %3240 = vmatprep.subr.bf16.mxu0 %v3239_v2  ;;  %3302 = vmatpush1.bf16.msra.mxu1 %v3301_v5  ;;  %v3247_v8 = vpack.c.bf16 %v10680_v14, %v10679_v58  ;;  %v10681_v2 = vld [vmem:[#allocation209_spill] sm:$0xff]  ;;  %v10683_v5 = vld [vmem:[#allocation226_spill] sm:$0xff] }
 0x24e   : > { %3304 = vmatprep.subr.bf16.mxu1 %v3303_v7  ;;  %v3309_v10 = vpack.c.bf16 %v10682_v13, %v10681_v2  ;;  %v3311_v12 = vpack.c.bf16 %v10684_v16, %v10683_v5  ;;  %v10685_v7 = vld [vmem:[#allocation223_spill] sm:$0xff]  ;;  %v10692_v14 = vld [vmem:[#allocation25_spill] sm:$0xff]  ;;  %v10694_v13 = vld [vmem:[#allocation22_spill] sm:$0xff] }
 0x24f   : > { %v3249_v17 = vpack.c.bf16 %v10686_v27, %v10685_v7  ;;  %v10696_v16 = vld [vmem:[#allocation31_spill] sm:$0xff]  ;;  %v10698_v27 = vld [vmem:[#allocation24_spill] sm:$0xff] }
 0x250   : > { %3242 = vmatpush1.bf16.msra.mxu0 %v3241_v9  ;;  %v10687_v9 = vld [vmem:[#allocation17_spill] sm:$0xff] }
 0x251   : > { %3244 = vmatprep.subr.bf16.mxu0 %v3243_v11  ;;  %3306 = vmatpush1.bf16.msra.mxu1 %v3305_v1  ;;  %v3315_v26 = vpack.c.bf16 %v10688_v0, %v10687_v9  ;;  %v10689_v11 = vld [vmem:[#allocation225_spill] sm:$0xff]  ;;  %v10691_v1 = vld [vmem:[#allocation19_spill] sm:$0xff] }
 0x252   : > { %3308 = vmatprep.subr.bf16.mxu1 %v3307_v4  ;;  %v3313_v58 = vpack.c.bf16 %v10690_v36, %v10689_v11  ;;  %v3379_v2 = vpack.c.bf16 %v10692_v14, %v10691_v1  ;;  %v10693_v4 = vld [vmem:[#allocation16_spill] sm:$0xff]  ;;  %v10700_v0 = vld [vmem:[#allocation33_spill] sm:$0xff]  ;;  %v10704_v1 = vld [vmem:[#allocation39_spill] sm:$0xff] }
 0x253   : > { %v3317_v5 = vpack.c.bf16 %v10694_v13, %v10693_v4  ;;  %v10706_v4 = vld [vmem:[#allocation32_spill] sm:$0xff] }
 0x254   : > { %3246 = vmatpush1.bf16.msra.mxu0 %v3245_v6  ;;  %v10695_v6 = vld [vmem:[#allocation27_spill] sm:$0xff] }
 0x255   : > { %3248 = vmatprep.subr.bf16.mxu0 %v3247_v8  ;;  %3310 = vmatpush1.bf16.msra.mxu1 %v3309_v10  ;;  %v3319_v7 = vpack.c.bf16 %v10696_v16, %v10695_v6  ;;  %v10697_v8 = vld [vmem:[#allocation18_spill] sm:$0xff]  ;;  %v10699_v10 = vld [vmem:[#allocation29_spill] sm:$0xff] }
 0x256   : > { %3312 = vmatprep.subr.bf16.mxu1 %v3311_v12  ;;  %v3381_v9 = vpack.c.bf16 %v10698_v27, %v10697_v8  ;;  %v3383_v11 = vpack.c.bf16 %v10700_v0, %v10699_v10  ;;  %v10701_v12 = vld [vmem:[#allocation26_spill] sm:$0xff]  ;;  %v10708_v6 = vld [vmem:[#allocation41_spill] sm:$0xff] }
 0x257   : > { %v10710_v8 = vld [vmem:[#allocation38_spill] sm:$0xff] }
 0x258   : > { %3250 = vmatpush1.bf16.msra.mxu0 %v3249_v17  ;;  %v10702_v17 = vld [vmem:[#allocation30_spill] sm:$0xff] }
 0x259   : > { %3316 = vmatprep.subr.bf16.mxu0 %v3315_v26  ;;  %3314 = vmatpush1.bf16.msra.mxu1 %v3313_v58  ;;  %v3321_v36 = vpack.c.bf16 %v10702_v17, %v10701_v12  ;;  %v10703_v26 = vld [vmem:[#allocation35_spill] sm:$0xff]  ;;  %v10705_v58 = vld [vmem:[#allocation28_spill] sm:$0xff]  ;;  %v10712_v10 = vld [vmem:[#allocation54_spill] sm:$0xff] }
 0x25a   : > { %3380 = vmatprep.subr.bf16.mxu1 %v3379_v2  ;;  %v3323_v14 = vpack.c.bf16 %v10704_v1, %v10703_v26  ;;  %v3385_v13 = vpack.c.bf16 %v10706_v4, %v10705_v58  ;;  %v10707_v2 = vld [vmem:[#allocation37_spill] sm:$0xff]  ;;  %v10714_v12 = vld [vmem:[#allocation40_spill] sm:$0xff]  ;;  %v10717_v58 = vld [vmem:[#allocation46_spill] sm:$0xff] }
 0x25b   : > { %1576 = vmatmul.mubr.f32.vlgmr.msra.gmra.mrb[0].mxu0 %v4272_v3  ;;  %v3387_v16 = vpack.c.bf16 %v10708_v6, %v10707_v2  ;;  %v10716_v26 = vld [vmem:[#allocation56_spill] sm:$0xff]  ;;  %v10718_v4 = vld [vmem:[#allocation53_spill] sm:$0xff]  ;;  %v10720_v2 = vld [vmem:[#allocation66_spill] sm:$0xff] }
 0x25c   : > { %3318 = vmatpush1.bf16.msra.mxu0 %v3317_v5  ;;  %1647 = vmatmul.mubr.f32.vlgmr.msra.gmra.mrb[0].mxu1 %v4272_v3  ;;  %v10709_v5 = vld [vmem:[#allocation34_spill] sm:$0xff] }
 0x25d   : > { %3320 = vmatprep.subr.bf16.mxu0 %v3319_v7  ;;  %3382 = vmatpush1.bf16.msra.mxu1 %v3381_v9  ;;  %v3325_v27 = vpack.c.bf16 %v10710_v8, %v10709_v5  ;;  %v10711_v7 = vld [vmem:[#allocation47_spill] sm:$0xff]  ;;  %v10713_v9 = vld [vmem:[#allocation36_spill] sm:$0xff] }
 0x25e   : > { %3384 = vmatprep.subr.bf16.mxu1 %v3383_v11  ;;  %1717 = vmatprep.mubr.f32.mxu0 %v4268_v42  ;;  %v3327_v0 = vpack.c.bf16 %v10712_v10, %v10711_v7  ;;  %v3389_v17 = vpack.c.bf16 %v10714_v12, %v10713_v9  ;;  %v10715_v11 = vld [vmem:[#allocation49_spill] sm:$0xff]  ;;  %v10722_v5 = vld [vmem:[#allocation55_spill] sm:$0xff]  ;;  %v10724_v7 = vld [vmem:[#allocation68_spill] sm:$0xff] }
 0x25f   : > { %1788 = vmatprep.mubr.f32.mxu1 %v4268_v42  ;;  %v3391_v1 = vpack.c.bf16 %v10716_v26, %v10715_v11  ;;  %v3329_v42 = vpack.c.bf16 %v10718_v4, %v10717_v58  ;;  %v10726_v9 = vld [vmem:[#allocation65_spill] sm:$0xff]  ;;  %v10728_v11 = vld [vmem:[#allocation76_spill] sm:$0xff]  ;;  %v10730_v58 = vld [vmem:[#allocation67_spill] sm:$0xff] }
 0x260   : > { %3322 = vmatpush1.bf16.msra.mxu0 %v3321_v36  ;;  %v10719_v36 = vld [vmem:[#allocation60_spill] sm:$0xff] }
 0x261   : > { %3324 = vmatprep.subr.bf16.mxu0 %v3323_v14  ;;  %3386 = vmatpush1.bf16.msra.mxu1 %v3385_v13  ;;  %v3331_v6 = vpack.c.bf16 %v10720_v2, %v10719_v36  ;;  %v10721_v14 = vld [vmem:[#allocation48_spill] sm:$0xff]  ;;  %v10723_v13 = vld [vmem:[#allocation62_spill] sm:$0xff] }
 0x262   : > { %3388 = vmatprep.subr.bf16.mxu1 %v3387_v16  ;;  %v3393_v8 = vpack.c.bf16 %v10722_v5, %v10721_v14  ;;  %v3395_v10 = vpack.c.bf16 %v10724_v7, %v10723_v13  ;;  %v10725_v16 = vld [vmem:[#allocation59_spill] sm:$0xff]  ;;  %v10732_v36 = vld [vmem:[#allocation78_spill] sm:$0xff]  ;;  %v10736_v13 = vld [vmem:[#allocation92_spill] sm:$0xff] }
 0x263   : > { %v3333_v12 = vpack.c.bf16 %v10726_v9, %v10725_v16  ;;  %v10734_v14 = vld [vmem:[#allocation75_spill] sm:$0xff]  ;;  %v10738_v16 = vld [vmem:[#allocation77_spill] sm:$0xff] }
 0x264   : > { %3326 = vmatpush1.bf16.msra.mxu0 %v3325_v27  ;;  %v10727_v27 = vld [vmem:[#allocation71_spill] sm:$0xff] }
 0x265   : > { %3328 = vmatprep.subr.bf16.mxu0 %v3327_v0  ;;  %3390 = vmatpush1.bf16.msra.mxu1 %v3389_v17  ;;  %v3335_v26 = vpack.c.bf16 %v10728_v11, %v10727_v27  ;;  %v10729_v0 = vld [vmem:[#allocation61_spill] sm:$0xff]  ;;  %v10740_v27 = vld [vmem:[#allocation94_spill] sm:$0xff] }
 0x266   : > { %3392 = vmatprep.subr.bf16.mxu1 %v3391_v1  ;;  %v3397_v4 = vpack.c.bf16 %v10730_v58, %v10729_v0  ;;  %v10731_v17 = vld [vmem:[#allocation73_spill] sm:$0xff]  ;;  %v10733_v1 = vld [vmem:[#allocation70_spill] sm:$0xff]  ;;  %v10742_v0 = vld [vmem:[#allocation91_spill] sm:$0xff] }
 0x267   : > { %v3399_v2 = vpack.c.bf16 %v10732_v36, %v10731_v17  ;;  %v3337_v5 = vpack.c.bf16 %v10734_v14, %v10733_v1  ;;  %v10744_v17 = vld [vmem:[#allocation108_spill] sm:$0xff]  ;;  %v10746_v1 = vld [vmem:[#allocation93_spill] sm:$0xff] }
 0x268   : > { %3330 = vmatpush1.bf16.msra.mxu0 %v3329_v42  ;;  %v10735_v42 = vld [vmem:[#allocation84_spill] sm:$0xff] }
 0x269   : > { %3332 = vmatprep.subr.bf16.mxu0 %v3331_v6  ;;  %3394 = vmatpush1.bf16.msra.mxu1 %v3393_v8  ;;  %v3339_v7 = vpack.c.bf16 %v10736_v13, %v10735_v42  ;;  %v10737_v6 = vld [vmem:[#allocation72_spill] sm:$0xff]  ;;  %v10739_v8 = vld [vmem:[#allocation86_spill] sm:$0xff] }
 0x26a   : > { %3396 = vmatprep.subr.bf16.mxu1 %v3395_v10  ;;  %v3401_v9 = vpack.c.bf16 %v10738_v16, %v10737_v6  ;;  %v3403_v11 = vpack.c.bf16 %v10740_v27, %v10739_v8  ;;  %v10741_v10 = vld [vmem:[#allocation83_spill] sm:$0xff]  ;;  %v10748_v42 = vld [vmem:[#allocation110_spill] sm:$0xff]  ;;  %v10752_v8 = vld [vmem:[#allocation124_spill] sm:$0xff] }
 0x26b   : > { %v3341_v58 = vpack.c.bf16 %v10742_v0, %v10741_v10  ;;  %v10750_v6 = vld [vmem:[#allocation107_spill] sm:$0xff]  ;;  %v10754_v10 = vld [vmem:[#allocation109_spill] sm:$0xff] }
 0x26c   : > { %3334 = vmatpush1.bf16.msra.mxu0 %v3333_v12  ;;  %v10743_v12 = vld [vmem:[#allocation100_spill] sm:$0xff] }
 0x26d   : > { %3336 = vmatprep.subr.bf16.mxu0 %v3335_v26  ;;  %3398 = vmatpush1.bf16.msra.mxu1 %v3397_v4  ;;  %v3343_v36 = vpack.c.bf16 %v10744_v17, %v10743_v12  ;;  %v10745_v26 = vld [vmem:[#allocation85_spill] sm:$0xff]  ;;  %v10747_v4 = vld [vmem:[#allocation102_spill] sm:$0xff] }
 0x26e   : > { %3400 = vmatprep.subr.bf16.mxu1 %v3399_v2  ;;  %v3405_v14 = vpack.c.bf16 %v10746_v1, %v10745_v26  ;;  %v3407_v13 = vpack.c.bf16 %v10748_v42, %v10747_v4  ;;  %v10749_v2 = vld [vmem:[#allocation99_spill] sm:$0xff]  ;;  %v10756_v12 = vld [vmem:[#allocation126_spill] sm:$0xff]  ;;  %v10760_v4 = vld [vmem:[#allocation140_spill] sm:$0xff] }
 0x26f   : > { %v3345_v16 = vpack.c.bf16 %v10750_v6, %v10749_v2  ;;  %v10758_v26 = vld [vmem:[#allocation123_spill] sm:$0xff]  ;;  %v10762_v2 = vld [vmem:[#allocation125_spill] sm:$0xff] }
 0x270   : > { %3338 = vmatpush1.bf16.msra.mxu0 %v3337_v5  ;;  %v10751_v5 = vld [vmem:[#allocation116_spill] sm:$0xff] }
 0x271   : > { %3340 = vmatprep.subr.bf16.mxu0 %v3339_v7  ;;  %3402 = vmatpush1.bf16.msra.mxu1 %v3401_v9  ;;  %v3347_v27 = vpack.c.bf16 %v10752_v8, %v10751_v5  ;;  %v10753_v7 = vld [vmem:[#allocation101_spill] sm:$0xff]  ;;  %v10755_v9 = vld [vmem:[#allocation118_spill] sm:$0xff] }
 0x272   : > { %3404 = vmatprep.subr.bf16.mxu1 %v3403_v11  ;;  %v3409_v0 = vpack.c.bf16 %v10754_v10, %v10753_v7  ;;  %v3411_v17 = vpack.c.bf16 %v10756_v12, %v10755_v9  ;;  %v10757_v11 = vld [vmem:[#allocation115_spill] sm:$0xff]  ;;  %v10764_v5 = vld [vmem:[#allocation142_spill] sm:$0xff]  ;;  %v10768_v9 = vld [vmem:[#allocation156_spill] sm:$0xff] }
 0x273   : > { %v3349_v1 = vpack.c.bf16 %v10758_v26, %v10757_v11  ;;  %v10766_v7 = vld [vmem:[#allocation139_spill] sm:$0xff]  ;;  %v10770_v11 = vld [vmem:[#allocation141_spill] sm:$0xff] }
 0x274   : > { %3342 = vmatpush1.bf16.msra.mxu0 %v3341_v58  ;;  %v10759_v58 = vld [vmem:[#allocation132_spill] sm:$0xff] }
 0x275   : > { %3344 = vmatprep.subr.bf16.mxu0 %v3343_v36  ;;  %3406 = vmatpush1.bf16.msra.mxu1 %v3405_v14  ;;  %v3351_v42 = vpack.c.bf16 %v10760_v4, %v10759_v58  ;;  %v10761_v36 = vld [vmem:[#allocation117_spill] sm:$0xff]  ;;  %v10763_v14 = vld [vmem:[#allocation134_spill] sm:$0xff] }
 0x276   : > { %3408 = vmatprep.subr.bf16.mxu1 %v3407_v13  ;;  %v3413_v6 = vpack.c.bf16 %v10762_v2, %v10761_v36  ;;  %v3415_v8 = vpack.c.bf16 %v10764_v5, %v10763_v14  ;;  %v10765_v13 = vld [vmem:[#allocation131_spill] sm:$0xff]  ;;  %v10772_v58 = vld [vmem:[#allocation158_spill] sm:$0xff]  ;;  %v10776_v14 = vld [vmem:[#allocation172_spill] sm:$0xff] }
 0x277   : > { %v3353_v10 = vpack.c.bf16 %v10766_v7, %v10765_v13  ;;  %v10774_v36 = vld [vmem:[#allocation155_spill] sm:$0xff]  ;;  %v10778_v13 = vld [vmem:[#allocation157_spill] sm:$0xff] }
 0x278   : > { %3346 = vmatpush1.bf16.msra.mxu0 %v3345_v16  ;;  %v10767_v16 = vld [vmem:[#allocation148_spill] sm:$0xff] }
 0x279   : > { %3348 = vmatprep.subr.bf16.mxu0 %v3347_v27  ;;  %3410 = vmatpush1.bf16.msra.mxu1 %v3409_v0  ;;  %v3355_v12 = vpack.c.bf16 %v10768_v9, %v10767_v16  ;;  %v10769_v27 = vld [vmem:[#allocation133_spill] sm:$0xff]  ;;  %v10771_v0 = vld [vmem:[#allocation150_spill] sm:$0xff] }
 0x27a   : > { %3412 = vmatprep.subr.bf16.mxu1 %v3411_v17  ;;  %v3417_v26 = vpack.c.bf16 %v10770_v11, %v10769_v27  ;;  %v3419_v4 = vpack.c.bf16 %v10772_v58, %v10771_v0  ;;  %v10773_v17 = vld [vmem:[#allocation147_spill] sm:$0xff]  ;;  %v10780_v16 = vld [vmem:[#allocation174_spill] sm:$0xff]  ;;  %v10784_v0 = vld [vmem:[#allocation188_spill] sm:$0xff] }
 0x27b   : > { %v3357_v2 = vpack.c.bf16 %v10774_v36, %v10773_v17  ;;  %v10782_v27 = vld [vmem:[#allocation171_spill] sm:$0xff]  ;;  %v10786_v17 = vld [vmem:[#allocation173_spill] sm:$0xff] }
 0x27c   : > { %3350 = vmatpush1.bf16.msra.mxu0 %v3349_v1  ;;  %v10775_v1 = vld [vmem:[#allocation164_spill] sm:$0xff] }
 0x27d   : > { %3352 = vmatprep.subr.bf16.mxu0 %v3351_v42  ;;  %3414 = vmatpush1.bf16.msra.mxu1 %v3413_v6  ;;  %v3359_v5 = vpack.c.bf16 %v10776_v14, %v10775_v1  ;;  %v10777_v42 = vld [vmem:[#allocation149_spill] sm:$0xff]  ;;  %v10779_v6 = vld [vmem:[#allocation166_spill] sm:$0xff] }
 0x27e   : > { %3416 = vmatprep.subr.bf16.mxu1 %v3415_v8  ;;  %v3421_v7 = vpack.c.bf16 %v10778_v13, %v10777_v42  ;;  %v3423_v9 = vpack.c.bf16 %v10780_v16, %v10779_v6  ;;  %v10781_v8 = vld [vmem:[#allocation163_spill] sm:$0xff]  ;;  %v10788_v1 = vld [vmem:[#allocation190_spill] sm:$0xff]  ;;  %v10792_v6 = vld [vmem:[#allocation204_spill] sm:$0xff] }
 0x27f   : > { %v3361_v11 = vpack.c.bf16 %v10782_v27, %v10781_v8  ;;  %v10790_v42 = vld [vmem:[#allocation187_spill] sm:$0xff]  ;;  %v10794_v8 = vld [vmem:[#allocation189_spill] sm:$0xff] }
 0x280   : > { %3354 = vmatpush1.bf16.msra.mxu0 %v3353_v10  ;;  %v10783_v10 = vld [vmem:[#allocation180_spill] sm:$0xff] }
 0x281   : > { %3356 = vmatprep.subr.bf16.mxu0 %v3355_v12  ;;  %3418 = vmatpush1.bf16.msra.mxu1 %v3417_v26  ;;  %v3363_v58 = vpack.c.bf16 %v10784_v0, %v10783_v10  ;;  %v10785_v12 = vld [vmem:[#allocation165_spill] sm:$0xff]  ;;  %v10787_v26 = vld [vmem:[#allocation182_spill] sm:$0xff] }
 0x282   : > { %3420 = vmatprep.subr.bf16.mxu1 %v3419_v4  ;;  %v3425_v36 = vpack.c.bf16 %v10786_v17, %v10785_v12  ;;  %v3427_v14 = vpack.c.bf16 %v10788_v1, %v10787_v26  ;;  %v10789_v4 = vld [vmem:[#allocation179_spill] sm:$0xff]  ;;  %v10796_v10 = vld [vmem:[#allocation206_spill] sm:$0xff]  ;;  %v10800_v26 = vld [vmem:[#allocation220_spill] sm:$0xff] }
 0x283   : > { %v3365_v13 = vpack.c.bf16 %v10790_v42, %v10789_v4  ;;  %v10798_v12 = vld [vmem:[#allocation203_spill] sm:$0xff]  ;;  %v10802_v4 = vld [vmem:[#allocation205_spill] sm:$0xff] }
 0x284   : > { %3358 = vmatpush1.bf16.msra.mxu0 %v3357_v2  ;;  %v10791_v2 = vld [vmem:[#allocation196_spill] sm:$0xff] }
 0x285   : > { %3360 = vmatprep.subr.bf16.mxu0 %v3359_v5  ;;  %3422 = vmatpush1.bf16.msra.mxu1 %v3421_v7  ;;  %v3367_v16 = vpack.c.bf16 %v10792_v6, %v10791_v2  ;;  %v10793_v5 = vld [vmem:[#allocation181_spill] sm:$0xff]  ;;  %v10795_v7 = vld [vmem:[#allocation198_spill] sm:$0xff] }
 0x286   : > { %3424 = vmatprep.subr.bf16.mxu1 %v3423_v9  ;;  %v3429_v27 = vpack.c.bf16 %v10794_v8, %v10793_v5  ;;  %v3431_v0 = vpack.c.bf16 %v10796_v10, %v10795_v7  ;;  %v10797_v9 = vld [vmem:[#allocation195_spill] sm:$0xff]  ;;  %v10804_v2 = vld [vmem:[#allocation222_spill] sm:$0xff]  ;;  %v10808_v7 = vld [vmem:[#allocation236_spill] sm:$0xff] }
 0x287   : > { %v3369_v17 = vpack.c.bf16 %v10798_v12, %v10797_v9  ;;  %v10806_v5 = vld [vmem:[#allocation219_spill] sm:$0xff]  ;;  %v10810_v9 = vld [vmem:[#allocation221_spill] sm:$0xff] }
 0x288   : > { %3362 = vmatpush1.bf16.msra.mxu0 %v3361_v11  ;;  %v10799_v11 = vld [vmem:[#allocation212_spill] sm:$0xff] }
 0x289   : > { %3364 = vmatprep.subr.bf16.mxu0 %v3363_v58  ;;  %3426 = vmatpush1.bf16.msra.mxu1 %v3425_v36  ;;  %v3371_v1 = vpack.c.bf16 %v10800_v26, %v10799_v11  ;;  %v10801_v58 = vld [vmem:[#allocation197_spill] sm:$0xff]  ;;  %v10803_v36 = vld [vmem:[#allocation214_spill] sm:$0xff] }
 0x28a   : > { %3428 = vmatprep.subr.bf16.mxu1 %v3427_v14  ;;  %v3433_v42 = vpack.c.bf16 %v10802_v4, %v10801_v58  ;;  %v3435_v6 = vpack.c.bf16 %v10804_v2, %v10803_v36  ;;  %v10805_v14 = vld [vmem:[#allocation211_spill] sm:$0xff]  ;;  %v10812_v11 = vld [vmem:[#allocation238_spill] sm:$0xff]  ;;  %v10816_v36 = vld [vmem:[#allocation237_spill] sm:$0xff] }
 0x28b   : > { %v3373_v8 = vpack.c.bf16 %v10806_v5, %v10805_v14  ;;  %v10814_v58 = vld [vmem:[#allocation235_spill] sm:$0xff]  ;;  %v10818_v2 = vld [vmem:[#allocation248_spill] sm:$0xff]  ;;  %v10819_v14 = vld [vmem:[#allocation242_spill] sm:$0xff] }
 0x28c   : > { %3366 = vmatpush1.bf16.msra.mxu0 %v3365_v13  ;;  %v10807_v13 = vld [vmem:[#allocation228_spill] sm:$0xff]  ;;  %v10820_v5 = vld [vmem:[#allocation250_spill] sm:$0xff] }
 0x28d   : > { %3368 = vmatprep.subr.bf16.mxu0 %v3367_v16  ;;  %3430 = vmatpush1.bf16.msra.mxu1 %v3429_v27  ;;  %v3375_v10 = vpack.c.bf16 %v10808_v7, %v10807_v13  ;;  %v10809_v16 = vld [vmem:[#allocation213_spill] sm:$0xff]  ;;  %v10811_v27 = vld [vmem:[#allocation230_spill] sm:$0xff]  ;;  %v10821_v13 = vld [vmem:[#allocation239_spill] sm:$0xff] }
 0x28e   : > { %3432 = vmatprep.subr.bf16.mxu1 %v3431_v0  ;;  %v3437_v12 = vpack.c.bf16 %v10810_v9, %v10809_v16  ;;  %v3439_v26 = vpack.c.bf16 %v10812_v11, %v10811_v27  ;;  %v10813_v0 = vld [vmem:[#allocation227_spill] sm:$0xff]  ;;  %v10823_v16 = vld [vmem:[#allocation241_spill] sm:$0xff]  ;;  %v10825_v27 = vld [vmem:[#allocation256_spill] sm:$0xff] }
 0x28f   : > { %v3377_v4 = vpack.c.bf16 %v10814_v58, %v10813_v0  ;;  %v10822_v7 = vld [vmem:[#allocation247_spill] sm:$0xff]  ;;  %v10824_v9 = vld [vmem:[#allocation249_spill] sm:$0xff]  ;;  %v3447_v11 = vpack.c.bf16 %v6081_v25, %v10825_v27 }
 0x290   : > { %3370 = vmatpush1.bf16.msra.mxu0 %v3369_v17  ;;  %v10815_v17 = vld [vmem:[#allocation229_spill] sm:$0xff] }
 0x291   : > { %3372 = vmatprep.subr.bf16.mxu0 %v3371_v1  ;;  %3434 = vmatpush1.bf16.msra.mxu1 %v3433_v42  ;;  %v3441_v1 = vpack.c.bf16 %v10816_v36, %v10815_v17  ;;  %v10817_v42 = vld [vmem:[#allocation240_spill] sm:$0xff]  ;;  %v10830_v36 = vld [vmem:[#allocation269_spill] sm:$0xff] }
 0x292   : > { %3436 = vmatprep.subr.bf16.mxu1 %v3435_v6  ;;  %v3443_v6 = vpack.c.bf16 %v10818_v2, %v10817_v42  ;;  %v10832_v2 = vld [vmem:[#allocation271_spill] sm:$0xff] }
 0x294   : > { %3374 = vmatpush1.bf16.msra.mxu0 %v3373_v8  ;;  %v3571_v8 = vpack.c.bf16 %v10820_v5, %v10819_v14  ;;  %v10833_v14 = vld [vmem:[#allocation279_spill] sm:$0xff] }
 0x295   : > { %3376 = vmatprep.subr.bf16.mxu0 %v3375_v10  ;;  %3438 = vmatpush1.bf16.msra.mxu1 %v3437_v12  ;;  %v3445_v10 = vpack.c.bf16 %v10822_v7, %v10821_v13  ;;  %v3573_v12 = vpack.c.bf16 %v10824_v9, %v10823_v16  ;;  %v3579_v5 = vpack.c.bf16 %v10833_v14, %v10832_v2  ;;  %v10836_v7 = vld [vmem:[#allocation270_spill] sm:$0xff]  ;;  %v10838_v9 = vld [vmem:[#allocation285_spill] sm:$0xff] }
 0x296   : > { %3440 = vmatprep.subr.bf16.mxu1 %v3439_v26  ;;  %v10826_v26 = vld [vmem:[#allocation258_spill] sm:$0xff]  ;;  %v10846_v2 = vld [vmem:[#allocation301_spill] sm:$0xff] }
 0x297   : > { %v3575_v0 = vpack.c.bf16 %v6097_v44, %v10826_v26  ;;  %v10841_v26 = vld [vmem:[#allocation295_spill] sm:$0xff]  ;;  %v10847_v14 = vld [vmem:[#allocation309_spill] sm:$0xff]  ;;  %v2550_v44 = vld [vmem:[%s9811_s9 + $0xb8] sm:$0xff] (%p1485_p0) }
 0x298   : > { %3378 = vmatpush1.bf16.msra.mxu0 %v3377_v4  ;;  %v10828_v4 = vld [vmem:[#allocation257_spill] sm:$0xff]  ;;  %v3975_v25 = vpack.c.bf16 (%p1485_p0), %v2550_v44, %v2548_v57  ;;  %v2657_v57 = vld [vmem:[%s9813_s11 + $0x68] sm:$0xff] (%p1485_p0) }
 0x299   : > { %3442 = vmatpush1.bf16.msra.mxu1 %v3441_v1  ;;  %3444 = vmatprep.subr.bf16.mxu0 %v3443_v6  ;;  %v3577_v17 = vpack.c.bf16 %v10829_v18, %v10828_v4  ;;  %v10831_v1 = vld [vmem:[#allocation277_spill] sm:$0xff]  ;;  %v10834_v6 = vld [vmem:[#allocation268_spill] sm:$0xff] }
 0x29a   : > { %3572 = vmatprep.subr.bf16.mxu1 %v3571_v8  ;;  %v3451_v42 = vpack.c.bf16 %v10831_v1, %v10830_v36  ;;  %v10835_v8 = vld [vmem:[#allocation276_spill] sm:$0xff]  ;;  %v10845_v36 = vld [vmem:[#allocation294_spill] sm:$0xff] }
 0x29b   : > { %1718 = vmatmul.mubr.f32.vlgmr.msra.gmra.mrb[2].mxu0 %v4272_v3  ;;  %v3453_v13 = vpack.c.bf16 %v10835_v8, %v10834_v6  ;;  %v10843_v4 = vld [vmem:[#allocation292_spill] sm:$0xff]  ;;  %v10849_v6 = vld [vmem:[#allocation311_spill] sm:$0xff] }
 0x29c   : > { %1789 = vmatmul.mubr.f32.vlgmr.msra.gmra.mrb[2].mxu1 %v4272_v3  ;;  %3446 = vmatpush1.bf16.msra.mxu0 %v3445_v10  ;;  %v10827_v3 = vld [vmem:[#allocation255_spill] sm:$0xff]  ;;  %v10837_v10 = vld [vmem:[#allocation278_spill] sm:$0xff] }
 0x29d   : > { %3574 = vmatpush1.bf16.msra.mxu1 %v3573_v12  ;;  %v3449_v58 = vpack.c.bf16 %v6076_v59, %v10827_v3  ;;  %3448 = vmatprep.subr.bf16.mxu0 %v3447_v11  ;;  %v3581_v16 = vpack.c.bf16 %v10837_v10, %v10836_v7  ;;  %v10839_v12 = vld [vmem:[#allocation293_spill] sm:$0xff]  ;;  %v10840_v11 = vld [vmem:[#allocation287_spill] sm:$0xff]  ;;  %v10842_v3 = vld [vmem:[#allocation284_spill] sm:$0xff]  ;;  %v3973_v59 = vpack.c.bf16 (%p1485_p0), %v2545_v56, %v2543_v55 }
 0x29e   : > { %3576 = vmatprep.subr.bf16.mxu1 %v3575_v0  ;;  %v3455_v27 = vpack.c.bf16 %v10839_v12, %v10838_v9  ;;  %v3583_v0 = vpack.c.bf16 %v10841_v26, %v10840_v11  ;;  %v10850_v7 = vld [vmem:[#allocation300_spill] sm:$0xff]  ;;  %v10853_v9 = vld [vmem:[#allocation310_spill] sm:$0xff]  ;;  %v10854_v11 = vld [vmem:[#allocation317_spill] sm:$0xff] }
 0x29f   : > { %v10851_v10 = vld [vmem:[#allocation308_spill] sm:$0xff]  ;;  %v10855_v26 = vld [vmem:[#allocation325_spill] sm:$0xff]  ;;  %v2656_v56 = vld [vmem:[%s9813_s11 + $0x60] sm:$0xff] (%p1485_p0) }
 0x2a0   : > { %3450 = vmatpush1.bf16.msra.mxu0 %v3449_v58  ;;  %v3457_v58 = vpack.c.bf16 %v10843_v4, %v10842_v3  ;;  %v10857_v3 = vld [vmem:[#allocation327_spill] sm:$0xff]  ;;  %v4013_v44 = vpack.c.bf16 (%p1485_p0), %v2657_v57, %v2656_v56  ;;  %v4280_v56 = vmov (%p1485_p0), 0.0|0.0  }
 0x2a1   : > { %3578 = vmatpush1.bf16.msra.mxu1 %v3577_v17  ;;  %3452 = vmatprep.subr.bf16.mxu0 %v3451_v42  ;;  %v10844_v17 = vld [vmem:[#allocation286_spill] sm:$0xff]  ;;  %v3459_v42 = vpack.c.bf16 %v10847_v14, %v10846_v2 }
 0x2a2   : > { %3580 = vmatprep.subr.bf16.mxu1 %v3579_v5  ;;  %v3585_v1 = vpack.c.bf16 %v10845_v36, %v10844_v17  ;;  %v10848_v5 = vld [vmem:[#allocation303_spill] sm:$0xff]  ;;  %v10858_v17 = vld [vmem:[#allocation316_spill] sm:$0xff]  ;;  %v10861_v2 = vld [vmem:[#allocation326_spill] sm:$0xff] }
 0x2a3   : > { %v3587_v8 = vpack.c.bf16 %v10849_v6, %v10848_v5  ;;  %v10859_v36 = vld [vmem:[#allocation324_spill] sm:$0xff]  ;;  %v10862_v5 = vld [vmem:[#allocation333_spill] sm:$0xff] }
 0x2a4   : > { %3454 = vmatpush1.bf16.msra.mxu0 %v3453_v13  ;;  %v3461_v13 = vpack.c.bf16 %v10851_v10, %v10850_v7  ;;  %v10863_v6 = vld [vmem:[#allocation341_spill] sm:$0xff]  ;;  %v10865_v10 = vld [vmem:[#allocation332_spill] sm:$0xff] }
 0x2a5   : > { %3582 = vmatpush1.bf16.msra.mxu1 %v3581_v16  ;;  %3456 = vmatprep.subr.bf16.mxu0 %v3455_v27  ;;  %v10852_v16 = vld [vmem:[#allocation302_spill] sm:$0xff]  ;;  %v3463_v27 = vpack.c.bf16 %v10855_v26, %v10854_v11  ;;  %v10869_v26 = vld [vmem:[#allocation348_spill] sm:$0xff] }
 0x2a6   : > { %3584 = vmatprep.subr.bf16.mxu1 %v3583_v0  ;;  %v3589_v12 = vpack.c.bf16 %v10853_v9, %v10852_v16  ;;  %v10856_v0 = vld [vmem:[#allocation319_spill] sm:$0xff]  ;;  %v10866_v16 = vld [vmem:[#allocation340_spill] sm:$0xff]  ;;  %v10867_v9 = vld [vmem:[#allocation334_spill] sm:$0xff] }
 0x2a7   : > { %v3591_v4 = vpack.c.bf16 %v10857_v3, %v10856_v0  ;;  %v10870_v0 = vld [vmem:[#allocation350_spill] sm:$0xff] }
 0x2a8   : > { %3458 = vmatpush1.bf16.msra.mxu0 %v3457_v58  ;;  %v3465_v58 = vpack.c.bf16 %v10859_v36, %v10858_v17  ;;  %v3599_v3 = vpack.c.bf16 %v10871_v20, %v10870_v0  ;;  %v10873_v36 = vld [vmem:[#allocation349_spill] sm:$0xff]  ;;  %v10885_v0 = vld [vmem:[#allocation387_spill] sm:$0xff] }
 0x2a9   : > { %3586 = vmatpush1.bf16.msra.mxu1 %v3585_v1  ;;  %3460 = vmatprep.subr.bf16.mxu0 %v3459_v42  ;;  %v10860_v1 = vld [vmem:[#allocation318_spill] sm:$0xff]  ;;  %v3467_v42 = vpack.c.bf16 %v10863_v6, %v10862_v5  ;;  %v10876_v5 = vld [vmem:[#allocation363_spill] sm:$0xff]  ;;  %v11094_v20 = vld [vmem:[#allocation297_spill] sm:$0xff] }
 0x2aa   : > { %3588 = vmatprep.subr.bf16.mxu1 %v3587_v8  ;;  %v3593_v14 = vpack.c.bf16 %v10861_v2, %v10860_v1  ;;  %v10864_v8 = vld [vmem:[#allocation335_spill] sm:$0xff]  ;;  %v10874_v1 = vld [vmem:[#allocation361_spill] sm:$0xff] }
 0x2ab   : > { %v3595_v7 = vpack.c.bf16 %v6524_v28, %v10864_v8  ;;  %v10875_v2 = vld [vmem:[#allocation369_spill] sm:$0xff]  ;;  %v10877_v6 = vld [vmem:[#allocation371_spill] sm:$0xff]  ;;  %v10878_v8 = vld [vmem:[#allocation360_spill] sm:$0xff] }
 0x2ac   : > { %3462 = vmatpush1.bf16.msra.mxu0 %v3461_v13  ;;  %v3469_v13 = vpack.c.bf16 %v10866_v16, %v10865_v10  ;;  %v10880_v16 = vld [vmem:[#allocation362_spill] sm:$0xff]  ;;  %v2547_v28 = vld [vmem:[%s9811_s9 + $0xa0] sm:$0xff] (%p1485_p0) }
 0x2ad   : > { %3590 = vmatpush1.bf16.msra.mxu1 %v3589_v12  ;;  %3464 = vmatprep.subr.bf16.mxu0 %v3463_v27  ;;  %v10868_v12 = vld [vmem:[#allocation342_spill] sm:$0xff]  ;;  %v3471_v27 = vpack.c.bf16 %v6598_v34, %v10869_v26  ;;  %v2552_v34 = vld [vmem:[%s9811_s9 + $0xc8] sm:$0xff] (%p1485_p0) }
 0x2ae   : > { %3592 = vmatprep.subr.bf16.mxu1 %v3591_v4  ;;  %v3597_v11 = vpack.c.bf16 %v10868_v12, %v10867_v9  ;;  %v10872_v4 = vld [vmem:[#allocation347_spill] sm:$0xff]  ;;  %v10882_v12 = vld [vmem:[#allocation377_spill] sm:$0xff] }
 0x2af   : > { %v3473_v17 = vpack.c.bf16 %v6593_v61, %v10872_v4  ;;  %v10886_v4 = vld [vmem:[#allocation376_spill] sm:$0xff]  ;;  %v2549_v61 = vld [vmem:[%s9811_s9 + $0xb0] sm:$0xff] (%p1485_p0) }
 0x2b0   : > { %3466 = vmatpush1.bf16.msra.mxu0 %v3465_v58  ;;  %v3601_v58 = vpack.c.bf16 %v6604_v41, %v10873_v36  ;;  %v2554_v41 = vld [vmem:[%s9811_s9 + $0xd8] sm:$0xff] (%p1485_p0) }
 0x2b1   : > { %3594 = vmatpush1.bf16.msra.mxu1 %v3593_v14  ;;  %3468 = vmatprep.subr.bf16.mxu0 %v3467_v42  ;;  %v3475_v14 = vpack.c.bf16 %v10875_v2, %v10874_v1  ;;  %v3603_v42 = vpack.c.bf16 %v10877_v6, %v10876_v5  ;;  %v10889_v1 = vld [vmem:[#allocation386_spill] sm:$0xff]  ;;  %v10891_v5 = vld [vmem:[#allocation401_spill] sm:$0xff] }
 0x2b2   : > { %3596 = vmatprep.subr.bf16.mxu1 %v3595_v7  ;;  %v10879_v7 = vld [vmem:[#allocation368_spill] sm:$0xff] }
 0x2b3   : > { %v3477_v10 = vpack.c.bf16 %v10879_v7, %v10878_v8  ;;  %v10893_v8 = vld [vmem:[#allocation403_spill] sm:$0xff] }
 0x2b4   : > { %3470 = vmatpush1.bf16.msra.mxu0 %v3469_v13  ;;  %v10881_v13 = vld [vmem:[#allocation370_spill] sm:$0xff] }
 0x2b5   : > { %3598 = vmatpush1.bf16.msra.mxu1 %v3597_v11  ;;  %3472 = vmatprep.subr.bf16.mxu0 %v3471_v27  ;;  %v3605_v9 = vpack.c.bf16 %v10881_v13, %v10880_v16  ;;  %v10883_v11 = vld [vmem:[#allocation385_spill] sm:$0xff]  ;;  %v10884_v27 = vld [vmem:[#allocation379_spill] sm:$0xff]  ;;  %v10895_v16 = vld [vmem:[#allocation400_spill] sm:$0xff] }
 0x2b6   : > { %3600 = vmatprep.subr.bf16.mxu1 %v3599_v3  ;;  %v3479_v26 = vpack.c.bf16 %v10883_v11, %v10882_v12  ;;  %v3607_v3 = vpack.c.bf16 %v10885_v0, %v10884_v27  ;;  %v10897_v12 = vld [vmem:[#allocation402_spill] sm:$0xff]  ;;  %v10899_v27 = vld [vmem:[#allocation417_spill] sm:$0xff] }
 0x2b8   : > { %3474 = vmatpush1.bf16.msra.mxu0 %v3473_v17  ;;  %v10887_v17 = vld [vmem:[#allocation384_spill] sm:$0xff] }
 0x2b9   : > { %3602 = vmatpush1.bf16.msra.mxu1 %v3601_v58  ;;  %3476 = vmatprep.subr.bf16.mxu0 %v3475_v14  ;;  %v3481_v36 = vpack.c.bf16 %v10887_v17, %v10886_v4  ;;  %v10888_v58 = vld [vmem:[#allocation378_spill] sm:$0xff]  ;;  %v10890_v14 = vld [vmem:[#allocation393_spill] sm:$0xff]  ;;  %v10901_v4 = vld [vmem:[#allocation419_spill] sm:$0xff] }
 0x2ba   : > { %3604 = vmatprep.subr.bf16.mxu1 %v3603_v42  ;;  %v3609_v2 = vpack.c.bf16 %v10889_v1, %v10888_v58  ;;  %v3483_v6 = vpack.c.bf16 %v10891_v5, %v10890_v14  ;;  %v10892_v42 = vld [vmem:[#allocation395_spill] sm:$0xff]  ;;  %v10903_v58 = vld [vmem:[#allocation416_spill] sm:$0xff]  ;;  %v10905_v14 = vld [vmem:[#allocation418_spill] sm:$0xff] }
 0x2bb   : > { %v3611_v7 = vpack.c.bf16 %v10893_v8, %v10892_v42  ;;  %v10907_v42 = vld [vmem:[#allocation433_spill] sm:$0xff] }
 0x2bc   : > { %3478 = vmatpush1.bf16.msra.mxu0 %v3477_v10  ;;  %v10894_v10 = vld [vmem:[#allocation392_spill] sm:$0xff] }
 0x2bd   : > { %3606 = vmatpush1.bf16.msra.mxu1 %v3605_v9  ;;  %3480 = vmatprep.subr.bf16.mxu0 %v3479_v26  ;;  %v3485_v13 = vpack.c.bf16 %v10895_v16, %v10894_v10  ;;  %v10896_v9 = vld [vmem:[#allocation394_spill] sm:$0xff]  ;;  %v10898_v26 = vld [vmem:[#allocation409_spill] sm:$0xff]  ;;  %v10909_v10 = vld [vmem:[#allocation435_spill] sm:$0xff] }
 0x2be   : > { %3608 = vmatprep.subr.bf16.mxu1 %v3607_v3  ;;  %v3613_v11 = vpack.c.bf16 %v10897_v12, %v10896_v9  ;;  %v3487_v0 = vpack.c.bf16 %v10899_v27, %v10898_v26  ;;  %v10900_v3 = vld [vmem:[#allocation411_spill] sm:$0xff]  ;;  %v10911_v9 = vld [vmem:[#allocation432_spill] sm:$0xff]  ;;  %v10913_v26 = vld [vmem:[#allocation434_spill] sm:$0xff] }
 0x2bf   : > { %v3615_v17 = vpack.c.bf16 %v10901_v4, %v10900_v3  ;;  %v10915_v3 = vld [vmem:[#allocation449_spill] sm:$0xff] }
 0x2c0   : > { %3482 = vmatpush1.bf16.msra.mxu0 %v3481_v36  ;;  %v10902_v36 = vld [vmem:[#allocation408_spill] sm:$0xff] }
 0x2c1   : > { %3610 = vmatpush1.bf16.msra.mxu1 %v3609_v2  ;;  %3484 = vmatprep.subr.bf16.mxu0 %v3483_v6  ;;  %v3489_v1 = vpack.c.bf16 %v10903_v58, %v10902_v36  ;;  %v10904_v2 = vld [vmem:[#allocation410_spill] sm:$0xff]  ;;  %v10906_v6 = vld [vmem:[#allocation425_spill] sm:$0xff]  ;;  %v10917_v36 = vld [vmem:[#allocation451_spill] sm:$0xff] }
 0x2c2   : > { %3612 = vmatprep.subr.bf16.mxu1 %v3611_v7  ;;  %v3617_v5 = vpack.c.bf16 %v10905_v14, %v10904_v2  ;;  %v3491_v8 = vpack.c.bf16 %v10907_v42, %v10906_v6  ;;  %v10908_v7 = vld [vmem:[#allocation427_spill] sm:$0xff]  ;;  %v10919_v2 = vld [vmem:[#allocation448_spill] sm:$0xff]  ;;  %v10921_v6 = vld [vmem:[#allocation450_spill] sm:$0xff] }
 0x2c3   : > { %v3619_v16 = vpack.c.bf16 %v10909_v10, %v10908_v7  ;;  %v10923_v7 = vld [vmem:[#allocation465_spill] sm:$0xff] }
 0x2c4   : > { %3486 = vmatpush1.bf16.msra.mxu0 %v3485_v13  ;;  %v10910_v13 = vld [vmem:[#allocation424_spill] sm:$0xff] }
 0x2c5   : > { %3614 = vmatpush1.bf16.msra.mxu1 %v3613_v11  ;;  %3488 = vmatprep.subr.bf16.mxu0 %v3487_v0  ;;  %v3493_v12 = vpack.c.bf16 %v10911_v9, %v10910_v13  ;;  %v10912_v11 = vld [vmem:[#allocation426_spill] sm:$0xff]  ;;  %v10914_v0 = vld [vmem:[#allocation441_spill] sm:$0xff]  ;;  %v10925_v13 = vld [vmem:[#allocation467_spill] sm:$0xff] }
 0x2c6   : > { %3616 = vmatprep.subr.bf16.mxu1 %v3615_v17  ;;  %v3621_v27 = vpack.c.bf16 %v10913_v26, %v10912_v11  ;;  %v3495_v4 = vpack.c.bf16 %v10915_v3, %v10914_v0  ;;  %v10916_v17 = vld [vmem:[#allocation443_spill] sm:$0xff]  ;;  %v10927_v11 = vld [vmem:[#allocation464_spill] sm:$0xff]  ;;  %v10929_v0 = vld [vmem:[#allocation466_spill] sm:$0xff] }
 0x2c7   : > { %v3623_v58 = vpack.c.bf16 %v10917_v36, %v10916_v17  ;;  %v10931_v17 = vld [vmem:[#allocation481_spill] sm:$0xff] }
 0x2c8   : > { %3490 = vmatpush1.bf16.msra.mxu0 %v3489_v1  ;;  %v10918_v1 = vld [vmem:[#allocation440_spill] sm:$0xff] }
 0x2c9   : > { %3618 = vmatpush1.bf16.msra.mxu1 %v3617_v5  ;;  %3492 = vmatprep.subr.bf16.mxu0 %v3491_v8  ;;  %v3497_v14 = vpack.c.bf16 %v10919_v2, %v10918_v1  ;;  %v10920_v5 = vld [vmem:[#allocation442_spill] sm:$0xff]  ;;  %v10922_v8 = vld [vmem:[#allocation457_spill] sm:$0xff]  ;;  %v10933_v1 = vld [vmem:[#allocation483_spill] sm:$0xff] }
 0x2ca   : > { %3620 = vmatprep.subr.bf16.mxu1 %v3619_v16  ;;  %v3625_v42 = vpack.c.bf16 %v10921_v6, %v10920_v5  ;;  %v3499_v10 = vpack.c.bf16 %v10923_v7, %v10922_v8  ;;  %v10924_v16 = vld [vmem:[#allocation459_spill] sm:$0xff]  ;;  %v10935_v5 = vld [vmem:[#allocation480_spill] sm:$0xff]  ;;  %v10937_v8 = vld [vmem:[#allocation482_spill] sm:$0xff] }
 0x2cb   : > { %v3627_v9 = vpack.c.bf16 %v10925_v13, %v10924_v16  ;;  %v10939_v16 = vld [vmem:[#allocation497_spill] sm:$0xff] }
 0x2cc   : > { %3494 = vmatpush1.bf16.msra.mxu0 %v3493_v12  ;;  %v10926_v12 = vld [vmem:[#allocation456_spill] sm:$0xff] }
 0x2cd   : > { %3622 = vmatpush1.bf16.msra.mxu1 %v3621_v27  ;;  %3496 = vmatprep.subr.bf16.mxu0 %v3495_v4  ;;  %v3501_v26 = vpack.c.bf16 %v10927_v11, %v10926_v12  ;;  %v10928_v27 = vld [vmem:[#allocation458_spill] sm:$0xff]  ;;  %v10930_v4 = vld [vmem:[#allocation473_spill] sm:$0xff]  ;;  %v10941_v12 = vld [vmem:[#allocation499_spill] sm:$0xff] }
 0x2ce   : > { %3624 = vmatprep.subr.bf16.mxu1 %v3623_v58  ;;  %v3629_v3 = vpack.c.bf16 %v10929_v0, %v10928_v27  ;;  %v3503_v36 = vpack.c.bf16 %v10931_v17, %v10930_v4  ;;  %v10932_v58 = vld [vmem:[#allocation475_spill] sm:$0xff]  ;;  %v1505_v4 = vld [vmem:[%s1502_s2 + $0x10] sm:$0xff]  ;;  %v1506_v17 = vld [vmem:[%s1502_s2 + $0x18] sm:$0xff] }
 0x2cf   : > { %v3631_v2 = vpack.c.bf16 %v10933_v1, %v10932_v58  ;;  %v1504_v58 = vld [vmem:[%s1502_s2 + $0x8] sm:$0xff] }
 0x2d0   : > { %3498 = vmatpush1.bf16.msra.mxu0 %v3497_v14  ;;  %v10934_v14 = vld [vmem:[#allocation472_spill] sm:$0xff] }
 0x2d1   : > { %3626 = vmatpush1.bf16.msra.mxu1 %v3625_v42  ;;  %3500 = vmatprep.subr.bf16.mxu0 %v3499_v10  ;;  %v3505_v6 = vpack.c.bf16 %v10935_v5, %v10934_v14  ;;  %v10936_v42 = vld [vmem:[#allocation474_spill] sm:$0xff]  ;;  %v10938_v10 = vld [vmem:[#allocation489_spill] sm:$0xff] }
 0x2d2   : > { %3628 = vmatprep.subr.bf16.mxu1 %v3627_v9  ;;  %v3633_v7 = vpack.c.bf16 %v10937_v8, %v10936_v42  ;;  %v3507_v13 = vpack.c.bf16 %v10939_v16, %v10938_v10  ;;  %v10940_v9 = vld [vmem:[#allocation491_spill] sm:$0xff]  ;;  %v1508_v16 = vld [vmem:[%s1502_s2 + $0x28] sm:$0xff] }
 0x2d3   : > { %v3635_v11 = vpack.c.bf16 %v10941_v12, %v10940_v9  ;;  %v1507_v10 = vld [vmem:[%s1502_s2 + $0x20] sm:$0xff]  ;;  %v1510_v12 = vld [vmem:[%s1502_s2 + $0x38] sm:$0xff] }
 0x2d4   : > { %3502 = vmatpush1.bf16.msra.mxu0 %v3501_v26 }
 0x2d5   : > { %3630 = vmatpush1.bf16.msra.mxu1 %v3629_v3  ;;  %3504 = vmatprep.subr.bf16.mxu0 %v3503_v36  ;;  %v1503_v36 = vld [vmem:[%s1502_s2] sm:$0xff] }
 0x2d6   : > { %3632 = vmatprep.subr.bf16.mxu1 %v3631_v2 }
 0x2d8   : > { %3506 = vmatpush1.bf16.msra.mxu0 %v3505_v6 }
 0x2d9   : > { %3634 = vmatpush1.bf16.msra.mxu1 %v3633_v7  ;;  %3508 = vmatprep.subr.bf16.mxu0 %v3507_v13  ;;  %v1509_v13 = vld [vmem:[%s1502_s2 + $0x30] sm:$0xff] }
 0x2da   : > { %3636 = vmatprep.subr.bf16.mxu1 %v3635_v11 }
 0x32e   : > { %v1577_v26 = vpop.f32.mrb[0].mxu0 }
 0x32f   : > { %v1579_v27 = vpop.f32.mrb[1].mxu0  ;;  %v1648_v0 = vpop.f32.mrb[0].mxu1  ;;  %v1795_v14 = vadd.f32 %v1577_v26, %v1503_v36 }
 0x330   : > { %v1650_v3 = vpop.f32.mrb[1].mxu1  ;;  %v1797_v1 = vadd.f32 %v1648_v0, %v1505_v4  ;;  %v1796_v5 = vadd.f32 %v1579_v27, %v1504_v58 }
 0x331   : > { %v1798_v2 = vadd.f32 %v1650_v3, %v1506_v17  ;;  %v1803_v8 = vmul.f32 0.5, %v1795_v14 }
 0x332   : > { %v1811_v6 = vmul.f32 0.5, %v1797_v1  ;;  %v1804_v7 = vmul.f32 0.5, %v1796_v5 }
 0x333   : > { %v1812_v42 = vmul.f32 0.5, %v1798_v2 }
 0x334   : > { %4166 = vtanh.f32 %v1811_v6 }
 0x335   : > { %4168 = vtanh.f32 %v1812_v42 }
 0x336   : > { %4170 = vtanh.f32 %v1803_v8 }
 0x337   : > { %4172 = vtanh.f32 %v1804_v7 }
 0x33e   : > { %v4167_v27 = vpop.eup %4166 }
 0x33f   : > { %v4169_v17 = vpop.eup %4168  ;;  %v1815_v14 = vmul.f32 0.5, %v4167_v27 }
 0x340   : > { %v4171_v58 = vpop.eup %4170  ;;  %v1816_v5 = vmul.f32 0.5, %v4169_v17 }
 0x341   : > { %v4173_v2 = vpop.eup %4172  ;;  %v1807_v6 = vmul.f32 0.5, %v4171_v58  ;;  %v1817_v8 = vadd.f32 0.5, %v1815_v14  ;;  %v10943_v14 = vld [vmem:[#allocation488_spill] sm:$0xff] }
 0x342   : > { %v1808_v42 = vmul.f32 0.5, %v4173_v2  ;;  %v1818_v7 = vadd.f32 0.5, %v1816_v5  ;;  %v10944_v5 = vld [vmem:[#allocation496_spill] sm:$0xff] }
 0x36e   : > { %v1719_v9 = vpop.f32.mrb[2].mxu0 }
 0x36f   : > { %v1799_v11 = vadd.f32 %v1719_v9, %v1507_v10  ;;  %v1721_v15 = vpop.f32.mrb[3].mxu0  ;;  %v1790_v18 = vpop.f32.mrb[2].mxu1  ;;  %v1810_v10 = vadd.f32 0.5, %v1808_v42 }
 0x370   : > { %v1800_v0 = vadd.f32 %v1721_v15, %v1508_v16  ;;  %v1801_v3 = vadd.f32 %v1790_v18, %v1509_v13  ;;  %v1792_v26 = vpop.f32.mrb[3].mxu1  ;;  %v1809_v15 = vadd.f32 0.5, %v1807_v6  ;;  %v1829_v13 = vmul.f32 %v4264_v19, %v1817_v8  ;;  %v10945_v8 = vld [vmem:[#allocation490_spill] sm:$0xff] }
 0x371   : > { %4174 = vtanh.f32 %v1799_v11  ;;  %v1802_v4 = vadd.f32 %v1792_v26, %v1510_v12  ;;  %v10942_v12 = vld [vmem:[#allocation748_spill] sm:$0xff]  ;;  %v3509_v6 = vpack.c.bf16 %v10944_v5, %v10943_v14  ;;  %v10957_v14 = vld [vmem:[#allocation523_spill] sm:$0xff] }
 0x372   : > { %4176 = vtanh.f32 %v1800_v0  ;;  %v1821_v36 = vmul.f32 0.5, %v1801_v3  ;;  %v1830_v11 = vmul.f32 %v10942_v12, %v1818_v7  ;;  %v10946_v7 = vld [vmem:[#allocation498_spill] sm:$0xff]  ;;  %v10958_v5 = vld [vmem:[#allocation531_spill] sm:$0xff] }
 0x373   : > { %v1822_v1 = vmul.f32 0.5, %v1802_v4 }
 0x374   : > { %4178 = vtanh.f32 %v1821_v36 }
 0x375   : > { %4180 = vtanh.f32 %v1822_v1 }
 0x37b   : > { %v4175_v18 = vpop.eup %4174 }
 0x37c   : > { %v4177_v16 = vpop.eup %4176  ;;  %v1831_v9 = vmul.f32 %v4175_v18, %v1809_v15  ;;  %v3637_v15 = vpack.c.bf16 %v10946_v7, %v10945_v8  ;;  %v10947_v18 = vld [vmem:[#allocation505_spill] sm:$0xff]  ;;  %v3643_v8 = vpack.c.bf16 %v10958_v5, %v10957_v14  ;;  %v10959_v7 = vld [vmem:[#allocation746_spill] sm:$0xff] }
 0x37d   : > { %v1832_v0 = vmul.f32 %v4177_v16, %v1810_v10  ;;  %v10948_v10 = vld [vmem:[#allocation513_spill] sm:$0xff]  ;;  %v10971_v14 = vld [vmem:[#allocation546_spill] sm:$0xff] }
 0x37e   : > { %v8995_v19 = vadd.f32 %v1831_v9, %v1829_v13   ;;  %v4179_v3 = vpop.eup %4178  ;;  %v3511_v16 = vpack.c.bf16 %v10948_v10, %v10947_v18  ;;  %v10949_v13 = vld [vmem:[#allocation507_spill] sm:$0xff]  ;;  %v10962_v10 = vld [vmem:[#allocation522_spill] sm:$0xff] }
 0x37f   : > { %v8997_v27 = vadd.f32 %v1832_v0, %v1830_v11   ;;  %v4181_v26 = vpop.eup %4180  ;;  %v1825_v4 = vmul.f32 0.5, %v4179_v3  ;;  %v10950_v9 = vld [vmem:[#allocation515_spill] sm:$0xff]  ;;  %v10951_v11 = vld [vmem:[#allocation504_spill] sm:$0xff] }
 0x380   : > { %4182 = vtanh.f32 %v8995_v19  ;;  %v1826_v17 = vmul.f32 0.5, %v4181_v26  ;;  %v3639_v12 = vpack.c.bf16 %v10950_v9, %v10949_v13  ;;  %v10952_v0 = vld [vmem:[#allocation512_spill] sm:$0xff]  ;;  %v10963_v13 = vld [vmem:[#allocation530_spill] sm:$0xff]  ;;  %v3977_v19 = vpack.c.bf16 (%p1485_p0), %v2549_v61, %v2547_v28 }
 0x381   : > { %4184 = vtanh.f32 %v8997_v27  ;;  %v1827_v36 = vadd.f32 0.5, %v1825_v4  ;;  %v3513_v26 = vpack.c.bf16 %v10952_v0, %v10951_v11  ;;  %v10953_v4 = vld [vmem:[#allocation506_spill] sm:$0xff]  ;;  %v3645_v9 = vpack.c.bf16 %v10963_v13, %v10962_v10  ;;  %v10966_v0 = vld [vmem:[#allocation539_spill] sm:$0xff]  ;;  %v2677_v28 = vld [vmem:[%s9813_s11 + $0x108] sm:$0xff] (%p1485_p0) }
 0x382   : > { %v1828_v58 = vadd.f32 0.5, %v1826_v17  ;;  %v10954_v17 = vld [vmem:[#allocation514_spill] sm:$0xff]  ;;  %v10975_v10 = vld [vmem:[#allocation563_spill] sm:$0xff]  ;;  %v3979_v27 = vpack.c.bf16 (%p1485_p0), %v2554_v41, %v2552_v34  ;;  %v2694_v34 = vld [vmem:[%s9813_s11 + $0x190] sm:$0xff] (%p1485_p0) }
 0x383   :  { %v2695_v41 = vld [vmem:[%s9813_s11 + $0x198] sm:$0xff] (%p1485_p0) }
 0x38a   : > { %v4183_v1 = vpop.eup %4182 }
 0x38b   : > { %v4185_v2 = vpop.eup %4184  ;;  %v9001_v3 = vmul.f32 %v4183_v1, %v1827_v36   ;;  %v3641_v36 = vpack.c.bf16 %v10954_v17, %v10953_v4  ;;  %v10956_v1 = vld [vmem:[#allocation529_spill] sm:$0xff]  ;;  %v10967_v4 = vld [vmem:[#allocation547_spill] sm:$0xff] }
 0x38c   : > { %v9003_v42 = vmul.f32 %v4185_v2, %v1828_v58   ;;  %v10955_v58 = vld [vmem:[#allocation521_spill] sm:$0xff]  ;;  %v3647_v17 = vpack.c.bf16 %v10967_v4, %v10966_v0  ;;  %v10979_v0 = vld [vmem:[#allocation562_spill] sm:$0xff] }
 0x38d   : > { %v3515_v2 = vpack.c.bf16 %v10956_v1, %v10955_v58  ;;  %v10968_v58 = vld [vmem:[#allocation536_spill] sm:$0xff] }
 0x38e   : > { %1903 = vmatprep.mubr.f32.mxu0 %v9003_v42  ;;  %2045 = vmatprep.mubr.f32.mxu1 %v9003_v42  ;;  %v10969_v1 = vld [vmem:[#allocation544_spill] sm:$0xff] }
 0x38f   : > { %1904 = vmatmul.mubr.f32.vlgmr.msra.gmra.mrb[4].mxu0 %v9001_v3  ;;  %2046 = vmatmul.mubr.f32.vlgmr.msra.gmra.mrb[4].mxu1 %v9001_v3 }
 0x390   : > { %3510 = vmatpush1.bf16.msra.mxu0 %v3509_v6  ;;  %3638 = vmatpush1.bf16.msra.mxu1 %v3637_v15  ;;  %v10960_v6 = vld [vmem:[#allocation520_spill] sm:$0xff] }
 0x391   : > { %3512 = vmatprep.subr.bf16.mxu0 %v3511_v16  ;;  %3640 = vmatprep.subr.bf16.mxu1 %v3639_v12  ;;  %v10961_v15 = vld [vmem:[#allocation528_spill] sm:$0xff]  ;;  %v10964_v16 = vld [vmem:[#allocation537_spill] sm:$0xff] }
 0x392   : > { %1974 = vmatprep.mubr.f32.mxu0 %v10959_v7  ;;  %2116 = vmatprep.mubr.f32.mxu1 %v10959_v7  ;;  %v3517_v18 = vpack.c.bf16 %v10961_v15, %v10960_v6  ;;  %v10965_v12 = vld [vmem:[#allocation545_spill] sm:$0xff] }
 0x393   : > { %v3519_v11 = vpack.c.bf16 %v10965_v12, %v10964_v16  ;;  %v10972_v6 = vld [vmem:[#allocation553_spill] sm:$0xff]  ;;  %v10976_v16 = vld [vmem:[#allocation552_spill] sm:$0xff] }
 0x394   : > { %3514 = vmatpush1.bf16.msra.mxu0 %v3513_v26  ;;  %3642 = vmatpush1.bf16.msra.mxu1 %v3641_v36  ;;  %v3521_v26 = vpack.c.bf16 %v10969_v1, %v10968_v58  ;;  %v10970_v36 = vld [vmem:[#allocation538_spill] sm:$0xff]  ;;  %v10973_v15 = vld [vmem:[#allocation561_spill] sm:$0xff]  ;;  %v10977_v12 = vld [vmem:[#allocation560_spill] sm:$0xff] }
 0x395   : > { %3516 = vmatprep.subr.bf16.mxu0 %v3515_v2  ;;  %3644 = vmatprep.subr.bf16.mxu1 %v3643_v8  ;;  %v3649_v5 = vpack.c.bf16 %v10971_v14, %v10970_v36  ;;  %v3523_v2 = vpack.c.bf16 %v10973_v15, %v10972_v6  ;;  %v10974_v8 = vld [vmem:[#allocation555_spill] sm:$0xff]  ;;  %v10980_v58 = vld [vmem:[#allocation569_spill] sm:$0xff]  ;;  %v10984_v6 = vld [vmem:[#allocation568_spill] sm:$0xff] }
 0x396   : > { %v3651_v13 = vpack.c.bf16 %v10975_v10, %v10974_v8  ;;  %v10981_v1 = vld [vmem:[#allocation577_spill] sm:$0xff]  ;;  %v10983_v36 = vld [vmem:[#allocation579_spill] sm:$0xff]  ;;  %v10985_v15 = vld [vmem:[#allocation576_spill] sm:$0xff] }
 0x397   : > { %v10987_v8 = vld [vmem:[#allocation578_spill] sm:$0xff] }
 0x398   : > { %3518 = vmatpush1.bf16.msra.mxu0 %v3517_v18  ;;  %3646 = vmatpush1.bf16.msra.mxu1 %v3645_v9  ;;  %v3525_v18 = vpack.c.bf16 %v10977_v12, %v10976_v16  ;;  %v10978_v9 = vld [vmem:[#allocation554_spill] sm:$0xff]  ;;  %v10988_v16 = vld [vmem:[#allocation585_spill] sm:$0xff] }
 0x399   : > { %3520 = vmatprep.subr.bf16.mxu0 %v3519_v11  ;;  %3648 = vmatprep.subr.bf16.mxu1 %v3647_v17  ;;  %v3653_v4 = vpack.c.bf16 %v10979_v0, %v10978_v9  ;;  %v3527_v11 = vpack.c.bf16 %v10981_v1, %v10980_v58  ;;  %v10982_v17 = vld [vmem:[#allocation571_spill] sm:$0xff]  ;;  %v10989_v12 = vld [vmem:[#allocation593_spill] sm:$0xff]  ;;  %v10992_v58 = vld [vmem:[#allocation584_spill] sm:$0xff] }
 0x39a   : > { %v3655_v14 = vpack.c.bf16 %v10983_v36, %v10982_v17  ;;  %v10991_v9 = vld [vmem:[#allocation595_spill] sm:$0xff]  ;;  %v10993_v1 = vld [vmem:[#allocation592_spill] sm:$0xff]  ;;  %v10995_v17 = vld [vmem:[#allocation594_spill] sm:$0xff] }
 0x39c   : > { %3522 = vmatpush1.bf16.msra.mxu0 %v3521_v26  ;;  %3650 = vmatpush1.bf16.msra.mxu1 %v3649_v5  ;;  %v3529_v26 = vpack.c.bf16 %v10985_v15, %v10984_v6  ;;  %v10986_v5 = vld [vmem:[#allocation570_spill] sm:$0xff]  ;;  %v10996_v6 = vld [vmem:[#allocation601_spill] sm:$0xff] }
 0x39d   : > { %3524 = vmatprep.subr.bf16.mxu0 %v3523_v2  ;;  %3652 = vmatprep.subr.bf16.mxu1 %v3651_v13  ;;  %v3657_v10 = vpack.c.bf16 %v10987_v8, %v10986_v5  ;;  %v3531_v2 = vpack.c.bf16 %v10989_v12, %v10988_v16  ;;  %v10990_v13 = vld [vmem:[#allocation587_spill] sm:$0xff]  ;;  %v10997_v15 = vld [vmem:[#allocation609_spill] sm:$0xff]  ;;  %v11000_v16 = vld [vmem:[#allocation600_spill] sm:$0xff] }
 0x39e   : > { %v3659_v0 = vpack.c.bf16 %v10991_v9, %v10990_v13  ;;  %v10999_v5 = vld [vmem:[#allocation611_spill] sm:$0xff]  ;;  %v11001_v12 = vld [vmem:[#allocation608_spill] sm:$0xff]  ;;  %v11003_v13 = vld [vmem:[#allocation610_spill] sm:$0xff] }
 0x3a0   : > { %3526 = vmatpush1.bf16.msra.mxu0 %v3525_v18  ;;  %3654 = vmatpush1.bf16.msra.mxu1 %v3653_v4  ;;  %v3533_v18 = vpack.c.bf16 %v10993_v1, %v10992_v58  ;;  %v10994_v4 = vld [vmem:[#allocation586_spill] sm:$0xff]  ;;  %v11004_v58 = vld [vmem:[#allocation617_spill] sm:$0xff] }
 0x3a1   : > { %3528 = vmatprep.subr.bf16.mxu0 %v3527_v11  ;;  %3656 = vmatprep.subr.bf16.mxu1 %v3655_v14  ;;  %v3661_v36 = vpack.c.bf16 %v10995_v17, %v10994_v4  ;;  %v3535_v11 = vpack.c.bf16 %v10997_v15, %v10996_v6  ;;  %v10998_v14 = vld [vmem:[#allocation603_spill] sm:$0xff]  ;;  %v11005_v1 = vld [vmem:[#allocation625_spill] sm:$0xff]  ;;  %v11008_v6 = vld [vmem:[#allocation616_spill] sm:$0xff] }
 0x3a2   : > { %v3663_v8 = vpack.c.bf16 %v10999_v5, %v10998_v14  ;;  %v11007_v4 = vld [vmem:[#allocation627_spill] sm:$0xff]  ;;  %v11009_v15 = vld [vmem:[#allocation624_spill] sm:$0xff]  ;;  %v11011_v14 = vld [vmem:[#allocation626_spill] sm:$0xff] }
 0x3a4   : > { %3530 = vmatpush1.bf16.msra.mxu0 %v3529_v26  ;;  %3658 = vmatpush1.bf16.msra.mxu1 %v3657_v10  ;;  %v3537_v26 = vpack.c.bf16 %v11001_v12, %v11000_v16  ;;  %v11002_v10 = vld [vmem:[#allocation602_spill] sm:$0xff]  ;;  %v11012_v16 = vld [vmem:[#allocation633_spill] sm:$0xff] }
 0x3a5   : > { %3532 = vmatprep.subr.bf16.mxu0 %v3531_v2  ;;  %3660 = vmatprep.subr.bf16.mxu1 %v3659_v0  ;;  %v3665_v9 = vpack.c.bf16 %v11003_v13, %v11002_v10  ;;  %v3539_v2 = vpack.c.bf16 %v11005_v1, %v11004_v58  ;;  %v11006_v0 = vld [vmem:[#allocation619_spill] sm:$0xff]  ;;  %v11013_v12 = vld [vmem:[#allocation641_spill] sm:$0xff]  ;;  %v11016_v58 = vld [vmem:[#allocation632_spill] sm:$0xff] }
 0x3a6   : > { %v3667_v17 = vpack.c.bf16 %v11007_v4, %v11006_v0  ;;  %v11015_v10 = vld [vmem:[#allocation643_spill] sm:$0xff]  ;;  %v11017_v1 = vld [vmem:[#allocation640_spill] sm:$0xff]  ;;  %v11019_v0 = vld [vmem:[#allocation642_spill] sm:$0xff] }
 0x3a8   : > { %3534 = vmatpush1.bf16.msra.mxu0 %v3533_v18  ;;  %3662 = vmatpush1.bf16.msra.mxu1 %v3661_v36  ;;  %v3541_v18 = vpack.c.bf16 %v11009_v15, %v11008_v6  ;;  %v11010_v36 = vld [vmem:[#allocation618_spill] sm:$0xff]  ;;  %v11020_v6 = vld [vmem:[#allocation649_spill] sm:$0xff] }
 0x3a9   : > { %3536 = vmatprep.subr.bf16.mxu0 %v3535_v11  ;;  %3664 = vmatprep.subr.bf16.mxu1 %v3663_v8  ;;  %v3669_v5 = vpack.c.bf16 %v11011_v14, %v11010_v36  ;;  %v3543_v11 = vpack.c.bf16 %v11013_v12, %v11012_v16  ;;  %v11014_v8 = vld [vmem:[#allocation635_spill] sm:$0xff]  ;;  %v11021_v15 = vld [vmem:[#allocation657_spill] sm:$0xff]  ;;  %v11024_v16 = vld [vmem:[#allocation648_spill] sm:$0xff] }
 0x3aa   : > { %v3671_v13 = vpack.c.bf16 %v11015_v10, %v11014_v8  ;;  %v11023_v36 = vld [vmem:[#allocation659_spill] sm:$0xff]  ;;  %v11025_v12 = vld [vmem:[#allocation656_spill] sm:$0xff]  ;;  %v11027_v8 = vld [vmem:[#allocation658_spill] sm:$0xff] }
 0x3ac   : > { %3538 = vmatpush1.bf16.msra.mxu0 %v3537_v26  ;;  %3666 = vmatpush1.bf16.msra.mxu1 %v3665_v9  ;;  %v3545_v26 = vpack.c.bf16 %v11017_v1, %v11016_v58  ;;  %v11018_v9 = vld [vmem:[#allocation634_spill] sm:$0xff]  ;;  %v11028_v58 = vld [vmem:[#allocation665_spill] sm:$0xff] }
 0x3ad   : > { %3540 = vmatprep.subr.bf16.mxu0 %v3539_v2  ;;  %3668 = vmatprep.subr.bf16.mxu1 %v3667_v17  ;;  %v3673_v4 = vpack.c.bf16 %v11019_v0, %v11018_v9  ;;  %v3547_v2 = vpack.c.bf16 %v11021_v15, %v11020_v6  ;;  %v11022_v17 = vld [vmem:[#allocation651_spill] sm:$0xff]  ;;  %v11029_v1 = vld [vmem:[#allocation673_spill] sm:$0xff]  ;;  %v11032_v6 = vld [vmem:[#allocation664_spill] sm:$0xff] }
 0x3ae   : > { %v3675_v14 = vpack.c.bf16 %v11023_v36, %v11022_v17  ;;  %v11031_v9 = vld [vmem:[#allocation675_spill] sm:$0xff]  ;;  %v11033_v15 = vld [vmem:[#allocation672_spill] sm:$0xff]  ;;  %v11035_v17 = vld [vmem:[#allocation674_spill] sm:$0xff] }
 0x3b0   : > { %3542 = vmatpush1.bf16.msra.mxu0 %v3541_v18  ;;  %3670 = vmatpush1.bf16.msra.mxu1 %v3669_v5  ;;  %v3549_v18 = vpack.c.bf16 %v11025_v12, %v11024_v16  ;;  %v11026_v5 = vld [vmem:[#allocation650_spill] sm:$0xff]  ;;  %v11036_v16 = vld [vmem:[#allocation681_spill] sm:$0xff] }
 0x3b1   : > { %3544 = vmatprep.subr.bf16.mxu0 %v3543_v11  ;;  %3672 = vmatprep.subr.bf16.mxu1 %v3671_v13  ;;  %v3677_v10 = vpack.c.bf16 %v11027_v8, %v11026_v5  ;;  %v3551_v11 = vpack.c.bf16 %v11029_v1, %v11028_v58  ;;  %v11030_v13 = vld [vmem:[#allocation667_spill] sm:$0xff]  ;;  %v11037_v12 = vld [vmem:[#allocation689_spill] sm:$0xff]  ;;  %v11040_v58 = vld [vmem:[#allocation680_spill] sm:$0xff] }
 0x3b2   : > { %v3679_v0 = vpack.c.bf16 %v11031_v9, %v11030_v13  ;;  %v11039_v5 = vld [vmem:[#allocation691_spill] sm:$0xff]  ;;  %v11041_v1 = vld [vmem:[#allocation688_spill] sm:$0xff]  ;;  %v11043_v13 = vld [vmem:[#allocation690_spill] sm:$0xff] }
 0x3b4   : > { %3546 = vmatpush1.bf16.msra.mxu0 %v3545_v26  ;;  %3674 = vmatpush1.bf16.msra.mxu1 %v3673_v4  ;;  %v3553_v26 = vpack.c.bf16 %v11033_v15, %v11032_v6  ;;  %v11034_v4 = vld [vmem:[#allocation666_spill] sm:$0xff]  ;;  %v11044_v6 = vld [vmem:[#allocation697_spill] sm:$0xff] }
 0x3b5   : > { %3548 = vmatprep.subr.bf16.mxu0 %v3547_v2  ;;  %3676 = vmatprep.subr.bf16.mxu1 %v3675_v14  ;;  %v3681_v36 = vpack.c.bf16 %v11035_v17, %v11034_v4  ;;  %v3555_v2 = vpack.c.bf16 %v11037_v12, %v11036_v16  ;;  %v11038_v14 = vld [vmem:[#allocation683_spill] sm:$0xff]  ;;  %v11045_v15 = vld [vmem:[#allocation705_spill] sm:$0xff]  ;;  %v11048_v16 = vld [vmem:[#allocation696_spill] sm:$0xff] }
 0x3b6   : > { %v3683_v8 = vpack.c.bf16 %v11039_v5, %v11038_v14  ;;  %v11047_v4 = vld [vmem:[#allocation707_spill] sm:$0xff]  ;;  %v11049_v12 = vld [vmem:[#allocation704_spill] sm:$0xff]  ;;  %v11051_v14 = vld [vmem:[#allocation706_spill] sm:$0xff] }
 0x3b8   : > { %3550 = vmatpush1.bf16.msra.mxu0 %v3549_v18  ;;  %3678 = vmatpush1.bf16.msra.mxu1 %v3677_v10  ;;  %v3557_v18 = vpack.c.bf16 %v11041_v1, %v11040_v58  ;;  %v11042_v10 = vld [vmem:[#allocation682_spill] sm:$0xff]  ;;  %v11052_v58 = vld [vmem:[#allocation713_spill] sm:$0xff] }
 0x3b9   : > { %3552 = vmatprep.subr.bf16.mxu0 %v3551_v11  ;;  %3680 = vmatprep.subr.bf16.mxu1 %v3679_v0  ;;  %v3685_v9 = vpack.c.bf16 %v11043_v13, %v11042_v10  ;;  %v3559_v11 = vpack.c.bf16 %v11045_v15, %v11044_v6  ;;  %v11046_v0 = vld [vmem:[#allocation699_spill] sm:$0xff]  ;;  %v11053_v1 = vld [vmem:[#allocation721_spill] sm:$0xff]  ;;  %v11056_v6 = vld [vmem:[#allocation712_spill] sm:$0xff] }
 0x3ba   : > { %v3687_v17 = vpack.c.bf16 %v11047_v4, %v11046_v0  ;;  %v11055_v10 = vld [vmem:[#allocation723_spill] sm:$0xff]  ;;  %v11057_v15 = vld [vmem:[#allocation720_spill] sm:$0xff]  ;;  %v11059_v0 = vld [vmem:[#allocation722_spill] sm:$0xff] }
 0x3bc   : > { %3554 = vmatpush1.bf16.msra.mxu0 %v3553_v26  ;;  %3682 = vmatpush1.bf16.msra.mxu1 %v3681_v36  ;;  %v3561_v26 = vpack.c.bf16 %v11049_v12, %v11048_v16  ;;  %v11050_v36 = vld [vmem:[#allocation698_spill] sm:$0xff]  ;;  %v11060_v16 = vld [vmem:[#allocation729_spill] sm:$0xff] }
 0x3bd   : > { %3556 = vmatprep.subr.bf16.mxu0 %v3555_v2  ;;  %3684 = vmatprep.subr.bf16.mxu1 %v3683_v8  ;;  %v3689_v5 = vpack.c.bf16 %v11051_v14, %v11050_v36  ;;  %v3563_v2 = vpack.c.bf16 %v11053_v1, %v11052_v58  ;;  %v11054_v8 = vld [vmem:[#allocation715_spill] sm:$0xff]  ;;  %v11061_v12 = vld [vmem:[#allocation737_spill] sm:$0xff]  ;;  %v11064_v58 = vld [vmem:[#allocation728_spill] sm:$0xff] }
 0x3be   : > { %v3691_v13 = vpack.c.bf16 %v11055_v10, %v11054_v8  ;;  %v11063_v36 = vld [vmem:[#allocation739_spill] sm:$0xff]  ;;  %v11065_v1 = vld [vmem:[#allocation736_spill] sm:$0xff]  ;;  %v11067_v8 = vld [vmem:[#allocation738_spill] sm:$0xff] }
 0x3c0   : > { %3558 = vmatpush1.bf16.msra.mxu0 %v3557_v18  ;;  %3686 = vmatpush1.bf16.msra.mxu1 %v3685_v9  ;;  %v3565_v18 = vpack.c.bf16 %v11057_v15, %v11056_v6  ;;  %v11058_v9 = vld [vmem:[#allocation714_spill] sm:$0xff]  ;;  %v11068_v6 = vld [vmem:[#allocation244_spill] sm:$0xff] }
 0x3c1   : > { %3560 = vmatprep.subr.bf16.mxu0 %v3559_v11  ;;  %3688 = vmatprep.subr.bf16.mxu1 %v3687_v17  ;;  %v3693_v4 = vpack.c.bf16 %v11059_v0, %v11058_v9  ;;  %v3567_v11 = vpack.c.bf16 %v11061_v12, %v11060_v16  ;;  %v11062_v17 = vld [vmem:[#allocation731_spill] sm:$0xff]  ;;  %v11069_v15 = vld [vmem:[#allocation252_spill] sm:$0xff]  ;;  %v11071_v9 = vld [vmem:[#allocation254_spill] sm:$0xff] }
 0x3c2   : > { %v3695_v14 = vpack.c.bf16 %v11063_v36, %v11062_v17  ;;  %v11072_v16 = vld [vmem:[#allocation243_spill] sm:$0xff]  ;;  %v11075_v17 = vld [vmem:[#allocation253_spill] sm:$0xff] }
 0x3c3   : > { %v11073_v12 = vld [vmem:[#allocation251_spill] sm:$0xff] }
 0x3c4   : > { %3562 = vmatpush1.bf16.msra.mxu0 %v3561_v26  ;;  %3690 = vmatpush1.bf16.msra.mxu1 %v3689_v5  ;;  %v3569_v26 = vpack.c.bf16 %v11065_v1, %v11064_v58  ;;  %v11066_v5 = vld [vmem:[#allocation730_spill] sm:$0xff]  ;;  %v11076_v58 = vld [vmem:[#allocation260_spill] sm:$0xff]  ;;  %v11077_v1 = vld [vmem:[#allocation265_spill] sm:$0xff] }
 0x3c5   : > { %3564 = vmatprep.subr.bf16.mxu0 %v3563_v2  ;;  %3692 = vmatprep.subr.bf16.mxu1 %v3691_v13  ;;  %v3697_v10 = vpack.c.bf16 %v11067_v8, %v11066_v5  ;;  %v3699_v2 = vpack.c.bf16 %v11069_v15, %v11068_v6  ;;  %v11070_v13 = vld [vmem:[#allocation246_spill] sm:$0xff]  ;;  %v11079_v5 = vld [vmem:[#allocation267_spill] sm:$0xff] }
 0x3c6   : > { %v3827_v0 = vpack.c.bf16 %v11071_v9, %v11070_v13  ;;  %v11080_v6 = vld [vmem:[#allocation747_spill] sm:$0xff]  ;;  %v11084_v13 = vld [vmem:[#allocation266_spill] sm:$0xff] }
 0x3c8   : > { %3566 = vmatpush1.bf16.msra.mxu0 %v3565_v18  ;;  %3694 = vmatpush1.bf16.msra.mxu1 %v3693_v4  ;;  %v3701_v18 = vpack.c.bf16 %v11073_v12, %v11072_v16  ;;  %v11074_v4 = vld [vmem:[#allocation245_spill] sm:$0xff] }
 0x3c9   : > { %3568 = vmatprep.subr.bf16.mxu0 %v3567_v11  ;;  %3696 = vmatprep.subr.bf16.mxu1 %v3695_v14  ;;  %v3829_v36 = vpack.c.bf16 %v11075_v17, %v11074_v4  ;;  %v3703_v11 = vpack.c.bf16 %v11077_v1, %v11076_v58  ;;  %v11078_v14 = vld [vmem:[#allocation262_spill] sm:$0xff]  ;;  %v11086_v16 = vld [vmem:[#allocation281_spill] sm:$0xff]  ;;  %v11087_v4 = vld [vmem:[#allocation275_spill] sm:$0xff] }
 0x3ca   : > { %v3831_v8 = vpack.c.bf16 %v11079_v5, %v11078_v14  ;;  %v11088_v17 = vld [vmem:[#allocation283_spill] sm:$0xff]  ;;  %v11090_v1 = vld [vmem:[#allocation280_spill] sm:$0xff]  ;;  %v11092_v5 = vld [vmem:[#allocation282_spill] sm:$0xff] }
 0x3cb   : > { %v3835_v58 = vpack.c.bf16 %v11088_v17, %v11087_v4  ;;  %v11100_v17 = vld [vmem:[#allocation298_spill] sm:$0xff] }
 0x3cc   : > { %3570 = vmatpush1.bf16.msra.mxu0 %v3569_v26  ;;  %3698 = vmatpush1.bf16.msra.mxu1 %v3697_v10  ;;  %v11081_v26 = vld [vmem:[#allocation259_spill] sm:$0xff]  ;;  %v11082_v10 = vld [vmem:[#allocation264_spill] sm:$0xff] }
 0x3cd   : > { %3700 = vmatprep.subr.bf16.mxu0 %v3699_v2  ;;  %3828 = vmatprep.subr.bf16.mxu1 %v3827_v0  ;;  %v3705_v15 = vpack.c.bf16 %v11082_v10, %v11081_v26  ;;  %v11083_v2 = vld [vmem:[#allocation261_spill] sm:$0xff] }
 0x3ce   : > { %v3833_v9 = vpack.c.bf16 %v11084_v13, %v11083_v2  ;;  %v11085_v0 = vld [vmem:[#allocation273_spill] sm:$0xff]  ;;  %v11095_v13 = vld [vmem:[#allocation291_spill] sm:$0xff] }
 0x3cf   : > { %1975 = vmatmul.mubr.f32.vlgmr.msra.gmra.mrb[4].mxu0 %v11080_v6  ;;  %2117 = vmatmul.mubr.f32.vlgmr.msra.gmra.mrb[4].mxu1 %v11080_v6  ;;  %v3707_v12 = vpack.c.bf16 %v11086_v16, %v11085_v0  ;;  %v11093_v10 = vld [vmem:[#allocation289_spill] sm:$0xff]  ;;  %v11096_v0 = vld [vmem:[#allocation299_spill] sm:$0xff]  ;;  %v11098_v16 = vld [vmem:[#allocation296_spill] sm:$0xff] }
 0x3d0   : > { %3702 = vmatpush1.bf16.msra.mxu0 %v3701_v18  ;;  %2187 = vmatprep.mubr.f32.mxu0 %v9003_v42  ;;  %v11089_v18 = vld [vmem:[#allocation272_spill] sm:$0xff]  ;;  %v3711_v2 = vpack.c.bf16 %v11094_v20, %v11093_v10 }
 0x3d1   : > { %3830 = vmatpush1.bf16.msra.mxu1 %v3829_v36  ;;  %2329 = vmatprep.mubr.f32.mxu1 %v9003_v42  ;;  %v3709_v14 = vpack.c.bf16 %v11090_v1, %v11089_v18  ;;  %v11091_v36 = vld [vmem:[#allocation274_spill] sm:$0xff]  ;;  %v11102_v18 = vld [vmem:[#allocation313_spill] sm:$0xff]  ;;  %v11106_v10 = vld [vmem:[#allocation312_spill] sm:$0xff] }
 0x3d2   : > { %3704 = vmatprep.subr.bf16.mxu0 %v3703_v11  ;;  %3832 = vmatprep.subr.bf16.mxu1 %v3831_v8  ;;  %v3837_v26 = vpack.c.bf16 %v11092_v5, %v11091_v36  ;;  %v3839_v11 = vpack.c.bf16 %v11096_v0, %v11095_v13  ;;  %v11097_v8 = vld [vmem:[#allocation288_spill] sm:$0xff]  ;;  %v11103_v36 = vld [vmem:[#allocation307_spill] sm:$0xff]  ;;  %v11108_v0 = vld [vmem:[#allocation314_spill] sm:$0xff] }
 0x3d3   : > { %v3713_v4 = vpack.c.bf16 %v11098_v16, %v11097_v8  ;;  %v11104_v5 = vld [vmem:[#allocation315_spill] sm:$0xff]  ;;  %v11110_v8 = vld [vmem:[#allocation329_spill] sm:$0xff] }
 0x3d4   : > { %3706 = vmatpush1.bf16.msra.mxu0 %v3705_v15  ;;  %v11099_v15 = vld [vmem:[#allocation290_spill] sm:$0xff]  ;;  %v3843_v20 = vpack.c.bf16 %v11104_v5, %v11103_v36  ;;  %v2551_v42 = vld [vmem:[%s9811_s9 + $0xc0] sm:$0xff] (%p1485_p0) }
 0x3d5   : > { %3834 = vmatpush1.bf16.msra.mxu1 %v3833_v9  ;;  %3708 = vmatprep.subr.bf16.mxu0 %v3707_v12  ;;  %v3841_v9 = vpack.c.bf16 %v11100_v17, %v11099_v15  ;;  %v11101_v12 = vld [vmem:[#allocation305_spill] sm:$0xff]  ;;  %v11111_v15 = vld [vmem:[#allocation323_spill] sm:$0xff]  ;;  %v11116_v5 = vld [vmem:[#allocation330_spill] sm:$0xff] }
 0x3d6   : > { %3836 = vmatprep.subr.bf16.mxu1 %v3835_v58  ;;  %v3715_v1 = vpack.c.bf16 %v11102_v18, %v11101_v12  ;;  %v11105_v58 = vld [vmem:[#allocation304_spill] sm:$0xff]  ;;  %v11112_v17 = vld [vmem:[#allocation331_spill] sm:$0xff] }
 0x3d7   : > { %v3717_v13 = vpack.c.bf16 %v11106_v10, %v11105_v58  ;;  %v3847_v12 = vpack.c.bf16 %v11112_v17, %v11111_v15  ;;  %v11114_v18 = vld [vmem:[#allocation328_spill] sm:$0xff]  ;;  %v11124_v17 = vld [vmem:[#allocation345_spill] sm:$0xff] }
 0x3d8   : > { %3710 = vmatpush1.bf16.msra.mxu0 %v3709_v14  ;;  %v11107_v14 = vld [vmem:[#allocation306_spill] sm:$0xff]  ;;  %v11118_v58 = vld [vmem:[#allocation344_spill] sm:$0xff] }
 0x3d9   : > { %3838 = vmatpush1.bf16.msra.mxu1 %v3837_v26  ;;  %3712 = vmatprep.subr.bf16.mxu0 %v3711_v2  ;;  %v3845_v26 = vpack.c.bf16 %v11108_v0, %v11107_v14  ;;  %v11109_v2 = vld [vmem:[#allocation321_spill] sm:$0xff]  ;;  %v11119_v14 = vld [vmem:[#allocation339_spill] sm:$0xff]  ;;  %v11120_v0 = vld [vmem:[#allocation346_spill] sm:$0xff] }
 0x3da   : > { %3840 = vmatprep.subr.bf16.mxu1 %v3839_v11  ;;  %v3719_v16 = vpack.c.bf16 %v11110_v8, %v11109_v2  ;;  %v11113_v11 = vld [vmem:[#allocation320_spill] sm:$0xff]  ;;  %v3851_v2 = vpack.c.bf16 %v11120_v0, %v11119_v14  ;;  %v11122_v8 = vld [vmem:[#allocation343_spill] sm:$0xff]  ;;  %v11132_v0 = vld [vmem:[#allocation358_spill] sm:$0xff] }
 0x3db   : > { %v3721_v36 = vpack.c.bf16 %v11114_v18, %v11113_v11  ;;  %v11126_v11 = vld [vmem:[#allocation357_spill] sm:$0xff] }
 0x3dc   : > { %3714 = vmatpush1.bf16.msra.mxu0 %v3713_v4  ;;  %v11115_v4 = vld [vmem:[#allocation322_spill] sm:$0xff] }
 0x3dd   : > { %3842 = vmatpush1.bf16.msra.mxu1 %v3841_v9  ;;  %3716 = vmatprep.subr.bf16.mxu0 %v3715_v1  ;;  %v3849_v9 = vpack.c.bf16 %v11116_v5, %v11115_v4  ;;  %v11117_v1 = vld [vmem:[#allocation337_spill] sm:$0xff]  ;;  %v11127_v4 = vld [vmem:[#allocation354_spill] sm:$0xff]  ;;  %v11128_v5 = vld [vmem:[#allocation359_spill] sm:$0xff] }
 0x3de   : > { %3844 = vmatprep.subr.bf16.mxu1 %v3843_v20  ;;  %v3723_v10 = vpack.c.bf16 %v11118_v58, %v11117_v1  ;;  %v11121_v20 = vld [vmem:[#allocation336_spill] sm:$0xff]  ;;  %v3855_v1 = vpack.c.bf16 %v11128_v5, %v11127_v4  ;;  %v11140_v5 = vld [vmem:[#allocation374_spill] sm:$0xff] }
 0x3df   : > { %v3725_v15 = vpack.c.bf16 %v11122_v8, %v11121_v20  ;;  %v11130_v58 = vld [vmem:[#allocation356_spill] sm:$0xff]  ;;  %v11134_v20 = vld [vmem:[#allocation373_spill] sm:$0xff] }
 0x3e0   : > { %3718 = vmatpush1.bf16.msra.mxu0 %v3717_v13  ;;  %v11123_v13 = vld [vmem:[#allocation338_spill] sm:$0xff] }
 0x3e1   : > { %3846 = vmatpush1.bf16.msra.mxu1 %v3845_v26  ;;  %3720 = vmatprep.subr.bf16.mxu0 %v3719_v16  ;;  %v3853_v26 = vpack.c.bf16 %v11124_v17, %v11123_v13  ;;  %v11125_v16 = vld [vmem:[#allocation352_spill] sm:$0xff]  ;;  %v11135_v13 = vld [vmem:[#allocation367_spill] sm:$0xff] }
 0x3e2   : > { %3848 = vmatprep.subr.bf16.mxu1 %v3847_v12  ;;  %v3727_v18 = vpack.c.bf16 %v11126_v11, %v11125_v16  ;;  %v11129_v12 = vld [vmem:[#allocation351_spill] sm:$0xff]  ;;  %v11138_v11 = vld [vmem:[#allocation372_spill] sm:$0xff] }
 0x3e3   : > { %v3729_v14 = vpack.c.bf16 %v11130_v58, %v11129_v12  ;;  %v11136_v17 = vld [vmem:[#allocation375_spill] sm:$0xff]  ;;  %v11142_v12 = vld [vmem:[#allocation389_spill] sm:$0xff] }
 0x3e4   : > { %3722 = vmatpush1.bf16.msra.mxu0 %v3721_v36  ;;  %v11131_v36 = vld [vmem:[#allocation353_spill] sm:$0xff]  ;;  %v3859_v16 = vpack.c.bf16 %v11136_v17, %v11135_v13  ;;  %v11148_v17 = vld [vmem:[#allocation390_spill] sm:$0xff] }
 0x3e5   : > { %3850 = vmatpush1.bf16.msra.mxu1 %v3849_v9  ;;  %3724 = vmatprep.subr.bf16.mxu0 %v3723_v10  ;;  %v3857_v9 = vpack.c.bf16 %v11132_v0, %v11131_v36  ;;  %v11133_v10 = vld [vmem:[#allocation365_spill] sm:$0xff]  ;;  %v11143_v36 = vld [vmem:[#allocation383_spill] sm:$0xff] }
 0x3e6   : > { %3852 = vmatprep.subr.bf16.mxu1 %v3851_v2  ;;  %v3731_v8 = vpack.c.bf16 %v11134_v20, %v11133_v10  ;;  %v11137_v2 = vld [vmem:[#allocation364_spill] sm:$0xff]  ;;  %v11144_v0 = vld [vmem:[#allocation391_spill] sm:$0xff] }
 0x3e7   : > { %v3733_v4 = vpack.c.bf16 %v11138_v11, %v11137_v2  ;;  %v3863_v10 = vpack.c.bf16 %v11144_v0, %v11143_v36  ;;  %v11146_v20 = vld [vmem:[#allocation388_spill] sm:$0xff]  ;;  %v11150_v2 = vld [vmem:[#allocation405_spill] sm:$0xff]  ;;  %v11156_v0 = vld [vmem:[#allocation406_spill] sm:$0xff] }
 0x3e8   : > { %3726 = vmatpush1.bf16.msra.mxu0 %v3725_v15  ;;  %v11139_v15 = vld [vmem:[#allocation366_spill] sm:$0xff] }
 0x3e9   : > { %3854 = vmatpush1.bf16.msra.mxu1 %v3853_v26  ;;  %3728 = vmatprep.subr.bf16.mxu0 %v3727_v18  ;;  %v3861_v26 = vpack.c.bf16 %v11140_v5, %v11139_v15  ;;  %v11141_v18 = vld [vmem:[#allocation381_spill] sm:$0xff]  ;;  %v11151_v15 = vld [vmem:[#allocation399_spill] sm:$0xff] }
 0x3ea   : > { %3856 = vmatprep.subr.bf16.mxu1 %v3855_v1  ;;  %v3735_v58 = vpack.c.bf16 %v11142_v12, %v11141_v18  ;;  %v11145_v1 = vld [vmem:[#allocation380_spill] sm:$0xff]  ;;  %v11152_v5 = vld [vmem:[#allocation407_spill] sm:$0xff] }
 0x3eb   : > { %v3737_v13 = vpack.c.bf16 %v11146_v20, %v11145_v1  ;;  %v3867_v18 = vpack.c.bf16 %v11152_v5, %v11151_v15  ;;  %v11154_v12 = vld [vmem:[#allocation404_spill] sm:$0xff]  ;;  %v11158_v1 = vld [vmem:[#allocation421_spill] sm:$0xff]  ;;  %v11164_v5 = vld [vmem:[#allocation422_spill] sm:$0xff] }
 0x3ec   : > { %3730 = vmatpush1.bf16.msra.mxu0 %v3729_v14  ;;  %v11147_v14 = vld [vmem:[#allocation382_spill] sm:$0xff] }
 0x3ed   : > { %3858 = vmatpush1.bf16.msra.mxu1 %v3857_v9  ;;  %3732 = vmatprep.subr.bf16.mxu0 %v3731_v8  ;;  %v3865_v9 = vpack.c.bf16 %v11148_v17, %v11147_v14  ;;  %v11149_v8 = vld [vmem:[#allocation397_spill] sm:$0xff]  ;;  %v11159_v14 = vld [vmem:[#allocation415_spill] sm:$0xff] }
 0x3ee   : > { %3860 = vmatprep.subr.bf16.mxu1 %v3859_v16  ;;  %v3739_v11 = vpack.c.bf16 %v11150_v2, %v11149_v8  ;;  %v11153_v16 = vld [vmem:[#allocation396_spill] sm:$0xff]  ;;  %v11160_v17 = vld [vmem:[#allocation423_spill] sm:$0xff] }
 0x3ef   : > { %v3741_v36 = vpack.c.bf16 %v11154_v12, %v11153_v16  ;;  %v3871_v8 = vpack.c.bf16 %v11160_v17, %v11159_v14  ;;  %v11162_v2 = vld [vmem:[#allocation420_spill] sm:$0xff]  ;;  %v11166_v16 = vld [vmem:[#allocation437_spill] sm:$0xff]  ;;  %v11172_v17 = vld [vmem:[#allocation438_spill] sm:$0xff] }
 0x3f0   : > { %3734 = vmatpush1.bf16.msra.mxu0 %v3733_v4  ;;  %v11155_v4 = vld [vmem:[#allocation398_spill] sm:$0xff] }
 0x3f1   : > { %3862 = vmatpush1.bf16.msra.mxu1 %v3861_v26  ;;  %3736 = vmatprep.subr.bf16.mxu0 %v3735_v58  ;;  %v3869_v26 = vpack.c.bf16 %v11156_v0, %v11155_v4  ;;  %v11157_v58 = vld [vmem:[#allocation413_spill] sm:$0xff]  ;;  %v11167_v4 = vld [vmem:[#allocation431_spill] sm:$0xff] }
 0x3f2   : > { %3864 = vmatprep.subr.bf16.mxu1 %v3863_v10  ;;  %v3743_v20 = vpack.c.bf16 %v11158_v1, %v11157_v58  ;;  %v11161_v10 = vld [vmem:[#allocation412_spill] sm:$0xff]  ;;  %v11168_v0 = vld [vmem:[#allocation439_spill] sm:$0xff] }
 0x3f3   : > { %v3745_v15 = vpack.c.bf16 %v11162_v2, %v11161_v10  ;;  %v3875_v58 = vpack.c.bf16 %v11168_v0, %v11167_v4  ;;  %v11170_v1 = vld [vmem:[#allocation436_spill] sm:$0xff]  ;;  %v11174_v10 = vld [vmem:[#allocation453_spill] sm:$0xff]  ;;  %v11180_v0 = vld [vmem:[#allocation454_spill] sm:$0xff] }
 0x3f4   : > { %3738 = vmatpush1.bf16.msra.mxu0 %v3737_v13  ;;  %v11163_v13 = vld [vmem:[#allocation414_spill] sm:$0xff] }
 0x3f5   : > { %3866 = vmatpush1.bf16.msra.mxu1 %v3865_v9  ;;  %3740 = vmatprep.subr.bf16.mxu0 %v3739_v11  ;;  %v3873_v9 = vpack.c.bf16 %v11164_v5, %v11163_v13  ;;  %v11165_v11 = vld [vmem:[#allocation429_spill] sm:$0xff]  ;;  %v11175_v13 = vld [vmem:[#allocation447_spill] sm:$0xff] }
 0x3f6   : > { %3868 = vmatprep.subr.bf16.mxu1 %v3867_v18  ;;  %v3747_v12 = vpack.c.bf16 %v11166_v16, %v11165_v11  ;;  %v11169_v18 = vld [vmem:[#allocation428_spill] sm:$0xff]  ;;  %v11176_v5 = vld [vmem:[#allocation455_spill] sm:$0xff] }
 0x3f7   : > { %v3749_v14 = vpack.c.bf16 %v11170_v1, %v11169_v18  ;;  %v3879_v11 = vpack.c.bf16 %v11176_v5, %v11175_v13  ;;  %v11178_v16 = vld [vmem:[#allocation452_spill] sm:$0xff]  ;;  %v11182_v18 = vld [vmem:[#allocation469_spill] sm:$0xff]  ;;  %v11188_v5 = vld [vmem:[#allocation470_spill] sm:$0xff] }
 0x3f8   : > { %3742 = vmatpush1.bf16.msra.mxu0 %v3741_v36  ;;  %v11171_v36 = vld [vmem:[#allocation430_spill] sm:$0xff] }
 0x3f9   : > { %3870 = vmatpush1.bf16.msra.mxu1 %v3869_v26  ;;  %3744 = vmatprep.subr.bf16.mxu0 %v3743_v20  ;;  %v3877_v26 = vpack.c.bf16 %v11172_v17, %v11171_v36  ;;  %v11173_v20 = vld [vmem:[#allocation445_spill] sm:$0xff]  ;;  %v11183_v36 = vld [vmem:[#allocation463_spill] sm:$0xff] }
 0x3fa   : > { %3872 = vmatprep.subr.bf16.mxu1 %v3871_v8  ;;  %v3751_v2 = vpack.c.bf16 %v11174_v10, %v11173_v20  ;;  %v11177_v8 = vld [vmem:[#allocation444_spill] sm:$0xff]  ;;  %v11184_v17 = vld [vmem:[#allocation471_spill] sm:$0xff] }
 0x3fb   : > { %v3753_v4 = vpack.c.bf16 %v11178_v16, %v11177_v8  ;;  %v3883_v20 = vpack.c.bf16 %v11184_v17, %v11183_v36  ;;  %v11186_v10 = vld [vmem:[#allocation468_spill] sm:$0xff]  ;;  %v11190_v8 = vld [vmem:[#allocation485_spill] sm:$0xff]  ;;  %v11196_v17 = vld [vmem:[#allocation486_spill] sm:$0xff] }
 0x3fc   : > { %3746 = vmatpush1.bf16.msra.mxu0 %v3745_v15  ;;  %v11179_v15 = vld [vmem:[#allocation446_spill] sm:$0xff] }
 0x3fd   : > { %3874 = vmatpush1.bf16.msra.mxu1 %v3873_v9  ;;  %3748 = vmatprep.subr.bf16.mxu0 %v3747_v12  ;;  %v3881_v9 = vpack.c.bf16 %v11180_v0, %v11179_v15  ;;  %v11181_v12 = vld [vmem:[#allocation461_spill] sm:$0xff]  ;;  %v11191_v15 = vld [vmem:[#allocation479_spill] sm:$0xff] }
 0x3fe   : > { %3876 = vmatprep.subr.bf16.mxu1 %v3875_v58  ;;  %v3755_v1 = vpack.c.bf16 %v11182_v18, %v11181_v12  ;;  %v11185_v58 = vld [vmem:[#allocation460_spill] sm:$0xff]  ;;  %v11192_v0 = vld [vmem:[#allocation487_spill] sm:$0xff] }
 0x3ff   : > { %v3757_v13 = vpack.c.bf16 %v11186_v10, %v11185_v58  ;;  %v3887_v12 = vpack.c.bf16 %v11192_v0, %v11191_v15  ;;  %v11194_v18 = vld [vmem:[#allocation484_spill] sm:$0xff]  ;;  %v11198_v58 = vld [vmem:[#allocation501_spill] sm:$0xff]  ;;  %v11204_v0 = vld [vmem:[#allocation502_spill] sm:$0xff] }
 0x400   : > { %3750 = vmatpush1.bf16.msra.mxu0 %v3749_v14  ;;  %v11187_v14 = vld [vmem:[#allocation462_spill] sm:$0xff] }
 0x401   : > { %3878 = vmatpush1.bf16.msra.mxu1 %v3877_v26  ;;  %3752 = vmatprep.subr.bf16.mxu0 %v3751_v2  ;;  %v3885_v26 = vpack.c.bf16 %v11188_v5, %v11187_v14  ;;  %v11189_v2 = vld [vmem:[#allocation477_spill] sm:$0xff]  ;;  %v11199_v14 = vld [vmem:[#allocation495_spill] sm:$0xff] }
 0x402   : > { %3880 = vmatprep.subr.bf16.mxu1 %v3879_v11  ;;  %v3759_v16 = vpack.c.bf16 %v11190_v8, %v11189_v2  ;;  %v11193_v11 = vld [vmem:[#allocation476_spill] sm:$0xff]  ;;  %v11200_v5 = vld [vmem:[#allocation503_spill] sm:$0xff] }
 0x403   : > { %v3761_v36 = vpack.c.bf16 %v11194_v18, %v11193_v11  ;;  %v3891_v2 = vpack.c.bf16 %v11200_v5, %v11199_v14  ;;  %v11202_v8 = vld [vmem:[#allocation500_spill] sm:$0xff]  ;;  %v11206_v11 = vld [vmem:[#allocation517_spill] sm:$0xff] }
 0x404   : > { %3754 = vmatpush1.bf16.msra.mxu0 %v3753_v4  ;;  %v11195_v4 = vld [vmem:[#allocation478_spill] sm:$0xff]  ;;  %v11213_v5 = vld [vmem:[#allocation525_spill] sm:$0xff] }
 0x405   : > { %3882 = vmatpush1.bf16.msra.mxu1 %v3881_v9  ;;  %3756 = vmatprep.subr.bf16.mxu0 %v3755_v1  ;;  %v3889_v9 = vpack.c.bf16 %v11196_v17, %v11195_v4  ;;  %v11197_v1 = vld [vmem:[#allocation493_spill] sm:$0xff]  ;;  %v11207_v4 = vld [vmem:[#allocation511_spill] sm:$0xff] }
 0x406   : > { %3884 = vmatprep.subr.bf16.mxu1 %v3883_v20  ;;  %v3763_v10 = vpack.c.bf16 %v11198_v58, %v11197_v1  ;;  %v11201_v20 = vld [vmem:[#allocation492_spill] sm:$0xff]  ;;  %v11208_v17 = vld [vmem:[#allocation519_spill] sm:$0xff] }
 0x407   : > { %v3765_v15 = vpack.c.bf16 %v11202_v8, %v11201_v20  ;;  %v3895_v1 = vpack.c.bf16 %v11208_v17, %v11207_v4  ;;  %v11214_v20 = vld [vmem:[#allocation533_spill] sm:$0xff] }
 0x408   : > { %3758 = vmatpush1.bf16.msra.mxu0 %v3757_v13  ;;  %v11203_v13 = vld [vmem:[#allocation494_spill] sm:$0xff]  ;;  %v3771_v8 = vpack.c.bf16 %v11214_v20, %v11213_v5  ;;  %v11221_v17 = vld [vmem:[#allocation541_spill] sm:$0xff]  ;;  %v11225_v5 = vld [vmem:[#allocation540_spill] sm:$0xff] }
 0x409   : > { %3886 = vmatpush1.bf16.msra.mxu1 %v3885_v26  ;;  %3760 = vmatprep.subr.bf16.mxu0 %v3759_v16  ;;  %v3893_v26 = vpack.c.bf16 %v11204_v0, %v11203_v13  ;;  %v11205_v16 = vld [vmem:[#allocation509_spill] sm:$0xff]  ;;  %v11216_v13 = vld [vmem:[#allocation535_spill] sm:$0xff]  ;;  %v11226_v20 = vld [vmem:[#allocation548_spill] sm:$0xff] }
 0x40a   : > { %3888 = vmatprep.subr.bf16.mxu1 %v3887_v12  ;;  %v3767_v18 = vpack.c.bf16 %v11206_v11, %v11205_v16  ;;  %v11209_v12 = vld [vmem:[#allocation508_spill] sm:$0xff] }
 0x40b   : > { %v11218_v16 = vld [vmem:[#allocation532_spill] sm:$0xff] }
 0x40c   : > { %3762 = vmatpush1.bf16.msra.mxu0 %v3761_v36  ;;  %v11210_v36 = vld [vmem:[#allocation516_spill] sm:$0xff] }
 0x40d   : > { %3890 = vmatpush1.bf16.msra.mxu1 %v3889_v9  ;;  %3764 = vmatprep.subr.bf16.mxu0 %v3763_v10  ;;  %v3769_v58 = vpack.c.bf16 %v11210_v36, %v11209_v12  ;;  %v11211_v9 = vld [vmem:[#allocation510_spill] sm:$0xff]  ;;  %v11222_v12 = vld [vmem:[#allocation549_spill] sm:$0xff] }
 0x40e   : > { %3892 = vmatprep.subr.bf16.mxu1 %v3891_v2  ;;  %v11212_v10 = vld [vmem:[#allocation518_spill] sm:$0xff]  ;;  %v11215_v2 = vld [vmem:[#allocation527_spill] sm:$0xff]  ;;  %v3775_v36 = vpack.c.bf16 %v11222_v12, %v11221_v17  ;;  %v11234_v17 = vld [vmem:[#allocation564_spill] sm:$0xff] }
 0x40f   : > { %2188 = vmatmul.mubr.f32.vlgmr.msra.gmra.mrb[6].mxu0 %v9001_v3  ;;  %v3897_v14 = vpack.c.bf16 %v11212_v10, %v11211_v9  ;;  %v3899_v0 = vpack.c.bf16 %v11216_v13, %v11215_v2  ;;  %v11224_v9 = vld [vmem:[#allocation551_spill] sm:$0xff]  ;;  %v11228_v2 = vld [vmem:[#allocation550_spill] sm:$0xff]  ;;  %v11230_v13 = vld [vmem:[#allocation565_spill] sm:$0xff] }
 0x410   : > { %2330 = vmatmul.mubr.f32.vlgmr.msra.gmra.mrb[6].mxu1 %v9001_v3  ;;  %3766 = vmatpush1.bf16.msra.mxu0 %v3765_v15  ;;  %v11217_v15 = vld [vmem:[#allocation524_spill] sm:$0xff]  ;;  %v2553_v3 = vld [vmem:[%s9811_s9 + $0xd0] sm:$0xff] (%p1485_p0) }
 0x411   : > { %3894 = vmatpush1.bf16.msra.mxu1 %v3893_v26  ;;  %3768 = vmatprep.subr.bf16.mxu0 %v3767_v18  ;;  %v3773_v11 = vpack.c.bf16 %v11218_v16, %v11217_v15  ;;  %v11219_v26 = vld [vmem:[#allocation526_spill] sm:$0xff]  ;;  %v11231_v16 = vld [vmem:[#allocation559_spill] sm:$0xff] }
 0x412   : > { %3896 = vmatprep.subr.bf16.mxu1 %v3895_v1  ;;  %2258 = vmatprep.mubr.f32.mxu0 %v10959_v7  ;;  %v11220_v18 = vld [vmem:[#allocation534_spill] sm:$0xff]  ;;  %v11223_v1 = vld [vmem:[#allocation543_spill] sm:$0xff] }
 0x413   : > { %2400 = vmatprep.mubr.f32.mxu1 %v10959_v7  ;;  %v3901_v4 = vpack.c.bf16 %v11220_v18, %v11219_v26  ;;  %v3903_v10 = vpack.c.bf16 %v11224_v9, %v11223_v1  ;;  %v3777_v7 = vpack.c.bf16 %v11226_v20, %v11225_v5  ;;  %v11232_v26 = vld [vmem:[#allocation567_spill] sm:$0xff]  ;;  %v11236_v1 = vld [vmem:[#allocation566_spill] sm:$0xff]  ;;  %v11238_v9 = vld [vmem:[#allocation581_spill] sm:$0xff] }
 0x414   : > { %3770 = vmatpush1.bf16.msra.mxu0 %v3769_v58  ;;  %v11227_v58 = vld [vmem:[#allocation542_spill] sm:$0xff]  ;;  %v3907_v18 = vpack.c.bf16 %v11232_v26, %v11231_v16  ;;  %v11239_v20 = vld [vmem:[#allocation575_spill] sm:$0xff]  ;;  %v11246_v26 = vld [vmem:[#allocation597_spill] sm:$0xff] }
 0x415   : > { %3898 = vmatpush1.bf16.msra.mxu1 %v3897_v14  ;;  %3772 = vmatprep.subr.bf16.mxu0 %v3771_v8  ;;  %v3905_v14 = vpack.c.bf16 %v11228_v2, %v11227_v58  ;;  %v11229_v8 = vld [vmem:[#allocation557_spill] sm:$0xff]  ;;  %v11240_v58 = vld [vmem:[#allocation583_spill] sm:$0xff]  ;;  %v11244_v16 = vld [vmem:[#allocation582_spill] sm:$0xff] }
 0x416   : > { %3900 = vmatprep.subr.bf16.mxu1 %v3899_v0  ;;  %v3779_v15 = vpack.c.bf16 %v11230_v13, %v11229_v8  ;;  %v11233_v0 = vld [vmem:[#allocation556_spill] sm:$0xff]  ;;  %v3911_v2 = vpack.c.bf16 %v11240_v58, %v11239_v20  ;;  %v11252_v20 = vld [vmem:[#allocation598_spill] sm:$0xff]  ;;  %v11254_v58 = vld [vmem:[#allocation613_spill] sm:$0xff] }
 0x417   : > { %v3781_v12 = vpack.c.bf16 %v11234_v17, %v11233_v0  ;;  %v11242_v8 = vld [vmem:[#allocation580_spill] sm:$0xff]  ;;  %v11247_v17 = vld [vmem:[#allocation591_spill] sm:$0xff] }
 0x418   : > { %3774 = vmatpush1.bf16.msra.mxu0 %v3773_v11  ;;  %v11235_v11 = vld [vmem:[#allocation558_spill] sm:$0xff] }
 0x419   : > { %3902 = vmatpush1.bf16.msra.mxu1 %v3901_v4  ;;  %3776 = vmatprep.subr.bf16.mxu0 %v3775_v36  ;;  %v3909_v4 = vpack.c.bf16 %v11236_v1, %v11235_v11  ;;  %v11237_v36 = vld [vmem:[#allocation573_spill] sm:$0xff]  ;;  %v11248_v11 = vld [vmem:[#allocation599_spill] sm:$0xff] }
 0x41a   : > { %3904 = vmatprep.subr.bf16.mxu1 %v3903_v10  ;;  %v3783_v5 = vpack.c.bf16 %v11238_v9, %v11237_v36  ;;  %v11241_v10 = vld [vmem:[#allocation572_spill] sm:$0xff]  ;;  %v3915_v1 = vpack.c.bf16 %v11248_v11, %v11247_v17  ;;  %v11260_v17 = vld [vmem:[#allocation614_spill] sm:$0xff]  ;;  %v11262_v11 = vld [vmem:[#allocation629_spill] sm:$0xff] }
 0x41b   : > { %v3785_v13 = vpack.c.bf16 %v11242_v8, %v11241_v10  ;;  %v11250_v36 = vld [vmem:[#allocation596_spill] sm:$0xff]  ;;  %v11255_v8 = vld [vmem:[#allocation607_spill] sm:$0xff] }
 0x41c   : > { %3778 = vmatpush1.bf16.msra.mxu0 %v3777_v7  ;;  %v11243_v7 = vld [vmem:[#allocation574_spill] sm:$0xff] }
 0x41d   : > { %3906 = vmatpush1.bf16.msra.mxu1 %v3905_v14  ;;  %3780 = vmatprep.subr.bf16.mxu0 %v3779_v15  ;;  %v3913_v14 = vpack.c.bf16 %v11244_v16, %v11243_v7  ;;  %v11245_v15 = vld [vmem:[#allocation589_spill] sm:$0xff]  ;;  %v11256_v7 = vld [vmem:[#allocation615_spill] sm:$0xff] }
 0x41e   : > { %3908 = vmatprep.subr.bf16.mxu1 %v3907_v18  ;;  %v3787_v0 = vpack.c.bf16 %v11246_v26, %v11245_v15  ;;  %v11249_v18 = vld [vmem:[#allocation588_spill] sm:$0xff]  ;;  %v3919_v16 = vpack.c.bf16 %v11256_v7, %v11255_v8  ;;  %v11268_v8 = vld [vmem:[#allocation630_spill] sm:$0xff]  ;;  %v11270_v7 = vld [vmem:[#allocation645_spill] sm:$0xff] }
 0x41f   : > { %v3789_v9 = vpack.c.bf16 %v11250_v36, %v11249_v18  ;;  %v11258_v15 = vld [vmem:[#allocation612_spill] sm:$0xff]  ;;  %v11263_v36 = vld [vmem:[#allocation623_spill] sm:$0xff] }
 0x420   : > { %3782 = vmatpush1.bf16.msra.mxu0 %v3781_v12  ;;  %v11251_v12 = vld [vmem:[#allocation590_spill] sm:$0xff] }
 0x421   : > { %3910 = vmatpush1.bf16.msra.mxu1 %v3909_v4  ;;  %3784 = vmatprep.subr.bf16.mxu0 %v3783_v5  ;;  %v3917_v4 = vpack.c.bf16 %v11252_v20, %v11251_v12  ;;  %v11253_v5 = vld [vmem:[#allocation605_spill] sm:$0xff]  ;;  %v11264_v12 = vld [vmem:[#allocation631_spill] sm:$0xff] }
 0x422   : > { %3912 = vmatprep.subr.bf16.mxu1 %v3911_v2  ;;  %v3791_v10 = vpack.c.bf16 %v11254_v58, %v11253_v5  ;;  %v11257_v2 = vld [vmem:[#allocation604_spill] sm:$0xff]  ;;  %v3923_v20 = vpack.c.bf16 %v11264_v12, %v11263_v36  ;;  %v11276_v36 = vld [vmem:[#allocation646_spill] sm:$0xff]  ;;  %v11278_v12 = vld [vmem:[#allocation661_spill] sm:$0xff] }
 0x423   : > { %v3793_v26 = vpack.c.bf16 %v11258_v15, %v11257_v2  ;;  %v11266_v5 = vld [vmem:[#allocation628_spill] sm:$0xff]  ;;  %v11271_v15 = vld [vmem:[#allocation639_spill] sm:$0xff] }
 0x424   : > { %3786 = vmatpush1.bf16.msra.mxu0 %v3785_v13  ;;  %v11259_v13 = vld [vmem:[#allocation606_spill] sm:$0xff] }
 0x425   : > { %3914 = vmatpush1.bf16.msra.mxu1 %v3913_v14  ;;  %3788 = vmatprep.subr.bf16.mxu0 %v3787_v0  ;;  %v3921_v14 = vpack.c.bf16 %v11260_v17, %v11259_v13  ;;  %v11261_v0 = vld [vmem:[#allocation621_spill] sm:$0xff]  ;;  %v11272_v13 = vld [vmem:[#allocation647_spill] sm:$0xff] }
 0x426   : > { %3916 = vmatprep.subr.bf16.mxu1 %v3915_v1  ;;  %v3795_v18 = vpack.c.bf16 %v11262_v11, %v11261_v0  ;;  %v11265_v1 = vld [vmem:[#allocation620_spill] sm:$0xff]  ;;  %v3927_v17 = vpack.c.bf16 %v11272_v13, %v11271_v15  ;;  %v11284_v15 = vld [vmem:[#allocation662_spill] sm:$0xff]  ;;  %v11286_v13 = vld [vmem:[#allocation677_spill] sm:$0xff] }
 0x427   : > { %v3797_v58 = vpack.c.bf16 %v11266_v5, %v11265_v1  ;;  %v11274_v0 = vld [vmem:[#allocation644_spill] sm:$0xff]  ;;  %v11279_v5 = vld [vmem:[#allocation655_spill] sm:$0xff] }
 0x428   : > { %3790 = vmatpush1.bf16.msra.mxu0 %v3789_v9  ;;  %v11267_v9 = vld [vmem:[#allocation622_spill] sm:$0xff] }
 0x429   : > { %3918 = vmatpush1.bf16.msra.mxu1 %v3917_v4  ;;  %3792 = vmatprep.subr.bf16.mxu0 %v3791_v10  ;;  %v3925_v4 = vpack.c.bf16 %v11268_v8, %v11267_v9  ;;  %v11269_v10 = vld [vmem:[#allocation637_spill] sm:$0xff]  ;;  %v11280_v9 = vld [vmem:[#allocation663_spill] sm:$0xff] }
 0x42a   : > { %3920 = vmatprep.subr.bf16.mxu1 %v3919_v16  ;;  %v3799_v2 = vpack.c.bf16 %v11270_v7, %v11269_v10  ;;  %v11273_v16 = vld [vmem:[#allocation636_spill] sm:$0xff]  ;;  %v3931_v8 = vpack.c.bf16 %v11280_v9, %v11279_v5  ;;  %v11292_v5 = vld [vmem:[#allocation678_spill] sm:$0xff]  ;;  %v11294_v9 = vld [vmem:[#allocation693_spill] sm:$0xff] }
 0x42b   : > { %v3801_v11 = vpack.c.bf16 %v11274_v0, %v11273_v16  ;;  %v11282_v10 = vld [vmem:[#allocation660_spill] sm:$0xff]  ;;  %v11287_v0 = vld [vmem:[#allocation671_spill] sm:$0xff] }
 0x42c   : > { %3794 = vmatpush1.bf16.msra.mxu0 %v3793_v26  ;;  %v11275_v26 = vld [vmem:[#allocation638_spill] sm:$0xff] }
 0x42d   : > { %3922 = vmatpush1.bf16.msra.mxu1 %v3921_v14  ;;  %3796 = vmatprep.subr.bf16.mxu0 %v3795_v18  ;;  %v3929_v14 = vpack.c.bf16 %v11276_v36, %v11275_v26  ;;  %v11277_v18 = vld [vmem:[#allocation653_spill] sm:$0xff]  ;;  %v11288_v26 = vld [vmem:[#allocation679_spill] sm:$0xff] }
 0x42e   : > { %3924 = vmatprep.subr.bf16.mxu1 %v3923_v20  ;;  %v3803_v1 = vpack.c.bf16 %v11278_v12, %v11277_v18  ;;  %v11281_v20 = vld [vmem:[#allocation652_spill] sm:$0xff]  ;;  %v3935_v36 = vpack.c.bf16 %v11288_v26, %v11287_v0  ;;  %v11300_v0 = vld [vmem:[#allocation694_spill] sm:$0xff]  ;;  %v11302_v26 = vld [vmem:[#allocation709_spill] sm:$0xff] }
 0x42f   : > { %v3805_v7 = vpack.c.bf16 %v11282_v10, %v11281_v20  ;;  %v11290_v18 = vld [vmem:[#allocation676_spill] sm:$0xff]  ;;  %v11295_v10 = vld [vmem:[#allocation687_spill] sm:$0xff] }
 0x430   : > { %3798 = vmatpush1.bf16.msra.mxu0 %v3797_v58  ;;  %v11283_v58 = vld [vmem:[#allocation654_spill] sm:$0xff] }
 0x431   : > { %3926 = vmatpush1.bf16.msra.mxu1 %v3925_v4  ;;  %3800 = vmatprep.subr.bf16.mxu0 %v3799_v2  ;;  %v3933_v4 = vpack.c.bf16 %v11284_v15, %v11283_v58  ;;  %v11285_v2 = vld [vmem:[#allocation669_spill] sm:$0xff]  ;;  %v11296_v58 = vld [vmem:[#allocation695_spill] sm:$0xff] }
 0x432   : > { %3928 = vmatprep.subr.bf16.mxu1 %v3927_v17  ;;  %v3807_v16 = vpack.c.bf16 %v11286_v13, %v11285_v2  ;;  %v11289_v17 = vld [vmem:[#allocation668_spill] sm:$0xff]  ;;  %v3939_v15 = vpack.c.bf16 %v11296_v58, %v11295_v10  ;;  %v11308_v10 = vld [vmem:[#allocation710_spill] sm:$0xff]  ;;  %v11310_v58 = vld [vmem:[#allocation725_spill] sm:$0xff] }
 0x433   : > { %v3809_v12 = vpack.c.bf16 %v11290_v18, %v11289_v17  ;;  %v11298_v2 = vld [vmem:[#allocation692_spill] sm:$0xff]  ;;  %v11303_v18 = vld [vmem:[#allocation703_spill] sm:$0xff] }
 0x434   : > { %3802 = vmatpush1.bf16.msra.mxu0 %v3801_v11  ;;  %v11291_v11 = vld [vmem:[#allocation670_spill] sm:$0xff] }
 0x435   : > { %3930 = vmatpush1.bf16.msra.mxu1 %v3929_v14  ;;  %3804 = vmatprep.subr.bf16.mxu0 %v3803_v1  ;;  %v3937_v14 = vpack.c.bf16 %v11292_v5, %v11291_v11  ;;  %v11293_v1 = vld [vmem:[#allocation685_spill] sm:$0xff]  ;;  %v11304_v11 = vld [vmem:[#allocation711_spill] sm:$0xff] }
 0x436   : > { %3932 = vmatprep.subr.bf16.mxu1 %v3931_v8  ;;  %v3811_v20 = vpack.c.bf16 %v11294_v9, %v11293_v1  ;;  %v11297_v8 = vld [vmem:[#allocation684_spill] sm:$0xff]  ;;  %v3943_v5 = vpack.c.bf16 %v11304_v11, %v11303_v18  ;;  %v11316_v18 = vld [vmem:[#allocation726_spill] sm:$0xff]  ;;  %v11318_v11 = vld [vmem:[#allocation741_spill] sm:$0xff] }
 0x437   : > { %v3813_v13 = vpack.c.bf16 %v11298_v2, %v11297_v8  ;;  %v11306_v1 = vld [vmem:[#allocation708_spill] sm:$0xff]  ;;  %v11311_v2 = vld [vmem:[#allocation719_spill] sm:$0xff] }
 0x438   : > { %3806 = vmatpush1.bf16.msra.mxu0 %v3805_v7  ;;  %v11299_v7 = vld [vmem:[#allocation686_spill] sm:$0xff] }
 0x439   : > { %3934 = vmatpush1.bf16.msra.mxu1 %v3933_v4  ;;  %3808 = vmatprep.subr.bf16.mxu0 %v3807_v16  ;;  %v3941_v4 = vpack.c.bf16 %v11300_v0, %v11299_v7  ;;  %v11301_v16 = vld [vmem:[#allocation701_spill] sm:$0xff]  ;;  %v11312_v7 = vld [vmem:[#allocation727_spill] sm:$0xff] }
 0x43a   : > { %3936 = vmatprep.subr.bf16.mxu1 %v3935_v36  ;;  %v3815_v17 = vpack.c.bf16 %v11302_v26, %v11301_v16  ;;  %v11305_v36 = vld [vmem:[#allocation700_spill] sm:$0xff]  ;;  %v3947_v0 = vpack.c.bf16 %v11312_v7, %v11311_v2  ;;  %v11324_v2 = vld [vmem:[#allocation742_spill] sm:$0xff] }
 0x43b   : > { %v3817_v9 = vpack.c.bf16 %v11306_v1, %v11305_v36  ;;  %v11314_v16 = vld [vmem:[#allocation724_spill] sm:$0xff]  ;;  %v11319_v1 = vld [vmem:[#allocation735_spill] sm:$0xff] }
 0x43c   : > { %3810 = vmatpush1.bf16.msra.mxu0 %v3809_v12  ;;  %v11307_v12 = vld [vmem:[#allocation702_spill] sm:$0xff] }
 0x43d   : > { %3938 = vmatpush1.bf16.msra.mxu1 %v3937_v14  ;;  %3812 = vmatprep.subr.bf16.mxu0 %v3811_v20  ;;  %v3945_v14 = vpack.c.bf16 %v11308_v10, %v11307_v12  ;;  %v11309_v20 = vld [vmem:[#allocation717_spill] sm:$0xff]  ;;  %v11320_v12 = vld [vmem:[#allocation743_spill] sm:$0xff] }
 0x43e   : > { %3940 = vmatprep.subr.bf16.mxu1 %v3939_v15  ;;  %v3819_v8 = vpack.c.bf16 %v11310_v58, %v11309_v20  ;;  %v11313_v15 = vld [vmem:[#allocation716_spill] sm:$0xff]  ;;  %v3951_v10 = vpack.c.bf16 %v11320_v12, %v11319_v1 }
 0x43f   : > { %v3821_v26 = vpack.c.bf16 %v11314_v16, %v11313_v15  ;;  %v11322_v20 = vld [vmem:[#allocation740_spill] sm:$0xff]  ;;  %v11325_v16 = vld [vmem:[#allocation6_spill] sm:$0xff] }
 0x440   : > { %3814 = vmatpush1.bf16.msra.mxu0 %v3813_v13  ;;  %v11315_v13 = vld [vmem:[#allocation718_spill] sm:$0xff]  ;;  %v11330_v1 = vld [vmem:[#allocation4_spill] sm:$0xff] }
 0x441   : > { %3942 = vmatpush1.bf16.msra.mxu1 %v3941_v4  ;;  %3816 = vmatprep.subr.bf16.mxu0 %v3815_v17  ;;  %v3949_v4 = vpack.c.bf16 %v11316_v18, %v11315_v13  ;;  %v11317_v17 = vld [vmem:[#allocation733_spill] sm:$0xff]  ;;  %v11326_v13 = vld [vmem:[#allocation7_spill] sm:$0xff] }
 0x442   : > { %3944 = vmatprep.subr.bf16.mxu1 %v3943_v5  ;;  %v3823_v36 = vpack.c.bf16 %v11318_v11, %v11317_v17  ;;  %v11321_v5 = vld [vmem:[#allocation732_spill] sm:$0xff]  ;;  %v11328_v17 = vld [vmem:[#allocation3_spill] sm:$0xff] }
 0x443   : > { %v3825_v58 = vpack.c.bf16 %v11322_v20, %v11321_v5 }
 0x444   : > { %3818 = vmatpush1.bf16.msra.mxu0 %v3817_v9  ;;  %v11323_v9 = vld [vmem:[#allocation734_spill] sm:$0xff] }
 0x445   : > { %3946 = vmatpush1.bf16.msra.mxu1 %v3945_v14  ;;  %3820 = vmatprep.subr.bf16.mxu0 %v3819_v8  ;;  %v3953_v14 = vpack.c.bf16 %v11324_v2, %v11323_v9  ;;  %v11332_v2 = vld [vmem:[#allocation8_spill] sm:$0xff] }
 0x446   : > { %3948 = vmatprep.subr.bf16.mxu1 %v3947_v0 }
 0x448   : > { %3822 = vmatpush1.bf16.msra.mxu0 %v3821_v26 }
 0x449   : > { %3950 = vmatpush1.bf16.msra.mxu1 %v3949_v4  ;;  %3824 = vmatprep.subr.bf16.mxu0 %v3823_v36  ;;  %v11327_v4 = vld [vmem:[#allocation5_spill] sm:$0xff] }
 0x44a   : > { %3952 = vmatprep.subr.bf16.mxu1 %v3951_v10  ;;  %v11329_v11 = vrot.slane %v11327_v4, %v11328_v17  ;;  %v11331_v12 = vrot.slane %v11327_v4, %v11330_v1  ;;  %v11336_v4 = vld [vmem:[#allocation745_spill] sm:$0xff] }
 0x44c   : > { %3826 = vmatpush1.bf16.msra.mxu0 %v3825_v58 }
 0x44d   : > { %3954 = vmatpush1.bf16.msra.mxu1 %v3953_v14 }
 0x44f   : > { %2259 = vmatmul.mubr.f32.vlgmr.msra.gmra.mrb[6].mxu0 %v11080_v6 }
 0x450   : > { %2401 = vmatmul.mubr.f32.vlgmr.msra.gmra.mrb[6].mxu1 %v11080_v6 }
 0x4a2   : > { %v1976_v8 = vpop.f32.mrb[4].mxu0  ;;  %v2118_v7 = vpop.f32.mrb[4].mxu1 }
 0x4a3   : > { %v1978_v0 = vpop.f32.mrb[5].mxu0  ;;  %v2120_v15 = vpop.f32.mrb[5].mxu1  ;;  %v4077_v26 = vadd.f32 %v2118_v7, %v11325_v16  ;;  %v4075_v36 = vadd.f32 %v1976_v8, %v11329_v11  ;;  %v11333_v16 = vld [vmem:[#allocation9_spill] sm:$0xff]  ;;  %v11334_v8 = vld [vmem:[#allocation10_spill] sm:$0xff] }
 0x4a4   : > { %v4078_v18 = vadd.f32 %v2120_v15, %v11326_v13  ;;  %v4076_v10 = vadd.f32 %v1978_v0, %v11331_v12  ;;  %v11335_v0 = vld [vmem:[#allocation11_spill] sm:$0xff] }
 0x4a5   : > { %v2415_v5 = vmul.f32 0.5, %v4077_v26  ;;  %v2407_v58 = vmul.f32 0.5, %v4075_v36 }
 0x4a6   : > { %v2416_v20 = vmul.f32 0.5, %v4078_v18  ;;  %v2408_v6 = vmul.f32 0.5, %v4076_v10 }
 0x4a7   : > { %4186 = vtanh.f32 %v2415_v5 }
 0x4a8   : > { %4188 = vtanh.f32 %v2416_v20 }
 0x4a9   : > { %4190 = vtanh.f32 %v2407_v58 }
 0x4aa   : > { %4192 = vtanh.f32 %v2408_v6 }
 0x4b1   : > { %v4187_v1 = vpop.eup %4186 }
 0x4b2   : > { %v4189_v18 = vpop.eup %4188  ;;  %v2419_v10 = vmul.f32 0.5, %v4187_v1 }
 0x4b3   : > { %v4191_v36 = vpop.eup %4190  ;;  %v2420_v20 = vmul.f32 0.5, %v4189_v18 }
 0x4b4   : > { %v4193_v12 = vpop.eup %4192  ;;  %v2411_v6 = vmul.f32 0.5, %v4191_v36 }
 0x522   : > { %v2260_v9 = vpop.f32.mrb[6].mxu0 }
 0x523   : > { %v4079_v14 = vadd.f32 %v2260_v9, %v11332_v2  ;;  %v2402_v7 = vpop.f32.mrb[6].mxu1  ;;  %v2262_v15 = vpop.f32.mrb[7].mxu0  ;;  %v2412_v9 = vmul.f32 0.5, %v4193_v12  ;;  %v2421_v2 = vadd.f32 0.5, %v2419_v10 }
 0x524   : > { %v4081_v13 = vadd.f32 %v2402_v7, %v11333_v16  ;;  %v4080_v17 = vadd.f32 %v2262_v15, %v11334_v8  ;;  %v2404_v11 = vpop.f32.mrb[7].mxu1  ;;  %v2422_v7 = vadd.f32 0.5, %v2420_v20  ;;  %v2413_v15 = vadd.f32 0.5, %v2411_v6 }
 0x525   : > { %4194 = vtanh.f32 %v4079_v14  ;;  %v4082_v26 = vadd.f32 %v2404_v11, %v11335_v0  ;;  %v2414_v8 = vadd.f32 0.5, %v2412_v9  ;;  %v2433_v11 = vmul.f32 %v11336_v4, %v2421_v2  ;;  %v2443_v4 = vld [vmem:[%s9807_s1] sm:$0xff] (%p1485_p0)  ;;  %v2528_v9 = vld [vmem:[%s9811_s9 + $0x8] sm:$0xff] (%p1485_p0) }
 0x526   : > { %4196 = vtanh.f32 %v4080_v17  ;;  %v2425_v5 = vmul.f32 0.5, %v4081_v13  ;;  %v11337_v17 = vld [vmem:[#allocation744_spill] sm:$0xff]  ;;  %v3955_v23 = vpack.c.bf16 (%p1485_p0), %v2530_v60, %v2528_v9  ;;  %v2664_v60 = vld [vmem:[%s9813_s11 + $0xa0] sm:$0xff] (%p1485_p0) }
 0x527   : > { %v2426_v58 = vmul.f32 0.5, %v4082_v26  ;;  %v2434_v21 = vmul.f32 %v11337_v17, %v2422_v7  ;;  %v2556_v2 = vld [vmem:[%s9811_s9 + $0xe8] sm:$0xff] (%p1485_p0)  ;;  %v2558_v7 = vld [vmem:[%s9811_s9 + $0xf8] sm:$0xff] (%p1485_p0)  ;;  %v3995_v63 = vpack.c.bf16 (%p1485_p0), %v2665_v62, %v2664_v60 }
 0x528   : > { %4198 = vtanh.f32 %v2425_v5  ;;  %3956 = vmatprep.subr.bf16.mxu1 (%p1485_p0), %v3955_v23  ;;  %v2648_v23 = vld [vmem:[%s9813_s11 + $0x20] sm:$0xff] (%p1485_p0)  ;;  %v2703_v60 = vld [vmem:[%s9813_s11 + $0x1d8] sm:$0xff] (%p1485_p0) }
 0x529   : > { %4200 = vtanh.f32 %v2426_v58  ;;  %3958 = vmatpush1.bf16.msra.mxu1 (%p1485_p0), %v3957_v24  ;;  %v2649_v24 = vld [vmem:[%s9813_s11 + $0x28] sm:$0xff] (%p1485_p0) }
 0x52a   :  { %3960 = vmatprep.subr.bf16.mxu1 (%p1485_p0), %v3959_v32  ;;  %v3997_v31 = vpack.c.bf16 (%p1485_p0), %v2649_v24, %v2648_v23  ;;  %v3999_v32 = vpack.c.bf16 (%p1485_p0), %v2667_v30, %v2666_v29  ;;  %v2686_v23 = vld [vmem:[%s9813_s11 + $0x150] sm:$0xff] (%p1485_p0)  ;;  %v2687_v24 = vld [vmem:[%s9813_s11 + $0x158] sm:$0xff] (%p1485_p0)  ;;  %v2704_v29 = vld [vmem:[%s9813_s11 + $0x1e0] sm:$0xff] (%p1485_p0) }
 0x52b   :  { %v2705_v30 = vld [vmem:[%s9813_s11 + $0x1e8] sm:$0xff] (%p1485_p0) }
 0x52d   :  { %3962 = vmatpush1.bf16.msra.mxu1 (%p1485_p0), %v3961_v38  ;;  %v2669_v38 = vld [vmem:[%s9813_s11 + $0xc8] sm:$0xff] (%p1485_p0) }
 0x52e   :  { %3964 = vmatprep.subr.bf16.mxu1 (%p1485_p0), %v3963_v39  ;;  %v4001_v39 = vpack.c.bf16 (%p1485_p0), %v2651_v35, %v2650_v33  ;;  %v4003_v40 = vpack.c.bf16 (%p1485_p0), %v2669_v38, %v2668_v37  ;;  %v2674_v33 = vld [vmem:[%s9813_s11 + $0xf0] sm:$0xff] (%p1485_p0)  ;;  %v2675_v35 = vld [vmem:[%s9813_s11 + $0xf8] sm:$0xff] (%p1485_p0)  ;;  %v2688_v37 = vld [vmem:[%s9813_s11 + $0x160] sm:$0xff] (%p1485_p0) }
 0x52f   : > { %v4195_v16 = vpop.eup %4194  ;;  %v4015_v38 = vpack.c.bf16 (%p1485_p0), %v2675_v35, %v2674_v33 }
 0x530   : > { %v4197_v14 = vpop.eup %4196  ;;  %v2435_v0 = vmul.f32 %v4195_v16, %v2413_v15  ;;  %v3983_v15 = vpack.c.bf16 (%p1485_p0), %v2558_v7, %v2556_v2  ;;  %v2555_v16 = vld [vmem:[%s9811_s9 + $0xe0] sm:$0xff] (%p1485_p0)  ;;  %v2678_v2 = vld [vmem:[%s9813_s11 + $0x110] sm:$0xff] (%p1485_p0)  ;;  %v2679_v7 = vld [vmem:[%s9813_s11 + $0x118] sm:$0xff] (%p1485_p0) }
 0x531   : > { %v2436_v22 = vmul.f32 %v4197_v14, %v2414_v8  ;;  %3966 = vmatpush1.bf16.msra.mxu1 (%p1485_p0), %v3965_v47  ;;  %v2557_v8 = vld [vmem:[%s9811_s9 + $0xf0] sm:$0xff] (%p1485_p0)  ;;  %v2671_v47 = vld [vmem:[%s9813_s11 + $0xd8] sm:$0xff] (%p1485_p0) }
 0x532   : > { %v2437_v36 = vadd.f32 %v2435_v0, %v2433_v11   ;;  %v4199_v13 = vpop.eup %4198  ;;  %3968 = vmatprep.subr.bf16.mxu1 (%p1485_p0), %v3967_v48  ;;  %v3985_v14 = vpack.c.bf16 (%p1485_p0), %v2557_v8, %v2555_v16  ;;  %v2660_v11 = vld [vmem:[%s9813_s11 + $0x80] sm:$0xff] (%p1485_p0)  ;;  %v4005_v48 = vpack.c.bf16 (%p1485_p0), %v2653_v45, %v2652_v43  ;;  %v4007_v49 = vpack.c.bf16 (%p1485_p0), %v2671_v47, %v2670_v46  ;;  %v2697_v16 = vld [vmem:[%s9813_s11 + $0x1a8] sm:$0xff] (%p1485_p0)  ;;  %v2659_v43 = vld [vmem:[%s9813_s11 + $0x78] sm:$0xff] (%p1485_p0) }
 0x533   : > { %v2438_v0 = vadd.f32 %v2436_v22, %v2434_v21   ;;  %v4201_v1 = vpop.eup %4200  ;;  %v2429_v26 = vmul.f32 0.5, %v4199_v13  ;;  %v11341_v21 = vmov (%p1485_p0), 0.0   ;;  %v2444_v22 = vld [vmem:[%s9809_s7] sm:$0xff] (%p1485_p0)  ;;  %v4025_v8 = vpack.c.bf16 (%p1485_p0), %v2679_v7, %v2678_v2  ;;  %v2706_v47 = vld [vmem:[%s9813_s11 + $0x1f0] sm:$0xff] (%p1485_p0) }
 0x534   : > { %4202 = vtanh.f32 %v2437_v36  ;;  %v2430_v18 = vmul.f32 0.5, %v4201_v1  ;;  %3115 = vmatprep.subr.mxu0 (%p1485_p0), %v11341_v21  ;;  %2635 = vmatprep.mubr.f32.mxu1 (%p1485_p0), %v11341_v21  ;;  %v3981_v36 = vpack.c.bf16 (%p1485_p0), %v2553_v3, %v2551_v42  ;;  %v2645_v1 = vld [vmem:[%s9813_s11 + $0x8] sm:$0xff] (%p1485_p0)  ;;  %v2559_v2 = vld [vmem:[%s9812_s10] sm:$0x3] (%p1485_p0) }
 0x535   : > { %4204 = vtanh.f32 %v2438_v0  ;;  %v2431_v12 = vadd.f32 0.5, %v2429_v26  ;;  %3116 = vmatpush3.msra.mxu0 (%p1485_p0), %v2444_v22  ;;  %3117 = vmatprep.mubr.msk.f32.mxu0 (%p1485_p0), %vm4279_vm2, %v11341_v21  ;;  %v2661_v0 = vld [vmem:[%s9813_s11 + $0x88] sm:$0xff] (%p1485_p0)  ;;  %v2646_v22 = vld [vmem:[%s9813_s11 + $0x10] sm:$0xff] (%p1485_p0)  ;;  %v11342_v7 = vld [vmem:[#allocation3_spill] sm:$0xff] (%p1485_p0) }
 0x536   : > { %v2432_v5 = vadd.f32 0.5, %v2430_v18  ;;  %3118 = vmatmul.mubr.msk.f32.vlgmr.msra.gmra.mrb[0].mxu0 (%p1485_p0), %vm2452_vm1, %v2443_v4  ;;  %3970 = vmatpush1.bf16.msra.mxu1 (%p1485_p0), %v3969_v53  ;;  %v3987_v13 = vpack.c.bf16 (%p1485_p0), %v2661_v0, %v2660_v11  ;;  %v2693_v18 = vld [vmem:[%s9813_s11 + $0x188] sm:$0xff] (%p1485_p0)  ;;  %v2647_v4 = vld [vmem:[%s9813_s11 + $0x18] sm:$0xff] (%p1485_p0)  ;;  %v2680_v11 = vld [vmem:[%s9813_s11 + $0x120] sm:$0xff] (%p1485_p0) }
 0x537   :  { %3972 = vmatprep.subr.bf16.mxu1 (%p1485_p0), %v3971_v54  ;;  %v3993_v9 = vpack.c.bf16 (%p1485_p0), %v2647_v4, %v2646_v22  ;;  %v2673_v53 = vld [vmem:[%s9813_s11 + $0xe8] sm:$0xff] (%p1485_p0)  ;;  %v4009_v54 = vpack.c.bf16 (%p1485_p0), %v2655_v51, %v2654_v50  ;;  %v2684_v22 = vld [vmem:[%s9813_s11 + $0x140] sm:$0xff] (%p1485_p0)  ;;  %v2690_v50 = vld [vmem:[%s9813_s11 + $0x170] sm:$0xff] (%p1485_p0) }
 0x538   :  { %3988 = vmatprep.subr.bf16.mxu0 (%p1485_p0), %v3987_v13  ;;  %v4011_v55 = vpack.c.bf16 (%p1485_p0), %v2673_v53, %v2672_v52  ;;  %v2681_v0 = vld [vmem:[%s9813_s11 + $0x128] sm:$0xff] (%p1485_p0)  ;;  %v2699_v13 = vld [vmem:[%s9813_s11 + $0x1b8] sm:$0xff] (%p1485_p0)  ;;  %v2856_v53 = vld [vmem:[%s9815_s13] sm:$0xff] (%p1485_p0) }
 0x539   :  { %v2685_v4 = vld [vmem:[%s9813_s11 + $0x148] sm:$0xff] (%p1485_p0)  ;;  %v2691_v51 = vld [vmem:[%s9813_s11 + $0x178] sm:$0xff] (%p1485_p0) }
 0x53a   :  { %3974 = vmatpush1.bf16.msra.mxu1 (%p1485_p0), %v3973_v59  ;;  %v3021_v59 = vld [vmem:[%s9810_s8] ss:$0 sm:$0xff] (%p1485_p0)  ;;  %v4037_v62 = vpack.c.bf16 (%p1485_p0), %v2685_v4, %v2684_v22  ;;  %v4049_v52 = vpack.c.bf16 (%p1485_p0), %v2691_v51, %v2690_v50  ;;  %v2871_v22 = vld [vmem:[%s9815_s13 + $0x78] sm:$0xff] (%p1485_p0) }
 0x53b   :  { %3976 = vmatprep.subr.bf16.mxu1 (%p1485_p0), %v3975_v25  ;;  %v2676_v25 = vld [vmem:[%s9813_s11 + $0x100] sm:$0xff] (%p1485_p0) }
 0x53c   :  { %1487 = sbr.rel (!%p1485_p0) target bundleno = 535 (0x217), region = 88  ;;  %v4021_v42 = vpack.c.bf16 (%p1485_p0), %v2677_v28, %v2676_v25  ;;  %v2862_v28 = vld [vmem:[%s9815_s13 + $0x30] sm:$0xff] (%p1485_p0) }
 0x53e   : > { %v4203_v10 = vpop.eup %4202  ;;  %3978 = vmatpush1.bf16.msra.mxu1 (%p1485_p0), %v3977_v19 }
 0x53f   : > { %v4205_v20 = vpop.eup %4204  ;;  %v9415_v17 = vmul.f32 %v4203_v10, %v2431_v12   ;;  %3980 = vmatprep.subr.bf16.mxu1 (%p1485_p0), %v3979_v27 }
 0x540   : > { %v2442_v6 = vmul.f32 %v4205_v20, %v2432_v5   ;;  %v2662_v5 = vld [vmem:[%s9813_s11 + $0x90] sm:$0xff] (%p1485_p0)  ;;  %v2663_v20 = vld [vmem:[%s9813_s11 + $0x98] sm:$0xff] (%p1485_p0) }
 0x541   : > { %v11338_v58 = vmov %v9415_v17 }
 0x542   : > { %v11339_v26 = vmov %v2442_v6  ;;  %v11340_v17 = vmov %v11338_v58  ;;  %2779 = vmatprep.mubr.f32.mxu0 (%p1485_p0), %v2442_v6  ;;  %3982 = vmatpush1.bf16.msra.mxu1 (%p1485_p0), %v3981_v36  ;;  %v3991_v6 = vpack.c.bf16 (%p1485_p0), %v2663_v20, %v2662_v5  ;;  %v4023_v36 = vpack.c.bf16 (%p1485_p0), %v2695_v41, %v2694_v34  ;;  %v2701_v5 = vld [vmem:[%s9813_s11 + $0x1c8] sm:$0xff] (%p1485_p0)  ;;  %v2864_v41 = vld [vmem:[%s9815_s13 + $0x40] sm:$0xff] (%p1485_p0) }
 0x543   :  { %3984 = vmatprep.subr.bf16.mxu1 %v3983_v15  ;;  %v2644_v17 = vld [vmem:[%s9813_s11] sm:$0xff] }
 0x544   :  { %v2692_v26 = vld [vmem:[%s9813_s11 + $0x180] sm:$0xff]  ;;  %v3989_v12 = vpack.c.bf16 %v2645_v1, %v2644_v17  ;;  %v2698_v17 = vld [vmem:[%s9813_s11 + $0x1b0] sm:$0xff]  ;;  %v4029_v1 = vpack.c.bf16 %v2681_v0, %v2680_v11 }
 0x545   :  { %v4019_v10 = vpack.c.bf16 %v2693_v18, %v2692_v26  ;;  %v2696_v15 = vld [vmem:[%s9813_s11 + $0x1a0] sm:$0xff]  ;;  %v4031_v26 = vpack.c.bf16 %v2699_v13, %v2698_v17  ;;  %v2682_v18 = vld [vmem:[%s9813_s11 + $0x130] sm:$0xff] }
 0x546   :  { %3986 = vmatpush1.bf16.msra.mxu1 %v3985_v14  ;;  %3990 = vmatpush3.bf16.msra.mxu0 %v3989_v12  ;;  %v4027_v14 = vpack.c.bf16 %v2697_v16, %v2696_v15  ;;  %v2683_v12 = vld [vmem:[%s9813_s11 + $0x138] sm:$0xff]  ;;  %v2564_v15 = vrot.slane %v2559_v2, %v11342_v7  ;;  %v11343_v16 = vld [vmem:[#allocation4_spill] sm:$0xff] }
 0x547   :  { %4020 = vmatprep.subr.bf16.mxu1 %v4019_v10  ;;  %3992 = vmatprep.subr.bf16.mxu0 %v3991_v6  ;;  %v2700_v10 = vld [vmem:[%s9813_s11 + $0x1c0] sm:$0xff]  ;;  %v4033_v20 = vpack.c.bf16 %v2683_v12, %v2682_v18 }
 0x548   :  { %v4035_v6 = vpack.c.bf16 %v2701_v5, %v2700_v10  ;;  %v2868_v12 = vld [vmem:[%s9815_s13 + $0x60] sm:$0xff]  ;;  %v2869_v10 = vld [vmem:[%s9815_s13 + $0x68] sm:$0xff] }
 0x54a   :  { %3994 = vmatpush3.bf16.msra.mxu0 %v3993_v9  ;;  %v2702_v9 = vld [vmem:[%s9813_s11 + $0x1d0] sm:$0xff] }
 0x54b   :  { %3996 = vmatprep.subr.bf16.mxu0 %v3995_v63  ;;  %v4039_v63 = vpack.c.bf16 %v2703_v60, %v2702_v9  ;;  %v3023_v9 = vld [vmem:[%s9814_s12] ss:$0 sm:$0xff] }
 0x54e   :  { %3998 = vmatpush3.bf16.msra.mxu0 %v3997_v31  ;;  %v4041_v31 = vpack.c.bf16 %v2687_v24, %v2686_v23 }
 0x54f   :  { %4000 = vmatprep.subr.bf16.mxu0 %v3999_v32  ;;  %v4043_v32 = vpack.c.bf16 %v2705_v30, %v2704_v29  ;;  %v3024_v30 = vld [vmem:[%s9816_s14] ss:$0 sm:$0xff] }
 0x552   :  { %4002 = vmatpush3.bf16.msra.mxu0 %v4001_v39  ;;  %v2689_v39 = vld [vmem:[%s9813_s11 + $0x168] sm:$0xff] }
 0x553   :  { %4004 = vmatprep.subr.bf16.mxu0 %v4003_v40  ;;  %v2658_v40 = vld [vmem:[%s9813_s11 + $0x70] sm:$0xff]  ;;  %v4045_v45 = vpack.c.bf16 %v2689_v39, %v2688_v37 }
 0x554   :  { %v4017_v46 = vpack.c.bf16 %v2659_v43, %v2658_v40 }
 0x556   :  { %4006 = vmatpush3.bf16.msra.mxu0 %v4005_v48  ;;  %v2707_v48 = vld [vmem:[%s9813_s11 + $0x1f8] sm:$0xff] }
 0x557   :  { %4008 = vmatprep.subr.bf16.mxu0 %v4007_v49  ;;  %v4047_v49 = vpack.c.bf16 %v2707_v48, %v2706_v47 }
 0x55a   :  { %4010 = vmatpush3.bf16.msra.mxu0 %v4009_v54  ;;  %v2857_v54 = vld [vmem:[%s9815_s13 + $0x8] sm:$0xff] }
 0x55b   :  { %4012 = vmatprep.subr.bf16.mxu0 %v4011_v55  ;;  %v2858_v55 = vld [vmem:[%s9815_s13 + $0x10] sm:$0xff]  ;;  %v4052_v57 = vpack.c.bf16 %v2857_v54, %v2856_v53 }
 0x55e   :  { %4014 = vmatpush3.bf16.msra.mxu0 %v4013_v44  ;;  %v2860_v44 = vld [vmem:[%s9815_s13 + $0x20] sm:$0xff] }
 0x55f   :  { %4016 = vmatprep.subr.bf16.mxu0 %v4015_v38 }
 0x562   :  { %4018 = vmatpush3.bf16.msra.mxu0 %v4017_v46 }
 0x563   :  { %4051 = vmatprep.subr.bf16.mxu0 %v4280_v56 }
 0x565   :  { %2780 = vmatmul.mubr.f32.vlgmr.msra.gmra.mrb[2].mxu0 %v11338_v58  ;;  %v2859_v58 = vld [vmem:[%s9815_s13 + $0x18] sm:$0xff] }
 0x566   :  { %3152 = vmatprep.mubr.msk.f32.mxu0 %vm4279_vm2, %v11341_v21  ;;  %4053 = vmatpush3.bf16.msra.mxu0 %v4052_v57  ;;  %v4055_v21 = vpack.c.bf16 %v2859_v58, %v2858_v55 }
 0x567   :  { %4054 = vmatprep.subr.bf16.mxu0 %v4280_v56 }
 0x56a   :  { %4056 = vmatpush3.bf16.msra.mxu0 %v4055_v21 }
 0x56b   :  { %4057 = vmatprep.subr.bf16.mxu0 %v4280_v56 }
 0x609   :  { %v2522_v61 = vpop.f32.mrb[0].mxu0 }
 0x60a   :  { %v2523_v19 = vadd.f32 %v3021_v59, %v2522_v61  ;;  %v3119_v27 = vpop.f32.mrb[1].mxu0  ;;  %v2861_v59 = vld [vmem:[%s9815_s13 + $0x28] sm:$0xff]  ;;  %v2863_v61 = vld [vmem:[%s9815_s13 + $0x38] sm:$0xff] }
 0x60b   :  { %v4058_v25 = vpack.c.bf16 %v2861_v59, %v2860_v44  ;;  %v4061_v34 = vpack.c.bf16 %v2863_v61, %v2862_v28 }
 0x60c   :  { %v2526_v3 = vmax.f32 %v2523_v19, 0.0  ;;  %v2865_v19 = vld [vmem:[%s9815_s13 + $0x48] sm:$0xff] }
 0x60d   :  { %4059 = vmatpush3.bf16.msra.mxu0 %v4058_v25  ;;  %v4064_v27 = vpack.c.bf16 %v2865_v19, %v2864_v41 }
 0x60e   :  { %2636 = vmatmul.mubr.f32.vlgmr.msra.gmra.mrb[0].mxu1 %v2526_v3  ;;  %4060 = vmatprep.subr.bf16.mxu0 %v4280_v56  ;;  %v2867_v3 = vld [vmem:[%s9815_s13 + $0x58] sm:$0xff] }
 0x60f   :  { %4022 = vmatpush3.bf16.msra.mxu1 %v4021_v42  ;;  %v2866_v42 = vld [vmem:[%s9815_s13 + $0x50] sm:$0xff] }
 0x610   :  { %4024 = vmatprep.subr.bf16.mxu1 %v4023_v36  ;;  %v4067_v36 = vpack.c.bf16 %v2867_v3, %v2866_v42 }
 0x611   :  { %4062 = vmatpush3.bf16.msra.mxu0 %v4061_v34 }
 0x612   :  { %4063 = vmatprep.subr.bf16.mxu0 %v4280_v56 }
 0x613   :  { %4026 = vmatpush3.bf16.msra.mxu1 %v4025_v8  ;;  %v2568_v8 = vrot.slane %v2559_v2, %v11343_v16 }
 0x614   :  { %4028 = vmatprep.subr.bf16.mxu1 %v4027_v14 }
 0x615   :  { %4065 = vmatpush3.bf16.msra.mxu0 %v4064_v27 }
 0x616   :  { %4066 = vmatprep.subr.bf16.mxu0 %v4280_v56 }
 0x617   :  { %4030 = vmatpush3.bf16.msra.mxu1 %v4029_v1 }
 0x618   :  { %4032 = vmatprep.subr.bf16.mxu1 %v4031_v26 }
 0x619   :  { %4068 = vmatpush3.bf16.msra.mxu0 %v4067_v36 }
 0x61a   :  { %4069 = vmatprep.subr.bf16.mxu0 %v4280_v56 }
 0x61b   :  { %4034 = vmatpush3.bf16.msra.mxu1 %v4033_v20  ;;  %v4070_v20 = vpack.c.bf16 %v2869_v10, %v2868_v12 }
 0x61c   :  { %4036 = vmatprep.subr.bf16.mxu1 %v4035_v6  ;;  %v2870_v6 = vld [vmem:[%s9815_s13 + $0x70] sm:$0xff] }
 0x61d   :  { %4071 = vmatpush3.bf16.msra.mxu0 %v4070_v20  ;;  %v4073_v4 = vpack.c.bf16 %v2871_v22, %v2870_v6 }
 0x61e   :  { %4072 = vmatprep.subr.bf16.mxu0 %v4280_v56 }
 0x61f   :  { %4038 = vmatpush3.bf16.msra.mxu1 %v4037_v62 }
 0x620   :  { %4040 = vmatprep.subr.bf16.mxu1 %v4039_v63 }
 0x621   :  { %4074 = vmatpush3.bf16.msra.mxu0 %v4073_v4 }
 0x623   :  { %4042 = vmatpush3.bf16.msra.mxu1 %v4041_v31 }
 0x624   :  { %4044 = vmatprep.subr.bf16.mxu1 %v4043_v32 }
 0x627   :  { %4046 = vmatpush3.bf16.msra.mxu1 %v4045_v45 }
 0x628   :  { %4048 = vmatprep.subr.bf16.mxu1 %v4047_v49 }
 0x62b   :  { %4050 = vmatpush3.bf16.msra.mxu1 %v4049_v52 }
 0x638   :  { %v3060_v26 = vpop.f32.mrb[2].mxu0 }
 0x639   :  { %v3061_v18 = vpop.f32.mrb[3].mxu0 }
 0x63a   :  { %v3062_v5 = vadd.f32 %v3061_v18, %v3060_v26 }
 0x63c   :  { %v2782_v60 = vadd.f32 %v3062_v5, %v3023_v9 }
 0x6e1   :  { %v2637_v14 = vpop.f32.mrb[0].mxu1 }
 0x6e2   :  { %v2638_v11 = vadd.f32 %v2637_v14, %v2564_v15  ;;  %v2639_v0 = vpop.f32.mrb[1].mxu1 }
 0x6e3   :  { %v2640_v17 = vadd.f32 %v2639_v0, %v2568_v8 }
 0x6e4   :  { %v2642_v1 = vmax.f32 %v2638_v11, 0.0 }
 0x6e5   :  { %v2643_v13 = vmax.f32 %v2640_v17, 0.0 }
 0x6e7   :  { %2849 = vmatprep.mubr.f32.mxu1 %v2643_v13 }
 0x6e8   :  { %2850 = vmatmul.mubr.f32.vlgmr.msra.gmra.mrb[2].mxu1 %v2642_v1 }
 0x7bb   :  { %v3095_v62 = vpop.f32.mrb[2].mxu1 }
 0x7bc   :  { %v3096_v63 = vpop.f32.mrb[3].mxu1 }
 0x7bd   :  { %v3097_v23 = vadd.f32 %v3096_v63, %v3095_v62 }
 0x7bf   :  { %v2852_v24 = vadd.f32 %v3097_v23, %v2782_v60 }
 0x7c1   :  { %v2855_v29 = vmax.f32 %v2852_v24, 0.0 }
 0x7c3   :  { %3153 = vmatmul.mubr.f32.vlgmr.msra.gmra.mrb[4].mxu0 %v2855_v29 }
 0x896   :  { %v2945_v31 = vpop.f32.mrb[4].mxu0 }
 0x897   :  { %v2946_v32 = vadd.f32 %v3024_v30, %v2945_v31  ;;  %v3154_v33 = vpop.f32.mrb[5].mxu0 }
 0x899   :  { %2950 = vst.msk [vmem:[%s9817_s15] sm:$0xff] %vm2949_vm3, %v2946_v32 }

</bundles_post_ra>
